<compile_context>
chip_gen: v7x
topology: tpu7x:2x2x1
jax: 0.10.0
libtpu: 0.0.40
codegen_flags: <defaults>
</compile_context>

<pallas_src>
import functools
import math

import jax
import jax.numpy as jnp
from jax import lax
from jax.experimental import pallas as pl
from jax.experimental.pallas import tpu as pltpu

# ----------------------------- model dimensions ------------------------------
B = 2            # batch size (also the LSTM "sequence length": 2-D input => unbatched)
S = 8            # token sequence length
VOCAB = 64
MAX_POS = 16
EMB = 128        # Electra embedding_size (koelectra-small style: != hidden)
HID = 256        # Electra hidden size == RNNClassifier input_size
N_HEADS = 4
HEAD_DIM = HID // N_HEADS
INTER = 512      # FFN intermediate size
N_LAYERS = 2     # small synthetic encoder depth
LSTM_HID = 128   # hidden_size(256) // num_directions(2)
NUM_CLASS = 5
LN_EPS = 1e-12

ROWS = B * S
PARAMS_PER_LAYER = 12
LAYER_KEYS = ("qkv_w", "qkv_b", "o_w", "o_b", "ln1_g", "ln1_b",
              "ff1_w", "ff1_b", "ff2_w", "ff2_b", "ln2_g", "ln2_b")


def _full_spec(shape):
    n = len(shape)
    return pl.BlockSpec(shape, lambda *_, _n=n: (0,) * _n)


# --------------------------- in-kernel math helpers ---------------------------
def _erf(x):
    # Abramowitz & Stegun 7.1.26 polynomial, |err| < 1.5e-7 (exact-GELU parity w/ HF Electra).
    a1, a2, a3, a4, a5 = 0.254829592, -0.284496736, 1.421413741, -1.453152027, 1.061405429
    p = 0.3275911
    ax = jnp.abs(x)
    t = 1.0 / (1.0 + p * ax)
    poly = ((((a5 * t + a4) * t + a3) * t + a2) * t + a1) * t
    y = 1.0 - poly * jnp.exp(-ax * ax)
    return jnp.where(x >= 0, y, -y)


def _gelu(x):
    return 0.5 * x * (1.0 + _erf(x * (1.0 / math.sqrt(2.0))))


def _layernorm(x, g, b):
    mu = jnp.mean(x, axis=-1, keepdims=True)
    var = jnp.mean((x - mu) ** 2, axis=-1, keepdims=True)
    return (x - mu) * lax.rsqrt(var + LN_EPS) * g + b


def _matmul(x, w_ref, b_ref=None):
    # Cast activations to the (bf16) weight dtype only at the MXU boundary; accumulate f32.
    y = jnp.dot(x.astype(w_ref.dtype), w_ref[...], preferred_element_type=jnp.float32)
    if b_ref is not None:
        y = y + b_ref[...]
    return y


# ------------------------------ the fused kernel -------------------------------
def _classifier_kernel(emb_ref, mask_ref, eln_g_ref, eln_b_ref, pw_ref, pb_ref, *rest):
    layer_refs = rest[: PARAMS_PER_LAYER * N_LAYERS]
    (wih_ref, whh_ref, bf_ref, br_ref,
     wo_ref, wob_ref, out_ref) = rest[PARAMS_PER_LAYER * N_LAYERS:]

    # ---- Electra embeddings: LayerNorm -> (dropout = identity) -> projection EMB->HID ----
    x = _layernorm(emb_ref[...].astype(jnp.float32), eln_g_ref[...], eln_b_ref[...])
    x = _matmul(x, pw_ref, pb_ref)                              # (ROWS, HID), stays in VMEM

    # Additive key mask computed in-kernel from the 0/1 float mask.
    mask_add = (1.0 - mask_ref[...]) * (-1e9)                   # (B, S)
    scale = 1.0 / math.sqrt(HEAD_DIM)

    # ---- encoder layers (statically unrolled; activations never leave VMEM) ----
    for l in range(N_LAYERS):
        (qkv_w, qkv_b, o_w, o_b, ln1_g, ln1_b,
         ff1_w, ff1_b, ff2_w, ff2_b, ln2_g, ln2_b) = \
            layer_refs[l * PARAMS_PER_LAYER:(l + 1) * PARAMS_PER_LAYER]

        # fused Q|K|V projection: one (ROWS,HID)@(HID,3*HID) matmul
        qkv = _matmul(x, qkv_w, qkv_b)                          # (ROWS, 3*HID)
        q = qkv[:, 0:HID]
        k = qkv[:, HID:2 * HID]
        v = qkv[:, 2 * HID:3 * HID]

        # per-batch attention, all heads assembled into a lane-dense (S, HID) context
        batch_ctx = []
        for b in range(B):
            rows = slice(b * S, (b + 1) * S)
            qb, kb, vb = q[rows], k[rows], v[rows]
            mb = mask_add[b:b + 1, :]                           # (1, S)
            head_ctx = []
            for h in range(N_HEADS):
                cols = slice(h * HEAD_DIM, (h + 1) * HEAD_DIM)
                qh, kh, vh = qb[:, cols], kb[:, cols], vb[:, cols]
                s = lax.dot_general(qh, kh, (((1,), (1,)), ((), ())),
                                    preferred_element_type=jnp.float32) * scale
                # key mask only; padded *query* rows are left unmasked -- harmless
                # because only the CLS row (position 0) is consumed downstream.
                s = s + mb
                s = s - jnp.max(s, axis=-1, keepdims=True)
                p = jnp.exp(s)
                p = p / jnp.sum(p, axis=-1, keepdims=True)
                head_ctx.append(jnp.dot(p, vh, preferred_element_type=jnp.float32))
            batch_ctx.append(jnp.concatenate(head_ctx, axis=1))  # (S, HID)
        ctx = jnp.concatenate(batch_ctx, axis=0)                 # (ROWS, HID)

        attn_out = _matmul(ctx, o_w, o_b)
        x = _layernorm(attn_out + x, ln1_g[...], ln1_b[...])     # dropout = identity
        ff = _gelu(_matmul(x, ff1_w, ff1_b))
        ff = _matmul(ff, ff2_w, ff2_b)
        x = _layernorm(ff + x, ln2_g[...], ln2_b[...])           # dropout = identity

    # ---- CLS tokens (rows 0, S, ...) -> (B, HID) ----
    cls = jnp.concatenate([x[b * S:b * S + 1, :] for b in range(B)], axis=0)

    # ---- fused bidirectional LSTM over the unbatched length-B CLS sequence ----
    # Directions stacked as a 2-row "batch" (row 0 = forward, row 1 = reverse).
    # Input-to-hidden contributions for all timesteps & both directions precomputed
    # as one (B, HID) @ (HID, 2*4H) matmul; the 2-step recurrence is statically unrolled.
    HG = 4 * LSTM_HID
    xi_all = _matmul(cls, wih_ref)                               # (B, 2*HG): [:, :HG] fwd, [:, HG:] rev
    bias_f = bf_ref[...]
    bias_r = br_ref[...]

    h_state = jnp.zeros((2, LSTM_HID), jnp.float32)
    c_state = jnp.zeros((2, LSTM_HID), jnp.float32)
    h_hist = []
    for t in range(B):                                           # static unroll (B == 2)
        hh_all = _matmul(h_state, whh_ref)                       # (2, 2*HG)
        g_f = xi_all[t:t + 1, 0:HG] + hh_all[0:1, 0:HG] + bias_f
        g_r = xi_all[B - 1 - t:B - t, HG:2 * HG] + hh_all[1:2, HG:2 * HG] + bias_r
        gates = jnp.concatenate([g_f, g_r], axis=0)              # (2, 4H); PyTorch order i,f,g,o
        i_g = jax.nn.sigmoid(gates[:, 0 * LSTM_HID:1 * LSTM_HID])
        f_g = jax.nn.sigmoid(gates[:, 1 * LSTM_HID:2 * LSTM_HID])
        g_g = jnp.tanh(gates[:, 2 * LSTM_HID:3 * LSTM_HID])
        o_g = jax.nn.sigmoid(gates[:, 3 * LSTM_HID:4 * LSTM_HID])
        c_state = f_g * c_state + i_g * g_g
        h_state = o_g * jnp.tanh(c_state)
        h_hist.append(h_state)

    # output[t] = [forward hidden after step t | reverse hidden after reading x_t backwards]
    fwd = jnp.concatenate([h_hist[t][0:1, :] for t in range(B)], axis=0)        # (B, H)
    rev = jnp.concatenate([h_hist[B - 1 - t][1:2, :] for t in range(B)], axis=0)  # (B, H)
    output = jnp.concatenate([fwd, rev], axis=1)                                # (B, 2H)
    # cat(out_fow, out_rev) == output; dropout = identity; squeeze(dim=1) is a no-op.

    # ---- classifier head: Linear -> Softmax over dim 0 (num_class != 1) ----
    logits = jnp.dot(output, wo_ref[...], preferred_element_type=jnp.float32) + wob_ref[...]
    m = jnp.max(logits, axis=0, keepdims=True)
    e = jnp.exp(logits - m)
    out_ref[...] = (e / jnp.sum(e, axis=0, keepdims=True)).astype(out_ref.dtype)


# ------------------------------ forward wrapper --------------------------------
def classifier_forward(params, token_idx, attn_mask):
    b, s = token_idx.shape
    # Embedding gather stays in plain JAX glue (data-dependent indexing).
    emb = (params["word_emb"][token_idx]
           + params["pos_emb"][jnp.arange(s)][None, :, :]
           + params["type_emb"][0][None, None, :]).reshape(b * s, EMB)
    mask_f = attn_mask.astype(jnp.float32)

    flat_inputs = [emb, mask_f,
                   params["emb_ln_g"], params["emb_ln_b"],
                   params["emb_proj_w"], params["emb_proj_b"]]
    for layer in params["layers"]:
        flat_inputs += [layer[k] for k in LAYER_KEYS]
    flat_inputs += [params["wih_cat"], params["whh_cat"],
                    params["b_f"], params["b_r"],
                    params["wo_w"], params["wo_b"]]

    return pl.pallas_call(
        _classifier_kernel,
        out_shape=jax.ShapeDtypeStruct((b, NUM_CLASS), jnp.float32),
        grid=(1,),
        in_specs=[_full_spec(t.shape) for t in flat_inputs],
        out_specs=_full_spec((b, NUM_CLASS)),
        compiler_params=pltpu.CompilerParams(
            dimension_semantics=("arbitrary",)),   # single TC; no cross-core sharding needed
    )(*flat_inputs)


# ------------------------------ parameter init ---------------------------------
def init_params(key):
    keys = iter(jax.random.split(key, 64))

    def norm(shape, scale=0.02, dtype=jnp.float32):
        return (scale * jax.random.normal(next(keys), shape)).astype(dtype)

    wdt = jnp.bfloat16   # MXU weights in bf16 (halves DMA bytes); biases/LN stay f32.
    p = {
        "word_emb": norm((VOCAB, EMB)),
        "pos_emb": norm((MAX_POS, EMB)),
        "type_emb": norm((2, EMB)),
        "emb_ln_g": jnp.ones((1, EMB), jnp.float32),
        "emb_ln_b": jnp.zeros((1, EMB), jnp.float32),
        "emb_proj_w": norm((EMB, HID), dtype=wdt),
        "emb_proj_b": jnp.zeros((1, HID), jnp.float32),
    }
    layers = []
    for _ in range(N_LAYERS):
        layers.append({
            "qkv_w": norm((HID, 3 * HID), dtype=wdt),            # fused Q|K|V
            "qkv_b": jnp.zeros((1, 3 * HID), jnp.float32),
            "o_w": norm((HID, HID), dtype=wdt),
            "o_b": jnp.zeros((1, HID), jnp.float32),
            "ln1_g": jnp.ones((1, HID), jnp.float32),
            "ln1_b": jnp.zeros((1, HID), jnp.float32),
            "ff1_w": norm((HID, INTER), dtype=wdt),
            "ff1_b": jnp.zeros((1, INTER), jnp.float32),
            "ff2_w": norm((INTER, HID), dtype=wdt),
            "ff2_b": jnp.zeros((1, HID), jnp.float32),
            "ln2_g": jnp.ones((1, HID), jnp.float32),
            "ln2_b": jnp.zeros((1, HID), jnp.float32),
        })
    p["layers"] = layers

    # Bidirectional LSTM: weights stored transposed vs PyTorch ((I,4H)/(H,4H)),
    # concatenated [forward | reverse] along the output axis; b = b_ih + b_hh.
    h = LSTM_HID
    wih_f, wih_r = norm((HID, 4 * h), 0.05), norm((HID, 4 * h), 0.05)
    whh_f, whh_r = norm((h, 4 * h), 0.05), norm((h, 4 * h), 0.05)
    p["wih_cat"] = jnp.concatenate([wih_f, wih_r], axis=1).astype(wdt)
    p["whh_cat"] = jnp.concatenate([whh_f, whh_r], axis=1).astype(wdt)
    p["b_f"] = norm((1, 4 * h), 0.05)
    p["b_r"] = norm((1, 4 * h), 0.05)
    p["wo_w"] = norm((2 * h, NUM_CLASS), 0.05)
    p["wo_b"] = jnp.zeros((1, NUM_CLASS), jnp.float32)
    return p


# ----------------------------------- main ---------------------------------------
if __name__ == "__main__":
    key = jax.random.PRNGKey(0)
    pkey, dkey = jax.random.split(key)
    params = init_params(pkey)

    token_idx = jax.random.randint(dkey, (B, S), 0, VOCAB, dtype=jnp.int32)
    # attention mask: second example has its last two tokens padded out
    attn_mask = jnp.array([[1] * S, [1] * (S - 2) + [0, 0]], dtype=jnp.int32)

    fwd = jax.jit(classifier_forward)
    out = jax.block_until_ready(fwd(params, token_idx, attn_mask))

    assert out.shape == (B, NUM_CLASS)
    assert bool(jnp.all(jnp.isfinite(out)))
    # Softmax(dim=0) => each class column sums to 1 over the batch dimension.
    assert bool(jnp.allclose(jnp.sum(out, axis=0), 1.0, atol=1e-5))
    print("KERNEL_OK")
</pallas_src>

<mosaic_0001>
module attributes {stable_mosaic.version = 11 : i64} {
  func.func @_classifier_kernel(%arg0: i32, %arg1: memref<16x128xf32, #tpu.memory_space<vmem>>, %arg2: memref<2x8xf32, #tpu.memory_space<vmem>>, %arg3: memref<1x128xf32, #tpu.memory_space<vmem>>, %arg4: memref<1x128xf32, #tpu.memory_space<vmem>>, %arg5: memref<128x256xbf16, #tpu.memory_space<vmem>>, %arg6: memref<1x256xf32, #tpu.memory_space<vmem>>, %arg7: memref<256x768xbf16, #tpu.memory_space<vmem>>, %arg8: memref<1x768xf32, #tpu.memory_space<vmem>>, %arg9: memref<256x256xbf16, #tpu.memory_space<vmem>>, %arg10: memref<1x256xf32, #tpu.memory_space<vmem>>, %arg11: memref<1x256xf32, #tpu.memory_space<vmem>>, %arg12: memref<1x256xf32, #tpu.memory_space<vmem>>, %arg13: memref<256x512xbf16, #tpu.memory_space<vmem>>, %arg14: memref<1x512xf32, #tpu.memory_space<vmem>>, %arg15: memref<512x256xbf16, #tpu.memory_space<vmem>>, %arg16: memref<1x256xf32, #tpu.memory_space<vmem>>, %arg17: memref<1x256xf32, #tpu.memory_space<vmem>>, %arg18: memref<1x256xf32, #tpu.memory_space<vmem>>, %arg19: memref<256x768xbf16, #tpu.memory_space<vmem>>, %arg20: memref<1x768xf32, #tpu.memory_space<vmem>>, %arg21: memref<256x256xbf16, #tpu.memory_space<vmem>>, %arg22: memref<1x256xf32, #tpu.memory_space<vmem>>, %arg23: memref<1x256xf32, #tpu.memory_space<vmem>>, %arg24: memref<1x256xf32, #tpu.memory_space<vmem>>, %arg25: memref<256x512xbf16, #tpu.memory_space<vmem>>, %arg26: memref<1x512xf32, #tpu.memory_space<vmem>>, %arg27: memref<512x256xbf16, #tpu.memory_space<vmem>>, %arg28: memref<1x256xf32, #tpu.memory_space<vmem>>, %arg29: memref<1x256xf32, #tpu.memory_space<vmem>>, %arg30: memref<1x256xf32, #tpu.memory_space<vmem>>, %arg31: memref<256x1024xbf16, #tpu.memory_space<vmem>>, %arg32: memref<128x1024xbf16, #tpu.memory_space<vmem>>, %arg33: memref<1x512xf32, #tpu.memory_space<vmem>>, %arg34: memref<1x512xf32, #tpu.memory_space<vmem>>, %arg35: memref<256x5xf32, #tpu.memory_space<vmem>>, %arg36: memref<1x5xf32, #tpu.memory_space<vmem>>, %arg37: memref<2x5xf32, #tpu.memory_space<vmem>>) attributes {dimension_semantics = [#tpu.dimension_semantics<arbitrary>], iteration_bounds = array<i64: 1>, scalar_prefetch = 0 : i64, scratch_operands = 0 : i64, tpu.core_type = #tpu.core_type<tc>, window_params = [{pipeline_mode = #tpu.pipeline_mode<synchronous>, transform_indices = @transform_0, window_bounds = array<i64: 16, 128>}, {pipeline_mode = #tpu.pipeline_mode<synchronous>, transform_indices = @transform_1, window_bounds = array<i64: 2, 8>}, {pipeline_mode = #tpu.pipeline_mode<synchronous>, transform_indices = @transform_2, window_bounds = array<i64: 1, 128>}, {pipeline_mode = #tpu.pipeline_mode<synchronous>, transform_indices = @transform_3, window_bounds = array<i64: 1, 128>}, {pipeline_mode = #tpu.pipeline_mode<synchronous>, transform_indices = @transform_4, window_bounds = array<i64: 128, 256>}, {pipeline_mode = #tpu.pipeline_mode<synchronous>, transform_indices = @transform_5, window_bounds = array<i64: 1, 256>}, {pipeline_mode = #tpu.pipeline_mode<synchronous>, transform_indices = @transform_6, window_bounds = array<i64: 256, 768>}, {pipeline_mode = #tpu.pipeline_mode<synchronous>, transform_indices = @transform_7, window_bounds = array<i64: 1, 768>}, {pipeline_mode = #tpu.pipeline_mode<synchronous>, transform_indices = @transform_8, window_bounds = array<i64: 256, 256>}, {pipeline_mode = #tpu.pipeline_mode<synchronous>, transform_indices = @transform_9, window_bounds = array<i64: 1, 256>}, {pipeline_mode = #tpu.pipeline_mode<synchronous>, transform_indices = @transform_10, window_bounds = array<i64: 1, 256>}, {pipeline_mode = #tpu.pipeline_mode<synchronous>, transform_indices = @transform_11, window_bounds = array<i64: 1, 256>}, {pipeline_mode = #tpu.pipeline_mode<synchronous>, transform_indices = @transform_12, window_bounds = array<i64: 256, 512>}, {pipeline_mode = #tpu.pipeline_mode<synchronous>, transform_indices = @transform_13, window_bounds = array<i64: 1, 512>}, {pipeline_mode = #tpu.pipeline_mode<synchronous>, transform_indices = @transform_14, window_bounds = array<i64: 512, 256>}, {pipeline_mode = #tpu.pipeline_mode<synchronous>, transform_indices = @transform_15, window_bounds = array<i64: 1, 256>}, {pipeline_mode = #tpu.pipeline_mode<synchronous>, transform_indices = @transform_16, window_bounds = array<i64: 1, 256>}, {pipeline_mode = #tpu.pipeline_mode<synchronous>, transform_indices = @transform_17, window_bounds = array<i64: 1, 256>}, {pipeline_mode = #tpu.pipeline_mode<synchronous>, transform_indices = @transform_18, window_bounds = array<i64: 256, 768>}, {pipeline_mode = #tpu.pipeline_mode<synchronous>, transform_indices = @transform_19, window_bounds = array<i64: 1, 768>}, {pipeline_mode = #tpu.pipeline_mode<synchronous>, transform_indices = @transform_20, window_bounds = array<i64: 256, 256>}, {pipeline_mode = #tpu.pipeline_mode<synchronous>, transform_indices = @transform_21, window_bounds = array<i64: 1, 256>}, {pipeline_mode = #tpu.pipeline_mode<synchronous>, transform_indices = @transform_22, window_bounds = array<i64: 1, 256>}, {pipeline_mode = #tpu.pipeline_mode<synchronous>, transform_indices = @transform_23, window_bounds = array<i64: 1, 256>}, {pipeline_mode = #tpu.pipeline_mode<synchronous>, transform_indices = @transform_24, window_bounds = array<i64: 256, 512>}, {pipeline_mode = #tpu.pipeline_mode<synchronous>, transform_indices = @transform_25, window_bounds = array<i64: 1, 512>}, {pipeline_mode = #tpu.pipeline_mode<synchronous>, transform_indices = @transform_26, window_bounds = array<i64: 512, 256>}, {pipeline_mode = #tpu.pipeline_mode<synchronous>, transform_indices = @transform_27, window_bounds = array<i64: 1, 256>}, {pipeline_mode = #tpu.pipeline_mode<synchronous>, transform_indices = @transform_28, window_bounds = array<i64: 1, 256>}, {pipeline_mode = #tpu.pipeline_mode<synchronous>, transform_indices = @transform_29, window_bounds = array<i64: 1, 256>}, {pipeline_mode = #tpu.pipeline_mode<synchronous>, transform_indices = @transform_30, window_bounds = array<i64: 256, 1024>}, {pipeline_mode = #tpu.pipeline_mode<synchronous>, transform_indices = @transform_31, window_bounds = array<i64: 128, 1024>}, {pipeline_mode = #tpu.pipeline_mode<synchronous>, transform_indices = @transform_32, window_bounds = array<i64: 1, 512>}, {pipeline_mode = #tpu.pipeline_mode<synchronous>, transform_indices = @transform_33, window_bounds = array<i64: 1, 512>}, {pipeline_mode = #tpu.pipeline_mode<synchronous>, transform_indices = @transform_34, window_bounds = array<i64: 256, 5>}, {pipeline_mode = #tpu.pipeline_mode<synchronous>, transform_indices = @transform_35, window_bounds = array<i64: 1, 5>}, {pipeline_mode = #tpu.pipeline_mode<synchronous>, transform_indices = @transform_36, window_bounds = array<i64: 2, 5>}]} {
    %c0 = arith.constant 0 : index
    %c0_0 = arith.constant 0 : index
    %0 = vector.load %arg1[%c0, %c0_0] : memref<16x128xf32, #tpu.memory_space<vmem>>, vector<16x128xf32>
    %c0_1 = arith.constant 0 : index
    %c0_2 = arith.constant 0 : index
    %1 = vector.load %arg3[%c0_1, %c0_2] : memref<1x128xf32, #tpu.memory_space<vmem>>, vector<1x128xf32>
    %c0_3 = arith.constant 0 : index
    %c0_4 = arith.constant 0 : index
    %2 = vector.load %arg4[%c0_3, %c0_4] : memref<1x128xf32, #tpu.memory_space<vmem>>, vector<1x128xf32>
    %cst = arith.constant dense<0.000000e+00> : vector<16xf32>
    %3 = vector.multi_reduction <add>, %0, %cst [1] : vector<16x128xf32> to vector<16xf32>
    %4 = vector.shape_cast %3 : vector<16xf32> to vector<16x1xf32>
    %cst_5 = arith.constant 1.280000e+02 : f32
    %5 = vector.broadcast %cst_5 : f32 to vector<16x1xf32>
    %6 = arith.divf %4, %5 : vector<16x1xf32>
    %7 = vector.broadcast %6 : vector<16x1xf32> to vector<16x128xf32>
    %8 = arith.subf %0, %7 : vector<16x128xf32>
    %9 = arith.mulf %8, %8 : vector<16x128xf32>
    %cst_6 = arith.constant dense<0.000000e+00> : vector<16xf32>
    %10 = vector.multi_reduction <add>, %9, %cst_6 [1] : vector<16x128xf32> to vector<16xf32>
    %11 = vector.shape_cast %10 : vector<16xf32> to vector<16x1xf32>
    %cst_7 = arith.constant 1.280000e+02 : f32
    %12 = vector.broadcast %cst_7 : f32 to vector<16x1xf32>
    %13 = arith.divf %11, %12 : vector<16x1xf32>
    %14 = vector.broadcast %6 : vector<16x1xf32> to vector<16x128xf32>
    %15 = arith.subf %0, %14 : vector<16x128xf32>
    %cst_8 = arith.constant 9.99999996E-13 : f32
    %16 = vector.broadcast %cst_8 : f32 to vector<16x1xf32>
    %17 = arith.addf %13, %16 : vector<16x1xf32>
    %18 = math.rsqrt %17 : vector<16x1xf32>
    %19 = vector.broadcast %18 : vector<16x1xf32> to vector<16x128xf32>
    %20 = arith.mulf %15, %19 : vector<16x128xf32>
    %21 = vector.broadcast %1 : vector<1x128xf32> to vector<16x128xf32>
    %22 = arith.mulf %20, %21 : vector<16x128xf32>
    %23 = vector.broadcast %2 : vector<1x128xf32> to vector<16x128xf32>
    %24 = arith.addf %22, %23 : vector<16x128xf32>
    %25 = arith.truncf %24 : vector<16x128xf32> to vector<16x128xbf16>
    %c0_9 = arith.constant 0 : index
    %c0_10 = arith.constant 0 : index
    %26 = vector.load %arg5[%c0_9, %c0_10] : memref<128x256xbf16, #tpu.memory_space<vmem>>, vector<128x256xbf16>
    %cst_11 = arith.constant dense<0.000000e+00> : vector<16x256xf32>
    %27 = tpu.matmul %25, %26, %cst_11 {dimension_numbers = #tpu.dot_dimension_numbers<[1], [0], [0], [1], [0, 0, 1, 1], [], []>} : vector<16x128xbf16>, vector<128x256xbf16>, vector<16x256xf32> -> vector<16x256xf32>
    %c0_12 = arith.constant 0 : index
    %c0_13 = arith.constant 0 : index
    %28 = vector.load %arg6[%c0_12, %c0_13] : memref<1x256xf32, #tpu.memory_space<vmem>>, vector<1x256xf32>
    %29 = vector.broadcast %28 : vector<1x256xf32> to vector<16x256xf32>
    %30 = arith.addf %27, %29 : vector<16x256xf32>
    %c0_14 = arith.constant 0 : index
    %c0_15 = arith.constant 0 : index
    %31 = vector.load %arg2[%c0_14, %c0_15] : memref<2x8xf32, #tpu.memory_space<vmem>>, vector<2x8xf32>
    %cst_16 = arith.constant 1.000000e+00 : f32
    %32 = vector.broadcast %cst_16 : f32 to vector<2x8xf32>
    %33 = arith.subf %32, %31 : vector<2x8xf32>
    %cst_17 = arith.constant -1.000000e+09 : f32
    %34 = vector.broadcast %cst_17 : f32 to vector<2x8xf32>
    %35 = arith.mulf %33, %34 : vector<2x8xf32>
    %36 = arith.truncf %30 : vector<16x256xf32> to vector<16x256xbf16>
    %c0_18 = arith.constant 0 : index
    %c0_19 = arith.constant 0 : index
    %37 = vector.load %arg7[%c0_18, %c0_19] : memref<256x768xbf16, #tpu.memory_space<vmem>>, vector<256x768xbf16>
    %cst_20 = arith.constant dense<0.000000e+00> : vector<16x768xf32>
    %38 = tpu.matmul %36, %37, %cst_20 {dimension_numbers = #tpu.dot_dimension_numbers<[1], [0], [0], [1], [0, 0, 1, 1], [], []>} : vector<16x256xbf16>, vector<256x768xbf16>, vector<16x768xf32> -> vector<16x768xf32>
    %c0_21 = arith.constant 0 : index
    %c0_22 = arith.constant 0 : index
    %39 = vector.load %arg8[%c0_21, %c0_22] : memref<1x768xf32, #tpu.memory_space<vmem>>, vector<1x768xf32>
    %40 = vector.broadcast %39 : vector<1x768xf32> to vector<16x768xf32>
    %41 = arith.addf %38, %40 : vector<16x768xf32>
    %42 = vector.extract_strided_slice %41 {offsets = [0, 0], sizes = [16, 256], strides = [1, 1]} : vector<16x768xf32> to vector<16x256xf32>
    %43 = vector.extract_strided_slice %41 {offsets = [0, 256], sizes = [16, 256], strides = [1, 1]} : vector<16x768xf32> to vector<16x256xf32>
    %44 = vector.extract_strided_slice %41 {offsets = [0, 512], sizes = [16, 256], strides = [1, 1]} : vector<16x768xf32> to vector<16x256xf32>
    %45 = vector.extract_strided_slice %42 {offsets = [0, 0], sizes = [8, 256], strides = [1, 1]} : vector<16x256xf32> to vector<8x256xf32>
    %46 = vector.extract_strided_slice %43 {offsets = [0, 0], sizes = [8, 256], strides = [1, 1]} : vector<16x256xf32> to vector<8x256xf32>
    %47 = vector.extract_strided_slice %44 {offsets = [0, 0], sizes = [8, 256], strides = [1, 1]} : vector<16x256xf32> to vector<8x256xf32>
    %48 = vector.extract_strided_slice %35 {offsets = [0, 0], sizes = [1, 8], strides = [1, 1]} : vector<2x8xf32> to vector<1x8xf32>
    %49 = vector.extract_strided_slice %45 {offsets = [0, 0], sizes = [8, 64], strides = [1, 1]} : vector<8x256xf32> to vector<8x64xf32>
    %50 = vector.extract_strided_slice %46 {offsets = [0, 0], sizes = [8, 64], strides = [1, 1]} : vector<8x256xf32> to vector<8x64xf32>
    %51 = vector.extract_strided_slice %47 {offsets = [0, 0], sizes = [8, 64], strides = [1, 1]} : vector<8x256xf32> to vector<8x64xf32>
    %cst_23 = arith.constant dense<0.000000e+00> : vector<8x8xf32>
    %52 = tpu.matmul %49, %50, %cst_23 {dimension_numbers = #tpu.dot_dimension_numbers<[1], [1], [0], [0], [0, 0, 1, 0], [], []>} : vector<8x64xf32>, vector<8x64xf32>, vector<8x8xf32> -> vector<8x8xf32>
    %cst_24 = arith.constant 1.250000e-01 : f32
    %53 = vector.broadcast %cst_24 : f32 to vector<8x8xf32>
    %54 = arith.mulf %52, %53 : vector<8x8xf32>
    %55 = vector.broadcast %48 : vector<1x8xf32> to vector<8x8xf32>
    %56 = arith.addf %54, %55 : vector<8x8xf32>
    %cst_25 = arith.constant dense<0xFF800000> : vector<8xf32>
    %57 = vector.multi_reduction <maximumf>, %56, %cst_25 [1] : vector<8x8xf32> to vector<8xf32>
    %58 = vector.shape_cast %57 : vector<8xf32> to vector<8x1xf32>
    %59 = vector.broadcast %58 : vector<8x1xf32> to vector<8x8xf32>
    %60 = arith.subf %56, %59 : vector<8x8xf32>
    %61 = math.exp %60 : vector<8x8xf32>
    %cst_26 = arith.constant dense<0.000000e+00> : vector<8xf32>
    %62 = vector.multi_reduction <add>, %61, %cst_26 [1] : vector<8x8xf32> to vector<8xf32>
    %63 = vector.shape_cast %62 : vector<8xf32> to vector<8x1xf32>
    %64 = vector.broadcast %63 : vector<8x1xf32> to vector<8x8xf32>
    %65 = arith.divf %61, %64 : vector<8x8xf32>
    %cst_27 = arith.constant dense<0.000000e+00> : vector<8x64xf32>
    %66 = tpu.matmul %65, %51, %cst_27 {dimension_numbers = #tpu.dot_dimension_numbers<[1], [0], [0], [1], [0, 0, 1, 1], [], []>} : vector<8x8xf32>, vector<8x64xf32>, vector<8x64xf32> -> vector<8x64xf32>
    %67 = vector.extract_strided_slice %45 {offsets = [0, 64], sizes = [8, 64], strides = [1, 1]} : vector<8x256xf32> to vector<8x64xf32>
    %68 = vector.extract_strided_slice %46 {offsets = [0, 64], sizes = [8, 64], strides = [1, 1]} : vector<8x256xf32> to vector<8x64xf32>
    %69 = vector.extract_strided_slice %47 {offsets = [0, 64], sizes = [8, 64], strides = [1, 1]} : vector<8x256xf32> to vector<8x64xf32>
    %cst_28 = arith.constant dense<0.000000e+00> : vector<8x8xf32>
    %70 = tpu.matmul %67, %68, %cst_28 {dimension_numbers = #tpu.dot_dimension_numbers<[1], [1], [0], [0], [0, 0, 1, 0], [], []>} : vector<8x64xf32>, vector<8x64xf32>, vector<8x8xf32> -> vector<8x8xf32>
    %cst_29 = arith.constant 1.250000e-01 : f32
    %71 = vector.broadcast %cst_29 : f32 to vector<8x8xf32>
    %72 = arith.mulf %70, %71 : vector<8x8xf32>
    %73 = vector.broadcast %48 : vector<1x8xf32> to vector<8x8xf32>
    %74 = arith.addf %72, %73 : vector<8x8xf32>
    %cst_30 = arith.constant dense<0xFF800000> : vector<8xf32>
    %75 = vector.multi_reduction <maximumf>, %74, %cst_30 [1] : vector<8x8xf32> to vector<8xf32>
    %76 = vector.shape_cast %75 : vector<8xf32> to vector<8x1xf32>
    %77 = vector.broadcast %76 : vector<8x1xf32> to vector<8x8xf32>
    %78 = arith.subf %74, %77 : vector<8x8xf32>
    %79 = math.exp %78 : vector<8x8xf32>
    %cst_31 = arith.constant dense<0.000000e+00> : vector<8xf32>
    %80 = vector.multi_reduction <add>, %79, %cst_31 [1] : vector<8x8xf32> to vector<8xf32>
    %81 = vector.shape_cast %80 : vector<8xf32> to vector<8x1xf32>
    %82 = vector.broadcast %81 : vector<8x1xf32> to vector<8x8xf32>
    %83 = arith.divf %79, %82 : vector<8x8xf32>
    %cst_32 = arith.constant dense<0.000000e+00> : vector<8x64xf32>
    %84 = tpu.matmul %83, %69, %cst_32 {dimension_numbers = #tpu.dot_dimension_numbers<[1], [0], [0], [1], [0, 0, 1, 1], [], []>} : vector<8x8xf32>, vector<8x64xf32>, vector<8x64xf32> -> vector<8x64xf32>
    %85 = vector.extract_strided_slice %45 {offsets = [0, 128], sizes = [8, 64], strides = [1, 1]} : vector<8x256xf32> to vector<8x64xf32>
    %86 = vector.extract_strided_slice %46 {offsets = [0, 128], sizes = [8, 64], strides = [1, 1]} : vector<8x256xf32> to vector<8x64xf32>
    %87 = vector.extract_strided_slice %47 {offsets = [0, 128], sizes = [8, 64], strides = [1, 1]} : vector<8x256xf32> to vector<8x64xf32>
    %cst_33 = arith.constant dense<0.000000e+00> : vector<8x8xf32>
    %88 = tpu.matmul %85, %86, %cst_33 {dimension_numbers = #tpu.dot_dimension_numbers<[1], [1], [0], [0], [0, 0, 1, 0], [], []>} : vector<8x64xf32>, vector<8x64xf32>, vector<8x8xf32> -> vector<8x8xf32>
    %cst_34 = arith.constant 1.250000e-01 : f32
    %89 = vector.broadcast %cst_34 : f32 to vector<8x8xf32>
    %90 = arith.mulf %88, %89 : vector<8x8xf32>
    %91 = vector.broadcast %48 : vector<1x8xf32> to vector<8x8xf32>
    %92 = arith.addf %90, %91 : vector<8x8xf32>
    %cst_35 = arith.constant dense<0xFF800000> : vector<8xf32>
    %93 = vector.multi_reduction <maximumf>, %92, %cst_35 [1] : vector<8x8xf32> to vector<8xf32>
    %94 = vector.shape_cast %93 : vector<8xf32> to vector<8x1xf32>
    %95 = vector.broadcast %94 : vector<8x1xf32> to vector<8x8xf32>
    %96 = arith.subf %92, %95 : vector<8x8xf32>
    %97 = math.exp %96 : vector<8x8xf32>
    %cst_36 = arith.constant dense<0.000000e+00> : vector<8xf32>
    %98 = vector.multi_reduction <add>, %97, %cst_36 [1] : vector<8x8xf32> to vector<8xf32>
    %99 = vector.shape_cast %98 : vector<8xf32> to vector<8x1xf32>
    %100 = vector.broadcast %99 : vector<8x1xf32> to vector<8x8xf32>
    %101 = arith.divf %97, %100 : vector<8x8xf32>
    %cst_37 = arith.constant dense<0.000000e+00> : vector<8x64xf32>
    %102 = tpu.matmul %101, %87, %cst_37 {dimension_numbers = #tpu.dot_dimension_numbers<[1], [0], [0], [1], [0, 0, 1, 1], [], []>} : vector<8x8xf32>, vector<8x64xf32>, vector<8x64xf32> -> vector<8x64xf32>
    %103 = vector.extract_strided_slice %45 {offsets = [0, 192], sizes = [8, 64], strides = [1, 1]} : vector<8x256xf32> to vector<8x64xf32>
    %104 = vector.extract_strided_slice %46 {offsets = [0, 192], sizes = [8, 64], strides = [1, 1]} : vector<8x256xf32> to vector<8x64xf32>
    %105 = vector.extract_strided_slice %47 {offsets = [0, 192], sizes = [8, 64], strides = [1, 1]} : vector<8x256xf32> to vector<8x64xf32>
    %cst_38 = arith.constant dense<0.000000e+00> : vector<8x8xf32>
    %106 = tpu.matmul %103, %104, %cst_38 {dimension_numbers = #tpu.dot_dimension_numbers<[1], [1], [0], [0], [0, 0, 1, 0], [], []>} : vector<8x64xf32>, vector<8x64xf32>, vector<8x8xf32> -> vector<8x8xf32>
    %cst_39 = arith.constant 1.250000e-01 : f32
    %107 = vector.broadcast %cst_39 : f32 to vector<8x8xf32>
    %108 = arith.mulf %106, %107 : vector<8x8xf32>
    %109 = vector.broadcast %48 : vector<1x8xf32> to vector<8x8xf32>
    %110 = arith.addf %108, %109 : vector<8x8xf32>
    %cst_40 = arith.constant dense<0xFF800000> : vector<8xf32>
    %111 = vector.multi_reduction <maximumf>, %110, %cst_40 [1] : vector<8x8xf32> to vector<8xf32>
    %112 = vector.shape_cast %111 : vector<8xf32> to vector<8x1xf32>
    %113 = vector.broadcast %112 : vector<8x1xf32> to vector<8x8xf32>
    %114 = arith.subf %110, %113 : vector<8x8xf32>
    %115 = math.exp %114 : vector<8x8xf32>
    %cst_41 = arith.constant dense<0.000000e+00> : vector<8xf32>
    %116 = vector.multi_reduction <add>, %115, %cst_41 [1] : vector<8x8xf32> to vector<8xf32>
    %117 = vector.shape_cast %116 : vector<8xf32> to vector<8x1xf32>
    %118 = vector.broadcast %117 : vector<8x1xf32> to vector<8x8xf32>
    %119 = arith.divf %115, %118 : vector<8x8xf32>
    %cst_42 = arith.constant dense<0.000000e+00> : vector<8x64xf32>
    %120 = tpu.matmul %119, %105, %cst_42 {dimension_numbers = #tpu.dot_dimension_numbers<[1], [0], [0], [1], [0, 0, 1, 1], [], []>} : vector<8x8xf32>, vector<8x64xf32>, vector<8x64xf32> -> vector<8x64xf32>
    %121 = tpu.concatenate %66, %84, %102, %120 in 1 : vector<8x64xf32>, vector<8x64xf32>, vector<8x64xf32>, vector<8x64xf32> -> vector<8x256xf32>
    %122 = vector.extract_strided_slice %42 {offsets = [8, 0], sizes = [8, 256], strides = [1, 1]} : vector<16x256xf32> to vector<8x256xf32>
    %123 = vector.extract_strided_slice %43 {offsets = [8, 0], sizes = [8, 256], strides = [1, 1]} : vector<16x256xf32> to vector<8x256xf32>
    %124 = vector.extract_strided_slice %44 {offsets = [8, 0], sizes = [8, 256], strides = [1, 1]} : vector<16x256xf32> to vector<8x256xf32>
    %125 = vector.extract_strided_slice %35 {offsets = [1, 0], sizes = [1, 8], strides = [1, 1]} : vector<2x8xf32> to vector<1x8xf32>
    %126 = vector.extract_strided_slice %122 {offsets = [0, 0], sizes = [8, 64], strides = [1, 1]} : vector<8x256xf32> to vector<8x64xf32>
    %127 = vector.extract_strided_slice %123 {offsets = [0, 0], sizes = [8, 64], strides = [1, 1]} : vector<8x256xf32> to vector<8x64xf32>
    %128 = vector.extract_strided_slice %124 {offsets = [0, 0], sizes = [8, 64], strides = [1, 1]} : vector<8x256xf32> to vector<8x64xf32>
    %cst_43 = arith.constant dense<0.000000e+00> : vector<8x8xf32>
    %129 = tpu.matmul %126, %127, %cst_43 {dimension_numbers = #tpu.dot_dimension_numbers<[1], [1], [0], [0], [0, 0, 1, 0], [], []>} : vector<8x64xf32>, vector<8x64xf32>, vector<8x8xf32> -> vector<8x8xf32>
    %cst_44 = arith.constant 1.250000e-01 : f32
    %130 = vector.broadcast %cst_44 : f32 to vector<8x8xf32>
    %131 = arith.mulf %129, %130 : vector<8x8xf32>
    %132 = vector.broadcast %125 : vector<1x8xf32> to vector<8x8xf32>
    %133 = arith.addf %131, %132 : vector<8x8xf32>
    %cst_45 = arith.constant dense<0xFF800000> : vector<8xf32>
    %134 = vector.multi_reduction <maximumf>, %133, %cst_45 [1] : vector<8x8xf32> to vector<8xf32>
    %135 = vector.shape_cast %134 : vector<8xf32> to vector<8x1xf32>
    %136 = vector.broadcast %135 : vector<8x1xf32> to vector<8x8xf32>
    %137 = arith.subf %133, %136 : vector<8x8xf32>
    %138 = math.exp %137 : vector<8x8xf32>
    %cst_46 = arith.constant dense<0.000000e+00> : vector<8xf32>
    %139 = vector.multi_reduction <add>, %138, %cst_46 [1] : vector<8x8xf32> to vector<8xf32>
    %140 = vector.shape_cast %139 : vector<8xf32> to vector<8x1xf32>
    %141 = vector.broadcast %140 : vector<8x1xf32> to vector<8x8xf32>
    %142 = arith.divf %138, %141 : vector<8x8xf32>
    %cst_47 = arith.constant dense<0.000000e+00> : vector<8x64xf32>
    %143 = tpu.matmul %142, %128, %cst_47 {dimension_numbers = #tpu.dot_dimension_numbers<[1], [0], [0], [1], [0, 0, 1, 1], [], []>} : vector<8x8xf32>, vector<8x64xf32>, vector<8x64xf32> -> vector<8x64xf32>
    %144 = vector.extract_strided_slice %122 {offsets = [0, 64], sizes = [8, 64], strides = [1, 1]} : vector<8x256xf32> to vector<8x64xf32>
    %145 = vector.extract_strided_slice %123 {offsets = [0, 64], sizes = [8, 64], strides = [1, 1]} : vector<8x256xf32> to vector<8x64xf32>
    %146 = vector.extract_strided_slice %124 {offsets = [0, 64], sizes = [8, 64], strides = [1, 1]} : vector<8x256xf32> to vector<8x64xf32>
    %cst_48 = arith.constant dense<0.000000e+00> : vector<8x8xf32>
    %147 = tpu.matmul %144, %145, %cst_48 {dimension_numbers = #tpu.dot_dimension_numbers<[1], [1], [0], [0], [0, 0, 1, 0], [], []>} : vector<8x64xf32>, vector<8x64xf32>, vector<8x8xf32> -> vector<8x8xf32>
    %cst_49 = arith.constant 1.250000e-01 : f32
    %148 = vector.broadcast %cst_49 : f32 to vector<8x8xf32>
    %149 = arith.mulf %147, %148 : vector<8x8xf32>
    %150 = vector.broadcast %125 : vector<1x8xf32> to vector<8x8xf32>
    %151 = arith.addf %149, %150 : vector<8x8xf32>
    %cst_50 = arith.constant dense<0xFF800000> : vector<8xf32>
    %152 = vector.multi_reduction <maximumf>, %151, %cst_50 [1] : vector<8x8xf32> to vector<8xf32>
    %153 = vector.shape_cast %152 : vector<8xf32> to vector<8x1xf32>
    %154 = vector.broadcast %153 : vector<8x1xf32> to vector<8x8xf32>
    %155 = arith.subf %151, %154 : vector<8x8xf32>
    %156 = math.exp %155 : vector<8x8xf32>
    %cst_51 = arith.constant dense<0.000000e+00> : vector<8xf32>
    %157 = vector.multi_reduction <add>, %156, %cst_51 [1] : vector<8x8xf32> to vector<8xf32>
    %158 = vector.shape_cast %157 : vector<8xf32> to vector<8x1xf32>
    %159 = vector.broadcast %158 : vector<8x1xf32> to vector<8x8xf32>
    %160 = arith.divf %156, %159 : vector<8x8xf32>
    %cst_52 = arith.constant dense<0.000000e+00> : vector<8x64xf32>
    %161 = tpu.matmul %160, %146, %cst_52 {dimension_numbers = #tpu.dot_dimension_numbers<[1], [0], [0], [1], [0, 0, 1, 1], [], []>} : vector<8x8xf32>, vector<8x64xf32>, vector<8x64xf32> -> vector<8x64xf32>
    %162 = vector.extract_strided_slice %122 {offsets = [0, 128], sizes = [8, 64], strides = [1, 1]} : vector<8x256xf32> to vector<8x64xf32>
    %163 = vector.extract_strided_slice %123 {offsets = [0, 128], sizes = [8, 64], strides = [1, 1]} : vector<8x256xf32> to vector<8x64xf32>
    %164 = vector.extract_strided_slice %124 {offsets = [0, 128], sizes = [8, 64], strides = [1, 1]} : vector<8x256xf32> to vector<8x64xf32>
    %cst_53 = arith.constant dense<0.000000e+00> : vector<8x8xf32>
    %165 = tpu.matmul %162, %163, %cst_53 {dimension_numbers = #tpu.dot_dimension_numbers<[1], [1], [0], [0], [0, 0, 1, 0], [], []>} : vector<8x64xf32>, vector<8x64xf32>, vector<8x8xf32> -> vector<8x8xf32>
    %cst_54 = arith.constant 1.250000e-01 : f32
    %166 = vector.broadcast %cst_54 : f32 to vector<8x8xf32>
    %167 = arith.mulf %165, %166 : vector<8x8xf32>
    %168 = vector.broadcast %125 : vector<1x8xf32> to vector<8x8xf32>
    %169 = arith.addf %167, %168 : vector<8x8xf32>
    %cst_55 = arith.constant dense<0xFF800000> : vector<8xf32>
    %170 = vector.multi_reduction <maximumf>, %169, %cst_55 [1] : vector<8x8xf32> to vector<8xf32>
    %171 = vector.shape_cast %170 : vector<8xf32> to vector<8x1xf32>
    %172 = vector.broadcast %171 : vector<8x1xf32> to vector<8x8xf32>
    %173 = arith.subf %169, %172 : vector<8x8xf32>
    %174 = math.exp %173 : vector<8x8xf32>
    %cst_56 = arith.constant dense<0.000000e+00> : vector<8xf32>
    %175 = vector.multi_reduction <add>, %174, %cst_56 [1] : vector<8x8xf32> to vector<8xf32>
    %176 = vector.shape_cast %175 : vector<8xf32> to vector<8x1xf32>
    %177 = vector.broadcast %176 : vector<8x1xf32> to vector<8x8xf32>
    %178 = arith.divf %174, %177 : vector<8x8xf32>
    %cst_57 = arith.constant dense<0.000000e+00> : vector<8x64xf32>
    %179 = tpu.matmul %178, %164, %cst_57 {dimension_numbers = #tpu.dot_dimension_numbers<[1], [0], [0], [1], [0, 0, 1, 1], [], []>} : vector<8x8xf32>, vector<8x64xf32>, vector<8x64xf32> -> vector<8x64xf32>
    %180 = vector.extract_strided_slice %122 {offsets = [0, 192], sizes = [8, 64], strides = [1, 1]} : vector<8x256xf32> to vector<8x64xf32>
    %181 = vector.extract_strided_slice %123 {offsets = [0, 192], sizes = [8, 64], strides = [1, 1]} : vector<8x256xf32> to vector<8x64xf32>
    %182 = vector.extract_strided_slice %124 {offsets = [0, 192], sizes = [8, 64], strides = [1, 1]} : vector<8x256xf32> to vector<8x64xf32>
    %cst_58 = arith.constant dense<0.000000e+00> : vector<8x8xf32>
    %183 = tpu.matmul %180, %181, %cst_58 {dimension_numbers = #tpu.dot_dimension_numbers<[1], [1], [0], [0], [0, 0, 1, 0], [], []>} : vector<8x64xf32>, vector<8x64xf32>, vector<8x8xf32> -> vector<8x8xf32>
    %cst_59 = arith.constant 1.250000e-01 : f32
    %184 = vector.broadcast %cst_59 : f32 to vector<8x8xf32>
    %185 = arith.mulf %183, %184 : vector<8x8xf32>
    %186 = vector.broadcast %125 : vector<1x8xf32> to vector<8x8xf32>
    %187 = arith.addf %185, %186 : vector<8x8xf32>
    %cst_60 = arith.constant dense<0xFF800000> : vector<8xf32>
    %188 = vector.multi_reduction <maximumf>, %187, %cst_60 [1] : vector<8x8xf32> to vector<8xf32>
    %189 = vector.shape_cast %188 : vector<8xf32> to vector<8x1xf32>
    %190 = vector.broadcast %189 : vector<8x1xf32> to vector<8x8xf32>
    %191 = arith.subf %187, %190 : vector<8x8xf32>
    %192 = math.exp %191 : vector<8x8xf32>
    %cst_61 = arith.constant dense<0.000000e+00> : vector<8xf32>
    %193 = vector.multi_reduction <add>, %192, %cst_61 [1] : vector<8x8xf32> to vector<8xf32>
    %194 = vector.shape_cast %193 : vector<8xf32> to vector<8x1xf32>
    %195 = vector.broadcast %194 : vector<8x1xf32> to vector<8x8xf32>
    %196 = arith.divf %192, %195 : vector<8x8xf32>
    %cst_62 = arith.constant dense<0.000000e+00> : vector<8x64xf32>
    %197 = tpu.matmul %196, %182, %cst_62 {dimension_numbers = #tpu.dot_dimension_numbers<[1], [0], [0], [1], [0, 0, 1, 1], [], []>} : vector<8x8xf32>, vector<8x64xf32>, vector<8x64xf32> -> vector<8x64xf32>
    %198 = tpu.concatenate %143, %161, %179, %197 in 1 : vector<8x64xf32>, vector<8x64xf32>, vector<8x64xf32>, vector<8x64xf32> -> vector<8x256xf32>
    %199 = tpu.concatenate %121, %198 in 0 : vector<8x256xf32>, vector<8x256xf32> -> vector<16x256xf32>
    %200 = arith.truncf %199 : vector<16x256xf32> to vector<16x256xbf16>
    %c0_63 = arith.constant 0 : index
    %c0_64 = arith.constant 0 : index
    %201 = vector.load %arg9[%c0_63, %c0_64] : memref<256x256xbf16, #tpu.memory_space<vmem>>, vector<256x256xbf16>
    %cst_65 = arith.constant dense<0.000000e+00> : vector<16x256xf32>
    %202 = tpu.matmul %200, %201, %cst_65 {dimension_numbers = #tpu.dot_dimension_numbers<[1], [0], [0], [1], [0, 0, 1, 1], [], []>} : vector<16x256xbf16>, vector<256x256xbf16>, vector<16x256xf32> -> vector<16x256xf32>
    %c0_66 = arith.constant 0 : index
    %c0_67 = arith.constant 0 : index
    %203 = vector.load %arg10[%c0_66, %c0_67] : memref<1x256xf32, #tpu.memory_space<vmem>>, vector<1x256xf32>
    %204 = vector.broadcast %203 : vector<1x256xf32> to vector<16x256xf32>
    %205 = arith.addf %202, %204 : vector<16x256xf32>
    %206 = arith.addf %205, %30 : vector<16x256xf32>
    %c0_68 = arith.constant 0 : index
    %c0_69 = arith.constant 0 : index
    %207 = vector.load %arg11[%c0_68, %c0_69] : memref<1x256xf32, #tpu.memory_space<vmem>>, vector<1x256xf32>
    %c0_70 = arith.constant 0 : index
    %c0_71 = arith.constant 0 : index
    %208 = vector.load %arg12[%c0_70, %c0_71] : memref<1x256xf32, #tpu.memory_space<vmem>>, vector<1x256xf32>
    %cst_72 = arith.constant dense<0.000000e+00> : vector<16xf32>
    %209 = vector.multi_reduction <add>, %206, %cst_72 [1] : vector<16x256xf32> to vector<16xf32>
    %210 = vector.shape_cast %209 : vector<16xf32> to vector<16x1xf32>
    %cst_73 = arith.constant 2.560000e+02 : f32
    %211 = vector.broadcast %cst_73 : f32 to vector<16x1xf32>
    %212 = arith.divf %210, %211 : vector<16x1xf32>
    %213 = vector.broadcast %212 : vector<16x1xf32> to vector<16x256xf32>
    %214 = arith.subf %206, %213 : vector<16x256xf32>
    %215 = arith.mulf %214, %214 : vector<16x256xf32>
    %cst_74 = arith.constant dense<0.000000e+00> : vector<16xf32>
    %216 = vector.multi_reduction <add>, %215, %cst_74 [1] : vector<16x256xf32> to vector<16xf32>
    %217 = vector.shape_cast %216 : vector<16xf32> to vector<16x1xf32>
    %cst_75 = arith.constant 2.560000e+02 : f32
    %218 = vector.broadcast %cst_75 : f32 to vector<16x1xf32>
    %219 = arith.divf %217, %218 : vector<16x1xf32>
    %220 = vector.broadcast %212 : vector<16x1xf32> to vector<16x256xf32>
    %221 = arith.subf %206, %220 : vector<16x256xf32>
    %cst_76 = arith.constant 9.99999996E-13 : f32
    %222 = vector.broadcast %cst_76 : f32 to vector<16x1xf32>
    %223 = arith.addf %219, %222 : vector<16x1xf32>
    %224 = math.rsqrt %223 : vector<16x1xf32>
    %225 = vector.broadcast %224 : vector<16x1xf32> to vector<16x256xf32>
    %226 = arith.mulf %221, %225 : vector<16x256xf32>
    %227 = vector.broadcast %207 : vector<1x256xf32> to vector<16x256xf32>
    %228 = arith.mulf %226, %227 : vector<16x256xf32>
    %229 = vector.broadcast %208 : vector<1x256xf32> to vector<16x256xf32>
    %230 = arith.addf %228, %229 : vector<16x256xf32>
    %231 = arith.truncf %230 : vector<16x256xf32> to vector<16x256xbf16>
    %c0_77 = arith.constant 0 : index
    %c0_78 = arith.constant 0 : index
    %232 = vector.load %arg13[%c0_77, %c0_78] : memref<256x512xbf16, #tpu.memory_space<vmem>>, vector<256x512xbf16>
    %cst_79 = arith.constant dense<0.000000e+00> : vector<16x512xf32>
    %233 = tpu.matmul %231, %232, %cst_79 {dimension_numbers = #tpu.dot_dimension_numbers<[1], [0], [0], [1], [0, 0, 1, 1], [], []>} : vector<16x256xbf16>, vector<256x512xbf16>, vector<16x512xf32> -> vector<16x512xf32>
    %c0_80 = arith.constant 0 : index
    %c0_81 = arith.constant 0 : index
    %234 = vector.load %arg14[%c0_80, %c0_81] : memref<1x512xf32, #tpu.memory_space<vmem>>, vector<1x512xf32>
    %235 = vector.broadcast %234 : vector<1x512xf32> to vector<16x512xf32>
    %236 = arith.addf %233, %235 : vector<16x512xf32>
    %cst_82 = arith.constant 5.000000e-01 : f32
    %237 = vector.broadcast %cst_82 : f32 to vector<16x512xf32>
    %238 = arith.mulf %237, %236 : vector<16x512xf32>
    %cst_83 = arith.constant 0.707106769 : f32
    %239 = vector.broadcast %cst_83 : f32 to vector<16x512xf32>
    %240 = arith.mulf %236, %239 : vector<16x512xf32>
    %241 = math.absf %240 : vector<16x512xf32>
    %cst_84 = arith.constant 0.327591091 : f32
    %242 = vector.broadcast %cst_84 : f32 to vector<16x512xf32>
    %243 = arith.mulf %242, %241 : vector<16x512xf32>
    %cst_85 = arith.constant 1.000000e+00 : f32
    %244 = vector.broadcast %cst_85 : f32 to vector<16x512xf32>
    %245 = arith.addf %244, %243 : vector<16x512xf32>
    %cst_86 = arith.constant 1.000000e+00 : f32
    %246 = vector.broadcast %cst_86 : f32 to vector<16x512xf32>
    %247 = arith.divf %246, %245 : vector<16x512xf32>
    %cst_87 = arith.constant 1.06140542 : f32
    %248 = vector.broadcast %cst_87 : f32 to vector<16x512xf32>
    %249 = arith.mulf %248, %247 : vector<16x512xf32>
    %cst_88 = arith.constant -1.45315206 : f32
    %250 = vector.broadcast %cst_88 : f32 to vector<16x512xf32>
    %251 = arith.addf %249, %250 : vector<16x512xf32>
    %252 = arith.mulf %251, %247 : vector<16x512xf32>
    %cst_89 = arith.constant 1.42141378 : f32
    %253 = vector.broadcast %cst_89 : f32 to vector<16x512xf32>
    %254 = arith.addf %252, %253 : vector<16x512xf32>
    %255 = arith.mulf %254, %247 : vector<16x512xf32>
    %cst_90 = arith.constant -0.284496725 : f32
    %256 = vector.broadcast %cst_90 : f32 to vector<16x512xf32>
    %257 = arith.addf %255, %256 : vector<16x512xf32>
    %258 = arith.mulf %257, %247 : vector<16x512xf32>
    %cst_91 = arith.constant 0.254829586 : f32
    %259 = vector.broadcast %cst_91 : f32 to vector<16x512xf32>
    %260 = arith.addf %258, %259 : vector<16x512xf32>
    %261 = arith.mulf %260, %247 : vector<16x512xf32>
    %cst_92 = arith.constant 0.000000e+00 : f32
    %262 = vector.broadcast %cst_92 : f32 to vector<16x512xf32>
    %263 = arith.subf %262, %241 : vector<16x512xf32>
    %264 = arith.mulf %263, %241 : vector<16x512xf32>
    %265 = math.exp %264 : vector<16x512xf32>
    %266 = arith.mulf %261, %265 : vector<16x512xf32>
    %cst_93 = arith.constant 1.000000e+00 : f32
    %267 = vector.broadcast %cst_93 : f32 to vector<16x512xf32>
    %268 = arith.subf %267, %266 : vector<16x512xf32>
    %cst_94 = arith.constant 0.000000e+00 : f32
    %269 = vector.broadcast %cst_94 : f32 to vector<16x512xf32>
    %270 = arith.cmpf oge, %240, %269 : vector<16x512xf32>
    %cst_95 = arith.constant 0.000000e+00 : f32
    %271 = vector.broadcast %cst_95 : f32 to vector<16x512xf32>
    %272 = arith.subf %271, %268 : vector<16x512xf32>
    %273 = arith.select %270, %268, %272 : vector<16x512xi1>, vector<16x512xf32>
    %cst_96 = arith.constant 1.000000e+00 : f32
    %274 = vector.broadcast %cst_96 : f32 to vector<16x512xf32>
    %275 = arith.addf %274, %273 : vector<16x512xf32>
    %276 = arith.mulf %238, %275 : vector<16x512xf32>
    %277 = arith.truncf %276 : vector<16x512xf32> to vector<16x512xbf16>
    %c0_97 = arith.constant 0 : index
    %c0_98 = arith.constant 0 : index
    %278 = vector.load %arg15[%c0_97, %c0_98] : memref<512x256xbf16, #tpu.memory_space<vmem>>, vector<512x256xbf16>
    %cst_99 = arith.constant dense<0.000000e+00> : vector<16x256xf32>
    %279 = tpu.matmul %277, %278, %cst_99 {dimension_numbers = #tpu.dot_dimension_numbers<[1], [0], [0], [1], [0, 0, 1, 1], [], []>} : vector<16x512xbf16>, vector<512x256xbf16>, vector<16x256xf32> -> vector<16x256xf32>
    %c0_100 = arith.constant 0 : index
    %c0_101 = arith.constant 0 : index
    %280 = vector.load %arg16[%c0_100, %c0_101] : memref<1x256xf32, #tpu.memory_space<vmem>>, vector<1x256xf32>
    %281 = vector.broadcast %280 : vector<1x256xf32> to vector<16x256xf32>
    %282 = arith.addf %279, %281 : vector<16x256xf32>
    %283 = arith.addf %282, %230 : vector<16x256xf32>
    %c0_102 = arith.constant 0 : index
    %c0_103 = arith.constant 0 : index
    %284 = vector.load %arg17[%c0_102, %c0_103] : memref<1x256xf32, #tpu.memory_space<vmem>>, vector<1x256xf32>
    %c0_104 = arith.constant 0 : index
    %c0_105 = arith.constant 0 : index
    %285 = vector.load %arg18[%c0_104, %c0_105] : memref<1x256xf32, #tpu.memory_space<vmem>>, vector<1x256xf32>
    %cst_106 = arith.constant dense<0.000000e+00> : vector<16xf32>
    %286 = vector.multi_reduction <add>, %283, %cst_106 [1] : vector<16x256xf32> to vector<16xf32>
    %287 = vector.shape_cast %286 : vector<16xf32> to vector<16x1xf32>
    %cst_107 = arith.constant 2.560000e+02 : f32
    %288 = vector.broadcast %cst_107 : f32 to vector<16x1xf32>
    %289 = arith.divf %287, %288 : vector<16x1xf32>
    %290 = vector.broadcast %289 : vector<16x1xf32> to vector<16x256xf32>
    %291 = arith.subf %283, %290 : vector<16x256xf32>
    %292 = arith.mulf %291, %291 : vector<16x256xf32>
    %cst_108 = arith.constant dense<0.000000e+00> : vector<16xf32>
    %293 = vector.multi_reduction <add>, %292, %cst_108 [1] : vector<16x256xf32> to vector<16xf32>
    %294 = vector.shape_cast %293 : vector<16xf32> to vector<16x1xf32>
    %cst_109 = arith.constant 2.560000e+02 : f32
    %295 = vector.broadcast %cst_109 : f32 to vector<16x1xf32>
    %296 = arith.divf %294, %295 : vector<16x1xf32>
    %297 = vector.broadcast %289 : vector<16x1xf32> to vector<16x256xf32>
    %298 = arith.subf %283, %297 : vector<16x256xf32>
    %cst_110 = arith.constant 9.99999996E-13 : f32
    %299 = vector.broadcast %cst_110 : f32 to vector<16x1xf32>
    %300 = arith.addf %296, %299 : vector<16x1xf32>
    %301 = math.rsqrt %300 : vector<16x1xf32>
    %302 = vector.broadcast %301 : vector<16x1xf32> to vector<16x256xf32>
    %303 = arith.mulf %298, %302 : vector<16x256xf32>
    %304 = vector.broadcast %284 : vector<1x256xf32> to vector<16x256xf32>
    %305 = arith.mulf %303, %304 : vector<16x256xf32>
    %306 = vector.broadcast %285 : vector<1x256xf32> to vector<16x256xf32>
    %307 = arith.addf %305, %306 : vector<16x256xf32>
    %308 = arith.truncf %307 : vector<16x256xf32> to vector<16x256xbf16>
    %c0_111 = arith.constant 0 : index
    %c0_112 = arith.constant 0 : index
    %309 = vector.load %arg19[%c0_111, %c0_112] : memref<256x768xbf16, #tpu.memory_space<vmem>>, vector<256x768xbf16>
    %cst_113 = arith.constant dense<0.000000e+00> : vector<16x768xf32>
    %310 = tpu.matmul %308, %309, %cst_113 {dimension_numbers = #tpu.dot_dimension_numbers<[1], [0], [0], [1], [0, 0, 1, 1], [], []>} : vector<16x256xbf16>, vector<256x768xbf16>, vector<16x768xf32> -> vector<16x768xf32>
    %c0_114 = arith.constant 0 : index
    %c0_115 = arith.constant 0 : index
    %311 = vector.load %arg20[%c0_114, %c0_115] : memref<1x768xf32, #tpu.memory_space<vmem>>, vector<1x768xf32>
    %312 = vector.broadcast %311 : vector<1x768xf32> to vector<16x768xf32>
    %313 = arith.addf %310, %312 : vector<16x768xf32>
    %314 = vector.extract_strided_slice %313 {offsets = [0, 0], sizes = [16, 256], strides = [1, 1]} : vector<16x768xf32> to vector<16x256xf32>
    %315 = vector.extract_strided_slice %313 {offsets = [0, 256], sizes = [16, 256], strides = [1, 1]} : vector<16x768xf32> to vector<16x256xf32>
    %316 = vector.extract_strided_slice %313 {offsets = [0, 512], sizes = [16, 256], strides = [1, 1]} : vector<16x768xf32> to vector<16x256xf32>
    %317 = vector.extract_strided_slice %314 {offsets = [0, 0], sizes = [8, 256], strides = [1, 1]} : vector<16x256xf32> to vector<8x256xf32>
    %318 = vector.extract_strided_slice %315 {offsets = [0, 0], sizes = [8, 256], strides = [1, 1]} : vector<16x256xf32> to vector<8x256xf32>
    %319 = vector.extract_strided_slice %316 {offsets = [0, 0], sizes = [8, 256], strides = [1, 1]} : vector<16x256xf32> to vector<8x256xf32>
    %320 = vector.extract_strided_slice %35 {offsets = [0, 0], sizes = [1, 8], strides = [1, 1]} : vector<2x8xf32> to vector<1x8xf32>
    %321 = vector.extract_strided_slice %317 {offsets = [0, 0], sizes = [8, 64], strides = [1, 1]} : vector<8x256xf32> to vector<8x64xf32>
    %322 = vector.extract_strided_slice %318 {offsets = [0, 0], sizes = [8, 64], strides = [1, 1]} : vector<8x256xf32> to vector<8x64xf32>
    %323 = vector.extract_strided_slice %319 {offsets = [0, 0], sizes = [8, 64], strides = [1, 1]} : vector<8x256xf32> to vector<8x64xf32>
    %cst_116 = arith.constant dense<0.000000e+00> : vector<8x8xf32>
    %324 = tpu.matmul %321, %322, %cst_116 {dimension_numbers = #tpu.dot_dimension_numbers<[1], [1], [0], [0], [0, 0, 1, 0], [], []>} : vector<8x64xf32>, vector<8x64xf32>, vector<8x8xf32> -> vector<8x8xf32>
    %cst_117 = arith.constant 1.250000e-01 : f32
    %325 = vector.broadcast %cst_117 : f32 to vector<8x8xf32>
    %326 = arith.mulf %324, %325 : vector<8x8xf32>
    %327 = vector.broadcast %320 : vector<1x8xf32> to vector<8x8xf32>
    %328 = arith.addf %326, %327 : vector<8x8xf32>
    %cst_118 = arith.constant dense<0xFF800000> : vector<8xf32>
    %329 = vector.multi_reduction <maximumf>, %328, %cst_118 [1] : vector<8x8xf32> to vector<8xf32>
    %330 = vector.shape_cast %329 : vector<8xf32> to vector<8x1xf32>
    %331 = vector.broadcast %330 : vector<8x1xf32> to vector<8x8xf32>
    %332 = arith.subf %328, %331 : vector<8x8xf32>
    %333 = math.exp %332 : vector<8x8xf32>
    %cst_119 = arith.constant dense<0.000000e+00> : vector<8xf32>
    %334 = vector.multi_reduction <add>, %333, %cst_119 [1] : vector<8x8xf32> to vector<8xf32>
    %335 = vector.shape_cast %334 : vector<8xf32> to vector<8x1xf32>
    %336 = vector.broadcast %335 : vector<8x1xf32> to vector<8x8xf32>
    %337 = arith.divf %333, %336 : vector<8x8xf32>
    %cst_120 = arith.constant dense<0.000000e+00> : vector<8x64xf32>
    %338 = tpu.matmul %337, %323, %cst_120 {dimension_numbers = #tpu.dot_dimension_numbers<[1], [0], [0], [1], [0, 0, 1, 1], [], []>} : vector<8x8xf32>, vector<8x64xf32>, vector<8x64xf32> -> vector<8x64xf32>
    %339 = vector.extract_strided_slice %317 {offsets = [0, 64], sizes = [8, 64], strides = [1, 1]} : vector<8x256xf32> to vector<8x64xf32>
    %340 = vector.extract_strided_slice %318 {offsets = [0, 64], sizes = [8, 64], strides = [1, 1]} : vector<8x256xf32> to vector<8x64xf32>
    %341 = vector.extract_strided_slice %319 {offsets = [0, 64], sizes = [8, 64], strides = [1, 1]} : vector<8x256xf32> to vector<8x64xf32>
    %cst_121 = arith.constant dense<0.000000e+00> : vector<8x8xf32>
    %342 = tpu.matmul %339, %340, %cst_121 {dimension_numbers = #tpu.dot_dimension_numbers<[1], [1], [0], [0], [0, 0, 1, 0], [], []>} : vector<8x64xf32>, vector<8x64xf32>, vector<8x8xf32> -> vector<8x8xf32>
    %cst_122 = arith.constant 1.250000e-01 : f32
    %343 = vector.broadcast %cst_122 : f32 to vector<8x8xf32>
    %344 = arith.mulf %342, %343 : vector<8x8xf32>
    %345 = vector.broadcast %320 : vector<1x8xf32> to vector<8x8xf32>
    %346 = arith.addf %344, %345 : vector<8x8xf32>
    %cst_123 = arith.constant dense<0xFF800000> : vector<8xf32>
    %347 = vector.multi_reduction <maximumf>, %346, %cst_123 [1] : vector<8x8xf32> to vector<8xf32>
    %348 = vector.shape_cast %347 : vector<8xf32> to vector<8x1xf32>
    %349 = vector.broadcast %348 : vector<8x1xf32> to vector<8x8xf32>
    %350 = arith.subf %346, %349 : vector<8x8xf32>
    %351 = math.exp %350 : vector<8x8xf32>
    %cst_124 = arith.constant dense<0.000000e+00> : vector<8xf32>
    %352 = vector.multi_reduction <add>, %351, %cst_124 [1] : vector<8x8xf32> to vector<8xf32>
    %353 = vector.shape_cast %352 : vector<8xf32> to vector<8x1xf32>
    %354 = vector.broadcast %353 : vector<8x1xf32> to vector<8x8xf32>
    %355 = arith.divf %351, %354 : vector<8x8xf32>
    %cst_125 = arith.constant dense<0.000000e+00> : vector<8x64xf32>
    %356 = tpu.matmul %355, %341, %cst_125 {dimension_numbers = #tpu.dot_dimension_numbers<[1], [0], [0], [1], [0, 0, 1, 1], [], []>} : vector<8x8xf32>, vector<8x64xf32>, vector<8x64xf32> -> vector<8x64xf32>
    %357 = vector.extract_strided_slice %317 {offsets = [0, 128], sizes = [8, 64], strides = [1, 1]} : vector<8x256xf32> to vector<8x64xf32>
    %358 = vector.extract_strided_slice %318 {offsets = [0, 128], sizes = [8, 64], strides = [1, 1]} : vector<8x256xf32> to vector<8x64xf32>
    %359 = vector.extract_strided_slice %319 {offsets = [0, 128], sizes = [8, 64], strides = [1, 1]} : vector<8x256xf32> to vector<8x64xf32>
    %cst_126 = arith.constant dense<0.000000e+00> : vector<8x8xf32>
    %360 = tpu.matmul %357, %358, %cst_126 {dimension_numbers = #tpu.dot_dimension_numbers<[1], [1], [0], [0], [0, 0, 1, 0], [], []>} : vector<8x64xf32>, vector<8x64xf32>, vector<8x8xf32> -> vector<8x8xf32>
    %cst_127 = arith.constant 1.250000e-01 : f32
    %361 = vector.broadcast %cst_127 : f32 to vector<8x8xf32>
    %362 = arith.mulf %360, %361 : vector<8x8xf32>
    %363 = vector.broadcast %320 : vector<1x8xf32> to vector<8x8xf32>
    %364 = arith.addf %362, %363 : vector<8x8xf32>
    %cst_128 = arith.constant dense<0xFF800000> : vector<8xf32>
    %365 = vector.multi_reduction <maximumf>, %364, %cst_128 [1] : vector<8x8xf32> to vector<8xf32>
    %366 = vector.shape_cast %365 : vector<8xf32> to vector<8x1xf32>
    %367 = vector.broadcast %366 : vector<8x1xf32> to vector<8x8xf32>
    %368 = arith.subf %364, %367 : vector<8x8xf32>
    %369 = math.exp %368 : vector<8x8xf32>
    %cst_129 = arith.constant dense<0.000000e+00> : vector<8xf32>
    %370 = vector.multi_reduction <add>, %369, %cst_129 [1] : vector<8x8xf32> to vector<8xf32>
    %371 = vector.shape_cast %370 : vector<8xf32> to vector<8x1xf32>
    %372 = vector.broadcast %371 : vector<8x1xf32> to vector<8x8xf32>
    %373 = arith.divf %369, %372 : vector<8x8xf32>
    %cst_130 = arith.constant dense<0.000000e+00> : vector<8x64xf32>
    %374 = tpu.matmul %373, %359, %cst_130 {dimension_numbers = #tpu.dot_dimension_numbers<[1], [0], [0], [1], [0, 0, 1, 1], [], []>} : vector<8x8xf32>, vector<8x64xf32>, vector<8x64xf32> -> vector<8x64xf32>
    %375 = vector.extract_strided_slice %317 {offsets = [0, 192], sizes = [8, 64], strides = [1, 1]} : vector<8x256xf32> to vector<8x64xf32>
    %376 = vector.extract_strided_slice %318 {offsets = [0, 192], sizes = [8, 64], strides = [1, 1]} : vector<8x256xf32> to vector<8x64xf32>
    %377 = vector.extract_strided_slice %319 {offsets = [0, 192], sizes = [8, 64], strides = [1, 1]} : vector<8x256xf32> to vector<8x64xf32>
    %cst_131 = arith.constant dense<0.000000e+00> : vector<8x8xf32>
    %378 = tpu.matmul %375, %376, %cst_131 {dimension_numbers = #tpu.dot_dimension_numbers<[1], [1], [0], [0], [0, 0, 1, 0], [], []>} : vector<8x64xf32>, vector<8x64xf32>, vector<8x8xf32> -> vector<8x8xf32>
    %cst_132 = arith.constant 1.250000e-01 : f32
    %379 = vector.broadcast %cst_132 : f32 to vector<8x8xf32>
    %380 = arith.mulf %378, %379 : vector<8x8xf32>
    %381 = vector.broadcast %320 : vector<1x8xf32> to vector<8x8xf32>
    %382 = arith.addf %380, %381 : vector<8x8xf32>
    %cst_133 = arith.constant dense<0xFF800000> : vector<8xf32>
    %383 = vector.multi_reduction <maximumf>, %382, %cst_133 [1] : vector<8x8xf32> to vector<8xf32>
    %384 = vector.shape_cast %383 : vector<8xf32> to vector<8x1xf32>
    %385 = vector.broadcast %384 : vector<8x1xf32> to vector<8x8xf32>
    %386 = arith.subf %382, %385 : vector<8x8xf32>
    %387 = math.exp %386 : vector<8x8xf32>
    %cst_134 = arith.constant dense<0.000000e+00> : vector<8xf32>
    %388 = vector.multi_reduction <add>, %387, %cst_134 [1] : vector<8x8xf32> to vector<8xf32>
    %389 = vector.shape_cast %388 : vector<8xf32> to vector<8x1xf32>
    %390 = vector.broadcast %389 : vector<8x1xf32> to vector<8x8xf32>
    %391 = arith.divf %387, %390 : vector<8x8xf32>
    %cst_135 = arith.constant dense<0.000000e+00> : vector<8x64xf32>
    %392 = tpu.matmul %391, %377, %cst_135 {dimension_numbers = #tpu.dot_dimension_numbers<[1], [0], [0], [1], [0, 0, 1, 1], [], []>} : vector<8x8xf32>, vector<8x64xf32>, vector<8x64xf32> -> vector<8x64xf32>
    %393 = tpu.concatenate %338, %356, %374, %392 in 1 : vector<8x64xf32>, vector<8x64xf32>, vector<8x64xf32>, vector<8x64xf32> -> vector<8x256xf32>
    %394 = vector.extract_strided_slice %314 {offsets = [8, 0], sizes = [8, 256], strides = [1, 1]} : vector<16x256xf32> to vector<8x256xf32>
    %395 = vector.extract_strided_slice %315 {offsets = [8, 0], sizes = [8, 256], strides = [1, 1]} : vector<16x256xf32> to vector<8x256xf32>
    %396 = vector.extract_strided_slice %316 {offsets = [8, 0], sizes = [8, 256], strides = [1, 1]} : vector<16x256xf32> to vector<8x256xf32>
    %397 = vector.extract_strided_slice %35 {offsets = [1, 0], sizes = [1, 8], strides = [1, 1]} : vector<2x8xf32> to vector<1x8xf32>
    %398 = vector.extract_strided_slice %394 {offsets = [0, 0], sizes = [8, 64], strides = [1, 1]} : vector<8x256xf32> to vector<8x64xf32>
    %399 = vector.extract_strided_slice %395 {offsets = [0, 0], sizes = [8, 64], strides = [1, 1]} : vector<8x256xf32> to vector<8x64xf32>
    %400 = vector.extract_strided_slice %396 {offsets = [0, 0], sizes = [8, 64], strides = [1, 1]} : vector<8x256xf32> to vector<8x64xf32>
    %cst_136 = arith.constant dense<0.000000e+00> : vector<8x8xf32>
    %401 = tpu.matmul %398, %399, %cst_136 {dimension_numbers = #tpu.dot_dimension_numbers<[1], [1], [0], [0], [0, 0, 1, 0], [], []>} : vector<8x64xf32>, vector<8x64xf32>, vector<8x8xf32> -> vector<8x8xf32>
    %cst_137 = arith.constant 1.250000e-01 : f32
    %402 = vector.broadcast %cst_137 : f32 to vector<8x8xf32>
    %403 = arith.mulf %401, %402 : vector<8x8xf32>
    %404 = vector.broadcast %397 : vector<1x8xf32> to vector<8x8xf32>
    %405 = arith.addf %403, %404 : vector<8x8xf32>
    %cst_138 = arith.constant dense<0xFF800000> : vector<8xf32>
    %406 = vector.multi_reduction <maximumf>, %405, %cst_138 [1] : vector<8x8xf32> to vector<8xf32>
    %407 = vector.shape_cast %406 : vector<8xf32> to vector<8x1xf32>
    %408 = vector.broadcast %407 : vector<8x1xf32> to vector<8x8xf32>
    %409 = arith.subf %405, %408 : vector<8x8xf32>
    %410 = math.exp %409 : vector<8x8xf32>
    %cst_139 = arith.constant dense<0.000000e+00> : vector<8xf32>
    %411 = vector.multi_reduction <add>, %410, %cst_139 [1] : vector<8x8xf32> to vector<8xf32>
    %412 = vector.shape_cast %411 : vector<8xf32> to vector<8x1xf32>
    %413 = vector.broadcast %412 : vector<8x1xf32> to vector<8x8xf32>
    %414 = arith.divf %410, %413 : vector<8x8xf32>
    %cst_140 = arith.constant dense<0.000000e+00> : vector<8x64xf32>
    %415 = tpu.matmul %414, %400, %cst_140 {dimension_numbers = #tpu.dot_dimension_numbers<[1], [0], [0], [1], [0, 0, 1, 1], [], []>} : vector<8x8xf32>, vector<8x64xf32>, vector<8x64xf32> -> vector<8x64xf32>
    %416 = vector.extract_strided_slice %394 {offsets = [0, 64], sizes = [8, 64], strides = [1, 1]} : vector<8x256xf32> to vector<8x64xf32>
    %417 = vector.extract_strided_slice %395 {offsets = [0, 64], sizes = [8, 64], strides = [1, 1]} : vector<8x256xf32> to vector<8x64xf32>
    %418 = vector.extract_strided_slice %396 {offsets = [0, 64], sizes = [8, 64], strides = [1, 1]} : vector<8x256xf32> to vector<8x64xf32>
    %cst_141 = arith.constant dense<0.000000e+00> : vector<8x8xf32>
    %419 = tpu.matmul %416, %417, %cst_141 {dimension_numbers = #tpu.dot_dimension_numbers<[1], [1], [0], [0], [0, 0, 1, 0], [], []>} : vector<8x64xf32>, vector<8x64xf32>, vector<8x8xf32> -> vector<8x8xf32>
    %cst_142 = arith.constant 1.250000e-01 : f32
    %420 = vector.broadcast %cst_142 : f32 to vector<8x8xf32>
    %421 = arith.mulf %419, %420 : vector<8x8xf32>
    %422 = vector.broadcast %397 : vector<1x8xf32> to vector<8x8xf32>
    %423 = arith.addf %421, %422 : vector<8x8xf32>
    %cst_143 = arith.constant dense<0xFF800000> : vector<8xf32>
    %424 = vector.multi_reduction <maximumf>, %423, %cst_143 [1] : vector<8x8xf32> to vector<8xf32>
    %425 = vector.shape_cast %424 : vector<8xf32> to vector<8x1xf32>
    %426 = vector.broadcast %425 : vector<8x1xf32> to vector<8x8xf32>
    %427 = arith.subf %423, %426 : vector<8x8xf32>
    %428 = math.exp %427 : vector<8x8xf32>
    %cst_144 = arith.constant dense<0.000000e+00> : vector<8xf32>
    %429 = vector.multi_reduction <add>, %428, %cst_144 [1] : vector<8x8xf32> to vector<8xf32>
    %430 = vector.shape_cast %429 : vector<8xf32> to vector<8x1xf32>
    %431 = vector.broadcast %430 : vector<8x1xf32> to vector<8x8xf32>
    %432 = arith.divf %428, %431 : vector<8x8xf32>
    %cst_145 = arith.constant dense<0.000000e+00> : vector<8x64xf32>
    %433 = tpu.matmul %432, %418, %cst_145 {dimension_numbers = #tpu.dot_dimension_numbers<[1], [0], [0], [1], [0, 0, 1, 1], [], []>} : vector<8x8xf32>, vector<8x64xf32>, vector<8x64xf32> -> vector<8x64xf32>
    %434 = vector.extract_strided_slice %394 {offsets = [0, 128], sizes = [8, 64], strides = [1, 1]} : vector<8x256xf32> to vector<8x64xf32>
    %435 = vector.extract_strided_slice %395 {offsets = [0, 128], sizes = [8, 64], strides = [1, 1]} : vector<8x256xf32> to vector<8x64xf32>
    %436 = vector.extract_strided_slice %396 {offsets = [0, 128], sizes = [8, 64], strides = [1, 1]} : vector<8x256xf32> to vector<8x64xf32>
    %cst_146 = arith.constant dense<0.000000e+00> : vector<8x8xf32>
    %437 = tpu.matmul %434, %435, %cst_146 {dimension_numbers = #tpu.dot_dimension_numbers<[1], [1], [0], [0], [0, 0, 1, 0], [], []>} : vector<8x64xf32>, vector<8x64xf32>, vector<8x8xf32> -> vector<8x8xf32>
    %cst_147 = arith.constant 1.250000e-01 : f32
    %438 = vector.broadcast %cst_147 : f32 to vector<8x8xf32>
    %439 = arith.mulf %437, %438 : vector<8x8xf32>
    %440 = vector.broadcast %397 : vector<1x8xf32> to vector<8x8xf32>
    %441 = arith.addf %439, %440 : vector<8x8xf32>
    %cst_148 = arith.constant dense<0xFF800000> : vector<8xf32>
    %442 = vector.multi_reduction <maximumf>, %441, %cst_148 [1] : vector<8x8xf32> to vector<8xf32>
    %443 = vector.shape_cast %442 : vector<8xf32> to vector<8x1xf32>
    %444 = vector.broadcast %443 : vector<8x1xf32> to vector<8x8xf32>
    %445 = arith.subf %441, %444 : vector<8x8xf32>
    %446 = math.exp %445 : vector<8x8xf32>
    %cst_149 = arith.constant dense<0.000000e+00> : vector<8xf32>
    %447 = vector.multi_reduction <add>, %446, %cst_149 [1] : vector<8x8xf32> to vector<8xf32>
    %448 = vector.shape_cast %447 : vector<8xf32> to vector<8x1xf32>
    %449 = vector.broadcast %448 : vector<8x1xf32> to vector<8x8xf32>
    %450 = arith.divf %446, %449 : vector<8x8xf32>
    %cst_150 = arith.constant dense<0.000000e+00> : vector<8x64xf32>
    %451 = tpu.matmul %450, %436, %cst_150 {dimension_numbers = #tpu.dot_dimension_numbers<[1], [0], [0], [1], [0, 0, 1, 1], [], []>} : vector<8x8xf32>, vector<8x64xf32>, vector<8x64xf32> -> vector<8x64xf32>
    %452 = vector.extract_strided_slice %394 {offsets = [0, 192], sizes = [8, 64], strides = [1, 1]} : vector<8x256xf32> to vector<8x64xf32>
    %453 = vector.extract_strided_slice %395 {offsets = [0, 192], sizes = [8, 64], strides = [1, 1]} : vector<8x256xf32> to vector<8x64xf32>
    %454 = vector.extract_strided_slice %396 {offsets = [0, 192], sizes = [8, 64], strides = [1, 1]} : vector<8x256xf32> to vector<8x64xf32>
    %cst_151 = arith.constant dense<0.000000e+00> : vector<8x8xf32>
    %455 = tpu.matmul %452, %453, %cst_151 {dimension_numbers = #tpu.dot_dimension_numbers<[1], [1], [0], [0], [0, 0, 1, 0], [], []>} : vector<8x64xf32>, vector<8x64xf32>, vector<8x8xf32> -> vector<8x8xf32>
    %cst_152 = arith.constant 1.250000e-01 : f32
    %456 = vector.broadcast %cst_152 : f32 to vector<8x8xf32>
    %457 = arith.mulf %455, %456 : vector<8x8xf32>
    %458 = vector.broadcast %397 : vector<1x8xf32> to vector<8x8xf32>
    %459 = arith.addf %457, %458 : vector<8x8xf32>
    %cst_153 = arith.constant dense<0xFF800000> : vector<8xf32>
    %460 = vector.multi_reduction <maximumf>, %459, %cst_153 [1] : vector<8x8xf32> to vector<8xf32>
    %461 = vector.shape_cast %460 : vector<8xf32> to vector<8x1xf32>
    %462 = vector.broadcast %461 : vector<8x1xf32> to vector<8x8xf32>
    %463 = arith.subf %459, %462 : vector<8x8xf32>
    %464 = math.exp %463 : vector<8x8xf32>
    %cst_154 = arith.constant dense<0.000000e+00> : vector<8xf32>
    %465 = vector.multi_reduction <add>, %464, %cst_154 [1] : vector<8x8xf32> to vector<8xf32>
    %466 = vector.shape_cast %465 : vector<8xf32> to vector<8x1xf32>
    %467 = vector.broadcast %466 : vector<8x1xf32> to vector<8x8xf32>
    %468 = arith.divf %464, %467 : vector<8x8xf32>
    %cst_155 = arith.constant dense<0.000000e+00> : vector<8x64xf32>
    %469 = tpu.matmul %468, %454, %cst_155 {dimension_numbers = #tpu.dot_dimension_numbers<[1], [0], [0], [1], [0, 0, 1, 1], [], []>} : vector<8x8xf32>, vector<8x64xf32>, vector<8x64xf32> -> vector<8x64xf32>
    %470 = tpu.concatenate %415, %433, %451, %469 in 1 : vector<8x64xf32>, vector<8x64xf32>, vector<8x64xf32>, vector<8x64xf32> -> vector<8x256xf32>
    %471 = tpu.concatenate %393, %470 in 0 : vector<8x256xf32>, vector<8x256xf32> -> vector<16x256xf32>
    %472 = arith.truncf %471 : vector<16x256xf32> to vector<16x256xbf16>
    %c0_156 = arith.constant 0 : index
    %c0_157 = arith.constant 0 : index
    %473 = vector.load %arg21[%c0_156, %c0_157] : memref<256x256xbf16, #tpu.memory_space<vmem>>, vector<256x256xbf16>
    %cst_158 = arith.constant dense<0.000000e+00> : vector<16x256xf32>
    %474 = tpu.matmul %472, %473, %cst_158 {dimension_numbers = #tpu.dot_dimension_numbers<[1], [0], [0], [1], [0, 0, 1, 1], [], []>} : vector<16x256xbf16>, vector<256x256xbf16>, vector<16x256xf32> -> vector<16x256xf32>
    %c0_159 = arith.constant 0 : index
    %c0_160 = arith.constant 0 : index
    %475 = vector.load %arg22[%c0_159, %c0_160] : memref<1x256xf32, #tpu.memory_space<vmem>>, vector<1x256xf32>
    %476 = vector.broadcast %475 : vector<1x256xf32> to vector<16x256xf32>
    %477 = arith.addf %474, %476 : vector<16x256xf32>
    %478 = arith.addf %477, %307 : vector<16x256xf32>
    %c0_161 = arith.constant 0 : index
    %c0_162 = arith.constant 0 : index
    %479 = vector.load %arg23[%c0_161, %c0_162] : memref<1x256xf32, #tpu.memory_space<vmem>>, vector<1x256xf32>
    %c0_163 = arith.constant 0 : index
    %c0_164 = arith.constant 0 : index
    %480 = vector.load %arg24[%c0_163, %c0_164] : memref<1x256xf32, #tpu.memory_space<vmem>>, vector<1x256xf32>
    %cst_165 = arith.constant dense<0.000000e+00> : vector<16xf32>
    %481 = vector.multi_reduction <add>, %478, %cst_165 [1] : vector<16x256xf32> to vector<16xf32>
    %482 = vector.shape_cast %481 : vector<16xf32> to vector<16x1xf32>
    %cst_166 = arith.constant 2.560000e+02 : f32
    %483 = vector.broadcast %cst_166 : f32 to vector<16x1xf32>
    %484 = arith.divf %482, %483 : vector<16x1xf32>
    %485 = vector.broadcast %484 : vector<16x1xf32> to vector<16x256xf32>
    %486 = arith.subf %478, %485 : vector<16x256xf32>
    %487 = arith.mulf %486, %486 : vector<16x256xf32>
    %cst_167 = arith.constant dense<0.000000e+00> : vector<16xf32>
    %488 = vector.multi_reduction <add>, %487, %cst_167 [1] : vector<16x256xf32> to vector<16xf32>
    %489 = vector.shape_cast %488 : vector<16xf32> to vector<16x1xf32>
    %cst_168 = arith.constant 2.560000e+02 : f32
    %490 = vector.broadcast %cst_168 : f32 to vector<16x1xf32>
    %491 = arith.divf %489, %490 : vector<16x1xf32>
    %492 = vector.broadcast %484 : vector<16x1xf32> to vector<16x256xf32>
    %493 = arith.subf %478, %492 : vector<16x256xf32>
    %cst_169 = arith.constant 9.99999996E-13 : f32
    %494 = vector.broadcast %cst_169 : f32 to vector<16x1xf32>
    %495 = arith.addf %491, %494 : vector<16x1xf32>
    %496 = math.rsqrt %495 : vector<16x1xf32>
    %497 = vector.broadcast %496 : vector<16x1xf32> to vector<16x256xf32>
    %498 = arith.mulf %493, %497 : vector<16x256xf32>
    %499 = vector.broadcast %479 : vector<1x256xf32> to vector<16x256xf32>
    %500 = arith.mulf %498, %499 : vector<16x256xf32>
    %501 = vector.broadcast %480 : vector<1x256xf32> to vector<16x256xf32>
    %502 = arith.addf %500, %501 : vector<16x256xf32>
    %503 = arith.truncf %502 : vector<16x256xf32> to vector<16x256xbf16>
    %c0_170 = arith.constant 0 : index
    %c0_171 = arith.constant 0 : index
    %504 = vector.load %arg25[%c0_170, %c0_171] : memref<256x512xbf16, #tpu.memory_space<vmem>>, vector<256x512xbf16>
    %cst_172 = arith.constant dense<0.000000e+00> : vector<16x512xf32>
    %505 = tpu.matmul %503, %504, %cst_172 {dimension_numbers = #tpu.dot_dimension_numbers<[1], [0], [0], [1], [0, 0, 1, 1], [], []>} : vector<16x256xbf16>, vector<256x512xbf16>, vector<16x512xf32> -> vector<16x512xf32>
    %c0_173 = arith.constant 0 : index
    %c0_174 = arith.constant 0 : index
    %506 = vector.load %arg26[%c0_173, %c0_174] : memref<1x512xf32, #tpu.memory_space<vmem>>, vector<1x512xf32>
    %507 = vector.broadcast %506 : vector<1x512xf32> to vector<16x512xf32>
    %508 = arith.addf %505, %507 : vector<16x512xf32>
    %cst_175 = arith.constant 5.000000e-01 : f32
    %509 = vector.broadcast %cst_175 : f32 to vector<16x512xf32>
    %510 = arith.mulf %509, %508 : vector<16x512xf32>
    %cst_176 = arith.constant 0.707106769 : f32
    %511 = vector.broadcast %cst_176 : f32 to vector<16x512xf32>
    %512 = arith.mulf %508, %511 : vector<16x512xf32>
    %513 = math.absf %512 : vector<16x512xf32>
    %cst_177 = arith.constant 0.327591091 : f32
    %514 = vector.broadcast %cst_177 : f32 to vector<16x512xf32>
    %515 = arith.mulf %514, %513 : vector<16x512xf32>
    %cst_178 = arith.constant 1.000000e+00 : f32
    %516 = vector.broadcast %cst_178 : f32 to vector<16x512xf32>
    %517 = arith.addf %516, %515 : vector<16x512xf32>
    %cst_179 = arith.constant 1.000000e+00 : f32
    %518 = vector.broadcast %cst_179 : f32 to vector<16x512xf32>
    %519 = arith.divf %518, %517 : vector<16x512xf32>
    %cst_180 = arith.constant 1.06140542 : f32
    %520 = vector.broadcast %cst_180 : f32 to vector<16x512xf32>
    %521 = arith.mulf %520, %519 : vector<16x512xf32>
    %cst_181 = arith.constant -1.45315206 : f32
    %522 = vector.broadcast %cst_181 : f32 to vector<16x512xf32>
    %523 = arith.addf %521, %522 : vector<16x512xf32>
    %524 = arith.mulf %523, %519 : vector<16x512xf32>
    %cst_182 = arith.constant 1.42141378 : f32
    %525 = vector.broadcast %cst_182 : f32 to vector<16x512xf32>
    %526 = arith.addf %524, %525 : vector<16x512xf32>
    %527 = arith.mulf %526, %519 : vector<16x512xf32>
    %cst_183 = arith.constant -0.284496725 : f32
    %528 = vector.broadcast %cst_183 : f32 to vector<16x512xf32>
    %529 = arith.addf %527, %528 : vector<16x512xf32>
    %530 = arith.mulf %529, %519 : vector<16x512xf32>
    %cst_184 = arith.constant 0.254829586 : f32
    %531 = vector.broadcast %cst_184 : f32 to vector<16x512xf32>
    %532 = arith.addf %530, %531 : vector<16x512xf32>
    %533 = arith.mulf %532, %519 : vector<16x512xf32>
    %cst_185 = arith.constant 0.000000e+00 : f32
    %534 = vector.broadcast %cst_185 : f32 to vector<16x512xf32>
    %535 = arith.subf %534, %513 : vector<16x512xf32>
    %536 = arith.mulf %535, %513 : vector<16x512xf32>
    %537 = math.exp %536 : vector<16x512xf32>
    %538 = arith.mulf %533, %537 : vector<16x512xf32>
    %cst_186 = arith.constant 1.000000e+00 : f32
    %539 = vector.broadcast %cst_186 : f32 to vector<16x512xf32>
    %540 = arith.subf %539, %538 : vector<16x512xf32>
    %cst_187 = arith.constant 0.000000e+00 : f32
    %541 = vector.broadcast %cst_187 : f32 to vector<16x512xf32>
    %542 = arith.cmpf oge, %512, %541 : vector<16x512xf32>
    %cst_188 = arith.constant 0.000000e+00 : f32
    %543 = vector.broadcast %cst_188 : f32 to vector<16x512xf32>
    %544 = arith.subf %543, %540 : vector<16x512xf32>
    %545 = arith.select %542, %540, %544 : vector<16x512xi1>, vector<16x512xf32>
    %cst_189 = arith.constant 1.000000e+00 : f32
    %546 = vector.broadcast %cst_189 : f32 to vector<16x512xf32>
    %547 = arith.addf %546, %545 : vector<16x512xf32>
    %548 = arith.mulf %510, %547 : vector<16x512xf32>
    %549 = arith.truncf %548 : vector<16x512xf32> to vector<16x512xbf16>
    %c0_190 = arith.constant 0 : index
    %c0_191 = arith.constant 0 : index
    %550 = vector.load %arg27[%c0_190, %c0_191] : memref<512x256xbf16, #tpu.memory_space<vmem>>, vector<512x256xbf16>
    %cst_192 = arith.constant dense<0.000000e+00> : vector<16x256xf32>
    %551 = tpu.matmul %549, %550, %cst_192 {dimension_numbers = #tpu.dot_dimension_numbers<[1], [0], [0], [1], [0, 0, 1, 1], [], []>} : vector<16x512xbf16>, vector<512x256xbf16>, vector<16x256xf32> -> vector<16x256xf32>
    %c0_193 = arith.constant 0 : index
    %c0_194 = arith.constant 0 : index
    %552 = vector.load %arg28[%c0_193, %c0_194] : memref<1x256xf32, #tpu.memory_space<vmem>>, vector<1x256xf32>
    %553 = vector.broadcast %552 : vector<1x256xf32> to vector<16x256xf32>
    %554 = arith.addf %551, %553 : vector<16x256xf32>
    %555 = arith.addf %554, %502 : vector<16x256xf32>
    %c0_195 = arith.constant 0 : index
    %c0_196 = arith.constant 0 : index
    %556 = vector.load %arg29[%c0_195, %c0_196] : memref<1x256xf32, #tpu.memory_space<vmem>>, vector<1x256xf32>
    %c0_197 = arith.constant 0 : index
    %c0_198 = arith.constant 0 : index
    %557 = vector.load %arg30[%c0_197, %c0_198] : memref<1x256xf32, #tpu.memory_space<vmem>>, vector<1x256xf32>
    %cst_199 = arith.constant dense<0.000000e+00> : vector<16xf32>
    %558 = vector.multi_reduction <add>, %555, %cst_199 [1] : vector<16x256xf32> to vector<16xf32>
    %559 = vector.shape_cast %558 : vector<16xf32> to vector<16x1xf32>
    %cst_200 = arith.constant 2.560000e+02 : f32
    %560 = vector.broadcast %cst_200 : f32 to vector<16x1xf32>
    %561 = arith.divf %559, %560 : vector<16x1xf32>
    %562 = vector.broadcast %561 : vector<16x1xf32> to vector<16x256xf32>
    %563 = arith.subf %555, %562 : vector<16x256xf32>
    %564 = arith.mulf %563, %563 : vector<16x256xf32>
    %cst_201 = arith.constant dense<0.000000e+00> : vector<16xf32>
    %565 = vector.multi_reduction <add>, %564, %cst_201 [1] : vector<16x256xf32> to vector<16xf32>
    %566 = vector.shape_cast %565 : vector<16xf32> to vector<16x1xf32>
    %cst_202 = arith.constant 2.560000e+02 : f32
    %567 = vector.broadcast %cst_202 : f32 to vector<16x1xf32>
    %568 = arith.divf %566, %567 : vector<16x1xf32>
    %569 = vector.broadcast %561 : vector<16x1xf32> to vector<16x256xf32>
    %570 = arith.subf %555, %569 : vector<16x256xf32>
    %cst_203 = arith.constant 9.99999996E-13 : f32
    %571 = vector.broadcast %cst_203 : f32 to vector<16x1xf32>
    %572 = arith.addf %568, %571 : vector<16x1xf32>
    %573 = math.rsqrt %572 : vector<16x1xf32>
    %574 = vector.broadcast %573 : vector<16x1xf32> to vector<16x256xf32>
    %575 = arith.mulf %570, %574 : vector<16x256xf32>
    %576 = vector.broadcast %556 : vector<1x256xf32> to vector<16x256xf32>
    %577 = arith.mulf %575, %576 : vector<16x256xf32>
    %578 = vector.broadcast %557 : vector<1x256xf32> to vector<16x256xf32>
    %579 = arith.addf %577, %578 : vector<16x256xf32>
    %580 = vector.extract_strided_slice %579 {offsets = [0, 0], sizes = [1, 256], strides = [1, 1]} : vector<16x256xf32> to vector<1x256xf32>
    %581 = vector.extract_strided_slice %579 {offsets = [8, 0], sizes = [1, 256], strides = [1, 1]} : vector<16x256xf32> to vector<1x256xf32>
    %582 = tpu.concatenate %580, %581 in 0 : vector<1x256xf32>, vector<1x256xf32> -> vector<2x256xf32>
    %583 = arith.truncf %582 : vector<2x256xf32> to vector<2x256xbf16>
    %c0_204 = arith.constant 0 : index
    %c0_205 = arith.constant 0 : index
    %584 = vector.load %arg31[%c0_204, %c0_205] : memref<256x1024xbf16, #tpu.memory_space<vmem>>, vector<256x1024xbf16>
    %cst_206 = arith.constant dense<0.000000e+00> : vector<2x1024xf32>
    %585 = tpu.matmul %583, %584, %cst_206 {dimension_numbers = #tpu.dot_dimension_numbers<[1], [0], [0], [1], [0, 0, 1, 1], [], []>} : vector<2x256xbf16>, vector<256x1024xbf16>, vector<2x1024xf32> -> vector<2x1024xf32>
    %c0_207 = arith.constant 0 : index
    %c0_208 = arith.constant 0 : index
    %586 = vector.load %arg33[%c0_207, %c0_208] : memref<1x512xf32, #tpu.memory_space<vmem>>, vector<1x512xf32>
    %c0_209 = arith.constant 0 : index
    %c0_210 = arith.constant 0 : index
    %587 = vector.load %arg34[%c0_209, %c0_210] : memref<1x512xf32, #tpu.memory_space<vmem>>, vector<1x512xf32>
    %cst_211 = arith.constant 0.000000e+00 : f32
    %588 = vector.broadcast %cst_211 : f32 to vector<2x128xf32>
    %cst_212 = arith.constant 0.000000e+00 : f32
    %589 = vector.broadcast %cst_212 : f32 to vector<2x128xf32>
    %590 = arith.truncf %588 : vector<2x128xf32> to vector<2x128xbf16>
    %c0_213 = arith.constant 0 : index
    %c0_214 = arith.constant 0 : index
    %591 = vector.load %arg32[%c0_213, %c0_214] : memref<128x1024xbf16, #tpu.memory_space<vmem>>, vector<128x1024xbf16>
    %cst_215 = arith.constant dense<0.000000e+00> : vector<2x1024xf32>
    %592 = tpu.matmul %590, %591, %cst_215 {dimension_numbers = #tpu.dot_dimension_numbers<[1], [0], [0], [1], [0, 0, 1, 1], [], []>} : vector<2x128xbf16>, vector<128x1024xbf16>, vector<2x1024xf32> -> vector<2x1024xf32>
    %593 = vector.extract_strided_slice %585 {offsets = [0, 0], sizes = [1, 512], strides = [1, 1]} : vector<2x1024xf32> to vector<1x512xf32>
    %594 = vector.extract_strided_slice %592 {offsets = [0, 0], sizes = [1, 512], strides = [1, 1]} : vector<2x1024xf32> to vector<1x512xf32>
    %595 = arith.addf %593, %594 : vector<1x512xf32>
    %596 = arith.addf %595, %586 : vector<1x512xf32>
    %597 = vector.extract_strided_slice %585 {offsets = [1, 512], sizes = [1, 512], strides = [1, 1]} : vector<2x1024xf32> to vector<1x512xf32>
    %598 = vector.extract_strided_slice %592 {offsets = [1, 512], sizes = [1, 512], strides = [1, 1]} : vector<2x1024xf32> to vector<1x512xf32>
    %599 = arith.addf %597, %598 : vector<1x512xf32>
    %600 = arith.addf %599, %587 : vector<1x512xf32>
    %601 = tpu.concatenate %596, %600 in 0 : vector<1x512xf32>, vector<1x512xf32> -> vector<2x512xf32>
    %602 = vector.extract_strided_slice %601 {offsets = [0, 0], sizes = [2, 128], strides = [1, 1]} : vector<2x512xf32> to vector<2x128xf32>
    %603 = arith.negf %602 : vector<2x128xf32>
    %604 = math.exp %603 : vector<2x128xf32>
    %cst_216 = arith.constant 1.000000e+00 : f32
    %605 = vector.broadcast %cst_216 : f32 to vector<2x128xf32>
    %606 = arith.addf %605, %604 : vector<2x128xf32>
    %607 = arith.divf %605, %606 : vector<2x128xf32>
    %608 = vector.extract_strided_slice %601 {offsets = [0, 128], sizes = [2, 128], strides = [1, 1]} : vector<2x512xf32> to vector<2x128xf32>
    %609 = arith.negf %608 : vector<2x128xf32>
    %610 = math.exp %609 : vector<2x128xf32>
    %cst_217 = arith.constant 1.000000e+00 : f32
    %611 = vector.broadcast %cst_217 : f32 to vector<2x128xf32>
    %612 = arith.addf %611, %610 : vector<2x128xf32>
    %613 = arith.divf %611, %612 : vector<2x128xf32>
    %614 = vector.extract_strided_slice %601 {offsets = [0, 256], sizes = [2, 128], strides = [1, 1]} : vector<2x512xf32> to vector<2x128xf32>
    %615 = math.tanh %614 : vector<2x128xf32>
    %616 = vector.extract_strided_slice %601 {offsets = [0, 384], sizes = [2, 128], strides = [1, 1]} : vector<2x512xf32> to vector<2x128xf32>
    %617 = arith.negf %616 : vector<2x128xf32>
    %618 = math.exp %617 : vector<2x128xf32>
    %cst_218 = arith.constant 1.000000e+00 : f32
    %619 = vector.broadcast %cst_218 : f32 to vector<2x128xf32>
    %620 = arith.addf %619, %618 : vector<2x128xf32>
    %621 = arith.divf %619, %620 : vector<2x128xf32>
    %622 = arith.mulf %613, %589 : vector<2x128xf32>
    %623 = arith.mulf %607, %615 : vector<2x128xf32>
    %624 = arith.addf %622, %623 : vector<2x128xf32>
    %625 = math.tanh %624 : vector<2x128xf32>
    %626 = arith.mulf %621, %625 : vector<2x128xf32>
    %627 = arith.truncf %626 : vector<2x128xf32> to vector<2x128xbf16>
    %c0_219 = arith.constant 0 : index
    %c0_220 = arith.constant 0 : index
    %628 = vector.load %arg32[%c0_219, %c0_220] : memref<128x1024xbf16, #tpu.memory_space<vmem>>, vector<128x1024xbf16>
    %cst_221 = arith.constant dense<0.000000e+00> : vector<2x1024xf32>
    %629 = tpu.matmul %627, %628, %cst_221 {dimension_numbers = #tpu.dot_dimension_numbers<[1], [0], [0], [1], [0, 0, 1, 1], [], []>} : vector<2x128xbf16>, vector<128x1024xbf16>, vector<2x1024xf32> -> vector<2x1024xf32>
    %630 = vector.extract_strided_slice %585 {offsets = [1, 0], sizes = [1, 512], strides = [1, 1]} : vector<2x1024xf32> to vector<1x512xf32>
    %631 = vector.extract_strided_slice %629 {offsets = [0, 0], sizes = [1, 512], strides = [1, 1]} : vector<2x1024xf32> to vector<1x512xf32>
    %632 = arith.addf %630, %631 : vector<1x512xf32>
    %633 = arith.addf %632, %586 : vector<1x512xf32>
    %634 = vector.extract_strided_slice %585 {offsets = [0, 512], sizes = [1, 512], strides = [1, 1]} : vector<2x1024xf32> to vector<1x512xf32>
    %635 = vector.extract_strided_slice %629 {offsets = [1, 512], sizes = [1, 512], strides = [1, 1]} : vector<2x1024xf32> to vector<1x512xf32>
    %636 = arith.addf %634, %635 : vector<1x512xf32>
    %637 = arith.addf %636, %587 : vector<1x512xf32>
    %638 = tpu.concatenate %633, %637 in 0 : vector<1x512xf32>, vector<1x512xf32> -> vector<2x512xf32>
    %639 = vector.extract_strided_slice %638 {offsets = [0, 0], sizes = [2, 128], strides = [1, 1]} : vector<2x512xf32> to vector<2x128xf32>
    %640 = arith.negf %639 : vector<2x128xf32>
    %641 = math.exp %640 : vector<2x128xf32>
    %cst_222 = arith.constant 1.000000e+00 : f32
    %642 = vector.broadcast %cst_222 : f32 to vector<2x128xf32>
    %643 = arith.addf %642, %641 : vector<2x128xf32>
    %644 = arith.divf %642, %643 : vector<2x128xf32>
    %645 = vector.extract_strided_slice %638 {offsets = [0, 128], sizes = [2, 128], strides = [1, 1]} : vector<2x512xf32> to vector<2x128xf32>
    %646 = arith.negf %645 : vector<2x128xf32>
    %647 = math.exp %646 : vector<2x128xf32>
    %cst_223 = arith.constant 1.000000e+00 : f32
    %648 = vector.broadcast %cst_223 : f32 to vector<2x128xf32>
    %649 = arith.addf %648, %647 : vector<2x128xf32>
    %650 = arith.divf %648, %649 : vector<2x128xf32>
    %651 = vector.extract_strided_slice %638 {offsets = [0, 256], sizes = [2, 128], strides = [1, 1]} : vector<2x512xf32> to vector<2x128xf32>
    %652 = math.tanh %651 : vector<2x128xf32>
    %653 = vector.extract_strided_slice %638 {offsets = [0, 384], sizes = [2, 128], strides = [1, 1]} : vector<2x512xf32> to vector<2x128xf32>
    %654 = arith.negf %653 : vector<2x128xf32>
    %655 = math.exp %654 : vector<2x128xf32>
    %cst_224 = arith.constant 1.000000e+00 : f32
    %656 = vector.broadcast %cst_224 : f32 to vector<2x128xf32>
    %657 = arith.addf %656, %655 : vector<2x128xf32>
    %658 = arith.divf %656, %657 : vector<2x128xf32>
    %659 = arith.mulf %650, %624 : vector<2x128xf32>
    %660 = arith.mulf %644, %652 : vector<2x128xf32>
    %661 = arith.addf %659, %660 : vector<2x128xf32>
    %662 = math.tanh %661 : vector<2x128xf32>
    %663 = arith.mulf %658, %662 : vector<2x128xf32>
    %664 = vector.extract_strided_slice %626 {offsets = [0, 0], sizes = [1, 128], strides = [1, 1]} : vector<2x128xf32> to vector<1x128xf32>
    %665 = vector.extract_strided_slice %663 {offsets = [0, 0], sizes = [1, 128], strides = [1, 1]} : vector<2x128xf32> to vector<1x128xf32>
    %666 = tpu.concatenate %664, %665 in 0 : vector<1x128xf32>, vector<1x128xf32> -> vector<2x128xf32>
    %667 = vector.extract_strided_slice %663 {offsets = [1, 0], sizes = [1, 128], strides = [1, 1]} : vector<2x128xf32> to vector<1x128xf32>
    %668 = vector.extract_strided_slice %626 {offsets = [1, 0], sizes = [1, 128], strides = [1, 1]} : vector<2x128xf32> to vector<1x128xf32>
    %669 = tpu.concatenate %667, %668 in 0 : vector<1x128xf32>, vector<1x128xf32> -> vector<2x128xf32>
    %670 = tpu.concatenate %666, %669 in 1 : vector<2x128xf32>, vector<2x128xf32> -> vector<2x256xf32>
    %c0_225 = arith.constant 0 : index
    %c0_226 = arith.constant 0 : index
    %671 = vector.load %arg35[%c0_225, %c0_226] : memref<256x5xf32, #tpu.memory_space<vmem>>, vector<256x5xf32>
    %cst_227 = arith.constant dense<0.000000e+00> : vector<2x5xf32>
    %672 = tpu.matmul %670, %671, %cst_227 {dimension_numbers = #tpu.dot_dimension_numbers<[1], [0], [0], [1], [0, 0, 1, 1], [], []>} : vector<2x256xf32>, vector<256x5xf32>, vector<2x5xf32> -> vector<2x5xf32>
    %c0_228 = arith.constant 0 : index
    %c0_229 = arith.constant 0 : index
    %673 = vector.load %arg36[%c0_228, %c0_229] : memref<1x5xf32, #tpu.memory_space<vmem>>, vector<1x5xf32>
    %674 = vector.broadcast %673 : vector<1x5xf32> to vector<2x5xf32>
    %675 = arith.addf %672, %674 : vector<2x5xf32>
    %cst_230 = arith.constant dense<0xFF800000> : vector<5xf32>
    %676 = vector.multi_reduction <maximumf>, %675, %cst_230 [0] : vector<2x5xf32> to vector<5xf32>
    %677 = vector.shape_cast %676 : vector<5xf32> to vector<1x5xf32>
    %678 = vector.broadcast %677 : vector<1x5xf32> to vector<2x5xf32>
    %679 = arith.subf %675, %678 : vector<2x5xf32>
    %680 = math.exp %679 : vector<2x5xf32>
    %cst_231 = arith.constant dense<0.000000e+00> : vector<5xf32>
    %681 = vector.multi_reduction <add>, %680, %cst_231 [0] : vector<2x5xf32> to vector<5xf32>
    %682 = vector.shape_cast %681 : vector<5xf32> to vector<1x5xf32>
    %683 = vector.broadcast %682 : vector<1x5xf32> to vector<2x5xf32>
    %684 = arith.divf %680, %683 : vector<2x5xf32>
    %c0_232 = arith.constant 0 : index
    %c0_233 = arith.constant 0 : index
    %685 = vector.load %arg37[%c0_232, %c0_233] : memref<2x5xf32, #tpu.memory_space<vmem>>, vector<2x5xf32>
    tpu.vector_store %arg37[%c0_232, %c0_233], %684 {strides = array<i32>} : memref<2x5xf32, #tpu.memory_space<vmem>>, vector<2x5xf32>,
    return
  }
  func.func @transform_0(%arg0: i32) -> (i32, i32) {
    %c0_i32 = arith.constant 0 : i32
    %c0_i32_0 = arith.constant 0 : i32
    %c0_i32_1 = arith.constant 0 : i32
    return %c0_i32, %c0_i32_0 : i32, i32
  }
  func.func @transform_1(%arg0: i32) -> (i32, i32) {
    %c0_i32 = arith.constant 0 : i32
    %c0_i32_0 = arith.constant 0 : i32
    %c0_i32_1 = arith.constant 0 : i32
    return %c0_i32, %c0_i32_0 : i32, i32
  }
  func.func @transform_2(%arg0: i32) -> (i32, i32) {
    %c0_i32 = arith.constant 0 : i32
    %c0_i32_0 = arith.constant 0 : i32
    %c0_i32_1 = arith.constant 0 : i32
    return %c0_i32, %c0_i32_0 : i32, i32
  }
  func.func @transform_3(%arg0: i32) -> (i32, i32) {
    %c0_i32 = arith.constant 0 : i32
    %c0_i32_0 = arith.constant 0 : i32
    %c0_i32_1 = arith.constant 0 : i32
    return %c0_i32, %c0_i32_0 : i32, i32
  }
  func.func @transform_4(%arg0: i32) -> (i32, i32) {
    %c0_i32 = arith.constant 0 : i32
    %c0_i32_0 = arith.constant 0 : i32
    %c0_i32_1 = arith.constant 0 : i32
    return %c0_i32, %c0_i32_0 : i32, i32
  }
  func.func @transform_5(%arg0: i32) -> (i32, i32) {
    %c0_i32 = arith.constant 0 : i32
    %c0_i32_0 = arith.constant 0 : i32
    %c0_i32_1 = arith.constant 0 : i32
    return %c0_i32, %c0_i32_0 : i32, i32
  }
  func.func @transform_6(%arg0: i32) -> (i32, i32) {
    %c0_i32 = arith.constant 0 : i32
    %c0_i32_0 = arith.constant 0 : i32
    %c0_i32_1 = arith.constant 0 : i32
    return %c0_i32, %c0_i32_0 : i32, i32
  }
  func.func @transform_7(%arg0: i32) -> (i32, i32) {
    %c0_i32 = arith.constant 0 : i32
    %c0_i32_0 = arith.constant 0 : i32
    %c0_i32_1 = arith.constant 0 : i32
    return %c0_i32, %c0_i32_0 : i32, i32
  }
  func.func @transform_8(%arg0: i32) -> (i32, i32) {
    %c0_i32 = arith.constant 0 : i32
    %c0_i32_0 = arith.constant 0 : i32
    %c0_i32_1 = arith.constant 0 : i32
    return %c0_i32, %c0_i32_0 : i32, i32
  }
  func.func @transform_9(%arg0: i32) -> (i32, i32) {
    %c0_i32 = arith.constant 0 : i32
    %c0_i32_0 = arith.constant 0 : i32
    %c0_i32_1 = arith.constant 0 : i32
    return %c0_i32, %c0_i32_0 : i32, i32
  }
  func.func @transform_10(%arg0: i32) -> (i32, i32) {
    %c0_i32 = arith.constant 0 : i32
    %c0_i32_0 = arith.constant 0 : i32
    %c0_i32_1 = arith.constant 0 : i32
    return %c0_i32, %c0_i32_0 : i32, i32
  }
  func.func @transform_11(%arg0: i32) -> (i32, i32) {
    %c0_i32 = arith.constant 0 : i32
    %c0_i32_0 = arith.constant 0 : i32
    %c0_i32_1 = arith.constant 0 : i32
    return %c0_i32, %c0_i32_0 : i32, i32
  }
  func.func @transform_12(%arg0: i32) -> (i32, i32) {
    %c0_i32 = arith.constant 0 : i32
    %c0_i32_0 = arith.constant 0 : i32
    %c0_i32_1 = arith.constant 0 : i32
    return %c0_i32, %c0_i32_0 : i32, i32
  }
  func.func @transform_13(%arg0: i32) -> (i32, i32) {
    %c0_i32 = arith.constant 0 : i32
    %c0_i32_0 = arith.constant 0 : i32
    %c0_i32_1 = arith.constant 0 : i32
    return %c0_i32, %c0_i32_0 : i32, i32
  }
  func.func @transform_14(%arg0: i32) -> (i32, i32) {
    %c0_i32 = arith.constant 0 : i32
    %c0_i32_0 = arith.constant 0 : i32
    %c0_i32_1 = arith.constant 0 : i32
    return %c0_i32, %c0_i32_0 : i32, i32
  }
  func.func @transform_15(%arg0: i32) -> (i32, i32) {
    %c0_i32 = arith.constant 0 : i32
    %c0_i32_0 = arith.constant 0 : i32
    %c0_i32_1 = arith.constant 0 : i32
    return %c0_i32, %c0_i32_0 : i32, i32
  }
  func.func @transform_16(%arg0: i32) -> (i32, i32) {
    %c0_i32 = arith.constant 0 : i32
    %c0_i32_0 = arith.constant 0 : i32
    %c0_i32_1 = arith.constant 0 : i32
    return %c0_i32, %c0_i32_0 : i32, i32
  }
  func.func @transform_17(%arg0: i32) -> (i32, i32) {
    %c0_i32 = arith.constant 0 : i32
    %c0_i32_0 = arith.constant 0 : i32
    %c0_i32_1 = arith.constant 0 : i32
    return %c0_i32, %c0_i32_0 : i32, i32
  }
  func.func @transform_18(%arg0: i32) -> (i32, i32) {
    %c0_i32 = arith.constant 0 : i32
    %c0_i32_0 = arith.constant 0 : i32
    %c0_i32_1 = arith.constant 0 : i32
    return %c0_i32, %c0_i32_0 : i32, i32
  }
  func.func @transform_19(%arg0: i32) -> (i32, i32) {
    %c0_i32 = arith.constant 0 : i32
    %c0_i32_0 = arith.constant 0 : i32
    %c0_i32_1 = arith.constant 0 : i32
    return %c0_i32, %c0_i32_0 : i32, i32
  }
  func.func @transform_20(%arg0: i32) -> (i32, i32) {
    %c0_i32 = arith.constant 0 : i32
    %c0_i32_0 = arith.constant 0 : i32
    %c0_i32_1 = arith.constant 0 : i32
    return %c0_i32, %c0_i32_0 : i32, i32
  }
  func.func @transform_21(%arg0: i32) -> (i32, i32) {
    %c0_i32 = arith.constant 0 : i32
    %c0_i32_0 = arith.constant 0 : i32
    %c0_i32_1 = arith.constant 0 : i32
    return %c0_i32, %c0_i32_0 : i32, i32
  }
  func.func @transform_22(%arg0: i32) -> (i32, i32) {
    %c0_i32 = arith.constant 0 : i32
    %c0_i32_0 = arith.constant 0 : i32
    %c0_i32_1 = arith.constant 0 : i32
    return %c0_i32, %c0_i32_0 : i32, i32
  }
  func.func @transform_23(%arg0: i32) -> (i32, i32) {
    %c0_i32 = arith.constant 0 : i32
    %c0_i32_0 = arith.constant 0 : i32
    %c0_i32_1 = arith.constant 0 : i32
    return %c0_i32, %c0_i32_0 : i32, i32
  }
  func.func @transform_24(%arg0: i32) -> (i32, i32) {
    %c0_i32 = arith.constant 0 : i32
    %c0_i32_0 = arith.constant 0 : i32
    %c0_i32_1 = arith.constant 0 : i32
    return %c0_i32, %c0_i32_0 : i32, i32
  }
  func.func @transform_25(%arg0: i32) -> (i32, i32) {
    %c0_i32 = arith.constant 0 : i32
    %c0_i32_0 = arith.constant 0 : i32
    %c0_i32_1 = arith.constant 0 : i32
    return %c0_i32, %c0_i32_0 : i32, i32
  }
  func.func @transform_26(%arg0: i32) -> (i32, i32) {
    %c0_i32 = arith.constant 0 : i32
    %c0_i32_0 = arith.constant 0 : i32
    %c0_i32_1 = arith.constant 0 : i32
    return %c0_i32, %c0_i32_0 : i32, i32
  }
  func.func @transform_27(%arg0: i32) -> (i32, i32) {
    %c0_i32 = arith.constant 0 : i32
    %c0_i32_0 = arith.constant 0 : i32
    %c0_i32_1 = arith.constant 0 : i32
    return %c0_i32, %c0_i32_0 : i32, i32
  }
  func.func @transform_28(%arg0: i32) -> (i32, i32) {
    %c0_i32 = arith.constant 0 : i32
    %c0_i32_0 = arith.constant 0 : i32
    %c0_i32_1 = arith.constant 0 : i32
    return %c0_i32, %c0_i32_0 : i32, i32
  }
  func.func @transform_29(%arg0: i32) -> (i32, i32) {
    %c0_i32 = arith.constant 0 : i32
    %c0_i32_0 = arith.constant 0 : i32
    %c0_i32_1 = arith.constant 0 : i32
    return %c0_i32, %c0_i32_0 : i32, i32
  }
  func.func @transform_30(%arg0: i32) -> (i32, i32) {
    %c0_i32 = arith.constant 0 : i32
    %c0_i32_0 = arith.constant 0 : i32
    %c0_i32_1 = arith.constant 0 : i32
    return %c0_i32, %c0_i32_0 : i32, i32
  }
  func.func @transform_31(%arg0: i32) -> (i32, i32) {
    %c0_i32 = arith.constant 0 : i32
    %c0_i32_0 = arith.constant 0 : i32
    %c0_i32_1 = arith.constant 0 : i32
    return %c0_i32, %c0_i32_0 : i32, i32
  }
  func.func @transform_32(%arg0: i32) -> (i32, i32) {
    %c0_i32 = arith.constant 0 : i32
    %c0_i32_0 = arith.constant 0 : i32
    %c0_i32_1 = arith.constant 0 : i32
    return %c0_i32, %c0_i32_0 : i32, i32
  }
  func.func @transform_33(%arg0: i32) -> (i32, i32) {
    %c0_i32 = arith.constant 0 : i32
    %c0_i32_0 = arith.constant 0 : i32
    %c0_i32_1 = arith.constant 0 : i32
    return %c0_i32, %c0_i32_0 : i32, i32
  }
  func.func @transform_34(%arg0: i32) -> (i32, i32) {
    %c0_i32 = arith.constant 0 : i32
    %c0_i32_0 = arith.constant 0 : i32
    %c0_i32_1 = arith.constant 0 : i32
    return %c0_i32, %c0_i32_0 : i32, i32
  }
  func.func @transform_35(%arg0: i32) -> (i32, i32) {
    %c0_i32 = arith.constant 0 : i32
    %c0_i32_0 = arith.constant 0 : i32
    %c0_i32_1 = arith.constant 0 : i32
    return %c0_i32, %c0_i32_0 : i32, i32
  }
  func.func @transform_36(%arg0: i32) -> (i32, i32) {
    %c0_i32 = arith.constant 0 : i32
    %c0_i32_0 = arith.constant 0 : i32
    %c0_i32_1 = arith.constant 0 : i32
    return %c0_i32, %c0_i32_0 : i32, i32
  }
}

</mosaic_0001>

<bundles_post_ra>
// kernel: classifier_forward.1
= control target key start
LH: loop header
LB: loop body
LE: loop exit
PB: predicated region body
PF: predicated region fallthrough
CT: control target
= control target key end

     0   :  { %s12275_s6 = smov 1   ;;  %s12276_s10 = smov 2   ;;  %s14010_s0 = inlined_call_operand.smem [shape: u32[37], index: -1, kind: input, shape index: {}] }
   0x1   :  { %s12343_s5 = sld [smem:[%s14010_s0]]   ;;  %s12277_s14 = smov 3  }
   0x2   :  { %s12348_s9 = sld [smem:[%s14010_s0 + %s12275_s6]]   ;;  %s12278_s18 = smov 4  }
   0x3   :  { %s12353_s13 = sld [smem:[%s14010_s0 + %s12276_s10]]   ;;  %s12279_s22 = smov 5  }
   0x4   :  { %s12358_s17 = sld [smem:[%s14010_s0 + %s12277_s14]]   ;;  %s12280_s26 = smov 6  }
   0x5   :  { %s12363_s21 = sld [smem:[%s14010_s0 + %s12278_s18]]   ;;  %s12281_s30 = smov 7  }
   0x6   :  { %s12368_s25 = sld [smem:[%s14010_s0 + %s12279_s22]]   ;;  %s12282_s4 = smov 8  }
   0x7   :  { %s12373_s29 = sld [smem:[%s14010_s0 + %s12280_s26]]   ;;  %s12283_s10 = smov 9  }
   0x8   :  { %14020 = sst [smem:[#allocation28_spill]] %s12348_s9  ;;  %s12284_s15 = smov 10  }
   0x9   :  { %s12378_s3 = sld [smem:[%s14010_s0 + %s12281_s30]]   ;;  %s12285_s20 = smov 11  }
   0xa   :  { %s12383_s8 = sld [smem:[%s14010_s0 + %s12282_s4]]   ;;  %s12286_s26 = smov 12  }
   0xb   :  { %s12388_s14 = sld [smem:[%s14010_s0 + %s12283_s10]]   ;;  %s12287_s1 = smov 13  }
   0xc   :  { %s12393_s19 = sld [smem:[%s14010_s0 + %s12284_s15]]   ;;  %s12288_s7 = smov 14  }
   0xd   :  { %s12398_s24 = sld [smem:[%s14010_s0 + %s12285_s20]]   ;;  %s12289_s15 = smov 15  }
   0xe   :  { %s12403_s30 = sld [smem:[%s14010_s0 + %s12286_s26]]   ;;  %s12290_s22 = smov 16  }
   0xf   :  { %14021 = sst [smem:[#allocation29_spill]] %s12378_s3  ;;  %s12291_s28 = smov 17  }
  0x10   :  { %s12408_s6 = sld [smem:[%s14010_s0 + %s12287_s1]]  }
  0x11   :  { %14022 = sst [smem:[#allocation30_spill]] %s12388_s14 }
  0x12   :  { %14023 = sst [smem:[#allocation31_spill]] %s12393_s19 }
  0x13   :  { %14024 = sst [smem:[#allocation32_spill]] %s12398_s24 }
  0x14   :  { %14025 = sst [smem:[#allocation33_spill]] %s12403_s30 }
  0x15   :  { %s12413_s12 = sld [smem:[%s14010_s0 + %s12288_s7]]   ;;  %s12292_s7 = smov 18  }
  0x16   :  { %14026 = sst [smem:[#allocation34_spill]] %s12408_s6 }
  0x17   :  { %s12418_s20 = sld [smem:[%s14010_s0 + %s12289_s15]]   ;;  %s12293_s15 = smov 19  }
  0x18   :  { %s12423_s27 = sld [smem:[%s14010_s0 + %s12290_s22]]   ;;  %s12294_s22 = smov 20  }
  0x19   :  { %s12428_s4 = sld [smem:[%s14010_s0 + %s12291_s28]]   ;;  %s12295_s28 = smov 21  }
  0x1a   :  { %s12433_s6 = sld [smem:[%s14010_s0 + %s12292_s7]]   ;;  %s12296_s7 = smov 22  }
  0x1b   :  { %s12453_s24 = sld [smem:[%s14010_s0 + %s12296_s7]]   ;;  %s12300_s7 = smov 26  }
  0x1d   :  { %14027 = sst [smem:[#allocation35_spill]] %s12418_s20 }
  0x1e   :  { %14028 = sst [smem:[#allocation36_spill]] %s12423_s27 }
  0x1f   :  { %14029 = sst [smem:[#allocation37_spill]] %s12428_s4 }
  0x20   :  { %s12438_s20 = sld [smem:[%s14010_s0 + %s12293_s15]]   ;;  %s12297_s15 = smov 23  }
  0x21   :  { %s12443_s27 = sld [smem:[%s14010_s0 + %s12294_s22]]   ;;  %s12298_s22 = smov 24  }
  0x22   :  { %s12448_s4 = sld [smem:[%s14010_s0 + %s12295_s28]]   ;;  %s12299_s28 = smov 25  }
  0x23   :  { %14032 = sst [smem:[#allocation40_spill]] %s12453_s24 }
  0x24   :  { %s12463_s19 = sld [smem:[%s14010_s0 + %s12298_s22]]   ;;  %s12302_s22 = smov 28  }
  0x25   :  { %s12473_s24 = sld [smem:[%s14010_s0 + %s12300_s7]]   ;;  %s12304_s7 = smov 30  }
  0x26   :  { %14030 = sst [smem:[#allocation38_spill]] %s12438_s20 }
  0x27   :  { %s12458_s20 = sld [smem:[%s14010_s0 + %s12297_s15]]   ;;  %s12301_s15 = smov 27  }
  0x28   :  { %14031 = sst [smem:[#allocation39_spill]] %s12448_s4 }
  0x29   :  { %s12468_s4 = sld [smem:[%s14010_s0 + %s12299_s28]]   ;;  %s12303_s28 = smov 29  }
  0x2a   :  { %s12483_s30 = sld [smem:[%s14010_s0 + %s12302_s22]]   ;;  %s12306_s22 = smov 32  }
  0x2b   :  { %s12493_s14 = sld [smem:[%s14010_s0 + %s12304_s7]]   ;;  %s12308_s7 = smov 34  }
  0x2c   :  { %s12513_s9 = sld [smem:[%s14010_s0 + %s12308_s7]]  }
  0x2d   :  { %14033 = sst [smem:[#allocation41_spill]] %s12458_s20 }
  0x2e   :  { %s12478_s20 = sld [smem:[%s14010_s0 + %s12301_s15]]   ;;  %s12305_s15 = smov 31  }
  0x2f   :  { %14034 = sst [smem:[#allocation42_spill]] %s12468_s4 }
  0x30   :  { %14036 = sst [smem:[#allocation44_spill]] %s12483_s30 }
  0x31   :  { %s12488_s4 = sld [smem:[%s14010_s0 + %s12303_s28]]   ;;  %s12307_s28 = smov 33  }
  0x32   :  { %s12503_s30 = sld [smem:[%s14010_s0 + %s12306_s22]]   ;;  %s12310_s22 = smov 36  }
  0x34   :  { %14035 = sst [smem:[#allocation43_spill]] %s12478_s20 }
  0x35   :  { %s12498_s20 = sld [smem:[%s14010_s0 + %s12305_s15]]   ;;  %s12309_s15 = smov 35  }
  0x36   :  { %s12518_s3 = sld [smem:[%s14010_s0 + %s12309_s15]]  }
  0x37   :  { %14037 = sst [smem:[#allocation45_spill]] %s12488_s4 }
  0x38   :  { %14038 = sst [smem:[#allocation46_spill]] %s12503_s30 }
  0x39   :  { %s12508_s4 = sld [smem:[%s14010_s0 + %s12307_s28]]  }
  0x3a   :  { %s12523_s30 = sld [smem:[%s14010_s0 + %s12310_s22]]  }
  0x3b   :  { %78 = vsyncpa [#allocation3], 0 }
  0x3c   :  { %79 = vsyncpa [#allocation6], 0 }
  0x3d   :  { %80 = vsyncpa [#allocation9], 0 }
  0x3e   :  { %81 = vsyncpa [#allocation12], 0 }
  0x3f   :  { %82 = vsyncpa [#allocation15], 0 }
  0x40   :  { %83 = vsyncpa [#allocation18], 0 }
  0x41   :  { %84 = vsyncpa [#allocation4], 0  ;;  %s12311_s28 = smov [#allocation5]   ;;  %s11997_s2 = scalar_lea.hbm %s12363_s21, 2048 }
  0x42   :  { %s106_s1 = sshll.u32 %s12311_s28, 4  ;;  %p11998_p0 = scmp.ne.s32.totalorder %s12363_s21, %s11997_s2  ;;  %s107_s1 = int_to_ptr.vmem [resolvable:$true] %s106_s1 }
  0x43   :  { %p12001_p1 = scmp.lt.u32.totalorder %s11997_s2, %s12363_s21 }
  0x45   :  { %p12003_p2 = pnand %p12001_p1, %p11998_p0 }
  0x47   :  { %12006 = shalt.err (!%p12003_p2)
}
  0x48   :  { %s12007_s0 = scalar_lea.vmem %s107_s1, 2048  ;;  %p12012_p4 = scmp.lt.s32.totalorder %s107_s1, %s107_s1 }
  0x49   :  { %p12008_p3 = scmp.ne.s32.totalorder %s107_s1, %s12007_s0  ;;  %p12013_p5 = scmp.lt.s32.totalorder %s12007_s0, %s12007_s0 }
  0x4b   :  { %p12014_p6 = por %p12013_p5, %p12012_p4 }
  0x4d   :  { %p12015_p7 = pnand %p12014_p6, %p12008_p3 }
  0x4f   :  { %12018 = shalt.err (!%p12015_p7)
}
  0x50   :  { %s12312_s7 = smov 128   ;;  %s12313_s10 = smov 8  }
  0x51   :  { %112 = dma.hbm_to_vmem [thread:$0]  %s12363_s21, 2048, %s107_s1, [#allocation6], %s12312_s7, %s12312_s7, %s12313_s10  }
  0x52   :  { %s12314_s11 = smov [#allocation8]   ;;  %s12019_s16 = scalar_lea.hbm %s12383_s8, 4096 }
  0x53   :  { %s134_s15 = sshll.u32 %s12314_s11, 4  ;;  %p12020_p8 = scmp.ne.s32.totalorder %s12383_s8, %s12019_s16  ;;  %s135_s15 = int_to_ptr.vmem [resolvable:$true] %s134_s15 }
  0x54   :  { %p12023_p9 = scmp.lt.u32.totalorder %s12019_s16, %s12383_s8 }
  0x56   :  { %p12025_p10 = pnand %p12023_p9, %p12020_p8 }
  0x58   :  { %12028 = shalt.err (!%p12025_p10)
}
  0x59   :  { %s12029_s18 = scalar_lea.vmem %s135_s15, 4096  ;;  %p12034_p12 = scmp.lt.s32.totalorder %s135_s15, %s135_s15 }
  0x5a   :  { %p12030_p11 = scmp.ne.s32.totalorder %s135_s15, %s12029_s18  ;;  %p12035_p13 = scmp.lt.s32.totalorder %s12029_s18, %s12029_s18 }
  0x5c   :  { %p12036_p0 = por %p12035_p13, %p12034_p12 }
  0x5e   :  { %p12037_p1 = pnand %p12036_p0, %p12030_p11 }
  0x60   :  { %12040 = shalt.err (!%p12037_p1)
}
  0x61   :  { %140 = dma.hbm_to_vmem [thread:$0]  %s12383_s8, 4096, %s135_s15, [#allocation9], %s12312_s7, %s12312_s7, %s12313_s10  }
  0x62   :  { %s12315_s21 = smov [#allocation11]   ;;  %s12316_s23 = smov [#allocation14]  }
  0x63   :  { %s174_s22 = sshll.u32 %s12315_s21, 4  ;;  %s206_s26 = sshll.u32 %s12316_s23, 4  ;;  %s175_s22 = int_to_ptr.vmem [resolvable:$true] %s174_s22  ;;  %s12539_s26 = int_to_ptr.vmem [resolvable:$true] %s206_s26 }
  0x64   :  { %s12041_s28 = scalar_lea.hbm %s12433_s6, 12288 }
  0x65   :  { %p12042_p2 = scmp.ne.s32.totalorder %s12433_s6, %s12041_s28  ;;  %p12045_p3 = scmp.lt.u32.totalorder %s12041_s28, %s12433_s6 }
  0x67   :  { %p12047_p4 = pnand %p12045_p3, %p12042_p2 }
  0x69   :  { %12050 = shalt.err (!%p12047_p4)
}
  0x6a   :  { %s12051_s1 = scalar_lea.vmem %s175_s22, 12288  ;;  %p12056_p6 = scmp.lt.s32.totalorder %s175_s22, %s175_s22 }
  0x6b   :  { %p12052_p5 = scmp.ne.s32.totalorder %s175_s22, %s12051_s1  ;;  %p12057_p7 = scmp.lt.s32.totalorder %s12051_s1, %s12051_s1 }
  0x6d   :  { %p12058_p8 = por %p12057_p7, %p12056_p6 }
  0x6f   :  { %p12059_p9 = pnand %p12058_p8, %p12052_p5 }
  0x71   :  { %12062 = shalt.err (!%p12059_p9)
}
  0x72   :  { %s12317_s8 = smov 384   ;;  %s12318_s2 = smov 24  }
  0x73   :  { %180 = dma.hbm_to_vmem [thread:$0]  %s12433_s6, 12288, %s175_s22, [#allocation12], %s12317_s8, %s12317_s8, %s12318_s2  }
  0x74   :  { %s12063_s0 = scalar_lea.hbm %s12463_s19, 8192 }
  0x75   :  { %p12064_p10 = scmp.ne.s32.totalorder %s12463_s19, %s12063_s0  ;;  %p12067_p11 = scmp.lt.u32.totalorder %s12063_s0, %s12463_s19 }
  0x77   :  { %p12069_p12 = pnand %p12067_p11, %p12064_p10 }
  0x79   :  { %12072 = shalt.err (!%p12069_p12)
}
  0x7a   :  { %s12073_s11 = scalar_lea.vmem %s12539_s26, 8192  ;;  %p12078_p0 = scmp.lt.s32.totalorder %s12539_s26, %s12539_s26 }
  0x7b   :  { %p12074_p13 = scmp.ne.s32.totalorder %s12539_s26, %s12073_s11  ;;  %p12079_p1 = scmp.lt.s32.totalorder %s12073_s11, %s12073_s11 }
  0x7d   :  { %p12080_p2 = por %p12079_p1, %p12078_p0 }
  0x7f   :  { %p12081_p3 = pnand %p12080_p2, %p12074_p13 }
  0x81   :  { %12084 = shalt.err (!%p12081_p3)
}
  0x82   :  { %s12319_s15 = smov 256   ;;  %s12320_s6 = smov 16  }
  0x83   :  { %212 = dma.hbm_to_vmem [thread:$0]  %s12463_s19, 8192, %s12539_s26, [#allocation15], %s12319_s15, %s12319_s15, %s12320_s6  }
  0x84   :  { %s12321_s16 = smov [#allocation17]   ;;  %s12085_s21 = scalar_lea.hbm %s12493_s14, 16384 }
  0x85   :  { %s238_s18 = sshll.u32 %s12321_s16, 4  ;;  %p12086_p4 = scmp.ne.s32.totalorder %s12493_s14, %s12085_s21  ;;  %s239_s18 = int_to_ptr.vmem [resolvable:$true] %s238_s18 }
  0x86   :  { %p12089_p5 = scmp.lt.u32.totalorder %s12085_s21, %s12493_s14 }
  0x88   :  { %p12091_p6 = pnand %p12089_p5, %p12086_p4 }
  0x8a   :  { %12094 = shalt.err (!%p12091_p6)
}
  0x8b   :  { %s12095_s22 = scalar_lea.vmem %s239_s18, 16384  ;;  %p12100_p8 = scmp.lt.s32.totalorder %s239_s18, %s239_s18 }
  0x8c   :  { %p12096_p7 = scmp.ne.s32.totalorder %s239_s18, %s12095_s22  ;;  %p12101_p9 = scmp.lt.s32.totalorder %s12095_s22, %s12095_s22 }
  0x8e   :  { %p12102_p10 = por %p12101_p9, %p12100_p8 }
  0x90   :  { %p12103_p11 = pnand %p12102_p10, %p12096_p7 }
  0x92   :  { %12106 = shalt.err (!%p12103_p11)
}
  0x93   :  { %s12322_s23 = smov 512   ;;  %s12323_s19 = smov 32  }
  0x94   :  { %244 = dma.hbm_to_vmem [thread:$0]  %s12493_s14, 16384, %s239_s18, [#allocation18], %s12322_s23, %s12322_s23, %s12323_s19  }
  0x95   :  { %s12324_s26 = smov [#allocation2]   ;;  %s12325_s1 = smov [#allocation7]  }
  0x96   :  { %s97_s28 = sshll.u32 %s12324_s26, 4  ;;  %s120_s0 = sshll.u32 %s12325_s1, 4  ;;  %s98_s28 = int_to_ptr.vmem [resolvable:$true] %s97_s28  ;;  %s121_s0 = int_to_ptr.vmem [resolvable:$true] %s120_s0 }
  0x97   :  { %s12107_s11 = scalar_lea.hbm %s12358_s17, 16 }
  0x98   :  { %p12108_p12 = scmp.ne.s32.totalorder %s12358_s17, %s12107_s11  ;;  %p12111_p13 = scmp.lt.u32.totalorder %s12107_s11, %s12358_s17 }
  0x9a   :  { %p12113_p0 = pnand %p12111_p13, %p12108_p12 }
  0x9c   :  { %12116 = shalt.err (!%p12113_p0)
}
  0x9d   :  { %s12117_s15 = scalar_lea.vmem %s98_s28, 16  ;;  %s12121_s6 = scalar_lea.vmem %s98_s28, 32 }
  0x9e   :  { %p12118_p1 = scmp.ne.s32.totalorder %s98_s28, %s12117_s15  ;;  %p12122_p2 = scmp.lt.s32.totalorder %s98_s28, %s98_s28 }
  0x9f   :  { %p12123_p3 = scmp.lt.s32.totalorder %s12121_s6, %s12117_s15 }
  0xa1   :  { %p12124_p4 = por %p12123_p3, %p12122_p2 }
  0xa3   :  { %p12125_p5 = pnand %p12124_p4, %p12118_p1 }
  0xa5   :  { %12128 = shalt.err (!%p12125_p5)
}
  0xa6   :  { %100 = dma.hbm_to_vmem [thread:$0]  %s12358_s17, 16, %s98_s28, [#allocation3]  }
  0xa7   :  { %s12129_s14 = scalar_lea.hbm %s12373_s29, 12288 }
  0xa8   :  { %p12130_p6 = scmp.ne.s32.totalorder %s12373_s29, %s12129_s14  ;;  %p12133_p7 = scmp.lt.u32.totalorder %s12129_s14, %s12373_s29 }
  0xaa   :  { %p12135_p8 = pnand %p12133_p7, %p12130_p6 }
  0xac   :  { %12138 = shalt.err (!%p12135_p8)
}
  0xad   :  { %s12139_s16 = scalar_lea.vmem %s121_s0, 12288  ;;  %p12144_p10 = scmp.lt.s32.totalorder %s121_s0, %s121_s0 }
  0xae   :  { %p12140_p9 = scmp.ne.s32.totalorder %s121_s0, %s12139_s16  ;;  %p12145_p11 = scmp.lt.s32.totalorder %s12139_s16, %s12139_s16 }
  0xb0   :  { %p12146_p12 = por %p12145_p11, %p12144_p10 }
  0xb2   :  { %p12147_p13 = pnand %p12146_p12, %p12140_p9 }
  0xb4   :  { %12150 = shalt.err (!%p12147_p13)
}
  0xb5   :  { %126 = dma.hbm_to_vmem [thread:$0]  %s12373_s29, 12288, %s121_s0, [#allocation6], %s12317_s8, %s12317_s8, %s12318_s2  }
  0xb6   :  { %s12326_s17 = smov [#allocation10]   ;;  %s12327_s21 = smov [#allocation13]  }
  0xb7   :  { %s156_s18 = sshll.u32 %s12326_s17, 4  ;;  %s188_s22 = sshll.u32 %s12327_s21, 4  ;;  %s157_s18 = int_to_ptr.vmem [resolvable:$true] %s156_s18  ;;  %s189_s22 = int_to_ptr.vmem [resolvable:$true] %s188_s22 }
  0xb8   :  { %s12151_s26 = scalar_lea.hbm %s12413_s12, 8192 }
  0xb9   :  { %p12152_p0 = scmp.ne.s32.totalorder %s12413_s12, %s12151_s26  ;;  %p12155_p1 = scmp.lt.u32.totalorder %s12151_s26, %s12413_s12 }
  0xbb   :  { %p12157_p2 = pnand %p12155_p1, %p12152_p0 }
  0xbd   :  { %12160 = shalt.err (!%p12157_p2)
}
  0xbe   :  { %s12161_s28 = scalar_lea.vmem %s157_s18, 8192  ;;  %p12166_p4 = scmp.lt.s32.totalorder %s157_s18, %s157_s18 }
  0xbf   :  { %p12162_p3 = scmp.ne.s32.totalorder %s157_s18, %s12161_s28  ;;  %p12167_p5 = scmp.lt.s32.totalorder %s12161_s28, %s12161_s28 }
  0xc1   :  { %p12168_p6 = por %p12167_p5, %p12166_p4 }
  0xc3   :  { %p12169_p7 = pnand %p12168_p6, %p12162_p3 }
  0xc5   :  { %12172 = shalt.err (!%p12169_p7)
}
  0xc6   :  { %162 = dma.hbm_to_vmem [thread:$0]  %s12413_s12, 8192, %s157_s18, [#allocation9], %s12312_s7, %s12312_s7, %s12313_s10  }
  0xc7   :  { %s12173_s29 = scalar_lea.hbm %s12443_s27, 4096 }
  0xc8   :  { %p12174_p8 = scmp.ne.s32.totalorder %s12443_s27, %s12173_s29  ;;  %p12177_p9 = scmp.lt.u32.totalorder %s12173_s29, %s12443_s27 }
  0xca   :  { %p12179_p10 = pnand %p12177_p9, %p12174_p8 }
  0xcc   :  { %12182 = shalt.err (!%p12179_p10)
}
  0xcd   :  { %s12183_s8 = scalar_lea.vmem %s189_s22, 4096  ;;  %p12188_p12 = scmp.lt.s32.totalorder %s189_s22, %s189_s22 }
  0xce   :  { %p12184_p11 = scmp.ne.s32.totalorder %s189_s22, %s12183_s8  ;;  %p12189_p13 = scmp.lt.s32.totalorder %s12183_s8, %s12183_s8 }
  0xd0   :  { %p12190_p0 = por %p12189_p13, %p12188_p12 }
  0xd2   :  { %p12191_p1 = pnand %p12190_p0, %p12184_p11 }
  0xd4   :  { %12194 = shalt.err (!%p12191_p1)
}
  0xd5   :  { %194 = dma.hbm_to_vmem [thread:$0]  %s12443_s27, 4096, %s189_s22, [#allocation12], %s12312_s7, %s12312_s7, %s12313_s10  }
  0xd6   :  { %s12328_s12 = smov [#allocation16]   ;;  %s12329_s1 = smov [#allocation19]  }
  0xd7   :  { %s220_s2 = sshll.u32 %s12328_s12, 4  ;;  %s250_s0 = sshll.u32 %s12329_s1, 4  ;;  %s221_s2 = int_to_ptr.vmem [resolvable:$true] %s220_s2  ;;  %s251_s0 = int_to_ptr.vmem [resolvable:$true] %s250_s0 }
  0xd8   :  { %s12195_s11 = scalar_lea.hbm %s12473_s24, 8192 }
  0xd9   :  { %p12196_p2 = scmp.ne.s32.totalorder %s12473_s24, %s12195_s11  ;;  %p12199_p3 = scmp.lt.u32.totalorder %s12195_s11, %s12473_s24 }
  0xdb   :  { %p12201_p4 = pnand %p12199_p3, %p12196_p2 }
  0xdd   :  { %12204 = shalt.err (!%p12201_p4)
}
  0xde   :  { %s12205_s15 = scalar_lea.vmem %s221_s2, 8192  ;;  %p12210_p6 = scmp.lt.s32.totalorder %s221_s2, %s221_s2 }
  0xdf   :  { %p12206_p5 = scmp.ne.s32.totalorder %s221_s2, %s12205_s15  ;;  %p12211_p7 = scmp.lt.s32.totalorder %s12205_s15, %s12205_s15 }
  0xe1   :  { %p12212_p8 = por %p12211_p7, %p12210_p6 }
  0xe3   :  { %p12213_p9 = pnand %p12212_p8, %p12206_p5 }
  0xe5   :  { %12216 = shalt.err (!%p12213_p9)
}
  0xe6   :  { %226 = dma.hbm_to_vmem [thread:$0]  %s12473_s24, 8192, %s221_s2, [#allocation15], %s12312_s7, %s12312_s7, %s12313_s10  }
  0xe7   :  { %s12217_s27 = scalar_lea.hbm %s12498_s20, 8192 }
  0xe8   :  { %p12218_p10 = scmp.ne.s32.totalorder %s12498_s20, %s12217_s27  ;;  %p12221_p11 = scmp.lt.u32.totalorder %s12217_s27, %s12498_s20 }
  0xea   :  { %p12223_p12 = pnand %p12221_p11, %p12218_p10 }
  0xec   :  { %12226 = shalt.err (!%p12223_p12)
}
  0xed   :  { %s12227_s6 = scalar_lea.vmem %s251_s0, 8192  ;;  %p12232_p0 = scmp.lt.s32.totalorder %s251_s0, %s251_s0 }
  0xee   :  { %p12228_p13 = scmp.ne.s32.totalorder %s251_s0, %s12227_s6  ;;  %p12233_p1 = scmp.lt.s32.totalorder %s12227_s6, %s12227_s6 }
  0xf0   :  { %p12234_p2 = por %p12233_p1, %p12232_p0 }
  0xf2   :  { %p12235_p3 = pnand %p12234_p2, %p12228_p13 }
  0xf4   :  { %12238 = shalt.err (!%p12235_p3)
}
  0xf5   :  { %256 = dma.hbm_to_vmem [thread:$0]  %s12498_s20, 8192, %s251_s0, [#allocation18], %s12322_s23, %s12322_s23, %s12323_s19  }
  0xf6   :  { %12261 = dma.done.wait [#allocation3], 16  }
  0xf7   :  { %12262 = vsyncadd [#allocation3], 4294967280 }
  0xf8   :  { %12263 = dma.done.wait [#allocation6], 14336  }
  0xf9   :  { %12264 = vsyncadd [#allocation6], 4294952960 }
  0xfa   :  { %12265 = dma.done.wait [#allocation9], 12288  }
  0xfb   :  { %12266 = vsyncadd [#allocation9], 4294955008 }
  0xfc   :  { %12267 = dma.done.wait [#allocation12], 16384  }
  0xfd   :  { %12268 = vsyncadd [#allocation12], 4294950912 }
  0xfe   :  { %12269 = dma.done.wait [#allocation15], 16384  }
  0xff   :  { %12270 = vsyncadd [#allocation15], 4294950912 }
 0x100   :  { %12271 = dma.done.wait [#allocation18], 24576  }
 0x101   :  { %12272 = vsyncadd [#allocation18], 4294942720  ;;  %v299_v0 = vld [vmem:[%s12343_s5] sm:$0xff]  ;;  %v300_v1 = vld [vmem:[%s12343_s5 + $0x8] sm:$0xff]  ;;  %v14012_v23 = vmov 0   ;;  %s14039_s5 = sld [smem:[#allocation29_spill]] }
 0x102   :  { %303 = vadd.xlane.f32.xlu0 %v299_v0  ;;  %v11021_v2 = vld [vmem:[#allocation5 + $0x4] ss:$8 sps:$4 sm:$0xff]   ;;  %v11023_v3 = vld [vmem:[#allocation5] ss:$8 sps:$4 sm:$0xff]   ;;  %v11024_v4 = vld [vmem:[#allocation5 + $0x14] ss:$8 sps:$4 sm:$0xff]   ;;  %483 = vmatprep.mubr.bf16.mxu0 %v14012_v23 }
 0x103   :  { %451 = vmatprep.subr.bf16.mxu0 %v11021_v2  ;;  %v11026_v13 = vld [vmem:[#allocation5 + $0x10] ss:$8 sps:$4 sm:$0xff]   ;;  %v11027_v14 = vld [vmem:[#allocation5 + $0x24] ss:$8 sps:$4 sm:$0xff]   ;;  %v11029_v15 = vld [vmem:[#allocation5 + $0x20] ss:$8 sps:$4 sm:$0xff]  }
 0x104   :  { %452 = vmatpush1.bf16.msra.mxu0 %v11023_v3  ;;  %v11030_v16 = vld [vmem:[#allocation5 + $0x34] ss:$8 sps:$4 sm:$0xff]   ;;  %v11032_v17 = vld [vmem:[#allocation5 + $0x30] ss:$8 sps:$4 sm:$0xff]   ;;  %v11033_v18 = vld [vmem:[#allocation5 + $0x44] ss:$8 sps:$4 sm:$0xff]  }
 0x105   :  { %453 = vmatprep.subr.bf16.mxu0 %v11024_v4  ;;  %v11035_v19 = vld [vmem:[#allocation5 + $0x40] ss:$8 sps:$4 sm:$0xff]   ;;  %v11036_v20 = vld [vmem:[#allocation5 + $0x54] ss:$8 sps:$4 sm:$0xff]   ;;  %v11038_v21 = vld [vmem:[#allocation5 + $0x50] ss:$8 sps:$4 sm:$0xff]  }
 0x106   :  { %305 = vadd.xlane.f32.xlu0 %v300_v1  ;;  %v11039_v22 = vld [vmem:[#allocation5 + $0x64] ss:$8 sps:$4 sm:$0xff]   ;;  %v11041_v24 = vld [vmem:[#allocation5 + $0x60] ss:$8 sps:$4 sm:$0xff]   ;;  %v11042_v25 = vld [vmem:[#allocation5 + $0x74] ss:$8 sps:$4 sm:$0xff]  }
 0x107   :  { %v11044_v26 = vld [vmem:[#allocation5 + $0x70] ss:$8 sps:$4 sm:$0xff]   ;;  %v11045_v27 = vld [vmem:[#allocation7 + $0x4] ss:$24 sps:$4 sm:$0xff]   ;;  %v11051_v30 = vld [vmem:[#allocation7 + $0x34] ss:$24 sps:$4 sm:$0xff]  }
 0x108   :  { %454 = vmatpush1.bf16.msra.mxu0 %v11026_v13  ;;  %v11047_v28 = vld [vmem:[#allocation7] ss:$24 sps:$4 sm:$0xff]   ;;  %v11050_v29 = vld [vmem:[#allocation7 + $0xc] ss:$24 sps:$4 sm:$0xff]   ;;  %1107 = vmatprep.subr.bf16.mxu1 %v11045_v27  ;;  %v11053_v31 = vld [vmem:[#allocation7 + $0x30] ss:$24 sps:$4 sm:$0xff]  }
 0x109   :  { %455 = vmatprep.subr.bf16.mxu0 %v11027_v14  ;;  %1108 = vmatpush1.bf16.msra.mxu1 %v11047_v28  ;;  %v11057_v32 = vld [vmem:[#allocation7 + $0x64] ss:$24 sps:$4 sm:$0xff]   ;;  %v11059_v33 = vld [vmem:[#allocation7 + $0x60] ss:$24 sps:$4 sm:$0xff]   ;;  %v11063_v34 = vld [vmem:[#allocation7 + $0x94] ss:$24 sps:$4 sm:$0xff]  }
 0x10a   :  { %1109 = vmatprep.subr.bf16.mxu1 %v11051_v30  ;;  %v11065_v35 = vld [vmem:[#allocation7 + $0x90] ss:$24 sps:$4 sm:$0xff]   ;;  %v11069_v36 = vld [vmem:[#allocation7 + $0xc4] ss:$24 sps:$4 sm:$0xff]   ;;  %v11071_v37 = vld [vmem:[#allocation7 + $0xc0] ss:$24 sps:$4 sm:$0xff]  }
 0x10b   :  { %v11075_v38 = vld [vmem:[#allocation7 + $0xf4] ss:$24 sps:$4 sm:$0xff]   ;;  %v11077_v39 = vld [vmem:[#allocation7 + $0xf0] ss:$24 sps:$4 sm:$0xff]   ;;  %v11081_v40 = vld [vmem:[#allocation7 + $0x124] ss:$24 sps:$4 sm:$0xff]  }
 0x10c   :  { %456 = vmatpush1.bf16.msra.mxu0 %v11029_v15  ;;  %v11083_v41 = vld [vmem:[#allocation7 + $0x120] ss:$24 sps:$4 sm:$0xff]   ;;  %v11087_v42 = vld [vmem:[#allocation7 + $0x154] ss:$24 sps:$4 sm:$0xff]   ;;  %v11089_v43 = vld [vmem:[#allocation7 + $0x150] ss:$24 sps:$4 sm:$0xff]  }
 0x10d   :  { %457 = vmatprep.subr.bf16.mxu0 %v11030_v16  ;;  %1110 = vmatpush1.bf16.msra.mxu1 %v11053_v31  ;;  %v11093_v44 = vld [vmem:[#allocation7 + $0x184] ss:$24 sps:$4 sm:$0xff]   ;;  %v11095_v45 = vld [vmem:[#allocation7 + $0x180] ss:$24 sps:$4 sm:$0xff]   ;;  %v11099_v46 = vld [vmem:[#allocation7 + $0x1b4] ss:$24 sps:$4 sm:$0xff]  }
 0x10e   :  { %1111 = vmatprep.subr.bf16.mxu1 %v11057_v32  ;;  %v11101_v47 = vld [vmem:[#allocation7 + $0x1b0] ss:$24 sps:$4 sm:$0xff]   ;;  %v11105_v48 = vld [vmem:[#allocation7 + $0x1e4] ss:$24 sps:$4 sm:$0xff]   ;;  %v11107_v49 = vld [vmem:[#allocation7 + $0x1e0] ss:$24 sps:$4 sm:$0xff]  }
 0x10f   :  { %v11111_v50 = vld [vmem:[#allocation7 + $0x214] ss:$24 sps:$4 sm:$0xff]   ;;  %v11113_v51 = vld [vmem:[#allocation7 + $0x210] ss:$24 sps:$4 sm:$0xff]   ;;  %v11117_v52 = vld [vmem:[#allocation7 + $0x244] ss:$24 sps:$4 sm:$0xff]  }
 0x110   :  { %458 = vmatpush1.bf16.msra.mxu0 %v11032_v17  ;;  %v11119_v53 = vld [vmem:[#allocation7 + $0x240] ss:$24 sps:$4 sm:$0xff]   ;;  %v11123_v54 = vld [vmem:[#allocation7 + $0x274] ss:$24 sps:$4 sm:$0xff]   ;;  %v11125_v55 = vld [vmem:[#allocation7 + $0x270] ss:$24 sps:$4 sm:$0xff]  }
 0x111   :  { %459 = vmatprep.subr.bf16.mxu0 %v11033_v18  ;;  %1112 = vmatpush1.bf16.msra.mxu1 %v11059_v33  ;;  %v9858_v4 = vld [vmem:[#allocation2] ss:$0 sm:$0xff]  ;;  %v11054_v13 = vld [vmem:[#allocation7 + $0x38] ss:$24 sps:$4 sm:$0xff]   ;;  %v11062_v14 = vld [vmem:[#allocation7 + $0x6c] ss:$24 sps:$4 sm:$0xff]  }
 0x112   :  { %1113 = vmatprep.subr.bf16.mxu1 %v11063_v34  ;;  %v11060_v15 = vld [vmem:[#allocation7 + $0x68] ss:$24 sps:$4 sm:$0xff]   ;;  %v11066_v16 = vld [vmem:[#allocation7 + $0x98] ss:$24 sps:$4 sm:$0xff]   ;;  %v11080_v18 = vld [vmem:[#allocation7 + $0xfc] ss:$24 sps:$4 sm:$0xff]  }
 0x113   :  { %v11072_v17 = vld [vmem:[#allocation7 + $0xc8] ss:$24 sps:$4 sm:$0xff]   ;;  %v11104_v27 = vld [vmem:[#allocation7 + $0x1bc] ss:$24 sps:$4 sm:$0xff]   ;;  %v11102_v28 = vld [vmem:[#allocation7 + $0x1b8] ss:$24 sps:$4 sm:$0xff]  }
 0x114   :  { %460 = vmatpush1.bf16.msra.mxu0 %v11035_v19  ;;  %v11078_v19 = vld [vmem:[#allocation7 + $0xf8] ss:$24 sps:$4 sm:$0xff]   ;;  %v11108_v30 = vld [vmem:[#allocation7 + $0x1e8] ss:$24 sps:$4 sm:$0xff]   ;;  %v11116_v31 = vld [vmem:[#allocation7 + $0x21c] ss:$24 sps:$4 sm:$0xff]  }
 0x115   :  { %461 = vmatprep.subr.bf16.mxu0 %v11036_v20  ;;  %1114 = vmatpush1.bf16.msra.mxu1 %v11065_v35  ;;  %v11086_v20 = vld [vmem:[#allocation7 + $0x12c] ss:$24 sps:$4 sm:$0xff]   ;;  %v11114_v32 = vld [vmem:[#allocation7 + $0x218] ss:$24 sps:$4 sm:$0xff]   ;;  %v11120_v34 = vld [vmem:[#allocation7 + $0x248] ss:$24 sps:$4 sm:$0xff]  }
 0x116   :  { %1115 = vmatprep.subr.bf16.mxu1 %v11069_v36  ;;  %v11122_v33 = vld [vmem:[#allocation7 + $0x24c] ss:$24 sps:$4 sm:$0xff]   ;;  %v11128_v35 = vld [vmem:[#allocation7 + $0x27c] ss:$24 sps:$4 sm:$0xff]   ;;  %v11126_v36 = vld [vmem:[#allocation7 + $0x278] ss:$24 sps:$4 sm:$0xff]  }
 0x117   :  { %vm12332_vm0 = vmmov 0   ;;  %vm1236_vm1 = vcmask 523264   ;;  %vm1319_vm2 = vcmask 64512   ;;  %s14041_s24 = sld [smem:[#allocation30_spill]]  ;;  %s14042_s20 = sld [smem:[#allocation33_spill]] }
 0x118   :  { %462 = vmatpush1.bf16.msra.mxu0 %v11038_v21  ;;  %v11084_v21 = vld [vmem:[#allocation7 + $0x128] ss:$24 sps:$4 sm:$0xff]   ;;  %s14043_s7 = sld [smem:[#allocation31_spill]]  ;;  %s14044_s10 = sld [smem:[#allocation32_spill]] }
 0x119   :  { %463 = vmatprep.subr.bf16.mxu0 %v11039_v22  ;;  %1116 = vmatpush1.bf16.msra.mxu1 %v11071_v37  ;;  %v11092_v22 = vld [vmem:[#allocation7 + $0x15c] ss:$24 sps:$4 sm:$0xff]   ;;  %s14045_s23 = sld [smem:[#allocation34_spill]]  ;;  %s14046_s19 = sld [smem:[#allocation35_spill]] }
 0x11a   :  { %1117 = vmatprep.subr.bf16.mxu1 %v11075_v38  ;;  %v11129_v37 = vld [vmem:[#allocation7 + $0x2a4] ss:$24 sps:$4 sm:$0xff]   ;;  %v11131_v38 = vld [vmem:[#allocation7 + $0x2a0] ss:$24 sps:$4 sm:$0xff]   ;;  %s14047_s14 = sld [smem:[#allocation36_spill]]  ;;  %s14048_s16 = sld [smem:[#allocation37_spill]] }
 0x11b   :  { %s14049_s17 = sld [smem:[#allocation38_spill]]  ;;  %s14050_s18 = sld [smem:[#allocation39_spill]] }
 0x11c   :  { %464 = vmatpush1.bf16.msra.mxu0 %v11041_v24  ;;  %v11090_v24 = vld [vmem:[#allocation7 + $0x158] ss:$24 sps:$4 sm:$0xff]   ;;  %s14051_s21 = sld [smem:[#allocation40_spill]]  ;;  %s14052_s22 = sld [smem:[#allocation41_spill]] }
 0x11d   :  { %465 = vmatprep.subr.bf16.mxu0 %v11042_v25  ;;  %1118 = vmatpush1.bf16.msra.mxu1 %v11077_v39  ;;  %v11098_v25 = vld [vmem:[#allocation7 + $0x18c] ss:$24 sps:$4 sm:$0xff]   ;;  %s14053_s26 = sld [smem:[#allocation42_spill]]  ;;  %s14054_s28 = sld [smem:[#allocation43_spill]] }
 0x11e   :  { %1119 = vmatprep.subr.bf16.mxu1 %v11081_v40  ;;  %v11134_v39 = vld [vmem:[#allocation7 + $0x2ac] ss:$24 sps:$4 sm:$0xff]   ;;  %v11132_v40 = vld [vmem:[#allocation7 + $0x2a8] ss:$24 sps:$4 sm:$0xff]   ;;  %s14055_s29 = sld [smem:[#allocation44_spill]]  ;;  %s14056_s8 = sld [smem:[#allocation45_spill]] }
 0x11f   :  { %s14064_s12 = sld [smem:[#allocation46_spill]] }
 0x120   :  { %466 = vmatpush1.bf16.msra.mxu0 %v11044_v26  ;;  %v11096_v26 = vld [vmem:[#allocation7 + $0x188] ss:$24 sps:$4 sm:$0xff]  }
 0x121   :  { %1150 = vmatprep.subr.bf16.mxu0 %v11050_v29  ;;  %1120 = vmatpush1.bf16.msra.mxu1 %v11083_v41  ;;  %v11110_v29 = vld [vmem:[#allocation7 + $0x1ec] ss:$24 sps:$4 sm:$0xff]  }
 0x122   :  { %1121 = vmatprep.subr.bf16.mxu1 %v11087_v42  ;;  %v11135_v41 = vld [vmem:[#allocation7 + $0x2d4] ss:$24 sps:$4 sm:$0xff]   ;;  %v11137_v42 = vld [vmem:[#allocation7 + $0x2d0] ss:$24 sps:$4 sm:$0xff]  }
 0x125   :  { %1122 = vmatpush1.bf16.msra.mxu1 %v11089_v43  ;;  %v11140_v43 = vld [vmem:[#allocation7 + $0x2dc] ss:$24 sps:$4 sm:$0xff]  }
 0x126   :  { %1123 = vmatprep.subr.bf16.mxu1 %v11093_v44  ;;  %v11138_v44 = vld [vmem:[#allocation7 + $0x2d8] ss:$24 sps:$4 sm:$0xff]  }
 0x129   :  { %1124 = vmatpush1.bf16.msra.mxu1 %v11095_v45  ;;  %v11143_v45 = vld [vmem:[#allocation7 + $0x14] ss:$24 sps:$4 sm:$0xff]  }
 0x12a   :  { %1125 = vmatprep.subr.bf16.mxu1 %v11099_v46  ;;  %v361_v46 = vlaneseq }
 0x12d   :  { %1126 = vmatpush1.bf16.msra.mxu1 %v11101_v47  ;;  %v12617_v47 = vshrl.u32 %v361_v46, 7 }
 0x12e   :  { %1127 = vmatprep.subr.bf16.mxu1 %v11105_v48 }
 0x12f   :  { %v12620_v48 = vsub.s32 1, %v12617_v47 }
 0x131   :  { %1128 = vmatpush1.bf16.msra.mxu1 %v11107_v49  ;;  %v359_v49 = vld [vmem:[%s12368_s25] sm:$0x3]  ;;  %s12333_s25 = smov 64  }
 0x132   :  { %1129 = vmatprep.subr.bf16.mxu1 %v11111_v50  ;;  %v12624_v50 = vsub.s32 0, %v12617_v47 }
 0x135   :  { %1130 = vmatpush1.bf16.msra.mxu1 %v11113_v51 }
 0x136   :  { %1131 = vmatprep.subr.bf16.mxu1 %v11117_v52  ;;  %v368_v52 = vrot.slane %v359_v49, %v12620_v48 }
 0x139   :  { %1132 = vmatpush1.bf16.msra.mxu1 %v11119_v53  ;;  %v364_v53 = vrot.slane %v359_v49, %v12624_v50 }
 0x13a   :  { %1133 = vmatprep.subr.bf16.mxu1 %v11123_v54 }
 0x13d   :  { %1134 = vmatpush1.bf16.msra.mxu1 %v11125_v55 }
 0x13e   :  { %1135 = vmatprep.subr.bf16.mxu1 %v11129_v37 }
 0x141   :  { %1136 = vmatpush1.bf16.msra.mxu1 %v11131_v38 }
 0x142   :  { %1137 = vmatprep.subr.bf16.mxu1 %v11135_v41 }
 0x145   :  { %1138 = vmatpush1.bf16.msra.mxu1 %v11137_v42 }
 0x146   :  { %1193 = vmatprep.subr.bf16.mxu1 %v11143_v45 }
 0x18f   :  { %v304_v5 = vpop.xlane.xlu0 %303 }
 0x190   :  { %v308_v6 = vmul.f32 0.0078125, %v304_v5 }
 0x192   :  { %v12605_v7 = vsub.f32 %v299_v0, %v308_v6  ;;  %v9857_v0 = vld [vmem:[%s12353_s13] ss:$0 sm:$0xff]  ;;  %s14040_s13 = sld [smem:[#allocation28_spill]] }
 0x193   :  { %v306_v8 = vpop.xlane.xlu0 %305 }
 0x194   :  { %v309_v9 = vmul.f32 0.0078125, %v306_v8  ;;  %v312_v10 = vmul.f32 %v12605_v7, %v12605_v7 }
 0x196   :  { %v12609_v11 = vsub.f32 %v300_v1, %v309_v9  ;;  %314 = vadd.xlane.f32.xlu1 %v312_v10  ;;  %v11048_v9 = vld [vmem:[#allocation7 + $0x8] ss:$24 sps:$4 sm:$0xff]  }
 0x198   :  { %v313_v12 = vmul.f32 %v12609_v11, %v12609_v11 }
 0x19a   :  { %316 = vadd.xlane.f32.xlu1 %v313_v12  ;;  %v11056_v12 = vld [vmem:[#allocation7 + $0x3c] ss:$24 sps:$4 sm:$0xff]  }
 0x223   :  { %v315_v56 = vpop.xlane.xlu1 %314 }
 0x224   :  { %v318_v57 = vmul.f32 0.0078125, %v315_v56 }
 0x226   :  { %v320_v58 = vadd.f32 1e-12, %v318_v57 }
 0x227   :  { %v317_v59 = vpop.xlane.xlu1 %316 }
 0x228   :  { %11813 = vrsqrt.f32 %v320_v58  ;;  %v319_v60 = vmul.f32 0.0078125, %v317_v59 }
 0x22a   :  { %v321_v61 = vadd.f32 1e-12, %v319_v60 }
 0x22c   :  { %11815 = vrsqrt.f32 %v321_v61 }
 0x232   :  { %v11814_v62 = vpop.eup %11813 }
 0x233   :  { %v324_v63 = vmul.f32 %v11814_v62, %v12605_v7  ;;  %v11068_v7 = vld [vmem:[#allocation7 + $0x9c] ss:$24 sps:$4 sm:$0xff]   ;;  %v11141_v62 = vld [vmem:[#allocation7 + $0x10] ss:$24 sps:$4 sm:$0xff]  }
 0x235   :  { %v332_v3 = vmul.f32 %v9857_v0, %v324_v63 }
 0x236   :  { %v11816_v1 = vpop.eup %11815 }
 0x237   :  { %v325_v2 = vmul.f32 %v11816_v1, %v12609_v11  ;;  %v340_v6 = vadd.f32 %v9858_v4, %v332_v3  ;;  %v11074_v11 = vld [vmem:[#allocation7 + $0xcc] ss:$24 sps:$4 sm:$0xff]   ;;  %v11144_v1 = vld [vmem:[#allocation7 + $0x40] ss:$24 sps:$4 sm:$0xff]   ;;  %v11147_v3 = vld [vmem:[#allocation7 + $0x70] ss:$24 sps:$4 sm:$0xff]  }
 0x239   :  { %v333_v5 = vmul.f32 %v9857_v0, %v325_v2  ;;  %v11146_v0 = vld [vmem:[#allocation7 + $0x44] ss:$24 sps:$4 sm:$0xff]   ;;  %v11149_v2 = vld [vmem:[#allocation7 + $0x74] ss:$24 sps:$4 sm:$0xff]  }
 0x23b   :  { %v341_v8 = vadd.f32 %v9858_v4, %v333_v5  ;;  %v11152_v4 = vld [vmem:[#allocation7 + $0xa4] ss:$24 sps:$4 sm:$0xff]   ;;  %v11150_v5 = vld [vmem:[#allocation7 + $0xa0] ss:$24 sps:$4 sm:$0xff]  }
 0x23d   :  { %v342_v10 = vpack.c.bf16 %v341_v8, %v340_v6  ;;  %v11155_v6 = vld [vmem:[#allocation7 + $0xd4] ss:$24 sps:$4 sm:$0xff]   ;;  %v11153_v8 = vld [vmem:[#allocation7 + $0xd0] ss:$24 sps:$4 sm:$0xff]  }
 0x23f   :  { %484 = vmatmul.mubr.bf16.vlgmr.msra.gmra.mrb[0].mxu0 %v342_v10  ;;  %v11156_v10 = vld [vmem:[#allocation7 + $0x100] ss:$24 sps:$4 sm:$0xff]  }
 0x240   :  { %1151 = vmatpush1.bf16.msra.mxu0 %v11048_v9  ;;  %v11158_v9 = vld [vmem:[#allocation7 + $0x104] ss:$24 sps:$4 sm:$0xff]  }
 0x241   :  { %1152 = vmatprep.subr.bf16.mxu0 %v11056_v12  ;;  %v11161_v12 = vld [vmem:[#allocation7 + $0x134] ss:$24 sps:$4 sm:$0xff]  }
 0x244   :  { %1153 = vmatpush1.bf16.msra.mxu0 %v11054_v13  ;;  %v11159_v13 = vld [vmem:[#allocation7 + $0x130] ss:$24 sps:$4 sm:$0xff]  }
 0x245   :  { %1154 = vmatprep.subr.bf16.mxu0 %v11062_v14  ;;  %v11164_v14 = vld [vmem:[#allocation7 + $0x164] ss:$24 sps:$4 sm:$0xff]  }
 0x248   :  { %1155 = vmatpush1.bf16.msra.mxu0 %v11060_v15  ;;  %v11162_v15 = vld [vmem:[#allocation7 + $0x160] ss:$24 sps:$4 sm:$0xff]  }
 0x249   :  { %1156 = vmatprep.subr.bf16.mxu0 %v11068_v7  ;;  %v11167_v7 = vld [vmem:[#allocation7 + $0x194] ss:$24 sps:$4 sm:$0xff]  }
 0x24c   :  { %1157 = vmatpush1.bf16.msra.mxu0 %v11066_v16  ;;  %v11165_v16 = vld [vmem:[#allocation7 + $0x190] ss:$24 sps:$4 sm:$0xff]  }
 0x24d   :  { %1158 = vmatprep.subr.bf16.mxu0 %v11074_v11  ;;  %v11170_v11 = vld [vmem:[#allocation7 + $0x1c4] ss:$24 sps:$4 sm:$0xff]  }
 0x250   :  { %1159 = vmatpush1.bf16.msra.mxu0 %v11072_v17  ;;  %v11168_v17 = vld [vmem:[#allocation7 + $0x1c0] ss:$24 sps:$4 sm:$0xff]  }
 0x251   :  { %1160 = vmatprep.subr.bf16.mxu0 %v11080_v18  ;;  %v11173_v18 = vld [vmem:[#allocation7 + $0x1f4] ss:$24 sps:$4 sm:$0xff]  }
 0x254   :  { %1161 = vmatpush1.bf16.msra.mxu0 %v11078_v19  ;;  %v11171_v19 = vld [vmem:[#allocation7 + $0x1f0] ss:$24 sps:$4 sm:$0xff]  }
 0x255   :  { %1162 = vmatprep.subr.bf16.mxu0 %v11086_v20  ;;  %v11176_v20 = vld [vmem:[#allocation7 + $0x224] ss:$24 sps:$4 sm:$0xff]  }
 0x258   :  { %1163 = vmatpush1.bf16.msra.mxu0 %v11084_v21  ;;  %v11174_v21 = vld [vmem:[#allocation7 + $0x220] ss:$24 sps:$4 sm:$0xff]  }
 0x259   :  { %1164 = vmatprep.subr.bf16.mxu0 %v11092_v22  ;;  %v11179_v22 = vld [vmem:[#allocation7 + $0x254] ss:$24 sps:$4 sm:$0xff]  }
 0x25c   :  { %1165 = vmatpush1.bf16.msra.mxu0 %v11090_v24  ;;  %v11177_v24 = vld [vmem:[#allocation7 + $0x250] ss:$24 sps:$4 sm:$0xff]  }
 0x25d   :  { %1166 = vmatprep.subr.bf16.mxu0 %v11098_v25  ;;  %v11182_v25 = vld [vmem:[#allocation7 + $0x284] ss:$24 sps:$4 sm:$0xff]  }
 0x260   :  { %1167 = vmatpush1.bf16.msra.mxu0 %v11096_v26  ;;  %v11180_v26 = vld [vmem:[#allocation7 + $0x280] ss:$24 sps:$4 sm:$0xff]  }
 0x261   :  { %1168 = vmatprep.subr.bf16.mxu0 %v11104_v27  ;;  %v11185_v27 = vld [vmem:[#allocation7 + $0x2b4] ss:$24 sps:$4 sm:$0xff]  }
 0x264   :  { %1169 = vmatpush1.bf16.msra.mxu0 %v11102_v28  ;;  %v11183_v28 = vld [vmem:[#allocation7 + $0x2b0] ss:$24 sps:$4 sm:$0xff]  }
 0x265   :  { %1170 = vmatprep.subr.bf16.mxu0 %v11110_v29  ;;  %v11188_v29 = vld [vmem:[#allocation7 + $0x2e4] ss:$24 sps:$4 sm:$0xff]  }
 0x268   :  { %1171 = vmatpush1.bf16.msra.mxu0 %v11108_v30  ;;  %v11186_v30 = vld [vmem:[#allocation7 + $0x2e0] ss:$24 sps:$4 sm:$0xff]  }
 0x269   :  { %1172 = vmatprep.subr.bf16.mxu0 %v11116_v31  ;;  %v12331_v31 = vmov 0.0  }
 0x26c   :  { %1173 = vmatpush1.bf16.msra.mxu0 %v11114_v32  ;;  %v12652_v32 = vsub.s32 2, %v12617_v47 }
 0x26d   :  { %1174 = vmatprep.subr.bf16.mxu0 %v11122_v33  ;;  %v595_v33 = vld [vmem:[%s14039_s5] sm:$0x3f] }
 0x26e   :  { %v12665_v42 = vrot.slane %v595_v33, %v12620_v48 }
 0x270   :  { %1175 = vmatpush1.bf16.msra.mxu0 %v11120_v34  ;;  %v608_v34 = vrot.slane %v595_v33, %v12652_v32 }
 0x271   :  { %1176 = vmatprep.subr.bf16.mxu0 %v11128_v35  ;;  %v12657_v35 = vsub.s32 3, %v12617_v47 }
 0x274   :  { %1177 = vmatpush1.bf16.msra.mxu0 %v11126_v36  ;;  %v600_v36 = vrot.slane %v595_v33, %v12624_v50 }
 0x275   :  { %1178 = vmatprep.subr.bf16.mxu0 %v11134_v39 }
 0x278   :  { %1179 = vmatpush1.bf16.msra.mxu0 %v11132_v40 }
 0x279   :  { %1180 = vmatprep.subr.bf16.mxu0 %v11140_v43  ;;  %v12668_v43 = vrot.slane %v595_v33, %v12657_v35 }
 0x27c   :  { %1181 = vmatpush1.bf16.msra.mxu0 %v11138_v44 }
 0x27d   :  { %10748 = vmatprep.subr.mxu0 %v12331_v31 }
 0x312   :  { %v485_v51 = vpop.f32.mrb[0].mxu0 }
 0x313   :  { %v487_v54 = vpop.f32.mrb[1].mxu0  ;;  %v12634_v60 = vadd.f32 %v485_v51, %v364_v53 }
 0x314   :  { %v489_v55 = vpop.f32.mrb[2].mxu0  ;;  %v12630_v58 = vadd.f32 %v487_v54, %v368_v52 }
 0x315   :  { %v12628_v56 = vadd.f32 %v489_v55, %v364_v53  ;;  %v491_v57 = vpop.f32.mrb[3].mxu0 }
 0x316   :  { %v12632_v59 = vadd.f32 %v491_v57, %v368_v52  ;;  %v615_v57 = vsub.s32 4, %v12617_v47 }
 0x317   :  { %v12640_v63 = vpack.c.bf16 %v12628_v56, %v12634_v60 }
 0x318   :  { %v498_v61 = vpack.c.bf16 %v12632_v59, %v12630_v58 }
 0x31a   :  { %1139 = vmatprep.mubr.bf16.mxu1 %v498_v61  ;;  %1182 = vmatprep.mubr.bf16.mxu0 %v498_v61 }
 0x31b   :  { %1140 = vmatmul.mubr.bf16.vlgmr.msra.gmra.mrb[0].mxu1 %v12640_v63  ;;  %1183 = vmatmul.mubr.bf16.vlgmr.msra.gmra.mrb[4].mxu0 %v12640_v63 }
 0x31c   :  { %1194 = vmatpush1.bf16.msra.mxu1 %v11141_v62  ;;  %1225 = vmatprep.mubr.bf16.mxu1 %v498_v61  ;;  %v616_v61 = vrot.slane %v595_v33, %v615_v57  ;;  %v619_v62 = vsub.s32 5, %v12617_v47 }
 0x31d   :  { %1195 = vmatprep.subr.bf16.mxu1 %v11146_v0  ;;  %10750 = vmatprep.mubr.msk.f32.mxu0 %vm12332_vm0, %v12331_v31 }
 0x320   :  { %1196 = vmatpush1.bf16.msra.mxu1 %v11144_v1 }
 0x321   :  { %1197 = vmatprep.subr.bf16.mxu1 %v11149_v2  ;;  %v12693_v2 = vrot.slane %v595_v33, %v619_v62 }
 0x324   :  { %1198 = vmatpush1.bf16.msra.mxu1 %v11147_v3 }
 0x325   :  { %1199 = vmatprep.subr.bf16.mxu1 %v11152_v4 }
 0x328   :  { %1200 = vmatpush1.bf16.msra.mxu1 %v11150_v5 }
 0x329   :  { %1201 = vmatprep.subr.bf16.mxu1 %v11155_v6 }
 0x32c   :  { %1202 = vmatpush1.bf16.msra.mxu1 %v11153_v8  ;;  %v494_v8 = vld [vmem:[%s14040_s13] sm:$0x3] }
 0x32d   :  { %1203 = vmatprep.subr.bf16.mxu1 %v11158_v9  ;;  %v495_v9 = vsub.f32 1.0, %v494_v8 }
 0x330   :  { %1204 = vmatpush1.bf16.msra.mxu1 %v11156_v10  ;;  %v12702_v10 = vmul.f32 -1e+09, %v495_v9 }
 0x331   :  { %1205 = vmatprep.subr.bf16.mxu1 %v11161_v12 }
 0x332   :  { %v12706_v12 = vrot.slane %v12702_v10, %v12624_v50 }
 0x334   :  { %1206 = vmatpush1.bf16.msra.mxu1 %v11159_v13 }
 0x335   :  { %1207 = vmatprep.subr.bf16.mxu1 %v11164_v14 }
 0x338   :  { %1208 = vmatpush1.bf16.msra.mxu1 %v11162_v15 }
 0x339   :  { %1209 = vmatprep.subr.bf16.mxu1 %v11167_v7 }
 0x33c   :  { %1210 = vmatpush1.bf16.msra.mxu1 %v11165_v16 }
 0x33d   :  { %1211 = vmatprep.subr.bf16.mxu1 %v11170_v11 }
 0x340   :  { %1212 = vmatpush1.bf16.msra.mxu1 %v11168_v17 }
 0x341   :  { %1213 = vmatprep.subr.bf16.mxu1 %v11173_v18 }
 0x344   :  { %1214 = vmatpush1.bf16.msra.mxu1 %v11171_v19 }
 0x345   :  { %1215 = vmatprep.subr.bf16.mxu1 %v11176_v20 }
 0x348   :  { %1216 = vmatpush1.bf16.msra.mxu1 %v11174_v21 }
 0x349   :  { %1217 = vmatprep.subr.bf16.mxu1 %v11179_v22 }
 0x34c   :  { %1218 = vmatpush1.bf16.msra.mxu1 %v11177_v24 }
 0x34d   :  { %1219 = vmatprep.subr.bf16.mxu1 %v11182_v25 }
 0x350   :  { %1220 = vmatpush1.bf16.msra.mxu1 %v11180_v26 }
 0x351   :  { %1221 = vmatprep.subr.bf16.mxu1 %v11185_v27 }
 0x354   :  { %1222 = vmatpush1.bf16.msra.mxu1 %v11183_v28 }
 0x355   :  { %1223 = vmatprep.subr.bf16.mxu1 %v11188_v29 }
 0x358   :  { %1224 = vmatpush1.bf16.msra.mxu1 %v11186_v30 }
 0x359   :  { %10733 = vmatprep.subr.mxu1 %v12331_v31 }
 0x35b   :  { %1226 = vmatmul.mubr.bf16.vlgmr.msra.gmra.mrb[4].mxu1 %v12640_v63 }
 0x35c   :  { %10735 = vmatprep.mubr.msk.f32.mxu1 %vm12332_vm0, %v12331_v31 }
 0x3ee   :  { %v1141_v37 = vpop.f32.mrb[0].mxu1  ;;  %v1184_v38 = vpop.f32.mrb[4].mxu0 }
 0x3ef   :  { %v1185_v39 = vadd.f32 %v1184_v38, %v608_v34  ;;  %v12660_v40 = vpop.f32.mrb[1].mxu1  ;;  %v12662_v41 = vpop.f32.mrb[5].mxu0  ;;  %v1142_v53 = vadd.f32 %v1141_v37, %v600_v36 }
 0x3f0   :  { %v1145_v44 = vpop.f32.mrb[2].mxu1  ;;  %v1188_v45 = vpop.f32.mrb[6].mxu0 }
 0x3f1   :  { %v12670_v46 = vadd.f32 %v1145_v44, %v600_v36  ;;  %v12672_v49 = vadd.f32 %v1188_v45, %v608_v34  ;;  %v1147_v51 = vpop.f32.mrb[3].mxu1  ;;  %v1190_v52 = vpop.f32.mrb[7].mxu0  ;;  %10734 = vmatpush3.xpose.msk.msra.mxu1 %vm1236_vm1, %v1185_v39 }
 0x3f2   :  { %v12676_v54 = vadd.f32 %v1147_v51, %v12665_v42  ;;  %v12679_v55 = vadd.f32 %v1190_v52, %v12668_v43  ;;  %10738 = vmatprep.subr.mxu1 %v12331_v31  ;;  %v1144_v51 = vadd.f32 %v12660_v40, %v12665_v42 }
 0x3f4   :  { %10736 = vmatmul.mubr.msk.f32.vlgmr.msra.gmra.mrb[8].mxu1 %vm1236_vm1, %v1142_v53 }
 0x3f5   :  { %10740 = vmatprep.mubr.msk.f32.mxu1 %vm12332_vm0, %v12331_v31 }
 0x42e   :  { %v1227_v63 = vpop.f32.mrb[4].mxu1 }
 0x42f   :  { %v1228_v0 = vadd.f32 %v1227_v63, %v616_v61  ;;  %v12689_v1 = vpop.f32.mrb[5].mxu1 }
 0x430   :  { %v1231_v3 = vpop.f32.mrb[6].mxu1  ;;  %v1230_v40 = vadd.f32 %v12689_v1, %v12693_v2 }
 0x431   :  { %v12695_v4 = vadd.f32 %v1231_v3, %v616_v61  ;;  %v1233_v5 = vpop.f32.mrb[7].mxu1  ;;  %10739 = vmatpush3.msra.mxu1 %v1228_v0  ;;  %v1187_v3 = vadd.f32 %v12662_v41, %v12668_v43 }
 0x432   :  { %v12698_v6 = vadd.f32 %v1233_v5, %v12693_v2  ;;  %10743 = vmatprep.subr.mxu1 %v12331_v31 }
 0x4c7   :  { %v1309_v13 = vpop.f32.mrb[8].mxu1 }
 0x4c8   :  { %v1313_v14 = vmul.f32 0.125, %v1309_v13  ;;  %v10737_v15 = vpop.f32.mrb[9].mxu1 }
 0x4ca   :  { %v1318_v7 = vadd.f32 %v12706_v12, %v1313_v14 }
 0x4cc   :  { %v1320_v16 = vsel %vm1319_vm2, %v1318_v7, -inf }
 0x4cd   :  { %1321 = vmax.xlane.f32.xlu0 %v1320_v16 }
 0x4e3   :  { %1406 = vrot.lane.b32.xlu0 %v1185_v39, %s12333_s25 }
 0x55a   :  { %v1322_v11 = vpop.xlane.xlu0 %1321 }
 0x55b   :  { %v1323_v17 = vsub.f32 %v1318_v7, %v1322_v11 }
 0x55d   :  { %v1324_v18 = vmul.f32 1.442695, %v1323_v17 }
 0x55e   :  { %v1407_v25 = vpop.permute.xlu0 %1406 }
 0x55f   :  { %11817 = vpow2.f32 %v1324_v18 }
 0x569   :  { %v11818_v19 = vpop.eup %11817 }
 0x56a   :  { %v1326_v20 = vsel %vm1319_vm2, %v11818_v19, 0.0 }
 0x56b   :  { %1327 = vadd.xlane.f32.xlu1 %v1326_v20 }
 0x57c   :  { %1404 = vrot.lane.b32.xlu1 %v1142_v53, %s12333_s25 }
 0x5f8   :  { %v1328_v21 = vpop.xlane.xlu1 %1327 }
 0x5f9   :  { %11819 = vrcp.f32 %v1328_v21 }
 0x5fc   :  { %v1405_v26 = vpop.permute.xlu1 %1404 }
 0x603   :  { %v11820_v22 = vpop.eup %11819 }
 0x604   :  { %v1330_v24 = vmul.f32 %v11820_v22, %v11818_v19 }
 0x606   :  { %10741 = vmatmul.mubr.msk.f32.vlgmr.msra.gmra.mrb[10].mxu1 %vm1319_vm2, %v1330_v24 }
 0x607   :  { %10744 = vmatpush3.xpose.msk.msra.mxu1 %vm1236_vm1, %v1407_v25  ;;  %10745 = vmatprep.mubr.msk.f32.mxu1 %vm12332_vm0, %v12331_v31 }
 0x608   :  { %10778 = vmatprep.subr.mxu1 %v12331_v31 }
 0x60a   :  { %10746 = vmatmul.mubr.msk.f32.vlgmr.msra.gmra.mrb[12].mxu1 %vm1236_vm1, %v1405_v26 }
 0x60b   :  { %10779 = vmatpush3.msra.mxu1 %v12695_v4  ;;  %10780 = vmatprep.mubr.msk.f32.mxu1 %vm12332_vm0, %v12331_v31 }
 0x60c   :  { %10788 = vmatprep.subr.mxu1 %v12331_v31 }
 0x6d9   :  { %v12723_v27 = vpop.f32.mrb[10].mxu1 }
 0x6da   :  { %v10742_v28 = vpop.f32.mrb[11].mxu1 }
 0x6dd   :  { %v1478_v29 = vpop.f32.mrb[12].mxu1 }
 0x6de   :  { %v1482_v30 = vmul.f32 0.125, %v1478_v29  ;;  %v10747_v33 = vpop.f32.mrb[13].mxu1 }
 0x6e0   :  { %v1483_v34 = vadd.f32 %v1482_v30, %v12706_v12 }
 0x6e2   :  { %v1484_v36 = vsel %vm1319_vm2, %v1483_v34, -inf }
 0x6e3   :  { %1485 = vmax.xlane.f32.xlu1 %v1484_v36 }
 0x770   :  { %v1486_v37 = vpop.xlane.xlu1 %1485 }
 0x771   :  { %v1487_v38 = vsub.f32 %v1483_v34, %v1486_v37 }
 0x773   :  { %v1488_v39 = vmul.f32 1.442695, %v1487_v38 }
 0x775   :  { %11821 = vpow2.f32 %v1488_v39 }
 0x77f   :  { %v11822_v44 = vpop.eup %11821 }
 0x780   :  { %v1490_v45 = vsel %vm1319_vm2, %v11822_v44, 0.0 }
 0x781   :  { %1491 = vadd.xlane.f32.xlu0 %v1490_v45 }
 0x797   :  { %1496 = vrot.lane.b32.xlu0 %v1228_v0, %s12333_s25 }
 0x79b   :  { %1734 = vrot.lane.b32.xlu0 %v1144_v51, %s12333_s25 }
 0x80e   :  { %v1492_v52 = vpop.xlane.xlu0 %1491 }
 0x80f   :  { %11823 = vrcp.f32 %v1492_v52  ;;  %v12803_v52 = vrot.slane %v12702_v10, %v12620_v48 }
 0x812   :  { %v1497_v53 = vpop.permute.xlu0 %1496 }
 0x813   :  { %10749 = vmatpush3.msra.mxu0 %v1497_v53 }
 0x814   :  { %10753 = vmatprep.subr.mxu0 %v12331_v31 }
 0x816   :  { %v1735_v18 = vpop.permute.xlu0 %1734 }
 0x819   :  { %v11824_v61 = vpop.eup %11823 }
 0x81a   :  { %v1494_v63 = vmul.f32 %v11824_v61, %v11822_v44 }
 0x81c   :  { %10751 = vmatmul.mubr.msk.f32.vlgmr.msra.gmra.mrb[8].mxu0 %vm1319_vm2, %v1494_v63 }
 0x81d   :  { %10754 = vmatpush3.xpose.msk.msra.mxu0 %vm1236_vm1, %v1187_v3  ;;  %10755 = vmatprep.mubr.msk.f32.mxu0 %vm12332_vm0, %v12331_v31 }
 0x81e   :  { %10758 = vmatprep.subr.mxu0 %v12331_v31 }
 0x820   :  { %10756 = vmatmul.mubr.msk.f32.vlgmr.msra.gmra.mrb[10].mxu0 %vm1236_vm1, %v1144_v51 }
 0x821   :  { %10759 = vmatpush3.msra.mxu0 %v1230_v40  ;;  %10760 = vmatprep.mubr.msk.f32.mxu0 %vm12332_vm0, %v12331_v31 }
 0x822   :  { %10763 = vmatprep.subr.mxu0 %v12331_v31 }
 0x8ef   :  { %v12746_v41 = vpop.f32.mrb[8].mxu0 }
 0x8f0   :  { %v10752_v42 = vpop.f32.mrb[9].mxu0 }
 0x8f3   :  { %v1644_v43 = vpop.f32.mrb[10].mxu0 }
 0x8f4   :  { %v1648_v0 = vmul.f32 0.125, %v1644_v43  ;;  %v10757_v5 = vpop.f32.mrb[11].mxu0 }
 0x8f6   :  { %v1649_v8 = vadd.f32 %v1648_v0, %v12706_v12 }
 0x8f8   :  { %v1650_v9 = vsel %vm1319_vm2, %v1649_v8, -inf }
 0x8f9   :  { %1651 = vmax.xlane.f32.xlu1 %v1650_v9 }
 0x986   :  { %v1652_v1 = vpop.xlane.xlu1 %1651 }
 0x987   :  { %v1653_v2 = vsub.f32 %v1649_v8, %v1652_v1 }
 0x989   :  { %v1654_v13 = vmul.f32 1.442695, %v1653_v2 }
 0x98b   :  { %11825 = vpow2.f32 %v1654_v13 }
 0x995   :  { %v11826_v14 = vpop.eup %11825 }
 0x996   :  { %v1656_v15 = vsel %vm1319_vm2, %v11826_v14, 0.0 }
 0x997   :  { %1657 = vadd.xlane.f32.xlu1 %v1656_v15 }
 0x9a8   :  { %1736 = vrot.lane.b32.xlu1 %v1187_v3, %s12333_s25 }
 0xa24   :  { %v1658_v7 = vpop.xlane.xlu1 %1657 }
 0xa25   :  { %11827 = vrcp.f32 %v1658_v7 }
 0xa28   :  { %v1737_v17 = vpop.permute.xlu1 %1736 }
 0xa2f   :  { %v11828_v16 = vpop.eup %11827 }
 0xa30   :  { %v1660_v11 = vmul.f32 %v11828_v16, %v11826_v14 }
 0xa32   :  { %10761 = vmatmul.mubr.msk.f32.vlgmr.msra.gmra.mrb[12].mxu0 %vm1319_vm2, %v1660_v11 }
 0xa33   :  { %10764 = vmatpush3.xpose.msk.msra.mxu0 %vm1236_vm1, %v1737_v17  ;;  %10765 = vmatprep.mubr.msk.f32.mxu0 %vm12332_vm0, %v12331_v31 }
 0xa34   :  { %10768 = vmatprep.subr.mxu0 %v12331_v31 }
 0xa36   :  { %10766 = vmatmul.mubr.msk.f32.vlgmr.msra.gmra.mrb[14].mxu0 %vm1236_vm1, %v1735_v18 }
 0xa37   :  { %10770 = vmatprep.mubr.msk.f32.mxu0 %vm12332_vm0, %v12331_v31 }
 0xb05   :  { %v12760_v19 = vpop.f32.mrb[12].mxu0 }
 0xb06   :  { %v10762_v20 = vpop.f32.mrb[13].mxu0 }
 0xb09   :  { %v1808_v21 = vpop.f32.mrb[14].mxu0 }
 0xb0a   :  { %v1812_v22 = vmul.f32 0.125, %v1808_v21  ;;  %v10767_v24 = vpop.f32.mrb[15].mxu0 }
 0xb0c   :  { %v1813_v25 = vadd.f32 %v1812_v22, %v12706_v12 }
 0xb0e   :  { %v1814_v26 = vsel %vm1319_vm2, %v1813_v25, -inf }
 0xb0f   :  { %1815 = vmax.xlane.f32.xlu1 %v1814_v26 }
 0xb20   :  { %2080 = vrot.lane.b32.xlu1 %v12672_v49, %s12333_s25 }
 0xb24   :  { %2078 = vrot.lane.b32.xlu1 %v12670_v46, %s12333_s25 }
 0xb28   :  { %2408 = vrot.lane.b32.xlu1 %v12676_v54, %s12333_s25 }
 0xb9c   :  { %v1816_v28 = vpop.xlane.xlu1 %1815 }
 0xb9d   :  { %v1817_v29 = vsub.f32 %v1813_v25, %v1816_v28 }
 0xb9f   :  { %v1818_v30 = vmul.f32 1.442695, %v1817_v29 }
 0xba0   :  { %v2081_v44 = vpop.permute.xlu1 %2080 }
 0xba1   :  { %11829 = vpow2.f32 %v1818_v30 }
 0xba4   :  { %v2079_v45 = vpop.permute.xlu1 %2078 }
 0xbab   :  { %v11830_v33 = vpop.eup %11829 }
 0xbac   :  { %v1820_v34 = vsel %vm1319_vm2, %v11830_v33, 0.0 }
 0xbad   :  { %1821 = vadd.xlane.f32.xlu0 %v1820_v34 }
 0xbc3   :  { %1826 = vrot.lane.b32.xlu0 %v1230_v40, %s12333_s25 }
 0xbc7   :  { %2410 = vrot.lane.b32.xlu0 %v12679_v55, %s12333_s25 }
 0xc3a   :  { %v1822_v36 = vpop.xlane.xlu0 %1821 }
 0xc3b   :  { %11831 = vrcp.f32 %v1822_v36 }
 0xc3e   :  { %v1827_v37 = vpop.permute.xlu0 %1826 }
 0xc3f   :  { %10769 = vmatpush3.msra.mxu0 %v1827_v37 }
 0xc40   :  { %10773 = vmatprep.subr.mxu0 %v12331_v31 }
 0xc45   :  { %v11832_v38 = vpop.eup %11831 }
 0xc46   :  { %v1824_v39 = vmul.f32 %v11832_v38, %v11830_v33 }
 0xc48   :  { %10771 = vmatmul.mubr.msk.f32.vlgmr.msra.gmra.mrb[16].mxu0 %vm1319_vm2, %v1824_v39 }
 0xc49   :  { %10774 = vmatpush3.xpose.msk.msra.mxu0 %vm1236_vm1, %v12672_v49  ;;  %10775 = vmatprep.mubr.msk.f32.mxu0 %vm12332_vm0, %v12331_v31  ;;  %v2411_v49 = vpop.permute.xlu0 %2410 }
 0xc4a   :  { %10783 = vmatprep.subr.mxu0 %v12331_v31 }
 0xc4c   :  { %10776 = vmatmul.mubr.msk.f32.vlgmr.msra.gmra.mrb[18].mxu0 %vm1236_vm1, %v12670_v46  ;;  %v2409_v46 = vpop.permute.xlu1 %2408 }
 0xc4d   :  { %10784 = vmatpush3.xpose.msk.msra.mxu0 %vm1236_vm1, %v2081_v44  ;;  %10785 = vmatprep.mubr.msk.f32.mxu0 %vm12332_vm0, %v12331_v31 }
 0xc4e   :  { %10793 = vmatprep.subr.mxu0 %v12331_v31 }
 0xc50   :  { %10786 = vmatmul.mubr.msk.f32.vlgmr.msra.gmra.mrb[20].mxu0 %vm1236_vm1, %v2079_v45 }
 0xc51   :  { %10794 = vmatpush3.xpose.msk.msra.mxu0 %vm1236_vm1, %v12679_v55  ;;  %10795 = vmatprep.mubr.msk.f32.mxu0 %vm12332_vm0, %v12331_v31 }
 0xc52   :  { %10803 = vmatprep.subr.mxu0 %v12331_v31 }
 0xc54   :  { %10796 = vmatmul.mubr.msk.f32.vlgmr.msra.gmra.mrb[22].mxu0 %vm1236_vm1, %v12676_v54 }
 0xc55   :  { %10804 = vmatpush3.xpose.msk.msra.mxu0 %vm1236_vm1, %v2411_v49  ;;  %10805 = vmatprep.mubr.msk.f32.mxu0 %vm12332_vm0, %v12331_v31 }
 0xc58   :  { %10806 = vmatmul.mubr.msk.f32.vlgmr.msra.gmra.mrb[24].mxu0 %vm1236_vm1, %v2409_v46 }
 0xd1b   :  { %v12799_v51 = vpop.f32.mrb[16].mxu0 }
 0xd1c   :  { %v10772_v55 = vpop.f32.mrb[17].mxu0 }
 0xd1f   :  { %v1984_v53 = vpop.f32.mrb[18].mxu0 }
 0xd20   :  { %v1988_v61 = vmul.f32 0.125, %v1984_v53  ;;  %v10777_v63 = vpop.f32.mrb[19].mxu0 }
 0xd22   :  { %v1993_v54 = vadd.f32 %v12803_v52, %v1988_v61 }
 0xd23   :  { %v2152_v3 = vpop.f32.mrb[20].mxu0 }
 0xd24   :  { %v2156_v40 = vmul.f32 0.125, %v2152_v3  ;;  %v10787_v42 = vpop.f32.mrb[21].mxu0  ;;  %v1994_v43 = vsel %vm1319_vm2, %v1993_v54, -inf }
 0xd25   :  { %1995 = vmax.xlane.f32.xlu0 %v1994_v43 }
 0xd26   :  { %v2157_v0 = vadd.f32 %v2156_v40, %v12803_v52 }
 0xd27   :  { %v2318_v5 = vpop.f32.mrb[22].mxu0 }
 0xd28   :  { %v2322_v8 = vmul.f32 0.125, %v2318_v5  ;;  %v10797_v9 = vpop.f32.mrb[23].mxu0  ;;  %v2158_v1 = vsel %vm1319_vm2, %v2157_v0, -inf }
 0xd29   :  { %2159 = vmax.xlane.f32.xlu1 %v2158_v1  ;;  %v11191_v9 = vld [vmem:[#allocation8 + $0x4] ss:$8 sps:$4 sm:$0xff]   ;;  %v11192_v1 = vld [vmem:[#allocation8 + $0x10] ss:$8 sps:$4 sm:$0xff]  }
 0xd2a   :  { %v2323_v10 = vadd.f32 %v2322_v8, %v12803_v52  ;;  %v11189_v8 = vld [vmem:[#allocation8] ss:$8 sps:$4 sm:$0xff]   ;;  %2792 = vmatprep.subr.bf16.mxu0 %v11191_v9 }
 0xd2b   :  { %v2482_v2 = vpop.f32.mrb[24].mxu0  ;;  %2793 = vmatpush1.bf16.msra.mxu0 %v11189_v8 }
 0xd2c   :  { %v2486_v13 = vmul.f32 0.125, %v2482_v2  ;;  %v10807_v14 = vpop.f32.mrb[25].mxu0  ;;  %v2324_v15 = vsel %vm1319_vm2, %v2323_v10, -inf  ;;  %v11195_v2 = vld [vmem:[#allocation8 + $0x20] ss:$8 sps:$4 sm:$0xff]  }
 0xd2d   :  { %2325 = vmax.xlane.f32.xlu0 %v2324_v15  ;;  %v11198_v14 = vld [vmem:[#allocation8 + $0x30] ss:$8 sps:$4 sm:$0xff]   ;;  %v11203_v15 = vld [vmem:[#allocation8 + $0x44] ss:$8 sps:$4 sm:$0xff]  }
 0xd2e   :  { %v2487_v7 = vadd.f32 %v2486_v13, %v12803_v52  ;;  %v11200_v13 = vld [vmem:[#allocation8 + $0x34] ss:$8 sps:$4 sm:$0xff]  }
 0xd30   :  { %v2488_v16 = vsel %vm1319_vm2, %v2487_v7, -inf }
 0xd31   :  { %2489 = vmax.xlane.f32.xlu0 %v2488_v16  ;;  %v11206_v16 = vld [vmem:[#allocation8 + $0x54] ss:$8 sps:$4 sm:$0xff]  }
 0xdb2   :  { %v1996_v11 = vpop.xlane.xlu0 %1995 }
 0xdb3   :  { %v1997_v17 = vsub.f32 %v1993_v54, %v1996_v11  ;;  %v11204_v11 = vld [vmem:[#allocation8 + $0x50] ss:$8 sps:$4 sm:$0xff]  }
 0xdb5   :  { %v1998_v18 = vmul.f32 1.442695, %v1997_v17  ;;  %v11209_v17 = vld [vmem:[#allocation8 + $0x64] ss:$8 sps:$4 sm:$0xff]  }
 0xdb6   :  { %v2160_v20 = vpop.xlane.xlu1 %2159 }
 0xdb7   :  { %11833 = vpow2.f32 %v1998_v18  ;;  %v2161_v21 = vsub.f32 %v2157_v0, %v2160_v20  ;;  %v11207_v18 = vld [vmem:[#allocation8 + $0x60] ss:$8 sps:$4 sm:$0xff]   ;;  %v11212_v20 = vld [vmem:[#allocation8 + $0x74] ss:$8 sps:$4 sm:$0xff]  }
 0xdb9   :  { %v2162_v22 = vmul.f32 1.442695, %v2161_v21  ;;  %v11210_v21 = vld [vmem:[#allocation8 + $0x70] ss:$8 sps:$4 sm:$0xff]  }
 0xdba   :  { %v2326_v24 = vpop.xlane.xlu0 %2325 }
 0xdbb   :  { %11835 = vpow2.f32 %v2162_v22  ;;  %v2327_v25 = vsub.f32 %v2323_v10, %v2326_v24  ;;  %v11197_v10 = vld [vmem:[#allocation8 + $0x24] ss:$8 sps:$4 sm:$0xff]   ;;  %v11213_v24 = vld [vmem:[#allocation8 + $0x80] ss:$8 sps:$4 sm:$0xff]  }
 0xdbc   :  { %v11215_v22 = vld [vmem:[#allocation8 + $0x84] ss:$8 sps:$4 sm:$0xff]  }
 0xdbd   :  { %v2328_v26 = vmul.f32 1.442695, %v2327_v25  ;;  %v11218_v25 = vld [vmem:[#allocation8 + $0x94] ss:$8 sps:$4 sm:$0xff]  }
 0xdbe   :  { %v2490_v28 = vpop.xlane.xlu0 %2489 }
 0xdbf   :  { %11837 = vpow2.f32 %v2328_v26  ;;  %v2491_v29 = vsub.f32 %v2487_v7, %v2490_v28  ;;  %v11201_v7 = vld [vmem:[#allocation8 + $0x40] ss:$8 sps:$4 sm:$0xff]   ;;  %v11216_v26 = vld [vmem:[#allocation8 + $0x90] ss:$8 sps:$4 sm:$0xff]   ;;  %v11221_v28 = vld [vmem:[#allocation8 + $0xa4] ss:$8 sps:$4 sm:$0xff]  }
 0xdc1   :  { %v11834_v30 = vpop.eup %11833  ;;  %v2492_v33 = vmul.f32 1.442695, %v2491_v29  ;;  %v11219_v29 = vld [vmem:[#allocation8 + $0xa0] ss:$8 sps:$4 sm:$0xff]  }
 0xdc2   :  { %v2000_v34 = vsel %vm1319_vm2, %v11834_v30, 0.0 }
 0xdc3   :  { %11839 = vpow2.f32 %v2492_v33  ;;  %2001 = vadd.xlane.f32.xlu0 %v2000_v34  ;;  %v11222_v33 = vld [vmem:[#allocation8 + $0xb0] ss:$8 sps:$4 sm:$0xff]   ;;  %v11227_v34 = vld [vmem:[#allocation8 + $0xc4] ss:$8 sps:$4 sm:$0xff]  }
 0xdc5   :  { %v11836_v36 = vpop.eup %11835 }
 0xdc6   :  { %v2164_v37 = vsel %vm1319_vm2, %v11836_v36, 0.0 }
 0xdc7   :  { %2165 = vadd.xlane.f32.xlu1 %v2164_v37  ;;  %v11230_v37 = vld [vmem:[#allocation8 + $0xd4] ss:$8 sps:$4 sm:$0xff]  }
 0xdc9   :  { %v11838_v38 = vpop.eup %11837 }
 0xdca   :  { %v2330_v39 = vsel %vm1319_vm2, %v11838_v38, 0.0 }
 0xdcb   :  { %2331 = vadd.xlane.f32.xlu0 %v2330_v39 }
 0xdcd   :  { %v11840_v44 = vpop.eup %11839 }
 0xdce   :  { %v2494_v45 = vsel %vm1319_vm2, %v11840_v44, 0.0 }
 0xdcf   :  { %2495 = vadd.xlane.f32.xlu1 %v2494_v45  ;;  %v11231_v45 = vld [vmem:[#allocation8 + $0xe0] ss:$8 sps:$4 sm:$0xff]  }
 0xde0   :  { %2500 = vrot.lane.b32.xlu1 %v12698_v6, %s12333_s25 }
 0xde1   :  { %2170 = vrot.lane.b32.xlu0 %v12695_v4, %s12333_s25 }
 0xe50   :  { %v2002_v49 = vpop.xlane.xlu0 %2001 }
 0xe51   :  { %11841 = vrcp.f32 %v2002_v49  ;;  %v11233_v49 = vld [vmem:[#allocation8 + $0xe4] ss:$8 sps:$4 sm:$0xff]  }
 0xe54   :  { %v2166_v46 = vpop.xlane.xlu1 %2165 }
 0xe55   :  { %11843 = vrcp.f32 %v2166_v46 }
 0xe58   :  { %v2332_v55 = vpop.xlane.xlu0 %2331 }
 0xe59   :  { %11845 = vrcp.f32 %v2332_v55 }
 0xe5b   :  { %v11842_v53 = vpop.eup %11841 }
 0xe5c   :  { %v2004_v61 = vmul.f32 %v11842_v53, %v11834_v30  ;;  %v2496_v63 = vpop.xlane.xlu1 %2495  ;;  %v2171_v54 = vpop.permute.xlu0 %2170  ;;  %v11224_v30 = vld [vmem:[#allocation8 + $0xb4] ss:$8 sps:$4 sm:$0xff]  }
 0xe5d   :  { %11847 = vrcp.f32 %v2496_v63  ;;  %v11234_v63 = vld [vmem:[#allocation8 + $0xf0] ss:$8 sps:$4 sm:$0xff]  }
 0xe5e   :  { %10781 = vmatmul.mubr.msk.f32.vlgmr.msra.gmra.mrb[14].mxu1 %vm1319_vm2, %v2004_v61  ;;  %v11236_v61 = vld [vmem:[#allocation8 + $0xf4] ss:$8 sps:$4 sm:$0xff]  }
 0xe5f   :  { %v11844_v3 = vpop.eup %11843  ;;  %10789 = vmatpush3.msra.mxu1 %v2171_v54  ;;  %10790 = vmatprep.mubr.msk.f32.mxu1 %vm12332_vm0, %v12331_v31 }
 0xe60   :  { %v2168_v40 = vmul.f32 %v11844_v3, %v11836_v36  ;;  %10798 = vmatprep.subr.mxu1 %v12331_v31  ;;  %v2501_v43 = vpop.permute.xlu1 %2500  ;;  %v11225_v36 = vld [vmem:[#allocation8 + $0xc0] ss:$8 sps:$4 sm:$0xff]  }
 0xe62   :  { %10791 = vmatmul.mubr.msk.f32.vlgmr.msra.gmra.mrb[16].mxu1 %vm1319_vm2, %v2168_v40 }
 0xe63   :  { %v11846_v4 = vpop.eup %11845  ;;  %10799 = vmatpush3.msra.mxu1 %v12698_v6  ;;  %10800 = vmatprep.mubr.msk.f32.mxu1 %vm12332_vm0, %v12331_v31  ;;  %v11194_v6 = vld [vmem:[#allocation8 + $0x14] ss:$8 sps:$4 sm:$0xff]  }
 0xe64   :  { %v2334_v42 = vmul.f32 %v11846_v4, %v11838_v38  ;;  %10808 = vmatprep.subr.mxu1 %v12331_v31  ;;  %2794 = vmatprep.subr.bf16.mxu0 %v11194_v6  ;;  %v11228_v38 = vld [vmem:[#allocation8 + $0xd0] ss:$8 sps:$4 sm:$0xff]  }
 0xe65   :  { %2795 = vmatpush1.bf16.msra.mxu0 %v11192_v1 }
 0xe66   :  { %10801 = vmatmul.mubr.msk.f32.vlgmr.msra.gmra.mrb[18].mxu1 %vm1319_vm2, %v2334_v42  ;;  %2796 = vmatprep.subr.bf16.mxu0 %v11197_v10 }
 0xe67   :  { %v11848_v0 = vpop.eup %11847  ;;  %10809 = vmatpush3.msra.mxu1 %v2501_v43  ;;  %10810 = vmatprep.mubr.msk.f32.mxu1 %vm12332_vm0, %v12331_v31 }
 0xe68   :  { %v2498_v5 = vmul.f32 %v11848_v0, %v11840_v44 }
 0xe69   :  { %2797 = vmatpush1.bf16.msra.mxu0 %v11195_v2 }
 0xe6a   :  { %10811 = vmatmul.mubr.msk.f32.vlgmr.msra.gmra.mrb[20].mxu1 %vm1319_vm2, %v2498_v5  ;;  %2798 = vmatprep.subr.bf16.mxu0 %v11200_v13 }
 0xe6d   :  { %2799 = vmatpush1.bf16.msra.mxu0 %v11198_v14  ;;  %v2620_v14 = vld [vmem:[%s14041_s24] sm:$0x3] }
 0xe6e   :  { %2800 = vmatprep.subr.bf16.mxu0 %v11203_v15  ;;  %v2625_v15 = vrot.slane %v2620_v14, %v12624_v50 }
 0xe71   :  { %2801 = vmatpush1.bf16.msra.mxu0 %v11201_v7  ;;  %v2629_v7 = vrot.slane %v2620_v14, %v12620_v48 }
 0xe72   :  { %2802 = vmatprep.subr.bf16.mxu0 %v11206_v16 }
 0xe75   :  { %2803 = vmatpush1.bf16.msra.mxu0 %v11204_v11 }
 0xe76   :  { %2804 = vmatprep.subr.bf16.mxu0 %v11209_v17 }
 0xe79   :  { %2805 = vmatpush1.bf16.msra.mxu0 %v11207_v18 }
 0xe7a   :  { %2806 = vmatprep.subr.bf16.mxu0 %v11212_v20 }
 0xe7d   :  { %2807 = vmatpush1.bf16.msra.mxu0 %v11210_v21 }
 0xe7e   :  { %2808 = vmatprep.subr.bf16.mxu0 %v11215_v22 }
 0xe81   :  { %2809 = vmatpush1.bf16.msra.mxu0 %v11213_v24 }
 0xe82   :  { %2810 = vmatprep.subr.bf16.mxu0 %v11218_v25 }
 0xe85   :  { %2811 = vmatpush1.bf16.msra.mxu0 %v11216_v26 }
 0xe86   :  { %2812 = vmatprep.subr.bf16.mxu0 %v11221_v28 }
 0xe89   :  { %2813 = vmatpush1.bf16.msra.mxu0 %v11219_v29  ;;  %v11239_v29 = vld [vmem:[%s14042_s20 + $0x4] ss:$16 sps:$4 sm:$0xff]  }
 0xe8a   :  { %2814 = vmatprep.subr.bf16.mxu0 %v11224_v30  ;;  %v11240_v30 = vld [vmem:[%s14042_s20 + $0x8] ss:$16 sps:$4 sm:$0xff]   ;;  %3312 = vmatprep.subr.bf16.mxu1 %v11239_v29  ;;  %v11299_v29 = vld [vmem:[%s14042_s20 + $0x144] ss:$16 sps:$4 sm:$0xff]  }
 0xe8d   :  { %2815 = vmatpush1.bf16.msra.mxu0 %v11222_v33  ;;  %v11245_v33 = vld [vmem:[%s14042_s20 + $0x24] ss:$16 sps:$4 sm:$0xff]  }
 0xe8e   :  { %2816 = vmatprep.subr.bf16.mxu0 %v11227_v34  ;;  %v11243_v34 = vld [vmem:[%s14042_s20 + $0x20] ss:$16 sps:$4 sm:$0xff]  }
 0xe91   :  { %2817 = vmatpush1.bf16.msra.mxu0 %v11225_v36  ;;  %v11246_v36 = vld [vmem:[%s14042_s20 + $0x28] ss:$16 sps:$4 sm:$0xff]  }
 0xe92   :  { %2818 = vmatprep.subr.bf16.mxu0 %v11230_v37  ;;  %v11251_v37 = vld [vmem:[%s14042_s20 + $0x44] ss:$16 sps:$4 sm:$0xff]  }
 0xe95   :  { %2819 = vmatpush1.bf16.msra.mxu0 %v11228_v38  ;;  %v11254_v38 = vld [vmem:[%s14042_s20 + $0x4c] ss:$16 sps:$4 sm:$0xff]  }
 0xe96   :  { %2820 = vmatprep.subr.bf16.mxu0 %v11233_v49  ;;  %v11260_v49 = vld [vmem:[%s14042_s20 + $0x6c] ss:$16 sps:$4 sm:$0xff]  }
 0xe99   :  { %2821 = vmatpush1.bf16.msra.mxu0 %v11231_v45  ;;  %v11257_v45 = vld [vmem:[%s14042_s20 + $0x64] ss:$16 sps:$4 sm:$0xff]  }
 0xe9a   :  { %2822 = vmatprep.subr.bf16.mxu0 %v11236_v61  ;;  %v11266_v61 = vld [vmem:[%s14042_s20 + $0x8c] ss:$16 sps:$4 sm:$0xff]  }
 0xe9d   :  { %2823 = vmatpush1.bf16.msra.mxu0 %v11234_v63  ;;  %v11261_v63 = vld [vmem:[%s14042_s20 + $0x80] ss:$16 sps:$4 sm:$0xff]  }
 0xf31   :  { %v2074_v39 = vpop.f32.mrb[14].mxu1 }
 0xf32   :  { %v10782_v44 = vpop.f32.mrb[15].mxu1 }
 0xf33   :  { %v11252_v44 = vld [vmem:[%s14042_s20 + $0x48] ss:$16 sps:$4 sm:$0xff]  }
 0xf35   :  { %v2242_v46 = vpop.f32.mrb[16].mxu1 }
 0xf36   :  { %v11006_v55 = vpack.i.bf16 %v2242_v46, %v12746_v41  ;;  %v10792_v53 = vpop.f32.mrb[17].mxu1  ;;  %v11255_v46 = vld [vmem:[%s14042_s20 + $0x60] ss:$16 sps:$4 sm:$0xff]  }
 0xf37   :  { %v11263_v53 = vld [vmem:[%s14042_s20 + $0x84] ss:$16 sps:$4 sm:$0xff]  }
 0xf39   :  { %v2404_v54 = vpop.f32.mrb[18].mxu1 }
 0xf3a   :  { %v10802_v3 = vpop.f32.mrb[19].mxu1 }
 0xf3b   :  { %v11269_v3 = vld [vmem:[%s14042_s20 + $0xa4] ss:$16 sps:$4 sm:$0xff]  }
 0xf3d   :  { %v2572_v40 = vpop.f32.mrb[20].mxu1 }
 0xf3e   :  { %v11001_v4 = vpack.i.bf16 %v2572_v40, %v12799_v51  ;;  %v10812_v42 = vpop.f32.mrb[21].mxu1  ;;  %v11272_v40 = vld [vmem:[%s14042_s20 + $0xac] ss:$16 sps:$4 sm:$0xff]  }
 0xf3f   :  { %v11270_v42 = vld [vmem:[%s14042_s20 + $0xa8] ss:$16 sps:$4 sm:$0xff]  }
 0xf40   :  { %11002 = vrot.lane.b32.xlu1 %v11001_v4, %s12333_s25  ;;  %v11267_v4 = vld [vmem:[%s14042_s20 + $0xa0] ss:$16 sps:$4 sm:$0xff]  }
 0xf44   :  { %11007 = vrot.lane.b32.xlu1 %v11006_v55, %s12333_s25  ;;  %v11258_v55 = vld [vmem:[%s14042_s20 + $0x68] ss:$16 sps:$4 sm:$0xff]  }
 0xfb2   :  { %v11003_v43 = vpop.permute.xlu1 %11002 }
 0xfb3   :  { %v11005_v0 = vunpack.i.h.bf16 %v11003_v43  ;;  %v11004_v41 = vunpack.i.l.bf16 %v11003_v43  ;;  %v11275_v43 = vld [vmem:[%s14042_s20 + $0xc4] ss:$16 sps:$4 sm:$0xff]  }
 0xfb5   :  { %v1911_v5 = vsel %vm1236_vm1, %v12760_v19, %v11004_v41  ;;  %v2585_v8 = vsel %vm1236_vm1, %v2404_v54, %v11005_v0  ;;  %v11264_v54 = vld [vmem:[%s14042_s20 + $0x88] ss:$16 sps:$4 sm:$0xff]   ;;  %v11278_v0 = vld [vmem:[%s14042_s20 + $0xcc] ss:$16 sps:$4 sm:$0xff]   ;;  %v11273_v41 = vld [vmem:[%s14042_s20 + $0xc0] ss:$16 sps:$4 sm:$0xff]  }
 0xfb6   :  { %v11008_v9 = vpop.permute.xlu1 %11007  ;;  %v2587_v6 = vpack.c.bf16 %v2585_v8, %v1911_v5  ;;  %v11276_v5 = vld [vmem:[%s14042_s20 + $0xc8] ss:$16 sps:$4 sm:$0xff]   ;;  %v11281_v8 = vld [vmem:[%s14042_s20 + $0xe4] ss:$16 sps:$4 sm:$0xff]  }
 0xfb7   :  { %v11010_v1 = vunpack.i.h.bf16 %v11008_v9  ;;  %v11009_v10 = vunpack.i.l.bf16 %v11008_v9  ;;  %v11284_v9 = vld [vmem:[%s14042_s20 + $0xec] ss:$16 sps:$4 sm:$0xff]  }
 0xfb8   :  { %2824 = vmatprep.mubr.bf16.mxu0 %v2587_v6  ;;  %v11279_v6 = vld [vmem:[%s14042_s20 + $0xe0] ss:$16 sps:$4 sm:$0xff]  }
 0xfb9   :  { %v2584_v51 = vsel %vm1236_vm1, %v2074_v39, %v11010_v1  ;;  %v1910_v2 = vsel %vm1236_vm1, %v12723_v27, %v11009_v10  ;;  %v11249_v39 = vld [vmem:[%s14042_s20 + $0x40] ss:$16 sps:$4 sm:$0xff]   ;;  %v11282_v1 = vld [vmem:[%s14042_s20 + $0xe8] ss:$16 sps:$4 sm:$0xff]   ;;  %v11287_v10 = vld [vmem:[%s14042_s20 + $0x104] ss:$16 sps:$4 sm:$0xff]  }
 0xfba   :  { %v2586_v13 = vpack.c.bf16 %v2584_v51, %v1910_v2  ;;  %v11290_v51 = vld [vmem:[%s14042_s20 + $0x10c] ss:$16 sps:$4 sm:$0xff]   ;;  %v11285_v2 = vld [vmem:[%s14042_s20 + $0x100] ss:$16 sps:$4 sm:$0xff]  }
 0xfbc   :  { %2825 = vmatmul.mubr.bf16.vlgmr.msra.gmra.mrb[28].mxu0 %v2586_v13  ;;  %v11288_v13 = vld [vmem:[%s14042_s20 + $0x108] ss:$16 sps:$4 sm:$0xff]  }
0x108f   :  { %v2826_v19 = vpop.f32.mrb[28].mxu0 }
0x1090   :  { %v2827_v16 = vadd.f32 %v2826_v19, %v2625_v15  ;;  %v2828_v11 = vpop.f32.mrb[29].mxu0 }
0x1091   :  { %v2829_v17 = vadd.f32 %v2828_v11, %v2629_v7  ;;  %v2830_v18 = vpop.f32.mrb[30].mxu0 }
0x1092   :  { %v12848_v20 = vadd.f32 %v2827_v16, %v12634_v60  ;;  %v2831_v27 = vadd.f32 %v2830_v18, %v2625_v15  ;;  %v2832_v21 = vpop.f32.mrb[31].mxu0 }
0x1093   :  { %v12851_v22 = vadd.f32 %v2829_v17, %v12630_v58  ;;  %v2833_v24 = vadd.f32 %v2832_v21, %v2629_v7  ;;  %v11237_v58 = vld [vmem:[%s14042_s20] ss:$16 sps:$4 sm:$0xff]  }
0x1094   :  { %v12854_v25 = vadd.f32 %v2831_v27, %v12628_v56  ;;  %v11242_v56 = vld [vmem:[%s14042_s20 + $0xc] ss:$16 sps:$4 sm:$0xff]   ;;  %3313 = vmatpush1.bf16.msra.mxu1 %v11237_v58  ;;  %v11294_v58 = vld [vmem:[%s14042_s20 + $0x128] ss:$16 sps:$4 sm:$0xff]  }
0x1095   :  { %v12857_v26 = vadd.f32 %v2833_v24, %v12632_v59  ;;  %v2841_v28 = vadd.f32 %v12851_v22, %v12848_v20  ;;  %v11248_v59 = vld [vmem:[%s14042_s20 + $0x2c] ss:$16 sps:$4 sm:$0xff]   ;;  %3355 = vmatprep.subr.bf16.mxu0 %v11242_v56  ;;  %3314 = vmatprep.subr.bf16.mxu1 %v11245_v33  ;;  %v11297_v56 = vld [vmem:[%s14042_s20 + $0x140] ss:$16 sps:$4 sm:$0xff]   ;;  %v11300_v33 = vld [vmem:[%s14042_s20 + $0x148] ss:$16 sps:$4 sm:$0xff]  }
0x1096   :  { %3356 = vmatpush1.bf16.msra.mxu0 %v11240_v30  ;;  %v11302_v30 = vld [vmem:[%s14042_s20 + $0x14c] ss:$16 sps:$4 sm:$0xff]  }
0x1097   :  { %2842 = vadd.xlane.f32.xlu0 %v2841_v28  ;;  %v2844_v60 = vadd.f32 %v12857_v26, %v12854_v25  ;;  %3357 = vmatprep.subr.bf16.mxu0 %v11248_v59  ;;  %v11296_v28 = vld [vmem:[%s14042_s20 + $0x12c] ss:$16 sps:$4 sm:$0xff]   ;;  %v11305_v59 = vld [vmem:[%s14042_s20 + $0x164] ss:$16 sps:$4 sm:$0xff]  }
0x1098   :  { %3315 = vmatpush1.bf16.msra.mxu1 %v11243_v34  ;;  %v11308_v34 = vld [vmem:[%s14042_s20 + $0x16c] ss:$16 sps:$4 sm:$0xff]  }
0x1099   :  { %2845 = vadd.xlane.f32.xlu1 %v2844_v60  ;;  %3316 = vmatprep.subr.bf16.mxu1 %v11251_v37  ;;  %v11291_v60 = vld [vmem:[%s14042_s20 + $0x120] ss:$16 sps:$4 sm:$0xff]   ;;  %v11306_v37 = vld [vmem:[%s14042_s20 + $0x168] ss:$16 sps:$4 sm:$0xff]  }
0x109a   :  { %3358 = vmatpush1.bf16.msra.mxu0 %v11246_v36  ;;  %v11303_v36 = vld [vmem:[%s14042_s20 + $0x160] ss:$16 sps:$4 sm:$0xff]  }
0x109b   :  { %3359 = vmatprep.subr.bf16.mxu0 %v11254_v38  ;;  %v11311_v38 = vld [vmem:[%s14042_s20 + $0x184] ss:$16 sps:$4 sm:$0xff]  }
0x109c   :  { %3317 = vmatpush1.bf16.msra.mxu1 %v11249_v39  ;;  %v11314_v39 = vld [vmem:[%s14042_s20 + $0x18c] ss:$16 sps:$4 sm:$0xff]  }
0x109d   :  { %3318 = vmatprep.subr.bf16.mxu1 %v11257_v45  ;;  %v11312_v45 = vld [vmem:[%s14042_s20 + $0x188] ss:$16 sps:$4 sm:$0xff]  }
0x109e   :  { %3360 = vmatpush1.bf16.msra.mxu0 %v11252_v44  ;;  %v11309_v44 = vld [vmem:[%s14042_s20 + $0x180] ss:$16 sps:$4 sm:$0xff]  }
0x109f   :  { %3361 = vmatprep.subr.bf16.mxu0 %v11260_v49  ;;  %v11317_v49 = vld [vmem:[%s14042_s20 + $0x1a4] ss:$16 sps:$4 sm:$0xff]  }
0x10a0   :  { %3319 = vmatpush1.bf16.msra.mxu1 %v11255_v46  ;;  %v11320_v46 = vld [vmem:[%s14042_s20 + $0x1ac] ss:$16 sps:$4 sm:$0xff]  }
0x10a1   :  { %3320 = vmatprep.subr.bf16.mxu1 %v11263_v53  ;;  %v11318_v53 = vld [vmem:[%s14042_s20 + $0x1a8] ss:$16 sps:$4 sm:$0xff]  }
0x10a2   :  { %3362 = vmatpush1.bf16.msra.mxu0 %v11258_v55  ;;  %v11315_v55 = vld [vmem:[%s14042_s20 + $0x1a0] ss:$16 sps:$4 sm:$0xff]  }
0x10a3   :  { %3363 = vmatprep.subr.bf16.mxu0 %v11266_v61  ;;  %v11321_v61 = vld [vmem:[%s14042_s20 + $0x1c0] ss:$16 sps:$4 sm:$0xff]  }
0x10a4   :  { %3321 = vmatpush1.bf16.msra.mxu1 %v11261_v63  ;;  %v11323_v63 = vld [vmem:[%s14042_s20 + $0x1c4] ss:$16 sps:$4 sm:$0xff]  }
0x10a5   :  { %3322 = vmatprep.subr.bf16.mxu1 %v11269_v3  ;;  %v11326_v3 = vld [vmem:[%s14042_s20 + $0x1cc] ss:$16 sps:$4 sm:$0xff]  }
0x10a6   :  { %3364 = vmatpush1.bf16.msra.mxu0 %v11264_v54  ;;  %v11324_v54 = vld [vmem:[%s14042_s20 + $0x1c8] ss:$16 sps:$4 sm:$0xff]  }
0x10a7   :  { %3365 = vmatprep.subr.bf16.mxu0 %v11272_v40  ;;  %v11329_v40 = vld [vmem:[%s14042_s20 + $0x1e4] ss:$16 sps:$4 sm:$0xff]  }
0x10a8   :  { %3323 = vmatpush1.bf16.msra.mxu1 %v11267_v4  ;;  %v11332_v4 = vld [vmem:[%s14042_s20 + $0x1ec] ss:$16 sps:$4 sm:$0xff]  }
0x10a9   :  { %3324 = vmatprep.subr.bf16.mxu1 %v11275_v43  ;;  %v11330_v43 = vld [vmem:[%s14042_s20 + $0x1e8] ss:$16 sps:$4 sm:$0xff]  }
0x10aa   :  { %3366 = vmatpush1.bf16.msra.mxu0 %v11270_v42  ;;  %v11327_v42 = vld [vmem:[%s14042_s20 + $0x1e0] ss:$16 sps:$4 sm:$0xff]  }
0x10ab   :  { %3367 = vmatprep.subr.bf16.mxu0 %v11278_v0  ;;  %v11335_v0 = vld [vmem:[#allocation10 + $0x4] ss:$8 sps:$4 sm:$0xff]  }
0x10ac   :  { %3325 = vmatpush1.bf16.msra.mxu1 %v11273_v41 }
0x10ad   :  { %3326 = vmatprep.subr.bf16.mxu1 %v11281_v8 }
0x10ae   :  { %3368 = vmatpush1.bf16.msra.mxu0 %v11276_v5 }
0x10af   :  { %3369 = vmatprep.subr.bf16.mxu0 %v11284_v9 }
0x10b0   :  { %3327 = vmatpush1.bf16.msra.mxu1 %v11279_v6 }
0x10b1   :  { %3328 = vmatprep.subr.bf16.mxu1 %v11287_v10  ;;  %v2839_v10 = vld [vmem:[%s14043_s7] sm:$0x3] }
0x10b2   :  { %3370 = vmatpush1.bf16.msra.mxu0 %v11282_v1 }
0x10b3   :  { %3371 = vmatprep.subr.bf16.mxu0 %v11290_v51 }
0x10b4   :  { %3329 = vmatpush1.bf16.msra.mxu1 %v11285_v2 }
0x10b6   :  { %3372 = vmatpush1.bf16.msra.mxu0 %v11288_v13  ;;  %v2840_v13 = vld [vmem:[%s14044_s10] sm:$0x3] }
0x10b7   :  { %3373 = vmatprep.subr.bf16.mxu0 %v11296_v28 }
0x10ba   :  { %3374 = vmatpush1.bf16.msra.mxu0 %v11294_v58 }
0x10bb   :  { %3375 = vmatprep.subr.bf16.mxu0 %v11302_v30  ;;  %v11333_v30 = vld [vmem:[#allocation10] ss:$8 sps:$4 sm:$0xff]  }
0x10be   :  { %3376 = vmatpush1.bf16.msra.mxu0 %v11300_v33  ;;  %v11341_v33 = vld [vmem:[#allocation10 + $0x24] ss:$8 sps:$4 sm:$0xff]  }
0x10bf   :  { %3377 = vmatprep.subr.bf16.mxu0 %v11308_v34  ;;  %v11344_v34 = vld [vmem:[#allocation10 + $0x34] ss:$8 sps:$4 sm:$0xff]  }
0x10c2   :  { %3378 = vmatpush1.bf16.msra.mxu0 %v11306_v37  ;;  %v11347_v37 = vld [vmem:[#allocation10 + $0x44] ss:$8 sps:$4 sm:$0xff]  }
0x10c3   :  { %3379 = vmatprep.subr.bf16.mxu0 %v11314_v39  ;;  %v11350_v39 = vld [vmem:[#allocation10 + $0x54] ss:$8 sps:$4 sm:$0xff]  }
0x10c6   :  { %3380 = vmatpush1.bf16.msra.mxu0 %v11312_v45  ;;  %v11353_v45 = vld [vmem:[#allocation10 + $0x64] ss:$8 sps:$4 sm:$0xff]  }
0x10c7   :  { %3381 = vmatprep.subr.bf16.mxu0 %v11320_v46  ;;  %v11356_v46 = vld [vmem:[#allocation10 + $0x74] ss:$8 sps:$4 sm:$0xff]  }
0x10ca   :  { %3382 = vmatpush1.bf16.msra.mxu0 %v11318_v53  ;;  %v11359_v53 = vld [vmem:[#allocation10 + $0x84] ss:$8 sps:$4 sm:$0xff]  }
0x10cb   :  { %3383 = vmatprep.subr.bf16.mxu0 %v11326_v3  ;;  %v11365_v3 = vld [vmem:[#allocation10 + $0xa4] ss:$8 sps:$4 sm:$0xff]  }
0x10ce   :  { %3384 = vmatpush1.bf16.msra.mxu0 %v11324_v54  ;;  %v11360_v54 = vld [vmem:[#allocation10 + $0x90] ss:$8 sps:$4 sm:$0xff]  }
0x10cf   :  { %3385 = vmatprep.subr.bf16.mxu0 %v11332_v4  ;;  %v11368_v4 = vld [vmem:[#allocation10 + $0xb4] ss:$8 sps:$4 sm:$0xff]  }
0x10d2   :  { %3386 = vmatpush1.bf16.msra.mxu0 %v11330_v43  ;;  %v11371_v43 = vld [vmem:[#allocation10 + $0xc4] ss:$8 sps:$4 sm:$0xff]  }
0x1124   :  { %v2843_v14 = vpop.xlane.xlu0 %2842 }
0x1125   :  { %v2848_v15 = vmul.f32 0.00390625, %v2843_v14 }
0x1126   :  { %v2846_v7 = vpop.xlane.xlu1 %2845 }
0x1127   :  { %v12900_v19 = vsub.f32 %v12848_v20, %v2848_v15  ;;  %v12903_v16 = vsub.f32 %v12851_v22, %v2848_v15  ;;  %v2849_v11 = vmul.f32 0.00390625, %v2846_v7  ;;  %v2878_v15 = vrot.slane %v2839_v10, %v12624_v50 }
0x1128   :  { %v2882_v7 = vrot.slane %v2839_v10, %v12620_v48  ;;  %v11383_v10 = vld [vmem:[#allocation10 + $0x104] ss:$8 sps:$4 sm:$0xff]  }
0x1129   :  { %v12906_v17 = vsub.f32 %v12854_v25, %v2849_v11  ;;  %v12909_v18 = vsub.f32 %v12857_v26, %v2849_v11  ;;  %v2854_v27 = vmul.f32 %v12900_v19, %v12900_v19  ;;  %v2855_v21 = vmul.f32 %v12903_v16, %v12903_v16  ;;  %v11293_v26 = vld [vmem:[%s14042_s20 + $0x124] ss:$16 sps:$4 sm:$0xff]  }
0x112a   :  { %3330 = vmatprep.subr.bf16.mxu1 %v11293_v26 }
0x112b   :  { %v2858_v20 = vadd.f32 %v2855_v21, %v2854_v27  ;;  %v2856_v22 = vmul.f32 %v12906_v17, %v12906_v17  ;;  %v2857_v24 = vmul.f32 %v12909_v18, %v12909_v18  ;;  %3331 = vmatpush1.bf16.msra.mxu1 %v11291_v60  ;;  %v2893_v27 = vrot.slane %v2840_v13, %v12624_v50 }
0x112c   :  { %3332 = vmatprep.subr.bf16.mxu1 %v11299_v29  ;;  %v2897_v21 = vrot.slane %v2840_v13, %v12620_v48 }
0x112d   :  { %2859 = vadd.xlane.f32.xlu0 %v2858_v20  ;;  %v2861_v25 = vadd.f32 %v2857_v24, %v2856_v22 }
0x112f   :  { %3333 = vmatpush1.bf16.msra.mxu1 %v11297_v56  ;;  %v11336_v56 = vld [vmem:[#allocation10 + $0x10] ss:$8 sps:$4 sm:$0xff]  }
0x1130   :  { %3334 = vmatprep.subr.bf16.mxu1 %v11305_v59  ;;  %v11339_v59 = vld [vmem:[#allocation10 + $0x20] ss:$8 sps:$4 sm:$0xff]  }
0x1131   :  { %2862 = vadd.xlane.f32.xlu0 %v2861_v25 }
0x1133   :  { %3335 = vmatpush1.bf16.msra.mxu1 %v11303_v36  ;;  %v11342_v36 = vld [vmem:[#allocation10 + $0x30] ss:$8 sps:$4 sm:$0xff]  }
0x1134   :  { %3336 = vmatprep.subr.bf16.mxu1 %v11311_v38  ;;  %v11345_v38 = vld [vmem:[#allocation10 + $0x40] ss:$8 sps:$4 sm:$0xff]  }
0x1137   :  { %3337 = vmatpush1.bf16.msra.mxu1 %v11309_v44  ;;  %v11348_v44 = vld [vmem:[#allocation10 + $0x50] ss:$8 sps:$4 sm:$0xff]  }
0x1138   :  { %3338 = vmatprep.subr.bf16.mxu1 %v11317_v49  ;;  %v11351_v49 = vld [vmem:[#allocation10 + $0x60] ss:$8 sps:$4 sm:$0xff]  }
0x113b   :  { %3339 = vmatpush1.bf16.msra.mxu1 %v11315_v55  ;;  %v11354_v55 = vld [vmem:[#allocation10 + $0x70] ss:$8 sps:$4 sm:$0xff]  }
0x113c   :  { %3340 = vmatprep.subr.bf16.mxu1 %v11323_v63  ;;  %v11362_v63 = vld [vmem:[#allocation10 + $0x94] ss:$8 sps:$4 sm:$0xff]  }
0x113f   :  { %3341 = vmatpush1.bf16.msra.mxu1 %v11321_v61  ;;  %v11357_v61 = vld [vmem:[#allocation10 + $0x80] ss:$8 sps:$4 sm:$0xff]  }
0x1140   :  { %3342 = vmatprep.subr.bf16.mxu1 %v11329_v40  ;;  %v11363_v40 = vld [vmem:[#allocation10 + $0xa0] ss:$8 sps:$4 sm:$0xff]  }
0x1143   :  { %3343 = vmatpush1.bf16.msra.mxu1 %v11327_v42  ;;  %v11366_v42 = vld [vmem:[#allocation10 + $0xb0] ss:$8 sps:$4 sm:$0xff]  }
0x1144   :  { %4014 = vmatprep.subr.bf16.mxu1 %v11335_v0  ;;  %v11369_v0 = vld [vmem:[#allocation10 + $0xc0] ss:$8 sps:$4 sm:$0xff]  }
0x11ba   :  { %v2860_v41 = vpop.xlane.xlu0 %2859 }
0x11bb   :  { %v2864_v5 = vmul.f32 0.00390625, %v2860_v41  ;;  %v11374_v41 = vld [vmem:[#allocation10 + $0xd4] ss:$8 sps:$4 sm:$0xff]  }
0x11bd   :  { %v2866_v8 = vadd.f32 1e-12, %v2864_v5  ;;  %v11372_v5 = vld [vmem:[#allocation10 + $0xd0] ss:$8 sps:$4 sm:$0xff]  }
0x11be   :  { %v2863_v9 = vpop.xlane.xlu0 %2862 }
0x11bf   :  { %11849 = vrsqrt.f32 %v2866_v8  ;;  %v2865_v6 = vmul.f32 0.00390625, %v2863_v9  ;;  %v11377_v8 = vld [vmem:[#allocation10 + $0xe4] ss:$8 sps:$4 sm:$0xff]   ;;  %v11375_v9 = vld [vmem:[#allocation10 + $0xe0] ss:$8 sps:$4 sm:$0xff]  }
0x11c1   :  { %v2867_v1 = vadd.f32 1e-12, %v2865_v6  ;;  %v11380_v6 = vld [vmem:[#allocation10 + $0xf4] ss:$8 sps:$4 sm:$0xff]  }
0x11c3   :  { %11851 = vrsqrt.f32 %v2867_v1  ;;  %v11378_v1 = vld [vmem:[#allocation10 + $0xf0] ss:$8 sps:$4 sm:$0xff]  }
0x11c9   :  { %v11850_v51 = vpop.eup %11849 }
0x11ca   :  { %v2870_v2 = vmul.f32 %v11850_v51, %v12900_v19  ;;  %v2871_v14 = vmul.f32 %v11850_v51, %v12903_v16  ;;  %v2970_v51 = vld [vmem:[%s14045_s23] sm:$0xf] }
0x11cb   :  { %v2983_v13 = vrot.slane %v2970_v51, %v12652_v32 }
0x11cc   :  { %v2886_v24 = vmul.f32 %v2882_v7, %v2871_v14  ;;  %v2885_v25 = vmul.f32 %v2878_v15, %v2870_v2  ;;  %v2975_v2 = vrot.slane %v2970_v51, %v12624_v50  ;;  %v2979_v14 = vrot.slane %v2970_v51, %v12620_v48 }
0x11cd   :  { %v11852_v11 = vpop.eup %11851 }
0x11ce   :  { %v2872_v20 = vmul.f32 %v11852_v11, %v12906_v17  ;;  %v2873_v22 = vmul.f32 %v11852_v11, %v12909_v18  ;;  %v12957_v28 = vadd.f32 %v2897_v21, %v2886_v24  ;;  %v12961_v60 = vadd.f32 %v2893_v27, %v2885_v25  ;;  %v11338_v18 = vld [vmem:[#allocation10 + $0x14] ss:$8 sps:$4 sm:$0xff]  }
0x11d0   :  { %v2888_v26 = vmul.f32 %v2882_v7, %v2873_v22  ;;  %v2887_v19 = vmul.f32 %v2878_v15, %v2872_v20  ;;  %v2987_v15 = vrot.slane %v2970_v51, %v12657_v35 }
0x11d2   :  { %v12959_v16 = vadd.f32 %v2897_v21, %v2888_v26  ;;  %v12963_v58 = vadd.f32 %v2893_v27, %v2887_v19 }
0x11d4   :  { %v2905_v29 = vpack.c.bf16 %v12959_v16, %v12957_v28  ;;  %v2904_v17 = vpack.c.bf16 %v12963_v58, %v12961_v60 }
0x11d6   :  { %3344 = vmatprep.mubr.bf16.mxu1 %v2905_v29  ;;  %3387 = vmatprep.mubr.bf16.mxu0 %v2905_v29 }
0x11d7   :  { %3345 = vmatmul.mubr.bf16.vlgmr.msra.gmra.mrb[24].mxu1 %v2904_v17  ;;  %3388 = vmatmul.mubr.bf16.vlgmr.msra.gmra.mrb[32].mxu0 %v2904_v17 }
0x11d8   :  { %4015 = vmatpush1.bf16.msra.mxu1 %v11333_v30 }
0x11d9   :  { %4016 = vmatprep.subr.bf16.mxu1 %v11338_v18 }
0x11dc   :  { %4017 = vmatpush1.bf16.msra.mxu1 %v11336_v56 }
0x11dd   :  { %4018 = vmatprep.subr.bf16.mxu1 %v11341_v33 }
0x11e0   :  { %4019 = vmatpush1.bf16.msra.mxu1 %v11339_v59 }
0x11e1   :  { %4020 = vmatprep.subr.bf16.mxu1 %v11344_v34 }
0x11e4   :  { %4021 = vmatpush1.bf16.msra.mxu1 %v11342_v36 }
0x11e5   :  { %4022 = vmatprep.subr.bf16.mxu1 %v11347_v37 }
0x11e8   :  { %4023 = vmatpush1.bf16.msra.mxu1 %v11345_v38 }
0x11e9   :  { %4024 = vmatprep.subr.bf16.mxu1 %v11350_v39 }
0x11ec   :  { %4025 = vmatpush1.bf16.msra.mxu1 %v11348_v44 }
0x11ed   :  { %4026 = vmatprep.subr.bf16.mxu1 %v11353_v45 }
0x11f0   :  { %4027 = vmatpush1.bf16.msra.mxu1 %v11351_v49 }
0x11f1   :  { %4028 = vmatprep.subr.bf16.mxu1 %v11356_v46 }
0x11f4   :  { %4029 = vmatpush1.bf16.msra.mxu1 %v11354_v55 }
0x11f5   :  { %4030 = vmatprep.subr.bf16.mxu1 %v11359_v53 }
0x11f8   :  { %4031 = vmatpush1.bf16.msra.mxu1 %v11357_v61 }
0x11f9   :  { %4032 = vmatprep.subr.bf16.mxu1 %v11362_v63 }
0x11fc   :  { %4033 = vmatpush1.bf16.msra.mxu1 %v11360_v54 }
0x11fd   :  { %4034 = vmatprep.subr.bf16.mxu1 %v11365_v3 }
0x1200   :  { %4035 = vmatpush1.bf16.msra.mxu1 %v11363_v40 }
0x1201   :  { %4036 = vmatprep.subr.bf16.mxu1 %v11368_v4 }
0x1204   :  { %4037 = vmatpush1.bf16.msra.mxu1 %v11366_v42 }
0x1205   :  { %4038 = vmatprep.subr.bf16.mxu1 %v11371_v43 }
0x1208   :  { %4039 = vmatpush1.bf16.msra.mxu1 %v11369_v0 }
0x1209   :  { %4040 = vmatprep.subr.bf16.mxu1 %v11374_v41 }
0x120c   :  { %4041 = vmatpush1.bf16.msra.mxu1 %v11372_v5 }
0x120d   :  { %4042 = vmatprep.subr.bf16.mxu1 %v11377_v8 }
0x1210   :  { %4043 = vmatpush1.bf16.msra.mxu1 %v11375_v9 }
0x1211   :  { %4044 = vmatprep.subr.bf16.mxu1 %v11380_v6 }
0x1214   :  { %4045 = vmatpush1.bf16.msra.mxu1 %v11378_v1 }
0x1215   :  { %4057 = vmatprep.subr.bf16.mxu1 %v11383_v10 }
0x12aa   :  { %v3346_v7 = vpop.f32.mrb[24].mxu1  ;;  %v3389_v11 = vpop.f32.mrb[32].mxu0 }
0x12ab   :  { %v12974_v27 = vadd.f32 %v3346_v7, %v2975_v2  ;;  %v12976_v21 = vadd.f32 %v3389_v11, %v2983_v13  ;;  %v3348_v20 = vpop.f32.mrb[25].mxu1  ;;  %v3391_v22 = vpop.f32.mrb[33].mxu0 }
0x12ac   :  { %v12978_v24 = vadd.f32 %v3348_v20, %v2979_v14  ;;  %v12980_v25 = vadd.f32 %v3391_v22, %v2987_v15  ;;  %v3350_v26 = vpop.f32.mrb[26].mxu1  ;;  %v3393_v19 = vpop.f32.mrb[34].mxu0 }
0x12ad   :  { %v12983_v29 = vmul.f32 0.70710677, %v12974_v27  ;;  %v12986_v17 = vmul.f32 0.70710677, %v12976_v21  ;;  %v3352_v49 = vpop.f32.mrb[27].mxu1  ;;  %v3395_v46 = vpop.f32.mrb[35].mxu0  ;;  %v12998_v53 = vadd.f32 %v3350_v26, %v2975_v2  ;;  %v13000_v61 = vadd.f32 %v3393_v19, %v2983_v13 }
0x12ae   :  { %v12989_v30 = vmul.f32 0.70710677, %v12978_v24  ;;  %v12992_v18 = vmul.f32 0.70710677, %v12980_v25  ;;  %v13005_v3 = vadd.f32 %v3352_v49, %v2979_v14  ;;  %v13011_v43 = vadd.f32 %v3395_v46, %v2987_v15 }
0x12af   :  { %v3414_v56 = vand.u32 2147483647, %v12983_v29  ;;  %v3416_v33 = vand.u32 2147483647, %v12986_v17  ;;  %v13003_v54 = vmul.f32 0.70710677, %v12998_v53 }
0x12b0   :  { %v3415_v59 = vand.u32 2147483647, %v12989_v30  ;;  %v3417_v34 = vand.u32 2147483647, %v12992_v18  ;;  %v13008_v4 = vmul.f32 0.70710677, %v13000_v61 }
0x12b1   :  { %v3422_v36 = vmul.f32 0.3275911, %v3414_v56  ;;  %v3424_v37 = vmul.f32 0.3275911, %v3416_v33  ;;  %v3526_v40 = vsub.f32 0.0, %v3414_v56  ;;  %v3528_v0 = vsub.f32 0.0, %v3416_v33 }
0x12b2   :  { %v3423_v38 = vmul.f32 0.3275911, %v3415_v59  ;;  %v3425_v45 = vmul.f32 0.3275911, %v3417_v34  ;;  %v3418_v42 = vand.u32 2147483647, %v13003_v54 }
0x12b3   :  { %v3430_v39 = vadd.f32 1.0, %v3422_v36  ;;  %v3432_v44 = vadd.f32 1.0, %v3424_v37  ;;  %v3527_v41 = vsub.f32 0.0, %v3415_v59  ;;  %v3420_v5 = vand.u32 2147483647, %v13008_v4 }
0x12b4   :  { %v3431_v55 = vadd.f32 1.0, %v3423_v38  ;;  %v3433_v63 = vadd.f32 1.0, %v3425_v45  ;;  %v13015_v8 = vmul.f32 0.70710677, %v13005_v3  ;;  %v3529_v9 = vsub.f32 0.0, %v3417_v34 }
0x12b5   :  { %11853 = vrcp.f32 %v3430_v39  ;;  %v3426_v6 = vmul.f32 0.3275911, %v3418_v42  ;;  %v3534_v1 = vmul.f32 %v3526_v40, %v3414_v56  ;;  %v3428_v10 = vmul.f32 0.3275911, %v3420_v5 }
0x12b6   :  { %11855 = vrcp.f32 %v3432_v44  ;;  %v3419_v51 = vand.u32 2147483647, %v13015_v8  ;;  %v13019_v13 = vmul.f32 0.70710677, %v13011_v43  ;;  %v3536_v14 = vmul.f32 %v3528_v0, %v3416_v33 }
0x12b7   :  { %11857 = vrcp.f32 %v3431_v55  ;;  %v3434_v2 = vadd.f32 1.0, %v3426_v6  ;;  %v3535_v15 = vmul.f32 %v3527_v41, %v3415_v59  ;;  %v3436_v7 = vadd.f32 1.0, %v3428_v10 }
0x12b8   :  { %11859 = vrcp.f32 %v3433_v63  ;;  %v3427_v11 = vmul.f32 0.3275911, %v3419_v51  ;;  %v3537_v22 = vmul.f32 %v3529_v9, %v3417_v34  ;;  %v3530_v26 = vsub.f32 0.0, %v3418_v42 }
0x12b9   :  { %11861 = vrcp.f32 %v3434_v2  ;;  %v13024_v19 = vand.u32 2147483647, %v13019_v13  ;;  %v3542_v37 = vmul.f32 1.442695, %v3534_v1  ;;  %v3532_v59 = vsub.f32 0.0, %v3420_v5 }
0x12ba   :  { %11863 = vrcp.f32 %v3436_v7  ;;  %v3435_v38 = vadd.f32 1.0, %v3427_v11  ;;  %v3546_v45 = vmul.f32 1.442695, %v3536_v14  ;;  %v3538_v46 = vmul.f32 %v3530_v26, %v3418_v42 }
0x12bb   :  { %v3429_v39 = vmul.f32 0.3275911, %v13024_v19  ;;  %v3544_v0 = vmul.f32 1.442695, %v3535_v15  ;;  %v3548_v41 = vmul.f32 1.442695, %v3537_v22  ;;  %v3540_v1 = vmul.f32 %v3532_v59, %v3420_v5 }
0x12bc   :  { %11865 = vrcp.f32 %v3435_v38  ;;  %v3531_v10 = vsub.f32 0.0, %v3419_v51  ;;  %v3550_v11 = vmul.f32 1.442695, %v3538_v46  ;;  %vm3574_vm3 = vcmp.ge.f32.partialorder %v12983_v29, 0.0 }
0x12bd   :  { %v3437_v55 = vadd.f32 1.0, %v3429_v39  ;;  %11867 = vpow2.f32 %v3542_v37  ;;  %v3554_v5 = vmul.f32 1.442695, %v3540_v1  ;;  %vm3576_vm4 = vcmp.ge.f32.partialorder %v12986_v17, 0.0 }
0x12be   :  { %v3539_v38 = vmul.f32 %v3531_v10, %v3419_v51  ;;  %vm3575_vm5 = vcmp.ge.f32.partialorder %v12989_v30, 0.0  ;;  %vm3578_vm6 = vcmp.ge.f32.partialorder %v13003_v54, 0.0  ;;  %vm3580_vm7 = vcmp.ge.f32.partialorder %v13008_v4, 0.0 }
0x12bf   :  { %v13021_v20 = vpop.eup %11853  ;;  %11869 = vrcp.f32 %v3437_v55  ;;  %v3533_v55 = vsub.f32 0.0, %v13024_v19  ;;  %vm3579_vm8 = vcmp.ge.f32.partialorder %v13015_v8, 0.0  ;;  %vm3577_vm9 = vcmp.ge.f32.partialorder %v12992_v18, 0.0 }
0x12c0   :  { %v13026_v56 = vpop.eup %11855  ;;  %v3454_v36 = vmul.f32 1.0614054, %v13021_v20  ;;  %11871 = vpow2.f32 %v3546_v45  ;;  %v3552_v10 = vmul.f32 1.442695, %v3539_v38  ;;  %vm3581_vm10 = vcmp.ge.f32.partialorder %v13019_v13, 0.0 }
0x12c1   :  { %v3456_v33 = vmul.f32 1.0614054, %v13026_v56  ;;  %v13031_v34 = vpop.eup %11857  ;;  %11873 = vpow2.f32 %v3544_v0  ;;  %v3401_v18 = vmul.f32 0.5, %v12980_v25  ;;  %v11387_v13 = vld [vmem:[#allocation10 + $0x120] ss:$8 sps:$4 sm:$0xff]  }
0x12c2   :  { %v3462_v44 = vadd.f32 -1.4531521, %v3454_v36  ;;  %v3455_v40 = vmul.f32 1.0614054, %v13031_v34  ;;  %v13035_v9 = vpop.eup %11859  ;;  %11875 = vpow2.f32 %v3548_v41  ;;  %v11390_v25 = vld [vmem:[#allocation10 + $0x130] ss:$8 sps:$4 sm:$0xff]  }
0x12c3   :  { %v3464_v49 = vadd.f32 -1.4531521, %v3456_v33  ;;  %v3457_v7 = vmul.f32 1.0614054, %v13035_v9  ;;  %v13041_v36 = vpop.eup %11861  ;;  %11877 = vpow2.f32 %v3550_v11 }
0x12c4   :  { %v3470_v63 = vmul.f32 %v13021_v20, %v3462_v44  ;;  %v3463_v14 = vadd.f32 -1.4531521, %v3455_v40  ;;  %v13044_v33 = vpop.eup %11863  ;;  %v3458_v45 = vmul.f32 1.0614054, %v13041_v36  ;;  %11879 = vpow2.f32 %v3554_v5 }
0x12c5   :  { %v3472_v6 = vmul.f32 %v13026_v56, %v3464_v49  ;;  %v3465_v22 = vadd.f32 -1.4531521, %v3457_v7  ;;  %v3460_v46 = vmul.f32 1.0614054, %v13044_v33  ;;  %11881 = vpow2.f32 %v3552_v10 }
0x12c6   :  { %v3478_v2 = vadd.f32 1.4214138, %v3470_v63  ;;  %v3471_v15 = vmul.f32 %v13031_v34, %v3463_v14  ;;  %v3466_v51 = vadd.f32 -1.4531521, %v3458_v45  ;;  %v13052_v41 = vpop.eup %11865 }
0x12c7   :  { %v3480_v42 = vadd.f32 1.4214138, %v3472_v6  ;;  %v3473_v44 = vmul.f32 %v13035_v9, %v3465_v22  ;;  %v3468_v1 = vadd.f32 -1.4531521, %v3460_v46  ;;  %v11868_v11 = vpop.eup %11867  ;;  %v3459_v22 = vmul.f32 1.0614054, %v13052_v41 }
0x12c8   :  { %v3486_v26 = vmul.f32 %v13021_v20, %v3478_v2  ;;  %v3479_v39 = vadd.f32 1.4214138, %v3471_v15 }
0x12c9   :  { %v3488_v37 = vmul.f32 %v13026_v56, %v3480_v42  ;;  %v3481_v0 = vadd.f32 1.4214138, %v3473_v44  ;;  %v3474_v42 = vmul.f32 %v13041_v36, %v3466_v51  ;;  %v3476_v15 = vmul.f32 %v13044_v33, %v3468_v1 }
0x12ca   :  { %v3494_v59 = vadd.f32 -0.28449672, %v3486_v26  ;;  %v3487_v40 = vmul.f32 %v13031_v34, %v3479_v39 }
0x12cb   :  { %v3496_v49 = vadd.f32 -0.28449672, %v3488_v37  ;;  %v3489_v7 = vmul.f32 %v13035_v9, %v3481_v0  ;;  %v3541_v37 = vmul.f32 %v3533_v55, %v13024_v19  ;;  %v3482_v44 = vadd.f32 1.4214138, %v3474_v42 }
0x12cc   :  { %v3502_v63 = vmul.f32 %v13021_v20, %v3494_v59  ;;  %v3495_v14 = vadd.f32 -0.28449672, %v3487_v40  ;;  %v13060_v59 = vpop.eup %11869  ;;  %v3484_v46 = vadd.f32 1.4214138, %v3476_v15 }
0x12cd   :  { %v3504_v6 = vmul.f32 %v13026_v56, %v3496_v49  ;;  %v3497_v38 = vadd.f32 -0.28449672, %v3489_v7  ;;  %v11872_v45 = vpop.eup %11871  ;;  %v3461_v40 = vmul.f32 1.0614054, %v13060_v59  ;;  %v3490_v55 = vmul.f32 %v13041_v36, %v3482_v44 }
0x12ce   :  { %v3510_v2 = vadd.f32 0.2548296, %v3502_v63  ;;  %v3503_v5 = vmul.f32 %v13031_v34, %v3495_v14  ;;  %v3467_v63 = vadd.f32 -1.4531521, %v3459_v22  ;;  %v11874_v0 = vpop.eup %11873  ;;  %v3556_v44 = vmul.f32 1.442695, %v3541_v37 }
0x12cf   :  { %v3512_v26 = vadd.f32 0.2548296, %v3504_v6  ;;  %v3505_v19 = vmul.f32 %v13035_v9, %v3497_v38  ;;  %v11876_v1 = vpop.eup %11875  ;;  %v3469_v7 = vadd.f32 -1.4531521, %v3461_v40 }
0x12d0   :  { %v3518_v39 = vmul.f32 %v13021_v20, %v3510_v2  ;;  %v3511_v6 = vadd.f32 0.2548296, %v3503_v5  ;;  %v3492_v2 = vmul.f32 %v13044_v33, %v3484_v46  ;;  %v3475_v14 = vmul.f32 %v13052_v41, %v3467_v63  ;;  %v11878_v15 = vpop.eup %11877 }
0x12d1   :  { %v3520_v49 = vmul.f32 %v13026_v56, %v3512_v26  ;;  %v3513_v42 = vadd.f32 0.2548296, %v3505_v19  ;;  %v3498_v26 = vadd.f32 -0.28449672, %v3490_v55  ;;  %v3398_v19 = vmul.f32 0.5, %v12974_v27 }
0x12d2   :  { %v3558_v51 = vmul.f32 %v11868_v11, %v3518_v39  ;;  %v3519_v56 = vmul.f32 %v13031_v34, %v3511_v6  ;;  %v3500_v22 = vadd.f32 -0.28449672, %v3492_v2  ;;  %v3483_v23 = vadd.f32 1.4214138, %v3475_v14 }
0x12d3   :  { %v3560_v20 = vmul.f32 %v11872_v45, %v3520_v49  ;;  %v3477_v11 = vmul.f32 %v13060_v59, %v3469_v7  ;;  %v3506_v38 = vmul.f32 %v13041_v36, %v3498_v26  ;;  %v11880_v45 = vpop.eup %11879  ;;  %v3521_v40 = vmul.f32 %v13035_v9, %v3513_v42 }
0x12d4   :  { %v3566_v39 = vsub.f32 1.0, %v3558_v51  ;;  %v3559_v49 = vmul.f32 %v11874_v0, %v3519_v56  ;;  %v3508_v46 = vmul.f32 %v13044_v33, %v3500_v22  ;;  %v3491_v63 = vmul.f32 %v13052_v41, %v3483_v23 }
0x12d5   :  { %v3568_v5 = vsub.f32 1.0, %v3560_v20  ;;  %v3485_v34 = vadd.f32 1.4214138, %v3477_v11  ;;  %v3514_v6 = vadd.f32 0.2548296, %v3506_v38  ;;  %11883 = vpow2.f32 %v3556_v44  ;;  %v11882_v11 = vpop.eup %11881 }
0x12d6   :  { %v3516_v10 = vadd.f32 0.2548296, %v3508_v46  ;;  %v3499_v55 = vadd.f32 -0.28449672, %v3491_v63  ;;  %v3582_v2 = vsub.f32 0.0, %v3566_v39  ;;  %v3567_v37 = vsub.f32 1.0, %v3559_v49 }
0x12d7   :  { %v3584_v51 = vsub.f32 0.0, %v3568_v5  ;;  %v3522_v20 = vmul.f32 %v13041_v36, %v3514_v6  ;;  %v3493_v23 = vmul.f32 %v13060_v59, %v3485_v34  ;;  %v3400_v7 = vmul.f32 0.5, %v12976_v21 }
0x12d8   :  { %v3524_v0 = vmul.f32 %v13044_v33, %v3516_v10  ;;  %v3507_v14 = vmul.f32 %v13052_v41, %v3499_v55  ;;  %v3399_v9 = vmul.f32 0.5, %v12978_v24  ;;  %v3561_v56 = vmul.f32 %v11876_v1, %v3521_v40 }
0x12d9   :  { %v3562_v27 = vmul.f32 %v11878_v15, %v3522_v20  ;;  %v3501_v22 = vadd.f32 -0.28449672, %v3493_v23  ;;  %v3590_v36 = vsel %vm3574_vm3, %v3566_v39, %v3582_v2  ;;  %v3592_v38 = vsel %vm3576_vm4, %v3568_v5, %v3584_v51 }
0x12da   :  { %v3564_v42 = vmul.f32 %v11880_v45, %v3524_v0  ;;  %v3515_v26 = vadd.f32 0.2548296, %v3507_v14  ;;  %v3583_v44 = vsub.f32 0.0, %v3567_v37  ;;  %v3569_v24 = vsub.f32 1.0, %v3561_v56 }
0x12db   :  { %v3570_v33 = vsub.f32 1.0, %v3562_v27  ;;  %v3402_v1 = vmul.f32 0.5, %v12998_v53  ;;  %v3509_v29 = vmul.f32 %v13060_v59, %v3501_v22  ;;  %v3598_v45 = vadd.f32 1.0, %v3590_v36 }
0x12dc   :  { %v3572_v49 = vsub.f32 1.0, %v3564_v42  ;;  %v3523_v21 = vmul.f32 %v13052_v41, %v3515_v26  ;;  %v3600_v46 = vadd.f32 1.0, %v3592_v38  ;;  %v3591_v34 = vsel %vm3575_vm5, %v3567_v37, %v3583_v44  ;;  %v11386_v44 = vld [vmem:[#allocation10 + $0x114] ss:$8 sps:$4 sm:$0xff]  }
0x12dd   :  { %v3586_v15 = vsub.f32 0.0, %v3570_v33  ;;  %v3517_v5 = vadd.f32 0.2548296, %v3509_v29  ;;  %v3585_v10 = vsub.f32 0.0, %v3569_v24  ;;  %v3404_v55 = vmul.f32 0.5, %v13000_v61 }
0x12de   :  { %v3588_v39 = vsub.f32 0.0, %v3572_v49  ;;  %v3563_v17 = vmul.f32 %v11882_v11, %v3523_v21  ;;  %v3606_v51 = vmul.f32 %v3598_v45, %v3398_v19  ;;  %v13096_v4 = vmul.f32 %v3600_v46, %v3400_v7  ;;  %v11381_v11 = vld [vmem:[#allocation10 + $0x100] ss:$8 sps:$4 sm:$0xff]   ;;  %v11398_v45 = vld [vmem:[#allocation10 + $0x154] ss:$8 sps:$4 sm:$0xff]  }
0x12df   :  { %v3594_v63 = vsel %vm3578_vm6, %v3570_v33, %v3586_v15  ;;  %v11884_v53 = vpop.eup %11883  ;;  %v3525_v54 = vmul.f32 %v13060_v59, %v3517_v5  ;;  %v3599_v14 = vadd.f32 1.0, %v3591_v34  ;;  %v3403_v56 = vmul.f32 0.5, %v13005_v3  ;;  %v11392_v15 = vld [vmem:[#allocation10 + $0x134] ss:$8 sps:$4 sm:$0xff]   ;;  %v11393_v29 = vld [vmem:[#allocation10 + $0x140] ss:$8 sps:$4 sm:$0xff]  }
0x12e0   :  { %v3602_v41 = vadd.f32 1.0, %v3594_v63  ;;  %v3596_v40 = vsel %vm3580_vm7, %v3572_v49, %v3588_v39  ;;  %v3571_v6 = vsub.f32 1.0, %v3563_v17  ;;  %v3593_v27 = vsel %vm3577_vm9, %v3569_v24, %v3585_v10  ;;  %v11396_v39 = vld [vmem:[#allocation10 + $0x150] ss:$8 sps:$4 sm:$0xff]   ;;  %v11401_v17 = vld [vmem:[#allocation10 + $0x164] ss:$8 sps:$4 sm:$0xff]  }
0x12e1   :  { %v3604_v2 = vadd.f32 1.0, %v3596_v40  ;;  %v3565_v37 = vmul.f32 %v11884_v53, %v3525_v54  ;;  %v3607_v8 = vmul.f32 %v3599_v14, %v3399_v9  ;;  %v3601_v22 = vadd.f32 1.0, %v3593_v27  ;;  %v11384_v9 = vld [vmem:[#allocation10 + $0x110] ss:$8 sps:$4 sm:$0xff]   ;;  %v11399_v46 = vld [vmem:[#allocation10 + $0x160] ss:$8 sps:$4 sm:$0xff]  }
0x12e2   :  { %v3610_v20 = vmul.f32 %v3602_v41, %v3402_v1  ;;  %v3587_v0 = vsub.f32 0.0, %v3571_v6  ;;  %v3405_v3 = vmul.f32 0.5, %v13011_v43  ;;  %v11389_v1 = vld [vmem:[#allocation10 + $0x124] ss:$8 sps:$4 sm:$0xff]   ;;  %v11404_v63 = vld [vmem:[#allocation10 + $0x174] ss:$8 sps:$4 sm:$0xff]  }
0x12e3   :  { %v13098_v30 = vmul.f32 %v3604_v2, %v3404_v55  ;;  %v3573_v42 = vsub.f32 1.0, %v3565_v37  ;;  %v3609_v49 = vmul.f32 %v3601_v22, %v3401_v18  ;;  %v11395_v43 = vld [vmem:[#allocation10 + $0x144] ss:$8 sps:$4 sm:$0xff]   ;;  %v11402_v5 = vld [vmem:[#allocation10 + $0x170] ss:$8 sps:$4 sm:$0xff]   ;;  %vm7834_vm3 = vcmask 1040384  }
0x12e4   :  { %v3614_v23 = vpack.c.bf16 %v3610_v20, %v3606_v51  ;;  %v3595_v61 = vsel %vm3579_vm8, %v3571_v6, %v3587_v0  ;;  %v11407_v34 = vld [vmem:[#allocation10 + $0x184] ss:$8 sps:$4 sm:$0xff]   ;;  %v11405_v41 = vld [vmem:[#allocation10 + $0x180] ss:$8 sps:$4 sm:$0xff]   ;;  %v11410_v40 = vld [vmem:[#allocation10 + $0x194] ss:$8 sps:$4 sm:$0xff]  }
0x12e5   :  { %v3616_v59 = vpack.c.bf16 %v13098_v30, %v13096_v4  ;;  %v3603_v19 = vadd.f32 1.0, %v3595_v61  ;;  %v3589_v7 = vsub.f32 0.0, %v3573_v42  ;;  %v11408_v6 = vld [vmem:[#allocation10 + $0x190] ss:$8 sps:$4 sm:$0xff]   ;;  %v11413_v53 = vld [vmem:[#allocation10 + $0x1a4] ss:$8 sps:$4 sm:$0xff]  }
0x12e6   :  { %v11411_v10 = vld [vmem:[#allocation10 + $0x1a0] ss:$8 sps:$4 sm:$0xff]   ;;  %v11416_v55 = vld [vmem:[#allocation10 + $0x1b4] ss:$8 sps:$4 sm:$0xff]   ;;  %v11414_v2 = vld [vmem:[#allocation10 + $0x1b0] ss:$8 sps:$4 sm:$0xff]  }
0x12e7   :  { %v3611_v26 = vmul.f32 %v3603_v19, %v3403_v56  ;;  %v3597_v36 = vsel %vm3581_vm10, %v3573_v42, %v3589_v7  ;;  %v11419_v54 = vld [vmem:[#allocation10 + $0x1c4] ss:$8 sps:$4 sm:$0xff]   ;;  %v11417_v51 = vld [vmem:[#allocation10 + $0x1c0] ss:$8 sps:$4 sm:$0xff]   ;;  %v11422_v20 = vld [vmem:[#allocation10 + $0x1d4] ss:$8 sps:$4 sm:$0xff]  }
0x12e8   :  { %v3605_v38 = vadd.f32 1.0, %v3597_v36  ;;  %v11420_v0 = vld [vmem:[#allocation10 + $0x1d0] ss:$8 sps:$4 sm:$0xff]   ;;  %v11425_v14 = vld [vmem:[#allocation10 + $0x1e4] ss:$8 sps:$4 sm:$0xff]   ;;  %vm9780_vm4 = vcmask 33792  }
0x12e9   :  { %v3615_v33 = vpack.c.bf16 %v3611_v26, %v3607_v8  ;;  %v11423_v37 = vld [vmem:[#allocation10 + $0x1e0] ss:$8 sps:$4 sm:$0xff]   ;;  %v11426_v56 = vld [vmem:[#allocation10 + $0x1f0] ss:$8 sps:$4 sm:$0xff]   ;;  %v3682_v61 = vld [vmem:[%s14046_s19] sm:$0x3] }
0x12ea   :  { %v3613_v21 = vmul.f32 %v3605_v38, %v3405_v3  ;;  %v3687_v27 = vrot.slane %v3682_v61, %v12624_v50  ;;  %v3691_v19 = vrot.slane %v3682_v61, %v12620_v48  ;;  %v11429_v38 = vld [vmem:[#allocation11] ss:$24 sps:$4 sm:$0xff]   ;;  %v11488_v61 = vld [vmem:[#allocation11 + $0x1c4] ss:$24 sps:$4 sm:$0xff]  }
0x12eb   :  { %4046 = vmatprep.mubr.bf16.mxu1 %v3615_v33 }
0x12ec   :  { %4047 = vmatmul.mubr.bf16.vlgmr.msra.gmra.mrb[28].mxu1 %v3614_v23  ;;  %v3617_v24 = vpack.c.bf16 %v3613_v21, %v3609_v49  ;;  %v11428_v23 = vld [vmem:[#allocation10 + $0x1f4] ss:$8 sps:$4 sm:$0xff]   ;;  %v11432_v49 = vld [vmem:[#allocation11 + $0x10] ss:$24 sps:$4 sm:$0xff]  }
0x12ed   :  { %4058 = vmatpush1.bf16.msra.mxu1 %v11381_v11  ;;  %v11437_v21 = vld [vmem:[#allocation11 + $0x34] ss:$24 sps:$4 sm:$0xff]  }
0x12ee   :  { %4059 = vmatprep.subr.bf16.mxu1 %v11386_v44  ;;  %4089 = vmatprep.mubr.bf16.mxu1 %v3617_v24  ;;  %v11431_v44 = vld [vmem:[#allocation11 + $0x4] ss:$24 sps:$4 sm:$0xff]  }
0x12ef   :  { %4778 = vmatprep.subr.bf16.mxu0 %v11431_v44  ;;  %v11443_v24 = vld [vmem:[#allocation11 + $0x64] ss:$24 sps:$4 sm:$0xff]  }
0x12f0   :  { %4779 = vmatpush1.bf16.msra.mxu0 %v11429_v38 }
0x12f1   :  { %4060 = vmatpush1.bf16.msra.mxu1 %v11384_v9  ;;  %v11440_v9 = vld [vmem:[#allocation11 + $0x44] ss:$24 sps:$4 sm:$0xff]   ;;  %4780 = vmatprep.subr.bf16.mxu0 %v11437_v21  ;;  %v11497_v21 = vld [vmem:[#allocation11 + $0x214] ss:$24 sps:$4 sm:$0xff]  }
0x12f2   :  { %4061 = vmatprep.subr.bf16.mxu1 %v11389_v1  ;;  %v11446_v1 = vld [vmem:[#allocation11 + $0x74] ss:$24 sps:$4 sm:$0xff]  }
0x12f5   :  { %4062 = vmatpush1.bf16.msra.mxu1 %v11387_v13  ;;  %v11441_v13 = vld [vmem:[#allocation11 + $0x60] ss:$24 sps:$4 sm:$0xff]  }
0x12f6   :  { %4063 = vmatprep.subr.bf16.mxu1 %v11392_v15  ;;  %v11444_v15 = vld [vmem:[#allocation11 + $0x70] ss:$24 sps:$4 sm:$0xff]  }
0x12f9   :  { %4064 = vmatpush1.bf16.msra.mxu1 %v11390_v25  ;;  %v11449_v25 = vld [vmem:[#allocation11 + $0x94] ss:$24 sps:$4 sm:$0xff]  }
0x12fa   :  { %4065 = vmatprep.subr.bf16.mxu1 %v11395_v43  ;;  %v11452_v43 = vld [vmem:[#allocation11 + $0xa4] ss:$24 sps:$4 sm:$0xff]  }
0x12fd   :  { %4066 = vmatpush1.bf16.msra.mxu1 %v11393_v29  ;;  %v11447_v29 = vld [vmem:[#allocation11 + $0x90] ss:$24 sps:$4 sm:$0xff]  }
0x12fe   :  { %4067 = vmatprep.subr.bf16.mxu1 %v11398_v45  ;;  %v11450_v45 = vld [vmem:[#allocation11 + $0xa0] ss:$24 sps:$4 sm:$0xff]  }
0x1301   :  { %4068 = vmatpush1.bf16.msra.mxu1 %v11396_v39  ;;  %v11455_v39 = vld [vmem:[#allocation11 + $0xc4] ss:$24 sps:$4 sm:$0xff]  }
0x1302   :  { %4069 = vmatprep.subr.bf16.mxu1 %v11401_v17  ;;  %v11458_v17 = vld [vmem:[#allocation11 + $0xd4] ss:$24 sps:$4 sm:$0xff]  }
0x1305   :  { %4070 = vmatpush1.bf16.msra.mxu1 %v11399_v46  ;;  %v11453_v46 = vld [vmem:[#allocation11 + $0xc0] ss:$24 sps:$4 sm:$0xff]  }
0x1306   :  { %4071 = vmatprep.subr.bf16.mxu1 %v11404_v63  ;;  %v11456_v63 = vld [vmem:[#allocation11 + $0xd0] ss:$24 sps:$4 sm:$0xff]  }
0x1309   :  { %4072 = vmatpush1.bf16.msra.mxu1 %v11402_v5  ;;  %v11461_v5 = vld [vmem:[#allocation11 + $0xf4] ss:$24 sps:$4 sm:$0xff]  }
0x130a   :  { %4073 = vmatprep.subr.bf16.mxu1 %v11407_v34  ;;  %v11464_v34 = vld [vmem:[#allocation11 + $0x104] ss:$24 sps:$4 sm:$0xff]  }
0x130d   :  { %4074 = vmatpush1.bf16.msra.mxu1 %v11405_v41  ;;  %v11459_v41 = vld [vmem:[#allocation11 + $0xf0] ss:$24 sps:$4 sm:$0xff]  }
0x130e   :  { %4075 = vmatprep.subr.bf16.mxu1 %v11410_v40  ;;  %v11462_v40 = vld [vmem:[#allocation11 + $0x100] ss:$24 sps:$4 sm:$0xff]  }
0x1311   :  { %4076 = vmatpush1.bf16.msra.mxu1 %v11408_v6  ;;  %v11467_v6 = vld [vmem:[#allocation11 + $0x124] ss:$24 sps:$4 sm:$0xff]  }
0x1312   :  { %4077 = vmatprep.subr.bf16.mxu1 %v11413_v53  ;;  %v11470_v53 = vld [vmem:[#allocation11 + $0x134] ss:$24 sps:$4 sm:$0xff]  }
0x1315   :  { %4078 = vmatpush1.bf16.msra.mxu1 %v11411_v10  ;;  %v11465_v10 = vld [vmem:[#allocation11 + $0x120] ss:$24 sps:$4 sm:$0xff]  }
0x1316   :  { %4079 = vmatprep.subr.bf16.mxu1 %v11416_v55  ;;  %v11468_v55 = vld [vmem:[#allocation11 + $0x130] ss:$24 sps:$4 sm:$0xff]  }
0x1319   :  { %4080 = vmatpush1.bf16.msra.mxu1 %v11414_v2  ;;  %v11473_v2 = vld [vmem:[#allocation11 + $0x154] ss:$24 sps:$4 sm:$0xff]  }
0x131a   :  { %4081 = vmatprep.subr.bf16.mxu1 %v11419_v54  ;;  %v11476_v54 = vld [vmem:[#allocation11 + $0x164] ss:$24 sps:$4 sm:$0xff]  }
0x131d   :  { %4082 = vmatpush1.bf16.msra.mxu1 %v11417_v51  ;;  %v11471_v51 = vld [vmem:[#allocation11 + $0x150] ss:$24 sps:$4 sm:$0xff]  }
0x131e   :  { %4083 = vmatprep.subr.bf16.mxu1 %v11422_v20  ;;  %v11474_v20 = vld [vmem:[#allocation11 + $0x160] ss:$24 sps:$4 sm:$0xff]  }
0x1321   :  { %4084 = vmatpush1.bf16.msra.mxu1 %v11420_v0  ;;  %v11479_v0 = vld [vmem:[#allocation11 + $0x184] ss:$24 sps:$4 sm:$0xff]  }
0x1322   :  { %4085 = vmatprep.subr.bf16.mxu1 %v11425_v14  ;;  %v11482_v14 = vld [vmem:[#allocation11 + $0x194] ss:$24 sps:$4 sm:$0xff]  }
0x1325   :  { %4086 = vmatpush1.bf16.msra.mxu1 %v11423_v37  ;;  %v11477_v37 = vld [vmem:[#allocation11 + $0x180] ss:$24 sps:$4 sm:$0xff]  }
0x1326   :  { %4087 = vmatprep.subr.bf16.mxu1 %v11428_v23  ;;  %v11480_v23 = vld [vmem:[#allocation11 + $0x190] ss:$24 sps:$4 sm:$0xff]  }
0x1329   :  { %4088 = vmatpush1.bf16.msra.mxu1 %v11426_v56  ;;  %v11485_v56 = vld [vmem:[#allocation11 + $0x1b4] ss:$24 sps:$4 sm:$0xff]  }
0x132c   :  { %4090 = vmatmul.mubr.bf16.vlgmr.msra.gmra.mrb[28].mxu1 %v3616_v59 }
0x13ff   :  { %v4091_v42 = vpop.f32.mrb[28].mxu1 }
0x1400   :  { %v10925_v8 = vadd.f32 %v4091_v42, %v3687_v27  ;;  %v4093_v26 = vpop.f32.mrb[29].mxu1 }
0x1401   :  { %v10926_v7 = vadd.f32 %v4093_v26, %v3691_v19  ;;  %v4095_v22 = vpop.f32.mrb[30].mxu1 }
0x1402   :  { %v13114_v36 = vadd.f32 %v10925_v8, %v12961_v60  ;;  %v10927_v33 = vadd.f32 %v4095_v22, %v3687_v27  ;;  %v4097_v11 = vpop.f32.mrb[31].mxu1  ;;  %v11483_v27 = vld [vmem:[#allocation11 + $0x1b0] ss:$24 sps:$4 sm:$0xff]  }
0x1403   :  { %v13117_v18 = vadd.f32 %v10926_v7, %v12957_v28  ;;  %v10928_v4 = vadd.f32 %v4097_v11, %v3691_v19  ;;  %v11434_v28 = vld [vmem:[#allocation11 + $0x14] ss:$24 sps:$4 sm:$0xff]   ;;  %v11486_v19 = vld [vmem:[#allocation11 + $0x1c0] ss:$24 sps:$4 sm:$0xff]  }
0x1404   :  { %v13120_v30 = vadd.f32 %v10927_v33, %v12963_v58  ;;  %4864 = vmatprep.subr.bf16.mxu1 %v11434_v28  ;;  %v11435_v58 = vld [vmem:[#allocation11 + $0x30] ss:$24 sps:$4 sm:$0xff]  }
0x1405   :  { %v13123_v59 = vadd.f32 %v10928_v4, %v12959_v16  ;;  %v4106_v3 = vadd.f32 %v13117_v18, %v13114_v36  ;;  %4865 = vmatpush1.bf16.msra.mxu1 %v11432_v49  ;;  %v11438_v16 = vld [vmem:[#allocation11 + $0x40] ss:$24 sps:$4 sm:$0xff]   ;;  %4781 = vmatpush1.bf16.msra.mxu0 %v11435_v58  ;;  %v11492_v28 = vld [vmem:[#allocation11 + $0x1f0] ss:$24 sps:$4 sm:$0xff]   ;;  %v11500_v58 = vld [vmem:[#allocation11 + $0x224] ss:$24 sps:$4 sm:$0xff]  }
0x1406   :  { %4866 = vmatprep.subr.bf16.mxu1 %v11440_v9  ;;  %4782 = vmatprep.subr.bf16.mxu0 %v11443_v24  ;;  %v11489_v49 = vld [vmem:[#allocation11 + $0x1e0] ss:$24 sps:$4 sm:$0xff]   ;;  %v11495_v9 = vld [vmem:[#allocation11 + $0x210] ss:$24 sps:$4 sm:$0xff]   ;;  %v11503_v24 = vld [vmem:[#allocation11 + $0x244] ss:$24 sps:$4 sm:$0xff]  }
0x1407   :  { %4107 = vadd.xlane.f32.xlu0 %v4106_v3  ;;  %v4109_v60 = vadd.f32 %v13123_v59, %v13120_v30 }
0x1409   :  { %4110 = vadd.xlane.f32.xlu1 %v4109_v60  ;;  %4867 = vmatpush1.bf16.msra.mxu1 %v11438_v16  ;;  %v11498_v16 = vld [vmem:[#allocation11 + $0x220] ss:$24 sps:$4 sm:$0xff]  }
0x140a   :  { %4868 = vmatprep.subr.bf16.mxu1 %v11446_v1  ;;  %4783 = vmatpush1.bf16.msra.mxu0 %v11441_v13  ;;  %v11501_v1 = vld [vmem:[#allocation11 + $0x240] ss:$24 sps:$4 sm:$0xff]   ;;  %v11506_v13 = vld [vmem:[#allocation11 + $0x254] ss:$24 sps:$4 sm:$0xff]  }
0x140b   :  { %4784 = vmatprep.subr.bf16.mxu0 %v11449_v25  ;;  %v11509_v25 = vld [vmem:[#allocation11 + $0x274] ss:$24 sps:$4 sm:$0xff]  }
0x140d   :  { %4869 = vmatpush1.bf16.msra.mxu1 %v11444_v15  ;;  %v11504_v15 = vld [vmem:[#allocation11 + $0x250] ss:$24 sps:$4 sm:$0xff]  }
0x140e   :  { %4870 = vmatprep.subr.bf16.mxu1 %v11452_v43  ;;  %4785 = vmatpush1.bf16.msra.mxu0 %v11447_v29  ;;  %v11507_v43 = vld [vmem:[#allocation11 + $0x270] ss:$24 sps:$4 sm:$0xff]   ;;  %v11512_v29 = vld [vmem:[#allocation11 + $0x284] ss:$24 sps:$4 sm:$0xff]  }
0x140f   :  { %4786 = vmatprep.subr.bf16.mxu0 %v11455_v39  ;;  %v11515_v39 = vld [vmem:[#allocation11 + $0x2a4] ss:$24 sps:$4 sm:$0xff]  }
0x1411   :  { %4871 = vmatpush1.bf16.msra.mxu1 %v11450_v45  ;;  %v11510_v45 = vld [vmem:[#allocation11 + $0x280] ss:$24 sps:$4 sm:$0xff]  }
0x1412   :  { %4872 = vmatprep.subr.bf16.mxu1 %v11458_v17  ;;  %4787 = vmatpush1.bf16.msra.mxu0 %v11453_v46  ;;  %v11513_v17 = vld [vmem:[#allocation11 + $0x2a0] ss:$24 sps:$4 sm:$0xff]   ;;  %v11518_v46 = vld [vmem:[#allocation11 + $0x2b4] ss:$24 sps:$4 sm:$0xff]  }
0x1413   :  { %4788 = vmatprep.subr.bf16.mxu0 %v11461_v5  ;;  %v11521_v5 = vld [vmem:[#allocation11 + $0x2d4] ss:$24 sps:$4 sm:$0xff]  }
0x1415   :  { %4873 = vmatpush1.bf16.msra.mxu1 %v11456_v63  ;;  %v11516_v63 = vld [vmem:[#allocation11 + $0x2b0] ss:$24 sps:$4 sm:$0xff]  }
0x1416   :  { %4874 = vmatprep.subr.bf16.mxu1 %v11464_v34  ;;  %4789 = vmatpush1.bf16.msra.mxu0 %v11459_v41  ;;  %v11524_v34 = vld [vmem:[#allocation11 + $0x2e4] ss:$24 sps:$4 sm:$0xff]   ;;  %v11519_v41 = vld [vmem:[#allocation11 + $0x2d0] ss:$24 sps:$4 sm:$0xff]  }
0x1417   :  { %4790 = vmatprep.subr.bf16.mxu0 %v11467_v6  ;;  %v11527_v6 = vld [vmem:[#allocation11 + $0xc] ss:$24 sps:$4 sm:$0xff]  }
0x1419   :  { %4875 = vmatpush1.bf16.msra.mxu1 %v11462_v40  ;;  %v11522_v40 = vld [vmem:[#allocation11 + $0x2e0] ss:$24 sps:$4 sm:$0xff]  }
0x141a   :  { %4876 = vmatprep.subr.bf16.mxu1 %v11470_v53  ;;  %4791 = vmatpush1.bf16.msra.mxu0 %v11465_v10 }
0x141b   :  { %4792 = vmatprep.subr.bf16.mxu0 %v11473_v2 }
0x141d   :  { %4877 = vmatpush1.bf16.msra.mxu1 %v11468_v55 }
0x141e   :  { %4878 = vmatprep.subr.bf16.mxu1 %v11476_v54  ;;  %4793 = vmatpush1.bf16.msra.mxu0 %v11471_v51 }
0x141f   :  { %4794 = vmatprep.subr.bf16.mxu0 %v11479_v0  ;;  %v4105_v0 = vld [vmem:[%s14048_s16] sm:$0x3] }
0x1421   :  { %4879 = vmatpush1.bf16.msra.mxu1 %v11474_v20  ;;  %v4104_v20 = vld [vmem:[%s14047_s14] sm:$0x3] }
0x1422   :  { %4880 = vmatprep.subr.bf16.mxu1 %v11482_v14  ;;  %4795 = vmatpush1.bf16.msra.mxu0 %v11477_v37  ;;  %v4142_v14 = vrot.slane %v4104_v20, %v12624_v50  ;;  %v4146_v37 = vrot.slane %v4104_v20, %v12620_v48 }
0x1423   :  { %4796 = vmatprep.subr.bf16.mxu0 %v11485_v56 }
0x1425   :  { %4881 = vmatpush1.bf16.msra.mxu1 %v11480_v23 }
0x1426   :  { %4882 = vmatprep.subr.bf16.mxu1 %v11488_v61  ;;  %4797 = vmatpush1.bf16.msra.mxu0 %v11483_v27 }
0x1429   :  { %4883 = vmatpush1.bf16.msra.mxu1 %v11486_v19  ;;  %v4157_v19 = vrot.slane %v4105_v0, %v12624_v50 }
0x1494   :  { %v4108_v42 = vpop.xlane.xlu0 %4107 }
0x1495   :  { %v4112_v8 = vmul.f32 0.00390625, %v4108_v42  ;;  %v4161_v42 = vrot.slane %v4105_v0, %v12620_v48 }
0x1496   :  { %v4111_v26 = vpop.xlane.xlu1 %4110 }
0x1497   :  { %v13130_v7 = vsub.f32 %v13114_v36, %v4112_v8  ;;  %v13133_v22 = vsub.f32 %v13117_v18, %v4112_v8  ;;  %v4113_v33 = vmul.f32 0.00390625, %v4111_v26 }
0x1499   :  { %v13136_v11 = vsub.f32 %v13120_v30, %v4113_v33  ;;  %v13139_v4 = vsub.f32 %v13123_v59, %v4113_v33  ;;  %v4118_v3 = vmul.f32 %v13130_v7, %v13130_v7  ;;  %v4119_v60 = vmul.f32 %v13133_v22, %v13133_v22  ;;  %v11491_v30 = vld [vmem:[#allocation11 + $0x1e4] ss:$24 sps:$4 sm:$0xff]   ;;  %v11494_v59 = vld [vmem:[#allocation11 + $0x1f4] ss:$24 sps:$4 sm:$0xff]  }
0x149a   :  { %4798 = vmatprep.subr.bf16.mxu0 %v11491_v30  ;;  %4884 = vmatprep.subr.bf16.mxu1 %v11494_v59  ;;  %v11525_v30 = vld [vmem:[#allocation11 + $0x8] ss:$24 sps:$4 sm:$0xff]   ;;  %v11533_v59 = vld [vmem:[#allocation11 + $0x6c] ss:$24 sps:$4 sm:$0xff]  }
0x149b   :  { %v4122_v38 = vadd.f32 %v4119_v60, %v4118_v3  ;;  %v4120_v36 = vmul.f32 %v13136_v11, %v13136_v11  ;;  %v4121_v18 = vmul.f32 %v13139_v4, %v13139_v4  ;;  %4799 = vmatpush1.bf16.msra.mxu0 %v11489_v49  ;;  %4885 = vmatpush1.bf16.msra.mxu1 %v11492_v28  ;;  %v11528_v49 = vld [vmem:[#allocation11 + $0x38] ss:$24 sps:$4 sm:$0xff]   ;;  %v11531_v28 = vld [vmem:[#allocation11 + $0x68] ss:$24 sps:$4 sm:$0xff]  }
0x149c   :  { %4800 = vmatprep.subr.bf16.mxu0 %v11497_v21  ;;  %4886 = vmatprep.subr.bf16.mxu1 %v11500_v58  ;;  %v11536_v21 = vld [vmem:[#allocation11 + $0x9c] ss:$24 sps:$4 sm:$0xff]   ;;  %v11539_v58 = vld [vmem:[#allocation11 + $0xcc] ss:$24 sps:$4 sm:$0xff]  }
0x149d   :  { %4123 = vadd.xlane.f32.xlu0 %v4122_v38  ;;  %v4125_v44 = vadd.f32 %v4121_v18, %v4120_v36 }
0x149f   :  { %4126 = vadd.xlane.f32.xlu1 %v4125_v44  ;;  %4801 = vmatpush1.bf16.msra.mxu0 %v11495_v9  ;;  %v11534_v9 = vld [vmem:[#allocation11 + $0x98] ss:$24 sps:$4 sm:$0xff]  }
0x14a0   :  { %4887 = vmatpush1.bf16.msra.mxu1 %v11498_v16  ;;  %4802 = vmatprep.subr.bf16.mxu0 %v11503_v24  ;;  %v11537_v16 = vld [vmem:[#allocation11 + $0xc8] ss:$24 sps:$4 sm:$0xff]   ;;  %v11542_v24 = vld [vmem:[#allocation11 + $0xfc] ss:$24 sps:$4 sm:$0xff]  }
0x14a1   :  { %4888 = vmatprep.subr.bf16.mxu1 %v11506_v13  ;;  %v11545_v13 = vld [vmem:[#allocation11 + $0x12c] ss:$24 sps:$4 sm:$0xff]  }
0x14a3   :  { %4803 = vmatpush1.bf16.msra.mxu0 %v11501_v1  ;;  %v11540_v1 = vld [vmem:[#allocation11 + $0xf8] ss:$24 sps:$4 sm:$0xff]  }
0x14a4   :  { %4889 = vmatpush1.bf16.msra.mxu1 %v11504_v15  ;;  %4804 = vmatprep.subr.bf16.mxu0 %v11509_v25  ;;  %v11543_v15 = vld [vmem:[#allocation11 + $0x128] ss:$24 sps:$4 sm:$0xff]   ;;  %v11548_v25 = vld [vmem:[#allocation11 + $0x15c] ss:$24 sps:$4 sm:$0xff]  }
0x14a5   :  { %4890 = vmatprep.subr.bf16.mxu1 %v11512_v29  ;;  %v11551_v29 = vld [vmem:[#allocation11 + $0x18c] ss:$24 sps:$4 sm:$0xff]  }
0x14a7   :  { %4805 = vmatpush1.bf16.msra.mxu0 %v11507_v43  ;;  %v11546_v43 = vld [vmem:[#allocation11 + $0x158] ss:$24 sps:$4 sm:$0xff]  }
0x14a8   :  { %4891 = vmatpush1.bf16.msra.mxu1 %v11510_v45  ;;  %4806 = vmatprep.subr.bf16.mxu0 %v11515_v39  ;;  %v11549_v45 = vld [vmem:[#allocation11 + $0x188] ss:$24 sps:$4 sm:$0xff]   ;;  %v11554_v39 = vld [vmem:[#allocation11 + $0x1bc] ss:$24 sps:$4 sm:$0xff]  }
0x14a9   :  { %4892 = vmatprep.subr.bf16.mxu1 %v11518_v46  ;;  %v11557_v46 = vld [vmem:[#allocation11 + $0x1ec] ss:$24 sps:$4 sm:$0xff]  }
0x14ab   :  { %4807 = vmatpush1.bf16.msra.mxu0 %v11513_v17  ;;  %v11552_v17 = vld [vmem:[#allocation11 + $0x1b8] ss:$24 sps:$4 sm:$0xff]  }
0x14ac   :  { %4893 = vmatpush1.bf16.msra.mxu1 %v11516_v63  ;;  %4808 = vmatprep.subr.bf16.mxu0 %v11521_v5  ;;  %v11555_v63 = vld [vmem:[#allocation11 + $0x1e8] ss:$24 sps:$4 sm:$0xff]   ;;  %v11560_v5 = vld [vmem:[#allocation11 + $0x21c] ss:$24 sps:$4 sm:$0xff]  }
0x14ad   :  { %4894 = vmatprep.subr.bf16.mxu1 %v11524_v34  ;;  %v11558_v34 = vld [vmem:[#allocation11 + $0x218] ss:$24 sps:$4 sm:$0xff]  }
0x14af   :  { %4809 = vmatpush1.bf16.msra.mxu0 %v11519_v41  ;;  %v11563_v41 = vld [vmem:[#allocation11 + $0x24c] ss:$24 sps:$4 sm:$0xff]  }
0x14b0   :  { %4895 = vmatpush1.bf16.msra.mxu1 %v11522_v40  ;;  %4821 = vmatprep.subr.bf16.mxu0 %v11527_v6  ;;  %v11561_v40 = vld [vmem:[#allocation11 + $0x248] ss:$24 sps:$4 sm:$0xff]   ;;  %v11566_v6 = vld [vmem:[#allocation11 + $0x27c] ss:$24 sps:$4 sm:$0xff]  }
0x14b1   :  { %10818 = vmatprep.subr.mxu1 %v12331_v31 }
0x152a   :  { %v4124_v53 = vpop.xlane.xlu0 %4123 }
0x152b   :  { %v4128_v10 = vmul.f32 0.00390625, %v4124_v53  ;;  %v11564_v53 = vld [vmem:[#allocation11 + $0x278] ss:$24 sps:$4 sm:$0xff]  }
0x152c   :  { %v4127_v55 = vpop.xlane.xlu1 %4126 }
0x152d   :  { %v4130_v2 = vadd.f32 1e-12, %v4128_v10  ;;  %v4129_v54 = vmul.f32 0.00390625, %v4127_v55  ;;  %v11569_v10 = vld [vmem:[#allocation11 + $0x2ac] ss:$24 sps:$4 sm:$0xff]  }
0x152e   :  { %v11567_v55 = vld [vmem:[#allocation11 + $0x2a8] ss:$24 sps:$4 sm:$0xff]  }
0x152f   :  { %11885 = vrsqrt.f32 %v4130_v2  ;;  %v4131_v51 = vadd.f32 1e-12, %v4129_v54  ;;  %v11572_v2 = vld [vmem:[#allocation11 + $0x2dc] ss:$24 sps:$4 sm:$0xff]   ;;  %v11570_v54 = vld [vmem:[#allocation11 + $0x2d8] ss:$24 sps:$4 sm:$0xff]  }
0x1531   :  { %11887 = vrsqrt.f32 %v4131_v51  ;;  %v13183_v51 = vld [vmem:[%s14049_s17] sm:$0x3f] }
0x1532   :  { %v4271_v20 = vrot.slane %v13183_v51, %v12624_v50  ;;  %v4287_v0 = vrot.slane %v13183_v51, %v615_v57  ;;  %v4279_v57 = vrot.slane %v13183_v51, %v12652_v32 }
0x1539   :  { %v11886_v23 = vpop.eup %11885 }
0x153a   :  { %v4134_v56 = vmul.f32 %v11886_v23, %v13130_v7  ;;  %v4135_v61 = vmul.f32 %v11886_v23, %v13133_v22 }
0x153b   :  { %v11888_v27 = vpop.eup %11887 }
0x153c   :  { %v4136_v8 = vmul.f32 %v11888_v27, %v13136_v11  ;;  %v4137_v26 = vmul.f32 %v11888_v27, %v13139_v4  ;;  %v4150_v33 = vmul.f32 %v4146_v37, %v4135_v61  ;;  %v4149_v3 = vmul.f32 %v4142_v14, %v4134_v56  ;;  %v11530_v4 = vld [vmem:[#allocation11 + $0x3c] ss:$24 sps:$4 sm:$0xff]  }
0x153e   :  { %v4152_v60 = vmul.f32 %v4146_v37, %v4137_v26  ;;  %v4151_v38 = vmul.f32 %v4142_v14, %v4136_v8  ;;  %v13160_v36 = vadd.f32 %v4161_v42, %v4150_v33  ;;  %v13164_v7 = vadd.f32 %v4157_v19, %v4149_v3 }
0x1540   :  { %v13162_v18 = vadd.f32 %v4161_v42, %v4152_v60  ;;  %v13166_v22 = vadd.f32 %v4157_v19, %v4151_v38  ;;  %v4283_v60 = vrot.slane %v13183_v51, %v12657_v35 }
0x1542   :  { %v4169_v44 = vpack.c.bf16 %v13162_v18, %v13160_v36  ;;  %v13172_v11 = vpack.c.bf16 %v13166_v22, %v13164_v7 }
0x1544   :  { %4810 = vmatprep.mubr.bf16.mxu0 %v4169_v44  ;;  %4896 = vmatprep.mubr.bf16.mxu1 %v4169_v44 }
0x1545   :  { %4811 = vmatmul.mubr.bf16.vlgmr.msra.gmra.mrb[36].mxu0 %v13172_v11  ;;  %4897 = vmatmul.mubr.bf16.vlgmr.msra.gmra.mrb[32].mxu1 %v13172_v11 }
0x1546   :  { %4822 = vmatpush1.bf16.msra.mxu0 %v11525_v30  ;;  %4853 = vmatprep.mubr.bf16.mxu0 %v4169_v44 }
0x1547   :  { %4823 = vmatprep.subr.bf16.mxu0 %v11530_v4  ;;  %10820 = vmatprep.mubr.msk.f32.mxu1 %vm12332_vm0, %v12331_v31 }
0x154a   :  { %4824 = vmatpush1.bf16.msra.mxu0 %v11528_v49 }
0x154b   :  { %4825 = vmatprep.subr.bf16.mxu0 %v11533_v59 }
0x154e   :  { %4826 = vmatpush1.bf16.msra.mxu0 %v11531_v28 }
0x154f   :  { %4827 = vmatprep.subr.bf16.mxu0 %v11536_v21 }
0x1552   :  { %4828 = vmatpush1.bf16.msra.mxu0 %v11534_v9 }
0x1553   :  { %4829 = vmatprep.subr.bf16.mxu0 %v11539_v58 }
0x1556   :  { %4830 = vmatpush1.bf16.msra.mxu0 %v11537_v16 }
0x1557   :  { %4831 = vmatprep.subr.bf16.mxu0 %v11542_v24 }
0x155a   :  { %4832 = vmatpush1.bf16.msra.mxu0 %v11540_v1 }
0x155b   :  { %4833 = vmatprep.subr.bf16.mxu0 %v11545_v13 }
0x155e   :  { %4834 = vmatpush1.bf16.msra.mxu0 %v11543_v15 }
0x155f   :  { %4835 = vmatprep.subr.bf16.mxu0 %v11548_v25 }
0x1562   :  { %4836 = vmatpush1.bf16.msra.mxu0 %v11546_v43 }
0x1563   :  { %4837 = vmatprep.subr.bf16.mxu0 %v11551_v29 }
0x1566   :  { %4838 = vmatpush1.bf16.msra.mxu0 %v11549_v45 }
0x1567   :  { %4839 = vmatprep.subr.bf16.mxu0 %v11554_v39 }
0x156a   :  { %4840 = vmatpush1.bf16.msra.mxu0 %v11552_v17 }
0x156b   :  { %4841 = vmatprep.subr.bf16.mxu0 %v11557_v46 }
0x156e   :  { %4842 = vmatpush1.bf16.msra.mxu0 %v11555_v63 }
0x156f   :  { %4843 = vmatprep.subr.bf16.mxu0 %v11560_v5 }
0x1572   :  { %4844 = vmatpush1.bf16.msra.mxu0 %v11558_v34 }
0x1573   :  { %4845 = vmatprep.subr.bf16.mxu0 %v11563_v41 }
0x1576   :  { %4846 = vmatpush1.bf16.msra.mxu0 %v11561_v40 }
0x1577   :  { %4847 = vmatprep.subr.bf16.mxu0 %v11566_v6 }
0x157a   :  { %4848 = vmatpush1.bf16.msra.mxu0 %v11564_v53 }
0x157b   :  { %4849 = vmatprep.subr.bf16.mxu0 %v11569_v10 }
0x157e   :  { %4850 = vmatpush1.bf16.msra.mxu0 %v11567_v55 }
0x157f   :  { %4851 = vmatprep.subr.bf16.mxu0 %v11572_v2 }
0x1582   :  { %4852 = vmatpush1.bf16.msra.mxu0 %v11570_v54 }
0x1583   :  { %10813 = vmatprep.subr.mxu0 %v12331_v31 }
0x1585   :  { %4854 = vmatmul.mubr.bf16.vlgmr.msra.gmra.mrb[40].mxu0 %v13172_v11  ;;  %v4275_v11 = vrot.slane %v13183_v51, %v12620_v48 }
0x1586   :  { %10815 = vmatprep.mubr.msk.f32.mxu0 %vm12332_vm0, %v12331_v31 }
0x1618   :  { %v4812_v14 = vpop.f32.mrb[36].mxu0  ;;  %v4898_v37 = vpop.f32.mrb[32].mxu1 }
0x1619   :  { %v4813_v23 = vadd.f32 %v4812_v14, %v4271_v20  ;;  %v13190_v56 = vadd.f32 %v4898_v37, %v4287_v0  ;;  %v4814_v61 = vpop.f32.mrb[37].mxu0  ;;  %v13192_v27 = vpop.f32.mrb[33].mxu1 }
0x161a   :  { %v4816_v19 = vpop.f32.mrb[38].mxu0  ;;  %v4902_v42 = vpop.f32.mrb[34].mxu1  ;;  %v4815_v21 = vadd.f32 %v4814_v61, %v4275_v11 }
0x161b   :  { %v4817_v8 = vadd.f32 %v4816_v19, %v4271_v20  ;;  %v13194_v26 = vadd.f32 %v4902_v42, %v4287_v0  ;;  %v4818_v33 = vpop.f32.mrb[39].mxu0  ;;  %v13196_v3 = vpop.f32.mrb[35].mxu1  ;;  %10819 = vmatpush3.msra.mxu1 %v13190_v56  ;;  %5069 = vrot.lane.b32.xlu1 %v4813_v23, %s12333_s25 }
0x161c   :  { %10828 = vmatprep.subr.mxu1 %v12331_v31  ;;  %v4819_v58 = vadd.f32 %v4818_v33, %v4275_v11 }
0x1658   :  { %v4855_v38 = vpop.f32.mrb[40].mxu0 }
0x1659   :  { %v4856_v44 = vadd.f32 %v4855_v38, %v4279_v57  ;;  %v4857_v30 = vpop.f32.mrb[41].mxu0 }
0x165a   :  { %v4858_v4 = vadd.f32 %v4857_v30, %v4283_v60  ;;  %v4859_v49 = vpop.f32.mrb[42].mxu0 }
0x165b   :  { %v4861_v59 = vpop.f32.mrb[43].mxu0  ;;  %5071 = vrot.lane.b32.xlu0 %v4856_v44, %s12333_s25  ;;  %10814 = vmatpush3.xpose.msk.msra.mxu0 %vm1236_vm1, %v4856_v44  ;;  %v4860_v28 = vadd.f32 %v4859_v49, %v4279_v57 }
0x165c   :  { %5401 = vrot.lane.b32.xlu1 %v4858_v4, %s12333_s25  ;;  %10823 = vmatprep.subr.mxu0 %v12331_v31  ;;  %v4862_v9 = vadd.f32 %v4861_v59, %v4283_v60 }
0x165e   :  { %10816 = vmatmul.mubr.msk.f32.vlgmr.msra.gmra.mrb[26].mxu0 %vm1236_vm1, %v4813_v23 }
0x165f   :  { %5741 = vrot.lane.b32.xlu0 %v4860_v28, %s12333_s25  ;;  %10825 = vmatprep.mubr.msk.f32.mxu0 %vm12332_vm0, %v12331_v31 }
0x1660   :  { %5399 = vrot.lane.b32.xlu1 %v4815_v21, %s12333_s25 }
0x1663   :  { %6071 = vrot.lane.b32.xlu0 %v4862_v9, %s12333_s25 }
0x1664   :  { %5739 = vrot.lane.b32.xlu1 %v4817_v8, %s12333_s25 }
0x1668   :  { %6069 = vrot.lane.b32.xlu1 %v4819_v58, %s12333_s25 }
0x168d   :  { %v5070_v24 = vpop.permute.xlu1 %5069 }
0x16cd   :  { %v5072_v16 = vpop.permute.xlu0 %5071 }
0x16ce   :  { %10824 = vmatpush3.xpose.msk.msra.mxu0 %vm1236_vm1, %v5072_v16  ;;  %v5402_v1 = vpop.permute.xlu1 %5401 }
0x16cf   :  { %10833 = vmatprep.subr.mxu0 %v12331_v31 }
0x16d1   :  { %10826 = vmatmul.mubr.msk.f32.vlgmr.msra.gmra.mrb[44].mxu0 %vm1236_vm1, %v5070_v24  ;;  %v5742_v15 = vpop.permute.xlu0 %5741 }
0x16d2   :  { %10834 = vmatpush3.xpose.msk.msra.mxu0 %vm1236_vm1, %v4858_v4  ;;  %10835 = vmatprep.mubr.msk.f32.mxu0 %vm12332_vm0, %v12331_v31  ;;  %v5400_v13 = vpop.permute.xlu1 %5399 }
0x16d3   :  { %10843 = vmatprep.subr.mxu0 %v12331_v31 }
0x16d5   :  { %10836 = vmatmul.mubr.msk.f32.vlgmr.msra.gmra.mrb[46].mxu0 %vm1236_vm1, %v4815_v21  ;;  %v6072_v43 = vpop.permute.xlu0 %6071 }
0x16d6   :  { %10844 = vmatpush3.xpose.msk.msra.mxu0 %vm1236_vm1, %v5402_v1  ;;  %10845 = vmatprep.mubr.msk.f32.mxu0 %vm12332_vm0, %v12331_v31  ;;  %v5740_v25 = vpop.permute.xlu1 %5739 }
0x16d7   :  { %10853 = vmatprep.subr.mxu0 %v12331_v31 }
0x16d9   :  { %10846 = vmatmul.mubr.msk.f32.vlgmr.msra.gmra.mrb[48].mxu0 %vm1236_vm1, %v5400_v13 }
0x16da   :  { %10854 = vmatpush3.xpose.msk.msra.mxu0 %vm1236_vm1, %v4860_v28  ;;  %10855 = vmatprep.mubr.msk.f32.mxu0 %vm12332_vm0, %v12331_v31  ;;  %v6070_v29 = vpop.permute.xlu1 %6069 }
0x16db   :  { %10863 = vmatprep.subr.mxu0 %v12331_v31 }
0x16dd   :  { %10856 = vmatmul.mubr.msk.f32.vlgmr.msra.gmra.mrb[50].mxu0 %vm1236_vm1, %v4817_v8 }
0x16de   :  { %10864 = vmatpush3.xpose.msk.msra.mxu0 %vm1236_vm1, %v5742_v15  ;;  %10865 = vmatprep.mubr.msk.f32.mxu0 %vm12332_vm0, %v12331_v31 }
0x16df   :  { %10873 = vmatprep.subr.mxu0 %v12331_v31 }
0x16e1   :  { %10866 = vmatmul.mubr.msk.f32.vlgmr.msra.gmra.mrb[52].mxu0 %vm1236_vm1, %v5740_v25 }
0x16e2   :  { %10874 = vmatpush3.xpose.msk.msra.mxu0 %vm1236_vm1, %v4862_v9  ;;  %10875 = vmatprep.mubr.msk.f32.mxu0 %vm12332_vm0, %v12331_v31 }
0x16e3   :  { %10883 = vmatprep.subr.mxu0 %v12331_v31 }
0x16e5   :  { %10876 = vmatmul.mubr.msk.f32.vlgmr.msra.gmra.mrb[54].mxu0 %vm1236_vm1, %v4819_v58 }
0x16e6   :  { %10884 = vmatpush3.xpose.msk.msra.mxu0 %vm1236_vm1, %v6072_v43  ;;  %10885 = vmatprep.mubr.msk.f32.mxu0 %vm12332_vm0, %v12331_v31 }
0x16e9   :  { %10886 = vmatmul.mubr.msk.f32.vlgmr.msra.gmra.mrb[56].mxu0 %vm1236_vm1, %v6070_v29 }
0x1731   :  { %v4979_v45 = vpop.f32.mrb[26].mxu0 }
0x1732   :  { %v4983_v39 = vmul.f32 0.125, %v4979_v45  ;;  %v10817_v17 = vpop.f32.mrb[27].mxu0 }
0x1734   :  { %v4984_v46 = vadd.f32 %v4983_v39, %v12706_v12 }
0x1736   :  { %v4985_v63 = vsel %vm1319_vm2, %v4984_v46, -inf }
0x1737   :  { %4986 = vmax.xlane.f32.xlu0 %v4985_v63 }
0x17a4   :  { %v5143_v5 = vpop.f32.mrb[44].mxu0 }
0x17a5   :  { %v5147_v34 = vmul.f32 0.125, %v5143_v5  ;;  %v10827_v41 = vpop.f32.mrb[45].mxu0 }
0x17a7   :  { %v5148_v40 = vadd.f32 %v5147_v34, %v12706_v12 }
0x17a8   :  { %v5309_v6 = vpop.f32.mrb[46].mxu0 }
0x17a9   :  { %v5313_v53 = vmul.f32 0.125, %v5309_v6  ;;  %v10837_v10 = vpop.f32.mrb[47].mxu0  ;;  %v5149_v55 = vsel %vm1319_vm2, %v5148_v40, -inf }
0x17aa   :  { %5150 = vmax.xlane.f32.xlu1 %v5149_v55 }
0x17ab   :  { %v5314_v2 = vadd.f32 %v5313_v53, %v12706_v12 }
0x17ac   :  { %v5473_v54 = vpop.f32.mrb[48].mxu0 }
0x17ad   :  { %v5477_v20 = vmul.f32 0.125, %v5473_v54  ;;  %v10847_v0 = vpop.f32.mrb[49].mxu0  ;;  %v5315_v14 = vsel %vm1319_vm2, %v5314_v2, -inf }
0x17ae   :  { %5316 = vmax.xlane.f32.xlu0 %v5315_v14 }
0x17af   :  { %v5478_v37 = vadd.f32 %v5477_v20, %v12706_v12 }
0x17b0   :  { %v5649_v23 = vpop.f32.mrb[50].mxu0 }
0x17b1   :  { %v5653_v61 = vmul.f32 0.125, %v5649_v23  ;;  %v10857_v19 = vpop.f32.mrb[51].mxu0  ;;  %v5479_v42 = vsel %vm1319_vm2, %v5478_v37, -inf }
0x17b2   :  { %5480 = vmax.xlane.f32.xlu0 %v5479_v42 }
0x17b3   :  { %v5654_v8 = vadd.f32 %v5653_v61, %v12803_v52 }
0x17b4   :  { %v5813_v33 = vpop.f32.mrb[52].mxu0 }
0x17b5   :  { %v5817_v57 = vmul.f32 0.125, %v5813_v33  ;;  %v10867_v60 = vpop.f32.mrb[53].mxu0  ;;  %v5655_v38 = vsel %vm1319_vm2, %v5654_v8, -inf }
0x17b6   :  { %5656 = vmax.xlane.f32.xlu0 %v5655_v38 }
0x17b7   :  { %v5818_v44 = vadd.f32 %v5817_v57, %v12803_v52 }
0x17b8   :  { %v5979_v30 = vpop.f32.mrb[54].mxu0 }
0x17b9   :  { %v5983_v11 = vmul.f32 0.125, %v5979_v30  ;;  %v10877_v4 = vpop.f32.mrb[55].mxu0  ;;  %v5819_v12 = vsel %vm1319_vm2, %v5818_v44, -inf }
0x17ba   :  { %5820 = vmax.xlane.f32.xlu1 %v5819_v12 }
0x17bb   :  { %v5984_v49 = vadd.f32 %v5983_v11, %v12803_v52 }
0x17bc   :  { %v6143_v59 = vpop.f32.mrb[56].mxu0 }
0x17bd   :  { %v6147_v28 = vmul.f32 0.125, %v6143_v59  ;;  %v10887_v21 = vpop.f32.mrb[57].mxu0  ;;  %v5985_v9 = vsel %vm1319_vm2, %v5984_v49, -inf }
0x17be   :  { %5986 = vmax.xlane.f32.xlu0 %v5985_v9 }
0x17bf   :  { %v13266_v58 = vadd.f32 %v6147_v28, %v12803_v52 }
0x17c1   :  { %v6149_v16 = vsel %vm1319_vm2, %v13266_v58, -inf }
0x17c2   :  { %6150 = vmax.xlane.f32.xlu1 %v6149_v16 }
0x17c4   :  { %v4987_v24 = vpop.xlane.xlu0 %4986 }
0x17c5   :  { %v4988_v1 = vsub.f32 %v4984_v46, %v4987_v24 }
0x17c7   :  { %v4989_v13 = vmul.f32 1.442695, %v4988_v1 }
0x17c9   :  { %11889 = vpow2.f32 %v4989_v13 }
0x17d3   :  { %v11890_v15 = vpop.eup %11889 }
0x17d4   :  { %v4991_v25 = vsel %vm1319_vm2, %v11890_v15, 0.0 }
0x17d5   :  { %4992 = vadd.xlane.f32.xlu0 %v4991_v25 }
0x1837   :  { %v5151_v43 = vpop.xlane.xlu1 %5150 }
0x1838   :  { %v5152_v29 = vsub.f32 %v5148_v40, %v5151_v43 }
0x183a   :  { %v5153_v45 = vmul.f32 1.442695, %v5152_v29 }
0x183b   :  { %v5317_v39 = vpop.xlane.xlu0 %5316 }
0x183c   :  { %11891 = vpow2.f32 %v5153_v45  ;;  %v5318_v17 = vsub.f32 %v5314_v2, %v5317_v39 }
0x183e   :  { %v5319_v52 = vmul.f32 1.442695, %v5318_v17 }
0x183f   :  { %v5481_v63 = vpop.xlane.xlu0 %5480 }
0x1840   :  { %11893 = vpow2.f32 %v5319_v52  ;;  %v5482_v5 = vsub.f32 %v5478_v37, %v5481_v63 }
0x1842   :  { %v5483_v34 = vmul.f32 1.442695, %v5482_v5 }
0x1843   :  { %v5657_v41 = vpop.xlane.xlu0 %5656 }
0x1844   :  { %11895 = vpow2.f32 %v5483_v34  ;;  %v5658_v46 = vsub.f32 %v5654_v8, %v5657_v41 }
0x1846   :  { %v11892_v6 = vpop.eup %11891  ;;  %v5659_v53 = vmul.f32 1.442695, %v5658_v46 }
0x1847   :  { %v5821_v10 = vpop.xlane.xlu1 %5820  ;;  %v5155_v55 = vsel %vm1319_vm2, %v11892_v6, 0.0 }
0x1848   :  { %11897 = vpow2.f32 %v5659_v53  ;;  %v5822_v54 = vsub.f32 %v5818_v44, %v5821_v10  ;;  %5156 = vadd.xlane.f32.xlu1 %v5155_v55  ;;  %v4291_v44 = vrot.slane %v13183_v51, %v619_v62  ;;  %v11573_v10 = vld [vmem:[#allocation13] ss:$8 sps:$4 sm:$0xff]   ;;  %v11575_v55 = vld [vmem:[#allocation13 + $0x4] ss:$8 sps:$4 sm:$0xff]  }
0x1849   :  { %6453 = vmatprep.subr.bf16.mxu0 %v11575_v55 }
0x184a   :  { %v11894_v40 = vpop.eup %11893  ;;  %v5823_v20 = vmul.f32 1.442695, %v5822_v54  ;;  %v4901_v30 = vadd.f32 %v13192_v27, %v4291_v44  ;;  %v11578_v54 = vld [vmem:[#allocation13 + $0x14] ss:$8 sps:$4 sm:$0xff]   ;;  %6454 = vmatpush1.bf16.msra.mxu0 %v11573_v10 }
0x184b   :  { %v5987_v0 = vpop.xlane.xlu0 %5986  ;;  %v5321_v2 = vsel %vm1319_vm2, %v11894_v40, 0.0  ;;  %6455 = vmatprep.subr.bf16.mxu0 %v11578_v54 }
0x184c   :  { %11899 = vpow2.f32 %v5823_v20  ;;  %v5988_v14 = vsub.f32 %v5984_v49, %v5987_v0  ;;  %5322 = vadd.xlane.f32.xlu0 %v5321_v2  ;;  %v4905_v49 = vadd.f32 %v13196_v3, %v4291_v44  ;;  %v11581_v20 = vld [vmem:[#allocation13 + $0x24] ss:$8 sps:$4 sm:$0xff]   ;;  %v11584_v0 = vld [vmem:[#allocation13 + $0x34] ss:$8 sps:$4 sm:$0xff]   ;;  %v11582_v2 = vld [vmem:[#allocation13 + $0x30] ss:$8 sps:$4 sm:$0xff]  }
0x184e   :  { %v11896_v37 = vpop.eup %11895  ;;  %v5989_v23 = vmul.f32 1.442695, %v5988_v14 }
0x184f   :  { %v5485_v61 = vsel %vm1319_vm2, %v11896_v37, 0.0  ;;  %v6151_v47 = vpop.xlane.xlu1 %6150 }
0x1850   :  { %11901 = vpow2.f32 %v5989_v23  ;;  %5486 = vadd.xlane.f32.xlu1 %v5485_v61  ;;  %v6152_v62 = vsub.f32 %v13266_v58, %v6151_v47 }
0x1852   :  { %v13274_v19 = vpop.eup %11897  ;;  %v6153_v51 = vmul.f32 1.442695, %v6152_v62 }
0x1853   :  { %v5661_v42 = vsel %vm1319_vm2, %v13274_v19, 0.0 }
0x1854   :  { %5662 = vadd.xlane.f32.xlu0 %v5661_v42 }
0x1856   :  { %v13278_v8 = vpop.eup %11899 }
0x1857   :  { %v5825_v33 = vsel %vm1319_vm2, %v13278_v8, 0.0 }
0x1858   :  { %5826 = vadd.xlane.f32.xlu1 %v5825_v33  ;;  %v11587_v33 = vld [vmem:[#allocation13 + $0x44] ss:$8 sps:$4 sm:$0xff]  }
0x185a   :  { %v13282_v57 = vpop.eup %11901 }
0x185b   :  { %v5991_v60 = vsel %vm1319_vm2, %v13282_v57, 0.0 }
0x185c   :  { %5992 = vadd.xlane.f32.xlu0 %v5991_v60 }
0x1862   :  { %v4993_v38 = vpop.xlane.xlu0 %4992 }
0x1863   :  { %11903 = vrcp.f32 %v4993_v38  ;;  %v11588_v38 = vld [vmem:[#allocation13 + $0x50] ss:$8 sps:$4 sm:$0xff]  }
0x1864   :  { %11905 = vpow2.f32 %v6153_v51  ;;  %v11596_v51 = vld [vmem:[#allocation13 + $0x74] ss:$8 sps:$4 sm:$0xff]  }
0x1869   :  { %5491 = vrot.lane.b32.xlu1 %v4901_v30, %s12333_s25 }
0x186d   :  { %v11904_v11 = vpop.eup %11903  ;;  %5831 = vrot.lane.b32.xlu1 %v13194_v26, %s12333_s25 }
0x186e   :  { %v4995_v4 = vmul.f32 %v11904_v11, %v11890_v15  ;;  %v11906_v27 = vpop.eup %11905 }
0x186f   :  { %v6155_v12 = vsel %vm1319_vm2, %v11906_v27, 0.0 }
0x1870   :  { %10821 = vmatmul.mubr.msk.f32.vlgmr.msra.gmra.mrb[22].mxu1 %vm1319_vm2, %v4995_v4  ;;  %v11591_v4 = vld [vmem:[#allocation13 + $0x60] ss:$8 sps:$4 sm:$0xff]  }
0x1871   :  { %10830 = vmatprep.mubr.msk.f32.mxu1 %vm12332_vm0, %v12331_v31 }
0x1872   :  { %5161 = vrot.lane.b32.xlu0 %v13190_v56, %s12333_s25 }
0x1891   :  { %6156 = vadd.xlane.f32.xlu1 %v6155_v12  ;;  %v11594_v12 = vld [vmem:[#allocation13 + $0x70] ss:$8 sps:$4 sm:$0xff]  }
0x18a2   :  { %6161 = vrot.lane.b32.xlu1 %v4905_v49, %s12333_s25 }
0x18d5   :  { %v5157_v59 = vpop.xlane.xlu1 %5156 }
0x18d6   :  { %11907 = vrcp.f32 %v5157_v59  ;;  %v11599_v59 = vld [vmem:[#allocation13 + $0x84] ss:$8 sps:$4 sm:$0xff]  }
0x18d9   :  { %v5323_v28 = vpop.xlane.xlu0 %5322 }
0x18da   :  { %11909 = vrcp.f32 %v5323_v28  ;;  %v11597_v28 = vld [vmem:[#allocation13 + $0x80] ss:$8 sps:$4 sm:$0xff]  }
0x18dd   :  { %v5487_v21 = vpop.xlane.xlu1 %5486 }
0x18de   :  { %11911 = vrcp.f32 %v5487_v21  ;;  %v11602_v21 = vld [vmem:[#allocation13 + $0x94] ss:$8 sps:$4 sm:$0xff]  }
0x18e0   :  { %v11908_v16 = vpop.eup %11907 }
0x18e1   :  { %v5663_v9 = vpop.xlane.xlu0 %5662  ;;  %v5159_v58 = vmul.f32 %v11908_v16, %v11892_v6  ;;  %v11603_v16 = vld [vmem:[#allocation13 + $0xa0] ss:$8 sps:$4 sm:$0xff]  }
0x18e2   :  { %11913 = vrcp.f32 %v5663_v9  ;;  %v11600_v9 = vld [vmem:[#allocation13 + $0x90] ss:$8 sps:$4 sm:$0xff]  }
0x18e4   :  { %v11910_v13 = vpop.eup %11909 }
0x18e5   :  { %v5827_v24 = vpop.xlane.xlu1 %5826  ;;  %v5325_v3 = vmul.f32 %v11910_v13, %v11894_v40  ;;  %v11576_v40 = vld [vmem:[#allocation13 + $0x10] ss:$8 sps:$4 sm:$0xff]   ;;  %v11609_v13 = vld [vmem:[#allocation13 + $0xc0] ss:$8 sps:$4 sm:$0xff]  }
0x18e6   :  { %11915 = vrcp.f32 %v5827_v24  ;;  %6456 = vmatpush1.bf16.msra.mxu0 %v11576_v40  ;;  %v11606_v24 = vld [vmem:[#allocation13 + $0xb0] ss:$8 sps:$4 sm:$0xff]  }
0x18e7   :  { %6457 = vmatprep.subr.bf16.mxu0 %v11581_v20 }
0x18e8   :  { %v11912_v15 = vpop.eup %11911 }
0x18e9   :  { %v5993_v56 = vpop.xlane.xlu0 %5992  ;;  %v5492_v25 = vpop.permute.xlu1 %5491  ;;  %v5489_v43 = vmul.f32 %v11912_v15, %v11896_v37  ;;  %v11612_v15 = vld [vmem:[#allocation13 + $0xd0] ss:$8 sps:$4 sm:$0xff]  }
0x18ea   :  { %11917 = vrcp.f32 %v5993_v56  ;;  %v11605_v56 = vld [vmem:[#allocation13 + $0xa4] ss:$8 sps:$4 sm:$0xff]  }
0x18ec   :  { %v11914_v29 = vpop.eup %11913 }
0x18ed   :  { %v5162_v1 = vpop.permute.xlu0 %5161  ;;  %v5665_v45 = vmul.f32 %v11914_v29, %v13274_v19  ;;  %v5832_v17 = vpop.permute.xlu1 %5831  ;;  %v11620_v29 = vld [vmem:[#allocation13 + $0xf4] ss:$8 sps:$4 sm:$0xff]  }
0x18ee   :  { %10829 = vmatpush3.msra.mxu1 %v5162_v1  ;;  %v11611_v1 = vld [vmem:[#allocation13 + $0xc4] ss:$8 sps:$4 sm:$0xff]  }
0x18ef   :  { %10831 = vmatmul.mubr.msk.f32.vlgmr.msra.gmra.mrb[36].mxu1 %vm1319_vm2, %v5159_v58  ;;  %10838 = vmatprep.subr.mxu1 %v12331_v31  ;;  %v11608_v58 = vld [vmem:[#allocation13 + $0xb4] ss:$8 sps:$4 sm:$0xff]  }
0x18f0   :  { %10839 = vmatpush3.msra.mxu1 %v4901_v30  ;;  %10840 = vmatprep.mubr.msk.f32.mxu1 %vm12332_vm0, %v12331_v31  ;;  %v11916_v39 = vpop.eup %11915  ;;  %v11593_v30 = vld [vmem:[#allocation13 + $0x64] ss:$8 sps:$4 sm:$0xff]  }
0x18f1   :  { %10848 = vmatprep.subr.mxu1 %v12331_v31  ;;  %v5829_v52 = vmul.f32 %v11916_v39, %v13278_v8  ;;  %v11585_v8 = vld [vmem:[#allocation13 + $0x40] ss:$8 sps:$4 sm:$0xff]  }
0x18f3   :  { %10841 = vmatmul.mubr.msk.f32.vlgmr.msra.gmra.mrb[38].mxu1 %vm1319_vm2, %v5325_v3  ;;  %v11614_v3 = vld [vmem:[#allocation13 + $0xd4] ss:$8 sps:$4 sm:$0xff]  }
0x18f4   :  { %10849 = vmatpush3.msra.mxu1 %v5492_v25  ;;  %10850 = vmatprep.mubr.msk.f32.mxu1 %vm12332_vm0, %v12331_v31  ;;  %v11617_v25 = vld [vmem:[#allocation13 + $0xe4] ss:$8 sps:$4 sm:$0xff]  }
0x18f5   :  { %10858 = vmatprep.subr.mxu1 %v12331_v31 }
0x18f7   :  { %10851 = vmatmul.mubr.msk.f32.vlgmr.msra.gmra.mrb[40].mxu1 %vm1319_vm2, %v5489_v43  ;;  %v11615_v43 = vld [vmem:[#allocation13 + $0xe0] ss:$8 sps:$4 sm:$0xff]  }
0x18f8   :  { %10859 = vmatpush3.msra.mxu1 %v13194_v26  ;;  %10860 = vmatprep.mubr.msk.f32.mxu1 %vm12332_vm0, %v12331_v31  ;;  %v11918_v26 = vpop.eup %11917 }
0x18f9   :  { %10868 = vmatprep.subr.mxu1 %v12331_v31  ;;  %v5995_v63 = vmul.f32 %v11918_v26, %v13282_v57  ;;  %v11590_v57 = vld [vmem:[#allocation13 + $0x54] ss:$8 sps:$4 sm:$0xff]  }
0x18fb   :  { %10861 = vmatmul.mubr.msk.f32.vlgmr.msra.gmra.mrb[42].mxu1 %vm1319_vm2, %v5665_v45  ;;  %v11618_v45 = vld [vmem:[#allocation13 + $0xf0] ss:$8 sps:$4 sm:$0xff]  }
0x18fc   :  { %10869 = vmatpush3.msra.mxu1 %v5832_v17  ;;  %10870 = vmatprep.mubr.msk.f32.mxu1 %vm12332_vm0, %v12331_v31 }
0x18fd   :  { %10878 = vmatprep.subr.mxu1 %v12331_v31 }
0x18ff   :  { %10871 = vmatmul.mubr.msk.f32.vlgmr.msra.gmra.mrb[44].mxu1 %vm1319_vm2, %v5829_v52 }
0x1900   :  { %10879 = vmatpush3.msra.mxu1 %v4905_v49  ;;  %10880 = vmatprep.mubr.msk.f32.mxu1 %vm12332_vm0, %v12331_v31 }
0x1901   :  { %10888 = vmatprep.subr.mxu1 %v12331_v31 }
0x1903   :  { %10881 = vmatmul.mubr.msk.f32.vlgmr.msra.gmra.mrb[46].mxu1 %vm1319_vm2, %v5995_v63 }
0x1904   :  { %10890 = vmatprep.mubr.msk.f32.mxu1 %vm12332_vm0, %v12331_v31  ;;  %v11579_v31 = vld [vmem:[#allocation13 + $0x20] ss:$8 sps:$4 sm:$0xff]  }
0x1905   :  { %6458 = vmatpush1.bf16.msra.mxu0 %v11579_v31  ;;  %v6281_v31 = vld [vmem:[%s14050_s18] sm:$0x3] }
0x1906   :  { %6459 = vmatprep.subr.bf16.mxu0 %v11584_v0  ;;  %v6286_v0 = vrot.slane %v6281_v31, %v12624_v50 }
0x1909   :  { %6460 = vmatpush1.bf16.msra.mxu0 %v11582_v2  ;;  %v6290_v2 = vrot.slane %v6281_v31, %v12620_v48 }
0x190a   :  { %6461 = vmatprep.subr.bf16.mxu0 %v11587_v33 }
0x190d   :  { %6462 = vmatpush1.bf16.msra.mxu0 %v11585_v8 }
0x190e   :  { %6463 = vmatprep.subr.bf16.mxu0 %v11590_v57 }
0x1911   :  { %6464 = vmatpush1.bf16.msra.mxu0 %v11588_v38 }
0x1912   :  { %6465 = vmatprep.subr.bf16.mxu0 %v11593_v30  ;;  %v11621_v30 = vld [vmem:[#allocation14] ss:$16 sps:$4 sm:$0xff]  }
0x1915   :  { %6466 = vmatpush1.bf16.msra.mxu0 %v11591_v4  ;;  %v11624_v4 = vld [vmem:[#allocation14 + $0x8] ss:$16 sps:$4 sm:$0xff]  }
0x1916   :  { %6467 = vmatprep.subr.bf16.mxu0 %v11596_v51  ;;  %v11635_v51 = vld [vmem:[#allocation14 + $0x44] ss:$16 sps:$4 sm:$0xff]  }
0x1919   :  { %6468 = vmatpush1.bf16.msra.mxu0 %v11594_v12  ;;  %v11633_v12 = vld [vmem:[#allocation14 + $0x40] ss:$16 sps:$4 sm:$0xff]  }
0x191a   :  { %6469 = vmatprep.subr.bf16.mxu0 %v11599_v59  ;;  %v11641_v59 = vld [vmem:[#allocation14 + $0x64] ss:$16 sps:$4 sm:$0xff]  }
0x191d   :  { %6470 = vmatpush1.bf16.msra.mxu0 %v11597_v28  ;;  %v11644_v28 = vld [vmem:[#allocation14 + $0x6c] ss:$16 sps:$4 sm:$0xff]  }
0x191e   :  { %v6157_v5 = vpop.xlane.xlu1 %6156  ;;  %6471 = vmatprep.subr.bf16.mxu0 %v11602_v21  ;;  %v11639_v21 = vld [vmem:[#allocation14 + $0x60] ss:$16 sps:$4 sm:$0xff]  }
0x191f   :  { %11919 = vrcp.f32 %v6157_v5 }
0x1921   :  { %6472 = vmatpush1.bf16.msra.mxu0 %v11600_v9  ;;  %v11642_v9 = vld [vmem:[#allocation14 + $0x68] ss:$16 sps:$4 sm:$0xff]  }
0x1922   :  { %v6162_v34 = vpop.permute.xlu1 %6161  ;;  %6473 = vmatprep.subr.bf16.mxu0 %v11605_v56  ;;  %v11647_v56 = vld [vmem:[#allocation14 + $0x84] ss:$16 sps:$4 sm:$0xff]  }
0x1923   :  { %10889 = vmatpush3.msra.mxu1 %v6162_v34 }
0x1925   :  { %6474 = vmatpush1.bf16.msra.mxu0 %v11603_v16  ;;  %v11650_v16 = vld [vmem:[#allocation14 + $0x8c] ss:$16 sps:$4 sm:$0xff]  }
0x1926   :  { %6475 = vmatprep.subr.bf16.mxu0 %v11608_v58  ;;  %v11645_v58 = vld [vmem:[#allocation14 + $0x80] ss:$16 sps:$4 sm:$0xff]  }
0x1929   :  { %v11920_v41 = vpop.eup %11919  ;;  %6476 = vmatpush1.bf16.msra.mxu0 %v11606_v24  ;;  %v11648_v24 = vld [vmem:[#allocation14 + $0x88] ss:$16 sps:$4 sm:$0xff]  }
0x192a   :  { %v6159_v46 = vmul.f32 %v11920_v41, %v11906_v27  ;;  %6477 = vmatprep.subr.bf16.mxu0 %v11611_v1  ;;  %v11653_v1 = vld [vmem:[#allocation14 + $0xa4] ss:$16 sps:$4 sm:$0xff]  }
0x192c   :  { %10891 = vmatmul.mubr.msk.f32.vlgmr.msra.gmra.mrb[48].mxu1 %vm1319_vm2, %v6159_v46 }
0x192d   :  { %6478 = vmatpush1.bf16.msra.mxu0 %v11609_v13  ;;  %v11656_v13 = vld [vmem:[#allocation14 + $0xac] ss:$16 sps:$4 sm:$0xff]  }
0x192e   :  { %6479 = vmatprep.subr.bf16.mxu0 %v11614_v3  ;;  %v11651_v3 = vld [vmem:[#allocation14 + $0xa0] ss:$16 sps:$4 sm:$0xff]  }
0x1931   :  { %6480 = vmatpush1.bf16.msra.mxu0 %v11612_v15  ;;  %v11654_v15 = vld [vmem:[#allocation14 + $0xa8] ss:$16 sps:$4 sm:$0xff]  }
0x1932   :  { %6481 = vmatprep.subr.bf16.mxu0 %v11617_v25  ;;  %v11659_v25 = vld [vmem:[#allocation14 + $0xc4] ss:$16 sps:$4 sm:$0xff]  }
0x1935   :  { %6482 = vmatpush1.bf16.msra.mxu0 %v11615_v43  ;;  %v11662_v43 = vld [vmem:[#allocation14 + $0xcc] ss:$16 sps:$4 sm:$0xff]  }
0x1936   :  { %6483 = vmatprep.subr.bf16.mxu0 %v11620_v29  ;;  %v11657_v29 = vld [vmem:[#allocation14 + $0xc0] ss:$16 sps:$4 sm:$0xff]  }
0x1939   :  { %6484 = vmatpush1.bf16.msra.mxu0 %v11618_v45  ;;  %v11660_v45 = vld [vmem:[#allocation14 + $0xc8] ss:$16 sps:$4 sm:$0xff]  }
0x1943   :  { %v13331_v6 = vpop.f32.mrb[22].mxu1 }
0x1944   :  { %v10822_v53 = vpop.f32.mrb[23].mxu1 }
0x19c2   :  { %v5233_v14 = vpop.f32.mrb[36].mxu1 }
0x19c3   :  { %v10832_v37 = vpop.f32.mrb[37].mxu1 }
0x19c6   :  { %v13333_v23 = vpop.f32.mrb[38].mxu1 }
0x19c7   :  { %v10842_v61 = vpop.f32.mrb[39].mxu1 }
0x19ca   :  { %v5563_v19 = vpop.f32.mrb[40].mxu1 }
0x19cb   :  { %v10852_v42 = vpop.f32.mrb[41].mxu1 }
0x19ce   :  { %v5735_v60 = vpop.f32.mrb[42].mxu1 }
0x19cf   :  { %v10862_v44 = vpop.f32.mrb[43].mxu1 }
0x19d2   :  { %v5903_v11 = vpop.f32.mrb[44].mxu1 }
0x19d3   :  { %v11016_v47 = vpack.i.bf16 %v5903_v11, %v5233_v14  ;;  %v10872_v62 = vpop.f32.mrb[45].mxu1  ;;  %v11623_v11 = vld [vmem:[#allocation14 + $0x4] ss:$16 sps:$4 sm:$0xff]  }
0x19d4   :  { %6972 = vmatprep.subr.bf16.mxu1 %v11623_v11  ;;  %v11632_v62 = vld [vmem:[#allocation14 + $0x2c] ss:$16 sps:$4 sm:$0xff]   ;;  %v11690_v11 = vld [vmem:[#allocation14 + $0x168] ss:$16 sps:$4 sm:$0xff]  }
0x19d5   :  { %11017 = vrot.lane.b32.xlu1 %v11016_v47, %s12333_s25  ;;  %v11629_v47 = vld [vmem:[#allocation14 + $0x24] ss:$16 sps:$4 sm:$0xff]   ;;  %6973 = vmatpush1.bf16.msra.mxu1 %v11621_v30  ;;  %v11687_v30 = vld [vmem:[#allocation14 + $0x160] ss:$16 sps:$4 sm:$0xff]  }
0x19d6   :  { %v6065_v27 = vpop.f32.mrb[46].mxu1  ;;  %6974 = vmatprep.subr.bf16.mxu1 %v11629_v47  ;;  %v11693_v47 = vld [vmem:[#allocation14 + $0x180] ss:$16 sps:$4 sm:$0xff]  }
0x19d7   :  { %v10882_v49 = vpop.f32.mrb[47].mxu1 }
0x19d8   :  { %v11636_v49 = vld [vmem:[#allocation14 + $0x48] ss:$16 sps:$4 sm:$0xff]  }
0x19ff   :  { %v6233_v39 = vpop.f32.mrb[48].mxu1 }
0x1a00   :  { %v11011_v17 = vpack.i.bf16 %v6233_v39, %v5563_v19  ;;  %v10892_v52 = vpop.f32.mrb[49].mxu1  ;;  %v11665_v39 = vld [vmem:[#allocation14 + $0xe4] ss:$16 sps:$4 sm:$0xff]  }
0x1a01   :  { %v11663_v52 = vld [vmem:[#allocation14 + $0xe0] ss:$16 sps:$4 sm:$0xff]  }
0x1a02   :  { %11012 = vrot.lane.b32.xlu0 %v11011_v17, %s12333_s25  ;;  %v11668_v17 = vld [vmem:[#allocation14 + $0xec] ss:$16 sps:$4 sm:$0xff]  }
0x1a47   :  { %v11018_v26 = vpop.permute.xlu1 %11017 }
0x1a48   :  { %v11020_v63 = vunpack.i.h.bf16 %v11018_v26  ;;  %v11019_v5 = vunpack.i.l.bf16 %v11018_v26  ;;  %v11666_v26 = vld [vmem:[#allocation14 + $0xe8] ss:$16 sps:$4 sm:$0xff]  }
0x1a4a   :  { %v6245_v34 = vsel %vm1236_vm1, %v5735_v60, %v11020_v63  ;;  %v5575_v41 = vsel %vm1236_vm1, %v13331_v6, %v11019_v5  ;;  %v11671_v63 = vld [vmem:[#allocation14 + $0x104] ss:$16 sps:$4 sm:$0xff]   ;;  %v11674_v5 = vld [vmem:[#allocation14 + $0x10c] ss:$16 sps:$4 sm:$0xff]  }
0x1a4b   :  { %v6247_v46 = vpack.c.bf16 %v6245_v34, %v5575_v41  ;;  %v11669_v34 = vld [vmem:[#allocation14 + $0x100] ss:$16 sps:$4 sm:$0xff]   ;;  %v11672_v41 = vld [vmem:[#allocation14 + $0x108] ss:$16 sps:$4 sm:$0xff]  }
0x1a74   :  { %v11013_v53 = vpop.permute.xlu0 %11012 }
0x1a75   :  { %v11015_v10 = vunpack.i.h.bf16 %v11013_v53  ;;  %v11014_v55 = vunpack.i.l.bf16 %v11013_v53 }
0x1a77   :  { %v5576_v54 = vsel %vm1236_vm1, %v13333_v23, %v11014_v55  ;;  %v6246_v40 = vsel %vm1236_vm1, %v6065_v27, %v11015_v10  ;;  %v11638_v27 = vld [vmem:[#allocation14 + $0x4c] ss:$16 sps:$4 sm:$0xff]  }
0x1a78   :  { %v6248_v20 = vpack.c.bf16 %v6246_v40, %v5576_v54 }
0x1a7a   :  { %6485 = vmatprep.mubr.bf16.mxu0 %v6248_v20 }
0x1a7b   :  { %6486 = vmatmul.mubr.bf16.vlgmr.msra.gmra.mrb[60].mxu0 %v6247_v46 }
0x1b4e   :  { %v6487_v14 = vpop.f32.mrb[60].mxu0 }
0x1b4f   :  { %v6488_v37 = vadd.f32 %v6487_v14, %v6286_v0  ;;  %v6489_v6 = vpop.f32.mrb[61].mxu0 }
0x1b50   :  { %v6490_v61 = vadd.f32 %v6489_v6, %v6290_v2  ;;  %v6491_v19 = vpop.f32.mrb[62].mxu0 }
0x1b51   :  { %v13347_v42 = vadd.f32 %v6488_v37, %v13164_v7  ;;  %v6492_v8 = vadd.f32 %v6491_v19, %v6286_v0  ;;  %v6493_v23 = vpop.f32.mrb[63].mxu0  ;;  %v11677_v19 = vld [vmem:[#allocation14 + $0x124] ss:$16 sps:$4 sm:$0xff]  }
0x1b52   :  { %v13350_v33 = vadd.f32 %v6490_v61, %v13160_v36  ;;  %v6494_v57 = vadd.f32 %v6493_v23, %v6290_v2  ;;  %v11626_v36 = vld [vmem:[#allocation14 + $0xc] ss:$16 sps:$4 sm:$0xff]   ;;  %v11678_v23 = vld [vmem:[#allocation14 + $0x128] ss:$16 sps:$4 sm:$0xff]  }
0x1b53   :  { %v13353_v60 = vadd.f32 %v6492_v8, %v13166_v22  ;;  %7015 = vmatprep.subr.bf16.mxu0 %v11626_v36  ;;  %v11627_v22 = vld [vmem:[#allocation14 + $0x20] ss:$16 sps:$4 sm:$0xff]   ;;  %v11698_v36 = vld [vmem:[#allocation14 + $0x18c] ss:$16 sps:$4 sm:$0xff]  }
0x1b54   :  { %v13356_v38 = vadd.f32 %v6494_v57, %v13162_v18  ;;  %v6502_v44 = vadd.f32 %v13350_v33, %v13347_v42  ;;  %7016 = vmatpush1.bf16.msra.mxu0 %v11624_v4  ;;  %v11630_v18 = vld [vmem:[#allocation14 + $0x28] ss:$16 sps:$4 sm:$0xff]   ;;  %6975 = vmatpush1.bf16.msra.mxu1 %v11627_v22  ;;  %v11675_v8 = vld [vmem:[#allocation14 + $0x120] ss:$16 sps:$4 sm:$0xff]   ;;  %v11686_v57 = vld [vmem:[#allocation14 + $0x14c] ss:$16 sps:$4 sm:$0xff]  }
0x1b55   :  { %7017 = vmatprep.subr.bf16.mxu0 %v11632_v62  ;;  %6976 = vmatprep.subr.bf16.mxu1 %v11635_v51  ;;  %v11695_v4 = vld [vmem:[#allocation14 + $0x184] ss:$16 sps:$4 sm:$0xff]   ;;  %v11696_v62 = vld [vmem:[#allocation14 + $0x188] ss:$16 sps:$4 sm:$0xff]   ;;  %v11699_v51 = vld [vmem:[#allocation14 + $0x1a0] ss:$16 sps:$4 sm:$0xff]  }
0x1b56   :  { %6503 = vadd.xlane.f32.xlu0 %v6502_v44  ;;  %v6505_v7 = vadd.f32 %v13356_v38, %v13353_v60  ;;  %v11689_v44 = vld [vmem:[#allocation14 + $0x164] ss:$16 sps:$4 sm:$0xff]  }
0x1b57   :  { %v11701_v22 = vld [vmem:[#allocation14 + $0x1a4] ss:$16 sps:$4 sm:$0xff]  }
0x1b58   :  { %6506 = vadd.xlane.f32.xlu1 %v6505_v7  ;;  %7018 = vmatpush1.bf16.msra.mxu0 %v11630_v18  ;;  %v11692_v7 = vld [vmem:[#allocation14 + $0x16c] ss:$16 sps:$4 sm:$0xff]  }
0x1b59   :  { %7019 = vmatprep.subr.bf16.mxu0 %v11638_v27  ;;  %6977 = vmatpush1.bf16.msra.mxu1 %v11633_v12  ;;  %v11704_v18 = vld [vmem:[#allocation14 + $0x1ac] ss:$16 sps:$4 sm:$0xff]   ;;  %v11702_v27 = vld [vmem:[#allocation14 + $0x1a8] ss:$16 sps:$4 sm:$0xff]   ;;  %v11707_v12 = vld [vmem:[#allocation14 + $0x1c4] ss:$16 sps:$4 sm:$0xff]  }
0x1b5a   :  { %6978 = vmatprep.subr.bf16.mxu1 %v11641_v59  ;;  %v11708_v59 = vld [vmem:[#allocation14 + $0x1c8] ss:$16 sps:$4 sm:$0xff]  }
0x1b5c   :  { %7020 = vmatpush1.bf16.msra.mxu0 %v11636_v49  ;;  %v11705_v49 = vld [vmem:[#allocation14 + $0x1c0] ss:$16 sps:$4 sm:$0xff]  }
0x1b5d   :  { %7021 = vmatprep.subr.bf16.mxu0 %v11644_v28  ;;  %6979 = vmatpush1.bf16.msra.mxu1 %v11639_v21  ;;  %v11710_v28 = vld [vmem:[#allocation14 + $0x1cc] ss:$16 sps:$4 sm:$0xff]   ;;  %v11713_v21 = vld [vmem:[#allocation14 + $0x1e4] ss:$16 sps:$4 sm:$0xff]  }
0x1b5e   :  { %6980 = vmatprep.subr.bf16.mxu1 %v11647_v56  ;;  %v11711_v56 = vld [vmem:[#allocation14 + $0x1e0] ss:$16 sps:$4 sm:$0xff]  }
0x1b60   :  { %7022 = vmatpush1.bf16.msra.mxu0 %v11642_v9  ;;  %v11716_v9 = vld [vmem:[#allocation14 + $0x1ec] ss:$16 sps:$4 sm:$0xff]  }
0x1b61   :  { %7023 = vmatprep.subr.bf16.mxu0 %v11650_v16  ;;  %6981 = vmatpush1.bf16.msra.mxu1 %v11645_v58  ;;  %v11714_v16 = vld [vmem:[#allocation14 + $0x1e8] ss:$16 sps:$4 sm:$0xff]   ;;  %v11719_v58 = vld [vmem:[#allocation16 + $0x4] ss:$8 sps:$4 sm:$0xff]  }
0x1b62   :  { %6982 = vmatprep.subr.bf16.mxu1 %v11653_v1 }
0x1b64   :  { %7024 = vmatpush1.bf16.msra.mxu0 %v11648_v24 }
0x1b65   :  { %7025 = vmatprep.subr.bf16.mxu0 %v11656_v13  ;;  %6983 = vmatpush1.bf16.msra.mxu1 %v11651_v3 }
0x1b66   :  { %6984 = vmatprep.subr.bf16.mxu1 %v11659_v25 }
0x1b68   :  { %7026 = vmatpush1.bf16.msra.mxu0 %v11654_v15 }
0x1b69   :  { %7027 = vmatprep.subr.bf16.mxu0 %v11662_v43  ;;  %6985 = vmatpush1.bf16.msra.mxu1 %v11657_v29  ;;  %v6500_v43 = vld [vmem:[%s14051_s21] sm:$0x3] }
0x1b6a   :  { %6986 = vmatprep.subr.bf16.mxu1 %v11665_v39  ;;  %v6501_v39 = vld [vmem:[%s14052_s22] sm:$0x3] }
0x1b6c   :  { %7028 = vmatpush1.bf16.msra.mxu0 %v11660_v45 }
0x1b6d   :  { %7029 = vmatprep.subr.bf16.mxu0 %v11668_v17  ;;  %6987 = vmatpush1.bf16.msra.mxu1 %v11663_v52  ;;  %v6538_v52 = vrot.slane %v6500_v43, %v12624_v50 }
0x1b6e   :  { %6988 = vmatprep.subr.bf16.mxu1 %v11671_v63 }
0x1b70   :  { %7030 = vmatpush1.bf16.msra.mxu0 %v11666_v26  ;;  %v6542_v26 = vrot.slane %v6500_v43, %v12620_v48 }
0x1b71   :  { %7031 = vmatprep.subr.bf16.mxu0 %v11674_v5  ;;  %6989 = vmatpush1.bf16.msra.mxu1 %v11669_v34  ;;  %v6553_v5 = vrot.slane %v6501_v39, %v12624_v50  ;;  %v6557_v34 = vrot.slane %v6501_v39, %v12620_v48 }
0x1b72   :  { %6990 = vmatprep.subr.bf16.mxu1 %v11677_v19  ;;  %v11725_v19 = vld [vmem:[#allocation16 + $0x24] ss:$8 sps:$4 sm:$0xff]  }
0x1b74   :  { %7032 = vmatpush1.bf16.msra.mxu0 %v11672_v41 }
0x1b75   :  { %6991 = vmatpush1.bf16.msra.mxu1 %v11675_v8  ;;  %v11728_v8 = vld [vmem:[#allocation16 + $0x34] ss:$8 sps:$4 sm:$0xff]  }
0x1be3   :  { %v6504_v46 = vpop.xlane.xlu0 %6503 }
0x1be4   :  { %v6508_v53 = vmul.f32 0.00390625, %v6504_v46 }
0x1be5   :  { %v6507_v10 = vpop.xlane.xlu1 %6506 }
0x1be6   :  { %v13363_v55 = vsub.f32 %v13347_v42, %v6508_v53  ;;  %v13366_v54 = vsub.f32 %v13350_v33, %v6508_v53  ;;  %v6509_v40 = vmul.f32 0.00390625, %v6507_v10  ;;  %v11680_v42 = vld [vmem:[#allocation14 + $0x12c] ss:$16 sps:$4 sm:$0xff]   ;;  %v11683_v33 = vld [vmem:[#allocation14 + $0x144] ss:$16 sps:$4 sm:$0xff]  }
0x1be7   :  { %7033 = vmatprep.subr.bf16.mxu0 %v11680_v42  ;;  %6992 = vmatprep.subr.bf16.mxu1 %v11683_v33  ;;  %v11723_v42 = vld [vmem:[#allocation16 + $0x20] ss:$8 sps:$4 sm:$0xff]   ;;  %v11731_v33 = vld [vmem:[#allocation16 + $0x44] ss:$8 sps:$4 sm:$0xff]  }
0x1be8   :  { %v13369_v20 = vsub.f32 %v13353_v60, %v6509_v40  ;;  %v13372_v31 = vsub.f32 %v13356_v38, %v6509_v40  ;;  %v6514_v0 = vmul.f32 %v13363_v55, %v13363_v55  ;;  %v6515_v2 = vmul.f32 %v13366_v54, %v13366_v54  ;;  %7034 = vmatpush1.bf16.msra.mxu0 %v11678_v23  ;;  %v11681_v60 = vld [vmem:[#allocation14 + $0x140] ss:$16 sps:$4 sm:$0xff]   ;;  %v11684_v38 = vld [vmem:[#allocation14 + $0x148] ss:$16 sps:$4 sm:$0xff]  }
0x1be9   :  { %7035 = vmatprep.subr.bf16.mxu0 %v11686_v57  ;;  %6993 = vmatpush1.bf16.msra.mxu1 %v11681_v60  ;;  %v11726_v23 = vld [vmem:[#allocation16 + $0x30] ss:$8 sps:$4 sm:$0xff]   ;;  %v11729_v57 = vld [vmem:[#allocation16 + $0x40] ss:$8 sps:$4 sm:$0xff]   ;;  %v11734_v60 = vld [vmem:[#allocation16 + $0x54] ss:$8 sps:$4 sm:$0xff]  }
0x1bea   :  { %v6518_v14 = vadd.f32 %v6515_v2, %v6514_v0  ;;  %v6516_v37 = vmul.f32 %v13369_v20, %v13369_v20  ;;  %v6517_v6 = vmul.f32 %v13372_v31, %v13372_v31  ;;  %6994 = vmatprep.subr.bf16.mxu1 %v11689_v44  ;;  %v11737_v44 = vld [vmem:[#allocation16 + $0x64] ss:$8 sps:$4 sm:$0xff]  }
0x1bec   :  { %6519 = vadd.xlane.f32.xlu0 %v6518_v14  ;;  %v6521_v61 = vadd.f32 %v6517_v6, %v6516_v37  ;;  %7036 = vmatpush1.bf16.msra.mxu0 %v11684_v38  ;;  %v11717_v6 = vld [vmem:[#allocation16] ss:$8 sps:$4 sm:$0xff]   ;;  %v11732_v38 = vld [vmem:[#allocation16 + $0x50] ss:$8 sps:$4 sm:$0xff]  }
0x1bed   :  { %7037 = vmatprep.subr.bf16.mxu0 %v11692_v7  ;;  %6995 = vmatpush1.bf16.msra.mxu1 %v11687_v30  ;;  %v11735_v7 = vld [vmem:[#allocation16 + $0x60] ss:$8 sps:$4 sm:$0xff]   ;;  %v11740_v30 = vld [vmem:[#allocation16 + $0x74] ss:$8 sps:$4 sm:$0xff]  }
0x1bee   :  { %6996 = vmatprep.subr.bf16.mxu1 %v11695_v4  ;;  %v11743_v4 = vld [vmem:[#allocation16 + $0x84] ss:$8 sps:$4 sm:$0xff]  }
0x1bf0   :  { %6522 = vadd.xlane.f32.xlu0 %v6521_v61  ;;  %7038 = vmatpush1.bf16.msra.mxu0 %v11690_v11  ;;  %v11720_v61 = vld [vmem:[#allocation16 + $0x10] ss:$8 sps:$4 sm:$0xff]  }
0x1bf1   :  { %7039 = vmatprep.subr.bf16.mxu0 %v11698_v36  ;;  %6997 = vmatpush1.bf16.msra.mxu1 %v11693_v47  ;;  %v11738_v11 = vld [vmem:[#allocation16 + $0x70] ss:$8 sps:$4 sm:$0xff]   ;;  %v11741_v36 = vld [vmem:[#allocation16 + $0x80] ss:$8 sps:$4 sm:$0xff]   ;;  %v11746_v47 = vld [vmem:[#allocation16 + $0x94] ss:$8 sps:$4 sm:$0xff]  }
0x1bf2   :  { %6998 = vmatprep.subr.bf16.mxu1 %v11701_v22  ;;  %v11749_v22 = vld [vmem:[#allocation16 + $0xa4] ss:$8 sps:$4 sm:$0xff]  }
0x1bf4   :  { %7040 = vmatpush1.bf16.msra.mxu0 %v11696_v62  ;;  %v11744_v62 = vld [vmem:[#allocation16 + $0x90] ss:$8 sps:$4 sm:$0xff]  }
0x1bf5   :  { %7041 = vmatprep.subr.bf16.mxu0 %v11704_v18  ;;  %6999 = vmatpush1.bf16.msra.mxu1 %v11699_v51  ;;  %v11747_v18 = vld [vmem:[#allocation16 + $0xa0] ss:$8 sps:$4 sm:$0xff]   ;;  %v11752_v51 = vld [vmem:[#allocation16 + $0xb4] ss:$8 sps:$4 sm:$0xff]  }
0x1bf6   :  { %7000 = vmatprep.subr.bf16.mxu1 %v11707_v12  ;;  %v11755_v12 = vld [vmem:[#allocation16 + $0xc4] ss:$8 sps:$4 sm:$0xff]  }
0x1bf8   :  { %7042 = vmatpush1.bf16.msra.mxu0 %v11702_v27  ;;  %v11750_v27 = vld [vmem:[#allocation16 + $0xb0] ss:$8 sps:$4 sm:$0xff]  }
0x1bf9   :  { %7043 = vmatprep.subr.bf16.mxu0 %v11710_v28  ;;  %7001 = vmatpush1.bf16.msra.mxu1 %v11705_v49  ;;  %v11753_v49 = vld [vmem:[#allocation16 + $0xc0] ss:$8 sps:$4 sm:$0xff]   ;;  %v11756_v28 = vld [vmem:[#allocation16 + $0xd0] ss:$8 sps:$4 sm:$0xff]  }
0x1bfa   :  { %7002 = vmatprep.subr.bf16.mxu1 %v11713_v21  ;;  %v11761_v21 = vld [vmem:[#allocation16 + $0xe4] ss:$8 sps:$4 sm:$0xff]  }
0x1bfc   :  { %7044 = vmatpush1.bf16.msra.mxu0 %v11708_v59  ;;  %v11758_v59 = vld [vmem:[#allocation16 + $0xd4] ss:$8 sps:$4 sm:$0xff]  }
0x1bfd   :  { %7045 = vmatprep.subr.bf16.mxu0 %v11716_v9  ;;  %7003 = vmatpush1.bf16.msra.mxu1 %v11711_v56  ;;  %v11759_v9 = vld [vmem:[#allocation16 + $0xe0] ss:$8 sps:$4 sm:$0xff]   ;;  %v11764_v56 = vld [vmem:[#allocation16 + $0xf4] ss:$8 sps:$4 sm:$0xff]  }
0x1bfe   :  { %7674 = vmatprep.subr.bf16.mxu1 %v11719_v58  ;;  %v11767_v58 = vld [vmem:[#allocation16 + $0x104] ss:$8 sps:$4 sm:$0xff]  }
0x1c00   :  { %7046 = vmatpush1.bf16.msra.mxu0 %v11714_v16  ;;  %v11762_v16 = vld [vmem:[#allocation16 + $0xf0] ss:$8 sps:$4 sm:$0xff]  }
0x1c79   :  { %v6520_v24 = vpop.xlane.xlu0 %6519 }
0x1c7a   :  { %v6524_v1 = vmul.f32 0.00390625, %v6520_v24  ;;  %v6630_v24 = vld [vmem:[%s14053_s26] sm:$0xf] }
0x1c7c   :  { %v6526_v13 = vadd.f32 1e-12, %v6524_v1  ;;  %v6635_v1 = vrot.slane %v6630_v24, %v12624_v50 }
0x1c7d   :  { %v6523_v3 = vpop.xlane.xlu0 %6522 }
0x1c7e   :  { %11921 = vrsqrt.f32 %v6526_v13  ;;  %v6525_v15 = vmul.f32 0.00390625, %v6523_v3  ;;  %v6643_v13 = vrot.slane %v6630_v24, %v12652_v32  ;;  %v6639_v3 = vrot.slane %v6630_v24, %v12620_v48 }
0x1c80   :  { %v6527_v25 = vadd.f32 1e-12, %v6525_v15  ;;  %v6647_v15 = vrot.slane %v6630_v24, %v12657_v35 }
0x1c82   :  { %11923 = vrsqrt.f32 %v6527_v25 }
0x1c88   :  { %v11922_v29 = vpop.eup %11921 }
0x1c89   :  { %v6530_v45 = vmul.f32 %v11922_v29, %v13363_v55  ;;  %v6531_v17 = vmul.f32 %v11922_v29, %v13366_v54 }
0x1c8b   :  { %v6546_v53 = vmul.f32 %v6542_v26, %v6531_v17  ;;  %v6545_v10 = vmul.f32 %v6538_v52, %v6530_v45 }
0x1c8c   :  { %v11924_v63 = vpop.eup %11923 }
0x1c8d   :  { %v6532_v41 = vmul.f32 %v11924_v63, %v13369_v20  ;;  %v6533_v46 = vmul.f32 %v11924_v63, %v13372_v31  ;;  %v13392_v0 = vadd.f32 %v6557_v34, %v6546_v53  ;;  %v13396_v2 = vadd.f32 %v6553_v5, %v6545_v10  ;;  %v11722_v31 = vld [vmem:[#allocation16 + $0x14] ss:$8 sps:$4 sm:$0xff]  }
0x1c8f   :  { %v6548_v40 = vmul.f32 %v6542_v26, %v6533_v46  ;;  %v6547_v55 = vmul.f32 %v6538_v52, %v6532_v41 }
0x1c91   :  { %v13394_v54 = vadd.f32 %v6557_v34, %v6548_v40  ;;  %v13398_v14 = vadd.f32 %v6553_v5, %v6547_v55 }
0x1c93   :  { %v6565_v37 = vpack.c.bf16 %v13394_v54, %v13392_v0  ;;  %v6564_v20 = vpack.c.bf16 %v13398_v14, %v13396_v2 }
0x1c95   :  { %7004 = vmatprep.mubr.bf16.mxu1 %v6565_v37  ;;  %7047 = vmatprep.mubr.bf16.mxu0 %v6565_v37 }
0x1c96   :  { %7005 = vmatmul.mubr.bf16.vlgmr.msra.gmra.mrb[52].mxu1 %v6564_v20  ;;  %7048 = vmatmul.mubr.bf16.vlgmr.msra.gmra.mrb[64].mxu0 %v6564_v20 }
0x1c97   :  { %7675 = vmatpush1.bf16.msra.mxu1 %v11717_v6 }
0x1c98   :  { %7676 = vmatprep.subr.bf16.mxu1 %v11722_v31 }
0x1c9b   :  { %7677 = vmatpush1.bf16.msra.mxu1 %v11720_v61 }
0x1c9c   :  { %7678 = vmatprep.subr.bf16.mxu1 %v11725_v19 }
0x1c9f   :  { %7679 = vmatpush1.bf16.msra.mxu1 %v11723_v42 }
0x1ca0   :  { %7680 = vmatprep.subr.bf16.mxu1 %v11728_v8 }
0x1ca3   :  { %7681 = vmatpush1.bf16.msra.mxu1 %v11726_v23 }
0x1ca4   :  { %7682 = vmatprep.subr.bf16.mxu1 %v11731_v33 }
0x1ca7   :  { %7683 = vmatpush1.bf16.msra.mxu1 %v11729_v57 }
0x1ca8   :  { %7684 = vmatprep.subr.bf16.mxu1 %v11734_v60 }
0x1cab   :  { %7685 = vmatpush1.bf16.msra.mxu1 %v11732_v38 }
0x1cac   :  { %7686 = vmatprep.subr.bf16.mxu1 %v11737_v44 }
0x1caf   :  { %7687 = vmatpush1.bf16.msra.mxu1 %v11735_v7 }
0x1cb0   :  { %7688 = vmatprep.subr.bf16.mxu1 %v11740_v30 }
0x1cb3   :  { %7689 = vmatpush1.bf16.msra.mxu1 %v11738_v11 }
0x1cb4   :  { %7690 = vmatprep.subr.bf16.mxu1 %v11743_v4 }
0x1cb7   :  { %7691 = vmatpush1.bf16.msra.mxu1 %v11741_v36 }
0x1cb8   :  { %7692 = vmatprep.subr.bf16.mxu1 %v11746_v47 }
0x1cbb   :  { %7693 = vmatpush1.bf16.msra.mxu1 %v11744_v62 }
0x1cbc   :  { %7694 = vmatprep.subr.bf16.mxu1 %v11749_v22 }
0x1cbf   :  { %7695 = vmatpush1.bf16.msra.mxu1 %v11747_v18 }
0x1cc0   :  { %7696 = vmatprep.subr.bf16.mxu1 %v11752_v51 }
0x1cc3   :  { %7697 = vmatpush1.bf16.msra.mxu1 %v11750_v27 }
0x1cc4   :  { %7698 = vmatprep.subr.bf16.mxu1 %v11755_v12 }
0x1cc7   :  { %7699 = vmatpush1.bf16.msra.mxu1 %v11753_v49 }
0x1cc8   :  { %7700 = vmatprep.subr.bf16.mxu1 %v11758_v59 }
0x1ccb   :  { %7701 = vmatpush1.bf16.msra.mxu1 %v11756_v28 }
0x1ccc   :  { %7702 = vmatprep.subr.bf16.mxu1 %v11761_v21 }
0x1ccf   :  { %7703 = vmatpush1.bf16.msra.mxu1 %v11759_v9 }
0x1cd0   :  { %7704 = vmatprep.subr.bf16.mxu1 %v11764_v56 }
0x1cd3   :  { %7705 = vmatpush1.bf16.msra.mxu1 %v11762_v16 }
0x1cd4   :  { %7717 = vmatprep.subr.bf16.mxu1 %v11767_v58 }
0x1d69   :  { %v7006_v25 = vpop.f32.mrb[52].mxu1  ;;  %v7049_v43 = vpop.f32.mrb[64].mxu0 }
0x1d6a   :  { %v13409_v29 = vadd.f32 %v7006_v25, %v6635_v1  ;;  %v13411_v45 = vadd.f32 %v7049_v43, %v6643_v13  ;;  %v7008_v39 = vpop.f32.mrb[53].mxu1  ;;  %v7051_v17 = vpop.f32.mrb[65].mxu0 }
0x1d6b   :  { %v13413_v52 = vadd.f32 %v7008_v39, %v6639_v3  ;;  %v13415_v26 = vadd.f32 %v7051_v17, %v6647_v15  ;;  %v7010_v63 = vpop.f32.mrb[54].mxu1  ;;  %v7053_v5 = vpop.f32.mrb[66].mxu0 }
0x1d6c   :  { %v13418_v34 = vmul.f32 0.70710677, %v13409_v29  ;;  %v13421_v41 = vmul.f32 0.70710677, %v13411_v45  ;;  %v7012_v8 = vpop.f32.mrb[55].mxu1  ;;  %v7055_v23 = vpop.f32.mrb[67].mxu0  ;;  %v13433_v57 = vadd.f32 %v7010_v63, %v6635_v1  ;;  %v13435_v60 = vadd.f32 %v7053_v5, %v6643_v13 }
0x1d6d   :  { %v13424_v46 = vmul.f32 0.70710677, %v13413_v52  ;;  %v13427_v53 = vmul.f32 0.70710677, %v13415_v26  ;;  %v13440_v7 = vadd.f32 %v7012_v8, %v6639_v3  ;;  %v13446_v36 = vadd.f32 %v7055_v23, %v6647_v15 }
0x1d6e   :  { %v7074_v10 = vand.u32 2147483647, %v13418_v34  ;;  %v7076_v40 = vand.u32 2147483647, %v13421_v41  ;;  %v13438_v44 = vmul.f32 0.70710677, %v13433_v57 }
0x1d6f   :  { %v7075_v55 = vand.u32 2147483647, %v13424_v46  ;;  %v7077_v37 = vand.u32 2147483647, %v13427_v53  ;;  %v13443_v11 = vmul.f32 0.70710677, %v13435_v60 }
0x1d70   :  { %v7082_v20 = vmul.f32 0.3275911, %v7074_v10  ;;  %v7084_v6 = vmul.f32 0.3275911, %v7076_v40  ;;  %v7186_v30 = vsub.f32 0.0, %v7074_v10  ;;  %v7188_v47 = vsub.f32 0.0, %v7076_v40 }
0x1d71   :  { %v7083_v31 = vmul.f32 0.3275911, %v7075_v55  ;;  %v7085_v42 = vmul.f32 0.3275911, %v7077_v37  ;;  %v7078_v4 = vand.u32 2147483647, %v13438_v44 }
0x1d72   :  { %v7090_v61 = vadd.f32 1.0, %v7082_v20  ;;  %v7092_v19 = vadd.f32 1.0, %v7084_v6  ;;  %v7187_v62 = vsub.f32 0.0, %v7075_v55  ;;  %v7080_v22 = vand.u32 2147483647, %v13443_v11 }
0x1d73   :  { %v7091_v33 = vadd.f32 1.0, %v7083_v31  ;;  %v7093_v38 = vadd.f32 1.0, %v7085_v42  ;;  %v13450_v18 = vmul.f32 0.70710677, %v13440_v7  ;;  %v7189_v51 = vsub.f32 0.0, %v7077_v37 }
0x1d74   :  { %11925 = vrcp.f32 %v7090_v61  ;;  %v7086_v27 = vmul.f32 0.3275911, %v7078_v4  ;;  %v7194_v12 = vmul.f32 %v7186_v30, %v7074_v10  ;;  %v7088_v49 = vmul.f32 0.3275911, %v7080_v22 }
0x1d75   :  { %11927 = vrcp.f32 %v7092_v19  ;;  %v7079_v59 = vand.u32 2147483647, %v13450_v18  ;;  %v13454_v21 = vmul.f32 0.70710677, %v13446_v36  ;;  %v7196_v9 = vmul.f32 %v7188_v47, %v7076_v40 }
0x1d76   :  { %11929 = vrcp.f32 %v7091_v33  ;;  %v7094_v28 = vadd.f32 1.0, %v7086_v27  ;;  %v7195_v56 = vmul.f32 %v7187_v62, %v7075_v55  ;;  %v7096_v16 = vadd.f32 1.0, %v7088_v49 }
0x1d77   :  { %11931 = vrcp.f32 %v7093_v38  ;;  %v7087_v58 = vmul.f32 0.3275911, %v7079_v59  ;;  %v7197_v1 = vmul.f32 %v7189_v51, %v7077_v37  ;;  %v7190_v13 = vsub.f32 0.0, %v7078_v4 }
0x1d78   :  { %11933 = vrcp.f32 %v7094_v28  ;;  %v13459_v3 = vand.u32 2147483647, %v13454_v21  ;;  %v7202_v43 = vmul.f32 1.442695, %v7194_v12  ;;  %v7192_v63 = vsub.f32 0.0, %v7080_v22 }
0x1d79   :  { %11935 = vrcp.f32 %v7096_v16  ;;  %v7095_v39 = vadd.f32 1.0, %v7087_v58  ;;  %v7206_v40 = vmul.f32 1.442695, %v7196_v9  ;;  %v7198_v20 = vmul.f32 %v7190_v13, %v7078_v4 }
0x1d7a   :  { %v7089_v5 = vmul.f32 0.3275911, %v13459_v3  ;;  %v7204_v19 = vmul.f32 1.442695, %v7195_v56  ;;  %v7208_v42 = vmul.f32 1.442695, %v7197_v1  ;;  %v7200_v33 = vmul.f32 %v7192_v63, %v7080_v22 }
0x1d7b   :  { %11937 = vrcp.f32 %v7095_v39  ;;  %v7191_v38 = vsub.f32 0.0, %v7079_v59  ;;  %v7210_v51 = vmul.f32 1.442695, %v7198_v20  ;;  %vm7234_vm11 = vcmp.ge.f32.partialorder %v13418_v34, 0.0 }
0x1d7c   :  { %v7097_v6 = vadd.f32 1.0, %v7089_v5  ;;  %11939 = vpow2.f32 %v7202_v43  ;;  %v7214_v22 = vmul.f32 1.442695, %v7200_v33  ;;  %vm7236_vm12 = vcmp.ge.f32.partialorder %v13421_v41, 0.0 }
0x1d7d   :  { %v7199_v56 = vmul.f32 %v7191_v38, %v7079_v59  ;;  %vm7235_vm13 = vcmp.ge.f32.partialorder %v13424_v46, 0.0  ;;  %vm7238_vm14 = vcmp.ge.f32.partialorder %v13438_v44, 0.0  ;;  %vm7240_vm15 = vcmp.ge.f32.partialorder %v13443_v11, 0.0 }
0x1d7e   :  { %v13456_v24 = vpop.eup %11925  ;;  %11941 = vrcp.f32 %v7097_v6  ;;  %vm7239_vm0 = vcmp.ge.f32.partialorder %v13450_v18, 0.0  ;;  %vm7237_vm1 = vcmp.ge.f32.partialorder %v13427_v53, 0.0  ;;  %vm7241_vm2 = vcmp.ge.f32.partialorder %v13454_v21, 0.0  ;;  %v11771_v21 = vld [vmem:[#allocation16 + $0x120] ss:$8 sps:$4 sm:$0xff]  }
0x1d7f   :  { %v13461_v15 = vpop.eup %11927  ;;  %v7114_v25 = vmul.f32 1.0614054, %v13456_v24  ;;  %11943 = vpow2.f32 %v7206_v40  ;;  %v7212_v6 = vmul.f32 1.442695, %v7199_v56  ;;  %v7061_v53 = vmul.f32 0.5, %v13415_v26 }
0x1d80   :  { %v7116_v17 = vmul.f32 1.0614054, %v13461_v15  ;;  %v13466_v55 = vpop.eup %11929  ;;  %11945 = vpow2.f32 %v7204_v19  ;;  %v11774_v26 = vld [vmem:[#allocation16 + $0x130] ss:$8 sps:$4 sm:$0xff]  }
0x1d81   :  { %v7122_v10 = vadd.f32 -1.4531521, %v7114_v25  ;;  %v7115_v61 = vmul.f32 1.0614054, %v13466_v55  ;;  %v13470_v8 = vpop.eup %11931  ;;  %11947 = vpow2.f32 %v7208_v42 }
0x1d82   :  { %v7124_v37 = vadd.f32 -1.4531521, %v7116_v17  ;;  %v7117_v62 = vmul.f32 1.0614054, %v13470_v8  ;;  %v13476_v28 = vpop.eup %11933  ;;  %11949 = vpow2.f32 %v7210_v51  ;;  %v7193_v17 = vsub.f32 0.0, %v13459_v3 }
0x1d83   :  { %v7130_v31 = vmul.f32 %v13456_v24, %v7122_v10  ;;  %v7123_v47 = vadd.f32 -1.4531521, %v7115_v61  ;;  %v13479_v16 = vpop.eup %11935  ;;  %v7118_v25 = vmul.f32 1.0614054, %v13476_v28  ;;  %11951 = vpow2.f32 %v7214_v22 }
0x1d84   :  { %v7132_v23 = vmul.f32 %v13461_v15, %v7124_v37  ;;  %v7125_v49 = vadd.f32 -1.4531521, %v7117_v62  ;;  %v7120_v39 = vmul.f32 1.0614054, %v13479_v16  ;;  %11953 = vpow2.f32 %v7212_v6 }
0x1d85   :  { %v7138_v30 = vadd.f32 1.4214138, %v7130_v31  ;;  %v7131_v12 = vmul.f32 %v13466_v55, %v7123_v47  ;;  %v7126_v59 = vadd.f32 -1.4531521, %v7118_v25  ;;  %v13487_v40 = vpop.eup %11937  ;;  %v7201_v47 = vmul.f32 %v7193_v17, %v13459_v3 }
0x1d86   :  { %v7140_v4 = vadd.f32 1.4214138, %v7132_v23  ;;  %v7133_v13 = vmul.f32 %v13470_v8, %v7125_v49  ;;  %v7128_v20 = vadd.f32 -1.4531521, %v7120_v39  ;;  %v11940_v23 = vpop.eup %11939 }
0x1d87   :  { %v7146_v27 = vmul.f32 %v13456_v24, %v7138_v30  ;;  %v7139_v1 = vadd.f32 1.4214138, %v7131_v12  ;;  %v7134_v42 = vmul.f32 %v13476_v28, %v7126_v59  ;;  %v7119_v30 = vmul.f32 1.0614054, %v13487_v40 }
0x1d88   :  { %v7148_v9 = vmul.f32 %v13461_v15, %v7140_v4  ;;  %v7141_v10 = vadd.f32 1.4214138, %v7133_v13  ;;  %v7136_v38 = vmul.f32 %v13479_v16, %v7128_v20  ;;  %v13495_v62 = vpop.eup %11941 }
0x1d89   :  { %v7154_v58 = vadd.f32 -0.28449672, %v7146_v27  ;;  %v7147_v5 = vmul.f32 %v13466_v55, %v7139_v1  ;;  %v7142_v12 = vadd.f32 1.4214138, %v7134_v42  ;;  %v11944_v49 = vpop.eup %11943  ;;  %v7127_v56 = vadd.f32 -1.4531521, %v7119_v30 }
0x1d8a   :  { %v7156_v43 = vadd.f32 -0.28449672, %v7148_v9  ;;  %v7149_v19 = vmul.f32 %v13470_v8, %v7141_v10  ;;  %v7144_v22 = vadd.f32 1.4214138, %v7136_v38  ;;  %v11946_v1 = vpop.eup %11945 }
0x1d8b   :  { %v7162_v63 = vmul.f32 %v13456_v24, %v7154_v58  ;;  %v7155_v61 = vadd.f32 -0.28449672, %v7147_v5  ;;  %v7121_v58 = vmul.f32 1.0614054, %v13495_v62  ;;  %v11948_v39 = vpop.eup %11947 }
0x1d8c   :  { %v7164_v37 = vmul.f32 %v13461_v15, %v7156_v43  ;;  %v7157_v27 = vadd.f32 -0.28449672, %v7149_v19  ;;  %v7150_v43 = vmul.f32 %v13476_v28, %v7142_v12  ;;  %v7152_v17 = vmul.f32 %v13479_v16, %v7144_v22 }
0x1d8d   :  { %v7170_v31 = vadd.f32 0.2548296, %v7162_v63  ;;  %v7163_v51 = vmul.f32 %v13466_v55, %v7155_v61  ;;  %v7135_v63 = vmul.f32 %v13487_v40, %v7127_v56  ;;  %v7129_v5 = vadd.f32 -1.4531521, %v7121_v58 }
0x1d8e   :  { %v7172_v33 = vadd.f32 0.2548296, %v7164_v37  ;;  %v7165_v3 = vmul.f32 %v13470_v8, %v7157_v27  ;;  %v7158_v59 = vadd.f32 -0.28449672, %v7150_v43  ;;  %v11950_v37 = vpop.eup %11949  ;;  %v7160_v20 = vadd.f32 -0.28449672, %v7152_v17 }
0x1d8f   :  { %v7178_v4 = vmul.f32 %v13456_v24, %v7170_v31  ;;  %v7171_v25 = vadd.f32 0.2548296, %v7163_v51  ;;  %v7143_v31 = vadd.f32 1.4214138, %v7135_v63  ;;  %v7137_v61 = vmul.f32 %v13495_v62, %v7129_v5  ;;  %v11952_v38 = vpop.eup %11951 }
0x1d90   :  { %v7180_v9 = vmul.f32 %v13461_v15, %v7172_v33  ;;  %v7173_v10 = vadd.f32 0.2548296, %v7165_v3  ;;  %v7216_v33 = vmul.f32 1.442695, %v7201_v47  ;;  %v7060_v3 = vmul.f32 0.5, %v13411_v45  ;;  %v11954_v5 = vpop.eup %11953 }
0x1d91   :  { %v7218_v13 = vmul.f32 %v11940_v23, %v7178_v4  ;;  %v7179_v15 = vmul.f32 %v13466_v55, %v7171_v25  ;;  %v7166_v23 = vmul.f32 %v13476_v28, %v7158_v59  ;;  %v7168_v4 = vmul.f32 %v13479_v16, %v7160_v20 }
0x1d92   :  { %v7220_v24 = vmul.f32 %v11944_v49, %v7180_v9  ;;  %v7151_v51 = vmul.f32 %v13487_v40, %v7143_v31  ;;  %v7145_v55 = vadd.f32 1.4214138, %v7137_v61  ;;  %v7181_v27 = vmul.f32 %v13470_v8, %v7173_v10 }
0x1d93   :  { %v7226_v19 = vsub.f32 1.0, %v7218_v13  ;;  %v7219_v30 = vmul.f32 %v11946_v1, %v7179_v15  ;;  %v7174_v12 = vadd.f32 0.2548296, %v7166_v23  ;;  %v7058_v49 = vmul.f32 0.5, %v13409_v29 }
0x1d94   :  { %v7228_v42 = vsub.f32 1.0, %v7220_v24  ;;  %v7176_v6 = vadd.f32 0.2548296, %v7168_v4  ;;  %v7159_v9 = vadd.f32 -0.28449672, %v7151_v51  ;;  %11955 = vpow2.f32 %v7216_v33 }
0x1d95   :  { %v7242_v22 = vsub.f32 0.0, %v7226_v19  ;;  %v7182_v58 = vmul.f32 %v13476_v28, %v7174_v12  ;;  %v7227_v47 = vsub.f32 1.0, %v7219_v30  ;;  %v7153_v25 = vmul.f32 %v13495_v62, %v7145_v55 }
0x1d96   :  { %v7244_v56 = vsub.f32 0.0, %v7228_v42  ;;  %v7184_v1 = vmul.f32 %v13479_v16, %v7176_v6  ;;  %v7167_v13 = vmul.f32 %v13487_v40, %v7159_v9  ;;  %v7059_v8 = vmul.f32 0.5, %v13413_v52 }
0x1d97   :  { %v7221_v43 = vmul.f32 %v11948_v39, %v7181_v27  ;;  %v7222_v29 = vmul.f32 %v11950_v37, %v7182_v58  ;;  %v7161_v63 = vadd.f32 -0.28449672, %v7153_v25  ;;  %v7250_v28 = vsel %vm7234_vm11, %v7226_v19, %v7242_v22 }
0x1d98   :  { %v7224_v24 = vmul.f32 %v11952_v38, %v7184_v1  ;;  %v7175_v17 = vadd.f32 0.2548296, %v7167_v13  ;;  %v7252_v15 = vsel %vm7236_vm12, %v7228_v42, %v7244_v56  ;;  %v7243_v10 = vsub.f32 0.0, %v7227_v47 }
0x1d99   :  { %v7230_v16 = vsub.f32 1.0, %v7222_v29  ;;  %v7229_v52 = vsub.f32 1.0, %v7221_v43  ;;  %v7062_v39 = vmul.f32 0.5, %v13433_v57  ;;  %v7169_v34 = vmul.f32 %v13495_v62, %v7161_v63  ;;  %v11765_v29 = vld [vmem:[#allocation16 + $0x100] ss:$8 sps:$4 sm:$0xff]  }
0x1d9a   :  { %v7232_v59 = vsub.f32 1.0, %v7224_v24  ;;  %v7183_v45 = vmul.f32 %v13487_v40, %v7175_v17  ;;  %v7258_v20 = vadd.f32 1.0, %v7250_v28  ;;  %v7260_v61 = vadd.f32 1.0, %v7252_v15  ;;  %v11770_v17 = vld [vmem:[#allocation16 + $0x114] ss:$8 sps:$4 sm:$0xff]  }
0x1d9b   :  { %v7246_v37 = vsub.f32 0.0, %v7230_v16  ;;  %v7177_v42 = vadd.f32 0.2548296, %v7169_v34  ;;  %v7251_v23 = vsel %vm7235_vm13, %v7227_v47, %v7243_v10  ;;  %v7245_v30 = vsub.f32 0.0, %v7229_v52  ;;  %v11776_v15 = vld [vmem:[#allocation16 + $0x134] ss:$8 sps:$4 sm:$0xff]  }
0x1d9c   :  { %v7248_v31 = vsub.f32 0.0, %v7232_v59  ;;  %v7223_v41 = vmul.f32 %v11954_v5, %v7183_v45  ;;  %v7064_v4 = vmul.f32 0.5, %v13435_v60  ;;  %v7266_v55 = vmul.f32 %v7258_v20, %v7058_v49  ;;  %v11773_v5 = vld [vmem:[#allocation16 + $0x124] ss:$8 sps:$4 sm:$0xff]   ;;  %v11777_v10 = vld [vmem:[#allocation16 + $0x140] ss:$8 sps:$4 sm:$0xff]  }
0x1d9d   :  { %v7254_v19 = vsel %vm7238_vm14, %v7230_v16, %v7246_v37  ;;  %v7185_v44 = vmul.f32 %v13495_v62, %v7177_v42  ;;  %v13531_v11 = vmul.f32 %v7260_v61, %v7060_v3  ;;  %v7259_v6 = vadd.f32 1.0, %v7251_v23  ;;  %v11780_v45 = vld [vmem:[#allocation16 + $0x150] ss:$8 sps:$4 sm:$0xff]   ;;  %v11788_v37 = vld [vmem:[#allocation16 + $0x174] ss:$8 sps:$4 sm:$0xff]  }
0x1d9e   :  { %v7262_v40 = vadd.f32 1.0, %v7254_v19  ;;  %v7256_v33 = vsel %vm7240_vm15, %v7232_v59, %v7248_v31  ;;  %v7231_v38 = vsub.f32 1.0, %v7223_v41  ;;  %v11956_v57 = vpop.eup %11955  ;;  %v7063_v56 = vmul.f32 0.5, %v13440_v7  ;;  %v11782_v59 = vld [vmem:[#allocation16 + $0x154] ss:$8 sps:$4 sm:$0xff]  }
0x1d9f   :  { %v7264_v51 = vadd.f32 1.0, %v7256_v33  ;;  %v7225_v9 = vmul.f32 %v11956_v57, %v7185_v44  ;;  %v7253_v58 = vsel %vm7237_vm1, %v7229_v52, %v7245_v30  ;;  %v7267_v18 = vmul.f32 %v7259_v6, %v7059_v8  ;;  %v11768_v8 = vld [vmem:[#allocation16 + $0x110] ss:$8 sps:$4 sm:$0xff]   ;;  %v11785_v52 = vld [vmem:[#allocation16 + $0x164] ss:$8 sps:$4 sm:$0xff]  }
0x1da0   :  { %v7270_v27 = vmul.f32 %v7262_v40, %v7062_v39  ;;  %v7247_v12 = vsub.f32 0.0, %v7231_v38  ;;  %v7261_v25 = vadd.f32 1.0, %v7253_v58  ;;  %v7065_v7 = vmul.f32 0.5, %v13446_v36  ;;  %v11779_v36 = vld [vmem:[#allocation16 + $0x144] ss:$8 sps:$4 sm:$0xff]  }
0x1da1   :  { %v13533_v46 = vmul.f32 %v7264_v51, %v7064_v4  ;;  %v7233_v47 = vsub.f32 1.0, %v7225_v9  ;;  %v11783_v39 = vld [vmem:[#allocation16 + $0x160] ss:$8 sps:$4 sm:$0xff]   ;;  %v11786_v34 = vld [vmem:[#allocation16 + $0x170] ss:$8 sps:$4 sm:$0xff]  }
0x1da2   :  { %v7274_v22 = vpack.c.bf16 %v7270_v27, %v7266_v55  ;;  %v7255_v60 = vsel %vm7239_vm0, %v7231_v38, %v7247_v12  ;;  %v7269_v63 = vmul.f32 %v7261_v25, %v7061_v53  ;;  %v11791_v20 = vld [vmem:[#allocation16 + $0x184] ss:$8 sps:$4 sm:$0xff]   ;;  %v11789_v31 = vld [vmem:[#allocation16 + $0x180] ss:$8 sps:$4 sm:$0xff]   ;;  %v11794_v41 = vld [vmem:[#allocation16 + $0x194] ss:$8 sps:$4 sm:$0xff]  }
0x1da3   :  { %v7276_v62 = vpack.c.bf16 %v13533_v46, %v13531_v11  ;;  %v7263_v49 = vadd.f32 1.0, %v7255_v60  ;;  %v7249_v13 = vsub.f32 0.0, %v7233_v47  ;;  %v11792_v61 = vld [vmem:[#allocation16 + $0x190] ss:$8 sps:$4 sm:$0xff]   ;;  %v11797_v19 = vld [vmem:[#allocation16 + $0x1a4] ss:$8 sps:$4 sm:$0xff]  }
0x1da4   :  { %v11795_v42 = vld [vmem:[#allocation16 + $0x1a0] ss:$8 sps:$4 sm:$0xff]   ;;  %v11800_v23 = vld [vmem:[#allocation16 + $0x1b4] ss:$8 sps:$4 sm:$0xff]   ;;  %v11798_v40 = vld [vmem:[#allocation16 + $0x1b0] ss:$8 sps:$4 sm:$0xff]  }
0x1da5   :  { %v7271_v1 = vmul.f32 %v7263_v49, %v7063_v56  ;;  %v7257_v3 = vsel %vm7241_vm2, %v7233_v47, %v7249_v13  ;;  %v11803_v33 = vld [vmem:[#allocation16 + $0x1c4] ss:$8 sps:$4 sm:$0xff]   ;;  %v11801_v38 = vld [vmem:[#allocation16 + $0x1c0] ss:$8 sps:$4 sm:$0xff]   ;;  %v11806_v57 = vld [vmem:[#allocation16 + $0x1d4] ss:$8 sps:$4 sm:$0xff]  }
0x1da6   :  { %v7265_v24 = vadd.f32 1.0, %v7257_v3  ;;  %v11804_v30 = vld [vmem:[#allocation16 + $0x1d0] ss:$8 sps:$4 sm:$0xff]   ;;  %v11809_v4 = vld [vmem:[#allocation16 + $0x1e4] ss:$8 sps:$4 sm:$0xff]  }
0x1da7   :  { %v7275_v43 = vpack.c.bf16 %v7271_v1, %v7267_v18  ;;  %v11807_v51 = vld [vmem:[#allocation16 + $0x1e0] ss:$8 sps:$4 sm:$0xff]   ;;  %v11812_v44 = vld [vmem:[#allocation16 + $0x1f4] ss:$8 sps:$4 sm:$0xff]   ;;  %v11810_v55 = vld [vmem:[#allocation16 + $0x1f0] ss:$8 sps:$4 sm:$0xff]  }
0x1da8   :  { %v7273_v28 = vmul.f32 %v7265_v24, %v7065_v7  ;;  %v7342_v27 = vld [vmem:[%s14054_s28] sm:$0x3]  ;;  %v7839_v25 = vld [vmem:[#allocation17] sm:$0xff]  ;;  %v7845_v53 = vld [vmem:[#allocation17 + $0x30] sm:$0xff] }
0x1da9   :  { %7706 = vmatprep.mubr.bf16.mxu1 %v7275_v43  ;;  %v7347_v12 = vrot.slane %v7342_v27, %v12624_v50  ;;  %v7351_v6 = vrot.slane %v7342_v27, %v12620_v48  ;;  %v7843_v3 = vld [vmem:[#allocation17 + $0x20] sm:$0xff]  ;;  %v7841_v43 = vld [vmem:[#allocation17 + $0x10] sm:$0xff] }
0x1daa   :  { %7707 = vmatmul.mubr.bf16.vlgmr.msra.gmra.mrb[56].mxu1 %v7274_v22  ;;  %v7277_v16 = vpack.c.bf16 %v7273_v28, %v7269_v63  ;;  %v7847_v7 = vld [vmem:[#allocation17 + $0x40] sm:$0xff]  ;;  %v10439_v24 = vcombine.low %v7841_v43, %v7845_v53  ;;  %v7849_v63 = vld [vmem:[#allocation17 + $0x50] sm:$0xff] }
0x1dab   :  { %7718 = vmatpush1.bf16.msra.mxu1 %v11765_v29  ;;  %v10436_v29 = vcombine.high %v7839_v25, %v7843_v3  ;;  %v7853_v28 = vld [vmem:[#allocation17 + $0x70] sm:$0xff] }
0x1dac   :  { %7719 = vmatprep.subr.bf16.mxu1 %v11770_v17  ;;  %7749 = vmatprep.mubr.bf16.mxu1 %v7277_v16  ;;  %v10440_v17 = vcombine.high %v7841_v43, %v7845_v53  ;;  %v10448_v16 = vcombine.high %v7849_v63, %v7853_v28 }
0x1dad   :  { %8607 = vmatprep.subr.bf16.mxu0 %v10436_v29 }
0x1daf   :  { %7720 = vmatpush1.bf16.msra.mxu1 %v11768_v8  ;;  %v7855_v8 = vld [vmem:[#allocation17 + $0x80] sm:$0xff] }
0x1db0   :  { %7721 = vmatprep.subr.bf16.mxu1 %v11773_v5  ;;  %v7859_v5 = vld [vmem:[#allocation17 + $0xa0] sm:$0xff] }
0x1db3   :  { %7722 = vmatpush1.bf16.msra.mxu1 %v11771_v21  ;;  %v7857_v21 = vld [vmem:[#allocation17 + $0x90] sm:$0xff] }
0x1db4   :  { %7723 = vmatprep.subr.bf16.mxu1 %v11776_v15  ;;  %v7861_v15 = vld [vmem:[#allocation17 + $0xb0] sm:$0xff] }
0x1db7   :  { %7724 = vmatpush1.bf16.msra.mxu1 %v11774_v26 }
0x1db8   :  { %7725 = vmatprep.subr.bf16.mxu1 %v11779_v36  ;;  %v10447_v36 = vcombine.low %v7849_v63, %v7853_v28 }
0x1dbb   :  { %7726 = vmatpush1.bf16.msra.mxu1 %v11777_v10  ;;  %v10452_v10 = vcombine.high %v7855_v8, %v7859_v5 }
0x1dbc   :  { %7727 = vmatprep.subr.bf16.mxu1 %v11782_v59  ;;  %v10456_v59 = vcombine.high %v7857_v21, %v7861_v15 }
0x1dbf   :  { %7728 = vmatpush1.bf16.msra.mxu1 %v11780_v45  ;;  %v7863_v45 = vld [vmem:[#allocation17 + $0xc0] sm:$0xff] }
0x1dc0   :  { %7729 = vmatprep.subr.bf16.mxu1 %v11785_v52  ;;  %v7867_v52 = vld [vmem:[#allocation17 + $0xe0] sm:$0xff] }
0x1dc3   :  { %7730 = vmatpush1.bf16.msra.mxu1 %v11783_v39  ;;  %v7865_v39 = vld [vmem:[#allocation17 + $0xd0] sm:$0xff] }
0x1dc4   :  { %7731 = vmatprep.subr.bf16.mxu1 %v11788_v37  ;;  %v7869_v37 = vld [vmem:[#allocation17 + $0xf0] sm:$0xff] }
0x1dc7   :  { %7732 = vmatpush1.bf16.msra.mxu1 %v11786_v34  ;;  %v10451_v34 = vcombine.low %v7855_v8, %v7859_v5 }
0x1dc8   :  { %7733 = vmatprep.subr.bf16.mxu1 %v11791_v20  ;;  %v10455_v20 = vcombine.low %v7857_v21, %v7861_v15 }
0x1dcb   :  { %7734 = vmatpush1.bf16.msra.mxu1 %v11789_v31  ;;  %v10460_v31 = vcombine.high %v7863_v45, %v7867_v52 }
0x1dcc   :  { %7735 = vmatprep.subr.bf16.mxu1 %v11794_v41  ;;  %v10464_v41 = vcombine.high %v7865_v39, %v7869_v37 }
0x1dcf   :  { %7736 = vmatpush1.bf16.msra.mxu1 %v11792_v61  ;;  %v7871_v61 = vld [vmem:[#allocation17 + $0x100] sm:$0xff] }
0x1dd0   :  { %7737 = vmatprep.subr.bf16.mxu1 %v11797_v19  ;;  %v7875_v19 = vld [vmem:[#allocation17 + $0x120] sm:$0xff] }
0x1dd3   :  { %7738 = vmatpush1.bf16.msra.mxu1 %v11795_v42  ;;  %v7873_v42 = vld [vmem:[#allocation17 + $0x110] sm:$0xff] }
0x1dd4   :  { %7739 = vmatprep.subr.bf16.mxu1 %v11800_v23  ;;  %v7877_v23 = vld [vmem:[#allocation17 + $0x130] sm:$0xff] }
0x1dd5   :  { %v10471_v27 = vcombine.low %v7873_v42, %v7877_v23 }
0x1dd7   :  { %7740 = vmatpush1.bf16.msra.mxu1 %v11798_v40  ;;  %v10459_v40 = vcombine.low %v7863_v45, %v7867_v52 }
0x1dd8   :  { %7741 = vmatprep.subr.bf16.mxu1 %v11803_v33  ;;  %v10463_v33 = vcombine.low %v7865_v39, %v7869_v37 }
0x1ddb   :  { %7742 = vmatpush1.bf16.msra.mxu1 %v11801_v38  ;;  %v10468_v38 = vcombine.high %v7871_v61, %v7875_v19 }
0x1ddc   :  { %7743 = vmatprep.subr.bf16.mxu1 %v11806_v57  ;;  %v10472_v57 = vcombine.high %v7873_v42, %v7877_v23 }
0x1ddf   :  { %7744 = vmatpush1.bf16.msra.mxu1 %v11804_v30  ;;  %v7879_v30 = vld [vmem:[#allocation17 + $0x140] sm:$0xff] }
0x1de0   :  { %7745 = vmatprep.subr.bf16.mxu1 %v11809_v4  ;;  %v7883_v4 = vld [vmem:[#allocation17 + $0x160] sm:$0xff] }
0x1de3   :  { %7746 = vmatpush1.bf16.msra.mxu1 %v11807_v51  ;;  %v7881_v51 = vld [vmem:[#allocation17 + $0x150] sm:$0xff] }
0x1de4   :  { %7747 = vmatprep.subr.bf16.mxu1 %v11812_v44  ;;  %v7885_v44 = vld [vmem:[#allocation17 + $0x170] sm:$0xff] }
0x1de7   :  { %7748 = vmatpush1.bf16.msra.mxu1 %v11810_v55  ;;  %v10467_v55 = vcombine.low %v7871_v61, %v7875_v19  ;;  %v7917_v61 = vld [vmem:[#allocation17 + $0x270] sm:$0xff] }
0x1de8   :  { %8689 = vmatprep.subr.bf16.mxu1 %v10440_v17  ;;  %v7909_v17 = vld [vmem:[#allocation17 + $0x230] sm:$0xff] }
0x1dea   :  { %7750 = vmatmul.mubr.bf16.vlgmr.msra.gmra.mrb[56].mxu1 %v7276_v62 }
0x1deb   :  { %8690 = vmatpush1.bf16.msra.mxu1 %v10439_v24  ;;  %v7905_v24 = vld [vmem:[#allocation17 + $0x210] sm:$0xff] }
0x1dec   :  { %8691 = vmatprep.subr.bf16.mxu1 %v10448_v16  ;;  %v10504_v8 = vcombine.high %v7905_v24, %v7909_v17  ;;  %v10503_v5 = vcombine.low %v7905_v24, %v7909_v17 }
0x1def   :  { %8692 = vmatpush1.bf16.msra.mxu1 %v10447_v36 }
0x1df0   :  { %8693 = vmatprep.subr.bf16.mxu1 %v10456_v59 }
0x1df3   :  { %8694 = vmatpush1.bf16.msra.mxu1 %v10455_v20 }
0x1df4   :  { %8695 = vmatprep.subr.bf16.mxu1 %v10464_v41 }
0x1df7   :  { %8696 = vmatpush1.bf16.msra.mxu1 %v10463_v33  ;;  %v7923_v33 = vld [vmem:[#allocation17 + $0x2a0] sm:$0xff] }
0x1df8   :  { %8697 = vmatprep.subr.bf16.mxu1 %v10472_v57 }
0x1dfb   :  { %8698 = vmatpush1.bf16.msra.mxu1 %v10471_v27  ;;  %v7931_v27 = vld [vmem:[#allocation17 + $0x2e0] sm:$0xff] }
0x1ebd   :  { %v7751_v9 = vpop.f32.mrb[56].mxu1 }
0x1ebe   :  { %v10929_v22 = vadd.f32 %v7751_v9, %v7347_v12  ;;  %v7753_v56 = vpop.f32.mrb[57].mxu1  ;;  %v7887_v9 = vld [vmem:[#allocation17 + $0x180] sm:$0xff] }
0x1ebf   :  { %v10930_v60 = vadd.f32 %v7753_v56, %v7351_v6  ;;  %v7755_v58 = vpop.f32.mrb[58].mxu1  ;;  %v7889_v56 = vld [vmem:[#allocation17 + $0x190] sm:$0xff] }
0x1ec0   :  { %v13549_v49 = vadd.f32 %v10929_v22, %v13396_v2  ;;  %v10931_v47 = vadd.f32 %v7755_v58, %v7347_v12  ;;  %v7757_v18 = vpop.f32.mrb[59].mxu1  ;;  %v10476_v12 = vcombine.high %v7879_v30, %v7883_v4  ;;  %v7891_v22 = vld [vmem:[#allocation17 + $0x1a0] sm:$0xff]  ;;  %v10475_v58 = vcombine.low %v7879_v30, %v7883_v4  ;;  %v7925_v30 = vld [vmem:[#allocation17 + $0x2b0] sm:$0xff] }
0x1ec1   :  { %v13552_v1 = vadd.f32 %v10930_v60, %v13392_v0  ;;  %v10932_v11 = vadd.f32 %v7757_v18, %v7351_v6  ;;  %v10435_v0 = vcombine.low %v7839_v25, %v7843_v3  ;;  %v10480_v6 = vcombine.high %v7881_v51, %v7885_v44  ;;  %v7893_v60 = vld [vmem:[#allocation17 + $0x1b0] sm:$0xff] }
0x1ec2   :  { %v13555_v46 = vadd.f32 %v10931_v47, %v13398_v14  ;;  %v7851_v14 = vld [vmem:[#allocation17 + $0x60] sm:$0xff]  ;;  %v10479_v47 = vcombine.low %v7881_v51, %v7885_v44  ;;  %v10484_v18 = vcombine.high %v7887_v9, %v7891_v22  ;;  %v7897_v25 = vld [vmem:[#allocation17 + $0x1d0] sm:$0xff]  ;;  %v10483_v43 = vcombine.low %v7887_v9, %v7891_v22 }
0x1ec3   :  { %v13558_v62 = vadd.f32 %v10932_v11, %v13394_v54  ;;  %v7766_v13 = vadd.f32 %v13552_v1, %v13549_v49  ;;  %v10444_v54 = vcombine.high %v7847_v7, %v7851_v14  ;;  %8608 = vmatpush1.bf16.msra.mxu0 %v10435_v0  ;;  %v10443_v26 = vcombine.low %v7847_v7, %v7851_v14  ;;  %v7901_v3 = vld [vmem:[#allocation17 + $0x1f0] sm:$0xff]  ;;  %v7903_v7 = vld [vmem:[#allocation17 + $0x200] sm:$0xff] }
0x1ec4   :  { %8699 = vmatprep.subr.bf16.mxu1 %v10480_v6  ;;  %v10488_v11 = vcombine.high %v7889_v56, %v7893_v60  ;;  %v10487_v0 = vcombine.low %v7889_v56, %v7893_v60  ;;  %v10496_v53 = vcombine.high %v7897_v25, %v7901_v3  ;;  %v7907_v14 = vld [vmem:[#allocation17 + $0x220] sm:$0xff]  ;;  %v10495_v63 = vcombine.low %v7897_v25, %v7901_v3  ;;  %v7933_v9 = vld [vmem:[#allocation17 + $0x2f0] sm:$0xff] }
0x1ec5   :  { %7767 = vadd.xlane.f32.xlu1 %v7766_v13  ;;  %v7769_v2 = vadd.f32 %v13558_v62, %v13555_v46  ;;  %8609 = vmatprep.subr.bf16.mxu0 %v10444_v54  ;;  %v7895_v13 = vld [vmem:[#allocation17 + $0x1c0] sm:$0xff]  ;;  %v10500_v28 = vcombine.high %v7903_v7, %v7907_v14  ;;  %v10499_v16 = vcombine.low %v7903_v7, %v7907_v14  ;;  %v7949_v7 = vld [vmem:[#allocation17 + $0x370] sm:$0xff] }
0x1ec6   :  { %8700 = vmatpush1.bf16.msra.mxu1 %v10479_v47  ;;  %v7939_v47 = vld [vmem:[#allocation17 + $0x320] sm:$0xff] }
0x1ec7   :  { %7770 = vadd.xlane.f32.xlu0 %v7769_v2  ;;  %8610 = vmatpush1.bf16.msra.mxu0 %v10443_v26  ;;  %v7899_v2 = vld [vmem:[#allocation17 + $0x1e0] sm:$0xff] }
0x1ec8   :  { %8611 = vmatprep.subr.bf16.mxu0 %v10452_v10  ;;  %v10492_v29 = vcombine.high %v7895_v13, %v7899_v2  ;;  %8701 = vmatprep.subr.bf16.mxu1 %v10488_v11  ;;  %v10491_v54 = vcombine.low %v7895_v13, %v7899_v2  ;;  %v7941_v13 = vld [vmem:[#allocation17 + $0x330] sm:$0xff] }
0x1eca   :  { %8702 = vmatpush1.bf16.msra.mxu1 %v10487_v0  ;;  %v7947_v0 = vld [vmem:[#allocation17 + $0x360] sm:$0xff] }
0x1ecb   :  { %8612 = vmatpush1.bf16.msra.mxu0 %v10451_v34  ;;  %8703 = vmatprep.subr.bf16.mxu1 %v10496_v53 }
0x1ecc   :  { %8613 = vmatprep.subr.bf16.mxu0 %v10460_v31  ;;  %v7915_v31 = vld [vmem:[#allocation17 + $0x260] sm:$0xff] }
0x1ece   :  { %8704 = vmatpush1.bf16.msra.mxu1 %v10495_v63  ;;  %v7955_v63 = vld [vmem:[#allocation17 + $0x3a0] sm:$0xff] }
0x1ecf   :  { %8614 = vmatpush1.bf16.msra.mxu0 %v10459_v40  ;;  %8705 = vmatprep.subr.bf16.mxu1 %v10504_v8  ;;  %v7919_v40 = vld [vmem:[#allocation17 + $0x280] sm:$0xff] }
0x1ed0   :  { %8615 = vmatprep.subr.bf16.mxu0 %v10468_v38  ;;  %v7921_v38 = vld [vmem:[#allocation17 + $0x290] sm:$0xff]  ;;  %v10516_v57 = vcombine.high %v7919_v40, %v7923_v33  ;;  %v10515_v4 = vcombine.low %v7919_v40, %v7923_v33 }
0x1ed1   :  { %v10519_v51 = vcombine.low %v7921_v38, %v7925_v30  ;;  %v10520_v44 = vcombine.high %v7921_v38, %v7925_v30 }
0x1ed2   :  { %8706 = vmatpush1.bf16.msra.mxu1 %v10503_v5  ;;  %v7959_v5 = vld [vmem:[#allocation17 + $0x3c0] sm:$0xff] }
0x1ed3   :  { %8616 = vmatpush1.bf16.msra.mxu0 %v10467_v55  ;;  %v7927_v55 = vld [vmem:[#allocation17 + $0x2c0] sm:$0xff] }
0x1ed4   :  { %8617 = vmatprep.subr.bf16.mxu0 %v10476_v12  ;;  %v7929_v12 = vld [vmem:[#allocation17 + $0x2d0] sm:$0xff]  ;;  %v10524_v6 = vcombine.high %v7927_v55, %v7931_v27  ;;  %v10523_v22 = vcombine.low %v7927_v55, %v7931_v27 }
0x1ed5   :  { %v10527_v56 = vcombine.low %v7929_v12, %v7933_v9  ;;  %v10528_v60 = vcombine.high %v7929_v12, %v7933_v9  ;;  %v7765_v9 = vld [vmem:[%s14056_s8] sm:$0x3] }
0x1ed7   :  { %8618 = vmatpush1.bf16.msra.mxu0 %v10475_v58  ;;  %v7935_v58 = vld [vmem:[#allocation17 + $0x300] sm:$0xff] }
0x1ed8   :  { %8619 = vmatprep.subr.bf16.mxu0 %v10484_v18  ;;  %v7937_v18 = vld [vmem:[#allocation17 + $0x310] sm:$0xff]  ;;  %v10532_v11 = vcombine.high %v7935_v58, %v7939_v47  ;;  %v10531_v2 = vcombine.low %v7935_v58, %v7939_v47  ;;  %v7821_v58 = vrot.slane %v7765_v9, %v12620_v48  ;;  %v7817_v47 = vrot.slane %v7765_v9, %v12624_v50 }
0x1ed9   :  { %v10535_v25 = vcombine.low %v7937_v18, %v7941_v13  ;;  %v10536_v3 = vcombine.high %v7937_v18, %v7941_v13 }
0x1edb   :  { %8620 = vmatpush1.bf16.msra.mxu0 %v10483_v43  ;;  %v7943_v43 = vld [vmem:[#allocation17 + $0x340] sm:$0xff] }
0x1edc   :  { %8621 = vmatprep.subr.bf16.mxu0 %v10492_v29  ;;  %v7945_v29 = vld [vmem:[#allocation17 + $0x350] sm:$0xff]  ;;  %v10540_v53 = vcombine.high %v7943_v43, %v7947_v0  ;;  %v10539_v14 = vcombine.low %v7943_v43, %v7947_v0 }
0x1edd   :  { %v10543_v24 = vcombine.low %v7945_v29, %v7949_v7  ;;  %v10544_v17 = vcombine.high %v7945_v29, %v7949_v7  ;;  %v7848_v29 = vld [vmem:[#allocation17 + $0x48] sm:$0xff]  ;;  %v8781_v7 = vld [vmem:[#allocation19 + $0x40] sm:$0xff] }
0x1edf   :  { %8622 = vmatpush1.bf16.msra.mxu0 %v10491_v54  ;;  %v7951_v54 = vld [vmem:[#allocation17 + $0x380] sm:$0xff] }
0x1ee0   :  { %8623 = vmatprep.subr.bf16.mxu0 %v10500_v28  ;;  %v7953_v28 = vld [vmem:[#allocation17 + $0x390] sm:$0xff]  ;;  %v10548_v8 = vcombine.high %v7951_v54, %v7955_v63 }
0x1ee3   :  { %8624 = vmatpush1.bf16.msra.mxu0 %v10499_v16  ;;  %v7957_v16 = vld [vmem:[#allocation17 + $0x3b0] sm:$0xff] }
0x1f52   :  { %v7768_v21 = vpop.xlane.xlu1 %7767 }
0x1f53   :  { %v7772_v15 = vmul.f32 0.00390625, %v7768_v21  ;;  %v7963_v21 = vld [vmem:[#allocation17 + $0x3e0] sm:$0xff] }
0x1f54   :  { %v7771_v26 = vpop.xlane.xlu0 %7770 }
0x1f55   :  { %v13565_v36 = vsub.f32 %v13549_v49, %v7772_v15  ;;  %v13568_v10 = vsub.f32 %v13552_v1, %v7772_v15  ;;  %v7773_v59 = vmul.f32 0.00390625, %v7771_v26  ;;  %v10547_v15 = vcombine.low %v7951_v54, %v7955_v63  ;;  %v7856_v63 = vld [vmem:[#allocation17 + $0x88] sm:$0xff] }
0x1f56   :  { %v10552_v26 = vcombine.high %v7953_v28, %v7957_v16 }
0x1f57   :  { %v13571_v45 = vsub.f32 %v13555_v46, %v7773_v59  ;;  %v13574_v52 = vsub.f32 %v13558_v62, %v7773_v59  ;;  %v7778_v39 = vmul.f32 %v13565_v36, %v13565_v36  ;;  %v7779_v37 = vmul.f32 %v13568_v10, %v13568_v10  ;;  %v7911_v46 = vld [vmem:[#allocation17 + $0x240] sm:$0xff]  ;;  %v7913_v62 = vld [vmem:[#allocation17 + $0x250] sm:$0xff] }
0x1f58   :  { %v10508_v41 = vcombine.high %v7911_v46, %v7915_v31  ;;  %v10507_v19 = vcombine.low %v7911_v46, %v7915_v31  ;;  %v10511_v42 = vcombine.low %v7913_v62, %v7917_v61  ;;  %v10512_v23 = vcombine.high %v7913_v62, %v7917_v61  ;;  %v7961_v59 = vld [vmem:[#allocation17 + $0x3d0] sm:$0xff]  ;;  %v7840_v46 = vld [vmem:[#allocation17 + $0x8] sm:$0xff]  ;;  %v8773_v62 = vld [vmem:[#allocation19] sm:$0xff] }
0x1f59   :  { %v7782_v34 = vadd.f32 %v7779_v37, %v7778_v39  ;;  %v7780_v49 = vmul.f32 %v13571_v45, %v13571_v45  ;;  %v7781_v1 = vmul.f32 %v13574_v52, %v13574_v52  ;;  %v7965_v39 = vld [vmem:[#allocation17 + $0x3f0] sm:$0xff]  ;;  %v10551_v37 = vcombine.low %v7953_v28, %v7957_v16  ;;  %v7844_v31 = vld [vmem:[#allocation17 + $0x28] sm:$0xff]  ;;  %v8789_v16 = vld [vmem:[#allocation19 + $0x80] sm:$0xff] }
0x1f5a   :  { %8625 = vmatprep.subr.bf16.mxu0 %v10508_v41  ;;  %8707 = vmatprep.subr.bf16.mxu1 %v10512_v23  ;;  %v10437_v41 = vcombine.low %v7840_v46, %v7844_v31  ;;  %v10438_v61 = vcombine.high %v7840_v46, %v7844_v31 }
0x1f5b   :  { %7783 = vadd.xlane.f32.xlu1 %v7782_v34  ;;  %v7785_v20 = vadd.f32 %v7781_v1, %v7780_v49  ;;  %8626 = vmatpush1.bf16.msra.mxu0 %v10507_v19  ;;  %v10556_v34 = vcombine.high %v7959_v5, %v7963_v21  ;;  %v10560_v49 = vcombine.high %v7961_v59, %v7965_v39  ;;  %v8777_v19 = vld [vmem:[#allocation19 + $0x20] sm:$0xff] }
0x1f5c   :  { %8708 = vmatpush1.bf16.msra.mxu1 %v10511_v42  ;;  %8627 = vmatprep.subr.bf16.mxu0 %v10516_v57  ;;  %v10555_v1 = vcombine.low %v7959_v5, %v7963_v21  ;;  %v13584_v42 = vcombine.low %v8773_v62, %v8777_v19  ;;  %v13586_v23 = vcombine.high %v8773_v62, %v8777_v19  ;;  %v8793_v5 = vld [vmem:[#allocation19 + $0xa0] sm:$0xff] }
0x1f5d   :  { %7786 = vadd.xlane.f32.xlu0 %v7785_v20  ;;  %8709 = vmatprep.subr.bf16.mxu1 %v10520_v44  ;;  %v10559_v20 = vcombine.low %v7961_v59, %v7965_v39  ;;  %v13615_v59 = vcombine.high %v8789_v16, %v8793_v5  ;;  %v7864_v39 = vld [vmem:[#allocation17 + $0xc8] sm:$0xff]  ;;  %v13620_v46 = vcombine.low %v8789_v16, %v8793_v5  ;;  %v8805_v19 = vld [vmem:[#allocation19 + $0x100] sm:$0xff] }
0x1f5e   :  { %v7912_v16 = vld [vmem:[#allocation17 + $0x248] sm:$0xff] }
0x1f5f   :  { %8628 = vmatpush1.bf16.msra.mxu0 %v10515_v4  ;;  %v7916_v5 = vld [vmem:[#allocation17 + $0x268] sm:$0xff] }
0x1f60   :  { %8710 = vmatpush1.bf16.msra.mxu1 %v10519_v51  ;;  %8629 = vmatprep.subr.bf16.mxu0 %v10524_v6  ;;  %v7764_v51 = vld [vmem:[%s14055_s29] sm:$0x3] }
0x1f61   :  { %8711 = vmatprep.subr.bf16.mxu1 %v10528_v60  ;;  %v7802_v55 = vrot.slane %v7764_v51, %v12624_v50  ;;  %v7806_v27 = vrot.slane %v7764_v51, %v12620_v48  ;;  %v7884_v51 = vld [vmem:[#allocation17 + $0x168] sm:$0xff] }
0x1f63   :  { %8630 = vmatpush1.bf16.msra.mxu0 %v10523_v22 }
0x1f64   :  { %8712 = vmatpush1.bf16.msra.mxu1 %v10527_v56  ;;  %8631 = vmatprep.subr.bf16.mxu0 %v10532_v11 }
0x1f65   :  { %8713 = vmatprep.subr.bf16.mxu1 %v10536_v3 }
0x1f67   :  { %8632 = vmatpush1.bf16.msra.mxu0 %v10531_v2 }
0x1f68   :  { %8714 = vmatpush1.bf16.msra.mxu1 %v10535_v25  ;;  %8633 = vmatprep.subr.bf16.mxu0 %v10540_v53  ;;  %v7852_v53 = vld [vmem:[#allocation17 + $0x68] sm:$0xff] }
0x1f69   :  { %8715 = vmatprep.subr.bf16.mxu1 %v10544_v17  ;;  %v10446_v54 = vcombine.high %v7848_v29, %v7852_v53  ;;  %v10445_v21 = vcombine.low %v7848_v29, %v7852_v53  ;;  %v7904_v53 = vld [vmem:[#allocation17 + $0x208] sm:$0xff] }
0x1f6b   :  { %8634 = vmatpush1.bf16.msra.mxu0 %v10539_v14  ;;  %v8785_v14 = vld [vmem:[#allocation19 + $0x60] sm:$0xff] }
0x1f6c   :  { %8716 = vmatpush1.bf16.msra.mxu1 %v10543_v24  ;;  %8635 = vmatprep.subr.bf16.mxu0 %v10548_v8  ;;  %v13607_v28 = vcombine.high %v8781_v7, %v8785_v14  ;;  %v7860_v8 = vld [vmem:[#allocation17 + $0xa8] sm:$0xff] }
0x1f6d   :  { %8717 = vmatprep.subr.bf16.mxu1 %v10552_v26  ;;  %v10454_v26 = vcombine.high %v7856_v63, %v7860_v8 }
0x1f6f   :  { %8636 = vmatpush1.bf16.msra.mxu0 %v10547_v15  ;;  %v13612_v15 = vcombine.low %v8781_v7, %v8785_v14  ;;  %v8778_v7 = vld [vmem:[#allocation19 + $0x28] sm:$0xff] }
0x1f70   :  { %8718 = vmatpush1.bf16.msra.mxu1 %v10551_v37  ;;  %8637 = vmatprep.subr.bf16.mxu0 %v10556_v34  ;;  %v7868_v37 = vld [vmem:[#allocation17 + $0xe8] sm:$0xff]  ;;  %v8797_v34 = vld [vmem:[#allocation19 + $0xc0] sm:$0xff] }
0x1f71   :  { %8719 = vmatprep.subr.bf16.mxu1 %v10560_v49  ;;  %v8801_v49 = vld [vmem:[#allocation19 + $0xe0] sm:$0xff]  ;;  %v10462_v31 = vcombine.high %v7864_v39, %v7868_v37 }
0x1f72   :  { %v13623_v62 = vcombine.high %v8797_v34, %v8801_v49 }
0x1f73   :  { %8638 = vmatpush1.bf16.msra.mxu0 %v10555_v1  ;;  %v14057_v1 = vmov 0  }
0x1f74   :  { %8720 = vmatpush1.bf16.msra.mxu1 %v10559_v20  ;;  %8648 = vmatprep.subr.bf16.mxu0 %v10438_v61  ;;  %v10453_v20 = vcombine.low %v7856_v63, %v7860_v8  ;;  %v7876_v61 = vld [vmem:[#allocation17 + $0x128] sm:$0xff] }
0x1f75   :  { %9157 = vmatprep.subr.bf16.mxu1 %v13586_v23 }
0x1fe8   :  { %v7784_v40 = vpop.xlane.xlu1 %7783 }
0x1fe9   :  { %v7788_v33 = vmul.f32 0.00390625, %v7784_v40  ;;  %v8809_v40 = vld [vmem:[#allocation19 + $0x120] sm:$0xff] }
0x1fea   :  { %v7787_v38 = vpop.xlane.xlu0 %7786 }
0x1feb   :  { %v7790_v57 = vadd.f32 1e-12, %v7788_v33  ;;  %v7789_v30 = vmul.f32 0.00390625, %v7787_v38  ;;  %v10461_v33 = vcombine.low %v7864_v39, %v7868_v37  ;;  %v13626_v38 = vcombine.low %v8797_v34, %v8801_v49 }
0x1fec   :  { %v10510_v34 = vcombine.high %v7912_v16, %v7916_v5 }
0x1fed   :  { %11957 = vrsqrt.f32 %v7790_v57  ;;  %v7791_v4 = vadd.f32 1e-12, %v7789_v30  ;;  %v13629_v30 = vcombine.high %v8805_v19, %v8809_v40 }
0x1fef   :  { %11959 = vrsqrt.f32 %v7791_v4  ;;  %v7880_v4 = vld [vmem:[#allocation17 + $0x148] sm:$0xff] }
0x1ff7   :  { %v11958_v44 = vpop.eup %11957 }
0x1ff8   :  { %v7794_v12 = vmul.f32 %v11958_v44, %v13565_v36  ;;  %v7795_v6 = vmul.f32 %v11958_v44, %v13568_v10  ;;  %v8813_v44 = vld [vmem:[#allocation19 + $0x140] sm:$0xff] }
0x1ff9   :  { %v11960_v22 = vpop.eup %11959 }
0x1ffa   :  { %v7796_v56 = vmul.f32 %v11960_v22, %v13571_v45  ;;  %v7797_v60 = vmul.f32 %v11960_v22, %v13574_v52  ;;  %v7809_v18 = vmul.f32 %v7802_v55, %v7794_v12  ;;  %v7810_v11 = vmul.f32 %v7806_v27, %v7795_v6  ;;  %v7888_v22 = vld [vmem:[#allocation17 + $0x188] sm:$0xff] }
0x1ffb   :  { %v13632_v12 = vcombine.low %v8805_v19, %v8809_v40  ;;  %v10478_v6 = vcombine.high %v7880_v4, %v7884_v51  ;;  %v10509_v19 = vcombine.low %v7912_v16, %v7916_v5  ;;  %v7952_v16 = vld [vmem:[#allocation17 + $0x388] sm:$0xff] }
0x1ffc   :  { %v7811_v13 = vmul.f32 %v7802_v55, %v7796_v56  ;;  %v7812_v2 = vmul.f32 %v7806_v27, %v7797_v60  ;;  %v7825_v36 = vadd.f32 %v7821_v58, %v7810_v11  ;;  %v7824_v10 = vadd.f32 %v7817_v47, %v7809_v18  ;;  %v8817_v55 = vld [vmem:[#allocation19 + $0x160] sm:$0xff]  ;;  %v7892_v56 = vld [vmem:[#allocation17 + $0x1a8] sm:$0xff] }
0x1ffd   :  { %v13635_v9 = vcombine.high %v8813_v44, %v8817_v55  ;;  %v8821_v60 = vld [vmem:[#allocation19 + $0x180] sm:$0xff]  ;;  %v13638_v18 = vcombine.low %v8813_v44, %v8817_v55  ;;  %v10486_v11 = vcombine.high %v7888_v22, %v7892_v56  ;;  %v8798_v44 = vld [vmem:[#allocation19 + $0xc8] sm:$0xff] }
0x1ffe   :  { %v7827_v25 = vadd.f32 %v7821_v58, %v7812_v2  ;;  %v7826_v3 = vadd.f32 %v7817_v47, %v7811_v13  ;;  %v8825_v58 = vld [vmem:[#allocation19 + $0x1a0] sm:$0xff]  ;;  %v10477_v47 = vcombine.low %v7880_v4, %v7884_v51  ;;  %v7896_v2 = vld [vmem:[#allocation17 + $0x1c8] sm:$0xff] }
0x1fff   :  { %v13641_v13 = vcombine.high %v8821_v60, %v8825_v58  ;;  %v7928_v4 = vld [vmem:[#allocation17 + $0x2c8] sm:$0xff] }
0x2000   :  { %v7831_v43 = vrot.slane %v7827_v25, 7  ;;  %v7830_v0 = vrot.slane %v7826_v3, 7  ;;  %v7900_v25 = vld [vmem:[#allocation17 + $0x1e8] sm:$0xff]  ;;  %v8829_v3 = vld [vmem:[#allocation19 + $0x1c0] sm:$0xff] }
0x2001   :  { %v10493_v14 = vcombine.low %v7896_v2, %v7900_v25  ;;  %v7932_v51 = vld [vmem:[#allocation17 + $0x2e8] sm:$0xff] }
0x2002   :  { %v7836_v45 = vsel %vm7834_vm3, %v7825_v36, %v7831_v43  ;;  %v7835_v52 = vsel %vm7834_vm3, %v7824_v10, %v7830_v0  ;;  %v8833_v36 = vld [vmem:[#allocation19 + $0x1e0] sm:$0xff]  ;;  %v10485_v43 = vcombine.low %v7888_v22, %v7892_v56  ;;  %v13644_v10 = vcombine.low %v8821_v60, %v8825_v58  ;;  %v8802_v55 = vld [vmem:[#allocation19 + $0xe8] sm:$0xff] }
0x2003   :  { %v13601_v24 = vpack.c.bf16 %v7836_v45, %v7836_v45  ;;  %v13603_v17 = vpack.c.bf16 %v7835_v52, %v7835_v52  ;;  %v10494_v0 = vcombine.high %v7896_v2, %v7900_v25  ;;  %v13647_v29 = vcombine.high %v8829_v3, %v8833_v36  ;;  %v7908_v45 = vld [vmem:[#allocation17 + $0x228] sm:$0xff] }
0x2004   :  { %v8774_v52 = vld [vmem:[#allocation19 + $0x8] sm:$0xff]  ;;  %v10502_v63 = vcombine.high %v7904_v53, %v7908_v45  ;;  %v10501_v39 = vcombine.low %v7904_v53, %v7908_v45  ;;  %v10526_v22 = vcombine.high %v7928_v4, %v7932_v51  ;;  %v13673_v56 = vcombine.high %v8798_v44, %v8802_v55 }
0x2005   :  { %8639 = vmatprep.mubr.bf16.mxu0 %v13601_v24  ;;  %8721 = vmatprep.mubr.bf16.mxu1 %v13601_v24  ;;  %v13653_v8 = vcombine.high %v8774_v52, %v8778_v7  ;;  %v13656_v37 = vcombine.low %v8774_v52, %v8778_v7  ;;  %v7936_v60 = vld [vmem:[#allocation17 + $0x308] sm:$0xff]  ;;  %v10525_v2 = vcombine.low %v7928_v4, %v7932_v51 }
0x2006   :  { %8640 = vmatmul.mubr.bf16.vlgmr.msra.gmra.mrb[68].mxu0 %v13603_v17  ;;  %8722 = vmatmul.mubr.bf16.vlgmr.msra.gmra.mrb[60].mxu1 %v13603_v17  ;;  %v7940_v58 = vld [vmem:[#allocation17 + $0x328] sm:$0xff]  ;;  %v13676_v25 = vcombine.low %v8798_v44, %v8802_v55 }
0x2007   :  { %8649 = vmatpush1.bf16.msra.mxu0 %v10437_v41  ;;  %9158 = vmatpush1.bf16.msra.mxu1 %v13584_v42  ;;  %v7872_v41 = vld [vmem:[#allocation17 + $0x108] sm:$0xff]  ;;  %v10533_v52 = vcombine.low %v7936_v60, %v7940_v58 }
0x2008   :  { %8680 = vmatprep.mubr.bf16.mxu0 %v13601_v24  ;;  %8650 = vmatprep.subr.bf16.mxu0 %v10446_v54  ;;  %v10470_v57 = vcombine.high %v7872_v41, %v7876_v61  ;;  %v10469_v27 = vcombine.low %v7872_v41, %v7876_v61  ;;  %v13650_v54 = vcombine.low %v8829_v3, %v8833_v36  ;;  %v8790_v41 = vld [vmem:[#allocation19 + $0x88] sm:$0xff] }
0x2009   :  { %9159 = vmatprep.subr.bf16.mxu1 %v13607_v28  ;;  %9189 = vmatprep.mubr.bf16.mxu1 %v14057_v1  ;;  %v8794_v61 = vld [vmem:[#allocation19 + $0xa8] sm:$0xff]  ;;  %v10534_v3 = vcombine.high %v7936_v60, %v7940_v58  ;;  %v8776_v60 = vld [vmem:[#allocation19 + $0x18] sm:$0xff] }
0x200a   :  { %v8814_v53 = vld [vmem:[#allocation19 + $0x148] sm:$0xff]  ;;  %v8780_v58 = vld [vmem:[#allocation19 + $0x38] sm:$0xff] }
0x200b   :  { %8651 = vmatpush1.bf16.msra.mxu0 %v10445_v21  ;;  %9160 = vmatpush1.bf16.msra.mxu1 %v13612_v15  ;;  %v8782_v21 = vld [vmem:[#allocation19 + $0x48] sm:$0xff] }
0x200c   :  { %8652 = vmatprep.subr.bf16.mxu0 %v10454_v26  ;;  %9161 = vmatprep.subr.bf16.mxu1 %v13615_v59  ;;  %v8786_v26 = vld [vmem:[#allocation19 + $0x68] sm:$0xff] }
0x200d   :  { %v13659_v49 = vcombine.high %v8782_v21, %v8786_v26  ;;  %v13663_v40 = vcombine.low %v8782_v21, %v8786_v26  ;;  %v8818_v45 = vld [vmem:[#allocation19 + $0x168] sm:$0xff] }
0x200e   :  { %v7956_v5 = vld [vmem:[#allocation17 + $0x3a8] sm:$0xff] }
0x200f   :  { %8653 = vmatpush1.bf16.msra.mxu0 %v10453_v20  ;;  %9162 = vmatpush1.bf16.msra.mxu1 %v13620_v46  ;;  %v7920_v20 = vld [vmem:[#allocation17 + $0x288] sm:$0xff]  ;;  %v10549_v4 = vcombine.low %v7952_v16, %v7956_v5 }
0x2010   :  { %8654 = vmatprep.subr.bf16.mxu0 %v10462_v31  ;;  %9163 = vmatprep.subr.bf16.mxu1 %v13623_v62  ;;  %v7924_v31 = vld [vmem:[#allocation17 + $0x2a8] sm:$0xff] }
0x2011   :  { %v8822_v21 = vld [vmem:[#allocation19 + $0x188] sm:$0xff] }
0x2012   :  { %v8826_v26 = vld [vmem:[#allocation19 + $0x1a8] sm:$0xff] }
0x2013   :  { %8655 = vmatpush1.bf16.msra.mxu0 %v10461_v33  ;;  %9164 = vmatpush1.bf16.msra.mxu1 %v13626_v38  ;;  %v10518_v33 = vcombine.high %v7920_v20, %v7924_v31  ;;  %v13694_v51 = vcombine.low %v8822_v21, %v8826_v26 }
0x2014   :  { %8656 = vmatprep.subr.bf16.mxu0 %v10470_v57  ;;  %9165 = vmatprep.subr.bf16.mxu1 %v13629_v30  ;;  %v13666_v57 = vcombine.high %v8790_v41, %v8794_v61 }
0x2017   :  { %8657 = vmatpush1.bf16.msra.mxu0 %v10469_v27  ;;  %9166 = vmatpush1.bf16.msra.mxu1 %v13632_v12  ;;  %v10517_v27 = vcombine.low %v7920_v20, %v7924_v31  ;;  %v10550_v20 = vcombine.high %v7952_v16, %v7956_v5  ;;  %v13691_v31 = vcombine.high %v8822_v21, %v8826_v26  ;;  %v7858_v5 = vld [vmem:[#allocation17 + $0x98] sm:$0xff] }
0x2018   :  { %8658 = vmatprep.subr.bf16.mxu0 %v10478_v6  ;;  %9167 = vmatprep.subr.bf16.mxu1 %v13635_v9  ;;  %v13670_v6 = vcombine.low %v8790_v41, %v8794_v61  ;;  %v7960_v41 = vld [vmem:[#allocation17 + $0x3c8] sm:$0xff]  ;;  %v13706_v16 = vcombine.low %v8776_v60, %v8780_v58  ;;  %v7862_v21 = vld [vmem:[#allocation17 + $0xb8] sm:$0xff] }
0x2019   :  { %v7964_v61 = vld [vmem:[#allocation17 + $0x3e8] sm:$0xff] }
0x201a   :  { %v10558_v44 = vcombine.high %v7960_v41, %v7964_v61 }
0x201b   :  { %8659 = vmatpush1.bf16.msra.mxu0 %v10477_v47  ;;  %9168 = vmatpush1.bf16.msra.mxu1 %v13638_v18  ;;  %v8806_v47 = vld [vmem:[#allocation19 + $0x108] sm:$0xff] }
0x201c   :  { %8660 = vmatprep.subr.bf16.mxu0 %v10486_v11  ;;  %9169 = vmatprep.subr.bf16.mxu1 %v13641_v13  ;;  %v8810_v11 = vld [vmem:[#allocation19 + $0x128] sm:$0xff] }
0x201d   :  { %v13679_v36 = vcombine.high %v8806_v47, %v8810_v11  ;;  %v13682_v7 = vcombine.low %v8806_v47, %v8810_v11  ;;  %v10557_v47 = vcombine.low %v7960_v41, %v7964_v61  ;;  %v10458_v61 = vcombine.high %v7858_v5, %v7862_v21 }
0x201f   :  { %8661 = vmatpush1.bf16.msra.mxu0 %v10485_v43  ;;  %9170 = vmatpush1.bf16.msra.mxu1 %v13644_v10  ;;  %v7944_v43 = vld [vmem:[#allocation17 + $0x348] sm:$0xff] }
0x2020   :  { %8662 = vmatprep.subr.bf16.mxu0 %v10494_v0  ;;  %9171 = vmatprep.subr.bf16.mxu1 %v13647_v29  ;;  %v7948_v0 = vld [vmem:[#allocation17 + $0x368] sm:$0xff] }
0x2023   :  { %8663 = vmatpush1.bf16.msra.mxu0 %v10493_v14  ;;  %9172 = vmatpush1.bf16.msra.mxu1 %v13650_v54  ;;  %v10542_v14 = vcombine.high %v7944_v43, %v7948_v0 }
0x2024   :  { %8664 = vmatprep.subr.bf16.mxu0 %v10502_v63  ;;  %9198 = vmatprep.subr.bf16.mxu1 %v13653_v8  ;;  %v13685_v63 = vcombine.high %v8814_v53, %v8818_v45 }
0x2026   :  { %9190 = vmatmul.mubr.bf16.vlgmr.msra.gmra.mrb[64].mxu1 %v14057_v1 }
0x2027   :  { %8665 = vmatpush1.bf16.msra.mxu0 %v10501_v39  ;;  %9199 = vmatpush1.bf16.msra.mxu1 %v13656_v37  ;;  %v10541_v39 = vcombine.low %v7944_v43, %v7948_v0  ;;  %v7850_v43 = vld [vmem:[#allocation17 + $0x58] sm:$0xff] }
0x2028   :  { %8666 = vmatprep.subr.bf16.mxu0 %v10510_v34  ;;  %9200 = vmatprep.subr.bf16.mxu1 %v13659_v49  ;;  %v13688_v34 = vcombine.low %v8814_v53, %v8818_v45  ;;  %v7854_v0 = vld [vmem:[#allocation17 + $0x78] sm:$0xff] }
0x2029   :  { %9230 = vmatprep.mubr.bf16.mxu1 %v14057_v1  ;;  %v8784_v53 = vld [vmem:[#allocation19 + $0x58] sm:$0xff]  ;;  %v10449_v41 = vcombine.low %v7850_v43, %v7854_v0 }
0x202a   :  { %v8788_v45 = vld [vmem:[#allocation19 + $0x78] sm:$0xff] }
0x202b   :  { %8667 = vmatpush1.bf16.msra.mxu0 %v10509_v19  ;;  %9201 = vmatpush1.bf16.msra.mxu1 %v13663_v40  ;;  %v8830_v19 = vld [vmem:[#allocation19 + $0x1c8] sm:$0xff]  ;;  %v13709_v26 = vcombine.high %v8784_v53, %v8788_v45 }
0x202c   :  { %8668 = vmatprep.subr.bf16.mxu0 %v10518_v33  ;;  %9202 = vmatprep.subr.bf16.mxu1 %v13666_v57  ;;  %v8834_v33 = vld [vmem:[#allocation19 + $0x1e8] sm:$0xff] }
0x202d   :  { %v13697_v55 = vcombine.high %v8830_v19, %v8834_v33  ;;  %v13700_v11 = vcombine.low %v8830_v19, %v8834_v33  ;;  %v13715_v19 = vcombine.low %v8784_v53, %v8788_v45  ;;  %v7866_v33 = vld [vmem:[#allocation17 + $0xd8] sm:$0xff] }
0x202e   :  { %v8812_v53 = vld [vmem:[#allocation19 + $0x138] sm:$0xff] }
0x202f   :  { %8669 = vmatpush1.bf16.msra.mxu0 %v10517_v27  ;;  %9203 = vmatpush1.bf16.msra.mxu1 %v13670_v6  ;;  %v7842_v27 = vld [vmem:[#allocation17 + $0x18] sm:$0xff] }
0x2030   :  { %8670 = vmatprep.subr.bf16.mxu0 %v10526_v22  ;;  %9204 = vmatprep.subr.bf16.mxu1 %v13673_v56  ;;  %v7846_v22 = vld [vmem:[#allocation17 + $0x38] sm:$0xff] }
0x2033   :  { %8671 = vmatpush1.bf16.msra.mxu0 %v10525_v2  ;;  %9205 = vmatpush1.bf16.msra.mxu1 %v13676_v25  ;;  %v10442_v2 = vcombine.high %v7842_v27, %v7846_v22 }
0x2034   :  { %8672 = vmatprep.subr.bf16.mxu0 %v10534_v3  ;;  %9206 = vmatprep.subr.bf16.mxu1 %v13679_v36  ;;  %v13703_v3 = vcombine.high %v8776_v60, %v8780_v58  ;;  %v10457_v60 = vcombine.low %v7858_v5, %v7862_v21  ;;  %v7882_v5 = vld [vmem:[#allocation17 + $0x158] sm:$0xff] }
0x2035   :  { %v7886_v21 = vld [vmem:[#allocation17 + $0x178] sm:$0xff] }
0x2037   :  { %8673 = vmatpush1.bf16.msra.mxu0 %v10533_v52  ;;  %9207 = vmatpush1.bf16.msra.mxu1 %v13682_v7  ;;  %v10441_v52 = vcombine.low %v7842_v27, %v7846_v22  ;;  %v8800_v27 = vld [vmem:[#allocation19 + $0xd8] sm:$0xff] }
0x2038   :  { %8674 = vmatprep.subr.bf16.mxu0 %v10542_v14  ;;  %9208 = vmatprep.subr.bf16.mxu1 %v13685_v63  ;;  %v10450_v14 = vcombine.high %v7850_v43, %v7854_v0  ;;  %v8804_v22 = vld [vmem:[#allocation19 + $0xf8] sm:$0xff] }
0x2039   :  { %v13725_v43 = vcombine.high %v8800_v27, %v8804_v22  ;;  %v8808_v0 = vld [vmem:[#allocation19 + $0x118] sm:$0xff] }
0x203b   :  { %8675 = vmatpush1.bf16.msra.mxu0 %v10541_v39  ;;  %9209 = vmatpush1.bf16.msra.mxu1 %v13688_v34  ;;  %v8792_v39 = vld [vmem:[#allocation19 + $0x98] sm:$0xff]  ;;  %14060 = vst [vmem:[#allocation49_spill] sm:$0xff] %v13725_v43 }
0x203c   :  { %8676 = vmatprep.subr.bf16.mxu0 %v10550_v20  ;;  %9210 = vmatprep.subr.bf16.mxu1 %v13691_v31  ;;  %v8796_v20 = vld [vmem:[#allocation19 + $0xb8] sm:$0xff] }
0x203d   :  { %v13722_v58 = vcombine.low %v8792_v39, %v8796_v20 }
0x203f   :  { %8677 = vmatpush1.bf16.msra.mxu0 %v10549_v4  ;;  %9211 = vmatpush1.bf16.msra.mxu1 %v13694_v51  ;;  %v7870_v4 = vld [vmem:[#allocation17 + $0xf8] sm:$0xff]  ;;  %14059 = vst [vmem:[#allocation48_spill] sm:$0xff] %v13722_v58 }
0x2040   :  { %8678 = vmatprep.subr.bf16.mxu0 %v10558_v44  ;;  %9212 = vmatprep.subr.bf16.mxu1 %v13697_v55  ;;  %v13718_v44 = vcombine.high %v8792_v39, %v8796_v20  ;;  %v10465_v45 = vcombine.low %v7866_v33, %v7870_v4  ;;  %v13731_v39 = vcombine.high %v8808_v0, %v8812_v53  ;;  %v8816_v20 = vld [vmem:[#allocation19 + $0x158] sm:$0xff] }
0x2042   :  { %14058 = vst [vmem:[#allocation47_spill] sm:$0xff] %v13718_v44  ;;  %14062 = vst [vmem:[#allocation51_spill] sm:$0xff] %v13731_v39 }
0x2043   :  { %8679 = vmatpush1.bf16.msra.mxu0 %v10557_v47  ;;  %9213 = vmatpush1.bf16.msra.mxu1 %v13700_v11  ;;  %v7874_v47 = vld [vmem:[#allocation17 + $0x118] sm:$0xff] }
0x2044   :  { %8730 = vmatprep.subr.bf16.mxu0 %v10442_v2  ;;  %9280 = vmatprep.subr.bf16.mxu1 %v13703_v3  ;;  %v7878_v2 = vld [vmem:[#allocation17 + $0x138] sm:$0xff] }
0x2046   :  { %8681 = vmatmul.mubr.bf16.vlgmr.msra.gmra.mrb[72].mxu0 %v13603_v17  ;;  %9231 = vmatmul.mubr.bf16.vlgmr.msra.gmra.mrb[68].mxu1 %v14057_v1 }
0x2047   :  { %8731 = vmatpush1.bf16.msra.mxu0 %v10441_v52  ;;  %8762 = vmatprep.mubr.bf16.mxu0 %v13601_v24  ;;  %v10466_v24 = vcombine.high %v7866_v33, %v7870_v4  ;;  %v10474_v52 = vcombine.high %v7874_v47, %v7878_v2  ;;  %v13734_v33 = vcombine.low %v8808_v0, %v8812_v53  ;;  %v7890_v4 = vld [vmem:[#allocation17 + $0x198] sm:$0xff] }
0x2048   :  { %8732 = vmatprep.subr.bf16.mxu0 %v10450_v14  ;;  %9281 = vmatpush1.bf16.msra.mxu1 %v13706_v16  ;;  %v13728_v14 = vcombine.low %v8800_v27, %v8804_v22  ;;  %v8824_v22 = vld [vmem:[#allocation19 + $0x198] sm:$0xff] }
0x2049   :  { %9282 = vmatprep.subr.bf16.mxu1 %v13709_v26  ;;  %9312 = vmatprep.mubr.bf16.mxu1 %v14057_v1  ;;  %v8832_v53 = vld [vmem:[#allocation19 + $0x1d8] sm:$0xff] }
0x204a   :  { %14061 = vst [vmem:[#allocation50_spill] sm:$0xff] %v13728_v14 }
0x204b   :  { %8733 = vmatpush1.bf16.msra.mxu0 %v10449_v41  ;;  %v8820_v41 = vld [vmem:[#allocation19 + $0x178] sm:$0xff] }
0x204c   :  { %8734 = vmatprep.subr.bf16.mxu0 %v10458_v61  ;;  %9283 = vmatpush1.bf16.msra.mxu1 %v13715_v19  ;;  %v10473_v61 = vcombine.low %v7874_v47, %v7878_v2  ;;  %v13737_v27 = vcombine.high %v8816_v20, %v8820_v41  ;;  %v13740_v47 = vcombine.low %v8816_v20, %v8820_v41  ;;  %v7898_v2 = vld [vmem:[#allocation17 + $0x1d8] sm:$0xff] }
0x204d   :  { %9284 = vmatprep.subr.bf16.mxu1 %v13718_v44  ;;  %v10482_v44 = vcombine.high %v7882_v5, %v7886_v21 }
0x204f   :  { %8735 = vmatpush1.bf16.msra.mxu0 %v10457_v60  ;;  %v7894_v60 = vld [vmem:[#allocation17 + $0x1b8] sm:$0xff] }
0x2050   :  { %8736 = vmatprep.subr.bf16.mxu0 %v10466_v24  ;;  %9285 = vmatpush1.bf16.msra.mxu1 %v13722_v58  ;;  %v8828_v24 = vld [vmem:[#allocation19 + $0x1b8] sm:$0xff]  ;;  %v10490_v58 = vcombine.high %v7890_v4, %v7894_v60 }
0x2051   :  { %9286 = vmatprep.subr.bf16.mxu1 %v13725_v43  ;;  %v10481_v43 = vcombine.low %v7882_v5, %v7886_v21  ;;  %v13743_v0 = vcombine.high %v8824_v22, %v8828_v24  ;;  %v7906_v5 = vld [vmem:[#allocation17 + $0x218] sm:$0xff] }
0x2052   :  { %v7910_v21 = vld [vmem:[#allocation17 + $0x238] sm:$0xff] }
0x2053   :  { %8737 = vmatpush1.bf16.msra.mxu0 %v10465_v45  ;;  %v7902_v45 = vld [vmem:[#allocation17 + $0x1f8] sm:$0xff]  ;;  %14063 = vst [vmem:[#allocation52_spill] sm:$0xff] %v13743_v0 }
0x2054   :  { %8738 = vmatprep.subr.bf16.mxu0 %v10474_v52  ;;  %9287 = vmatpush1.bf16.msra.mxu1 %v13728_v14  ;;  %v8836_v52 = vld [vmem:[#allocation19 + $0x1f8] sm:$0xff]  ;;  %v10498_v14 = vcombine.high %v7898_v2, %v7902_v45  ;;  %v10497_v41 = vcombine.low %v7898_v2, %v7902_v45 }
0x2055   :  { %9288 = vmatprep.subr.bf16.mxu1 %v13731_v39  ;;  %v10489_v39 = vcombine.low %v7890_v4, %v7894_v60  ;;  %v13749_v20 = vcombine.high %v8832_v53, %v8836_v52  ;;  %v7918_v4 = vld [vmem:[#allocation17 + $0x278] sm:$0xff]  ;;  %v10505_v60 = vcombine.low %v7906_v5, %v7910_v21 }
0x2056   :  { %v7930_v2 = vld [vmem:[#allocation17 + $0x2d8] sm:$0xff] }
0x2057   :  { %8739 = vmatpush1.bf16.msra.mxu0 %v10473_v61  ;;  %v10506_v61 = vcombine.high %v7906_v5, %v7910_v21  ;;  %v7934_v45 = vld [vmem:[#allocation17 + $0x2f8] sm:$0xff] }
0x2058   :  { %8740 = vmatprep.subr.bf16.mxu0 %v10482_v44  ;;  %9289 = vmatpush1.bf16.msra.mxu1 %v13734_v33  ;;  %v13746_v44 = vcombine.low %v8824_v22, %v8828_v24  ;;  %v7922_v24 = vld [vmem:[#allocation17 + $0x298] sm:$0xff]  ;;  %v10529_v21 = vcombine.low %v7930_v2, %v7934_v45 }
0x2059   :  { %9290 = vmatprep.subr.bf16.mxu1 %v13737_v27  ;;  %v7942_v5 = vld [vmem:[#allocation17 + $0x338] sm:$0xff] }
0x205b   :  { %8741 = vmatpush1.bf16.msra.mxu0 %v10481_v43  ;;  %v13752_v43 = vcombine.low %v8832_v53, %v8836_v52  ;;  %v10530_v52 = vcombine.high %v7930_v2, %v7934_v45  ;;  %v8795_v2 = vld [vmem:[#allocation19 + $0xb0] sm:$0xff] }
0x205c   :  { %8742 = vmatprep.subr.bf16.mxu0 %v10490_v58  ;;  %9291 = vmatpush1.bf16.msra.mxu1 %v13740_v47  ;;  %v7914_v58 = vld [vmem:[#allocation17 + $0x258] sm:$0xff]  ;;  %v8799_v45 = vld [vmem:[#allocation19 + $0xd0] sm:$0xff] }
0x205d   :  { %9292 = vmatprep.subr.bf16.mxu1 %v13743_v0  ;;  %v10514_v22 = vcombine.high %v7914_v58, %v7918_v4  ;;  %v7926_v0 = vld [vmem:[#allocation17 + $0x2b8] sm:$0xff] }
0x205e   :  { %v10521_v53 = vcombine.low %v7922_v24, %v7926_v0 }
0x205f   :  { %8743 = vmatpush1.bf16.msra.mxu0 %v10489_v39  ;;  %v10522_v39 = vcombine.high %v7922_v24, %v7926_v0  ;;  %v8779_v24 = vld [vmem:[#allocation19 + $0x30] sm:$0xff] }
0x2060   :  { %8744 = vmatprep.subr.bf16.mxu0 %v10498_v14  ;;  %9293 = vmatpush1.bf16.msra.mxu1 %v13746_v44  ;;  %v10513_v14 = vcombine.low %v7914_v58, %v7918_v4  ;;  %v7958_v58 = vld [vmem:[#allocation17 + $0x3b8] sm:$0xff] }
0x2061   :  { %9294 = vmatprep.subr.bf16.mxu1 %v13749_v20 }
0x2063   :  { %8745 = vmatpush1.bf16.msra.mxu0 %v10497_v41  ;;  %v7946_v41 = vld [vmem:[#allocation17 + $0x358] sm:$0xff] }
0x2064   :  { %8746 = vmatprep.subr.bf16.mxu0 %v10506_v61  ;;  %9295 = vmatpush1.bf16.msra.mxu1 %v13752_v43 }
0x2065   :  { %9449 = vmatprep.subr.bf16.mxu1 %v13653_v8  ;;  %v7938_v8 = vld [vmem:[#allocation17 + $0x318] sm:$0xff] }
0x2066   :  { %v10537_v0 = vcombine.low %v7938_v8, %v7942_v5 }
0x2067   :  { %8747 = vmatpush1.bf16.msra.mxu0 %v10505_v60  ;;  %9313 = vmatmul.mubr.bf16.vlgmr.msra.gmra.mrb[72].mxu1 %v14057_v1  ;;  %v7966_v60 = vld [vmem:[#allocation17 + $0x3f8] sm:$0xff] }
0x2068   :  { %8748 = vmatprep.subr.bf16.mxu0 %v10514_v22  ;;  %9450 = vmatpush1.bf16.msra.mxu1 %v13656_v37  ;;  %v10538_v37 = vcombine.high %v7938_v8, %v7942_v5 }
0x2069   :  { %9451 = vmatprep.subr.bf16.mxu1 %v13659_v49  ;;  %9481 = vmatprep.mubr.bf16.mxu1 %v14057_v1  ;;  %v7950_v49 = vld [vmem:[#allocation17 + $0x378] sm:$0xff] }
0x206a   :  { %v10546_v61 = vcombine.high %v7946_v41, %v7950_v49 }
0x206b   :  { %8749 = vmatpush1.bf16.msra.mxu0 %v10513_v14 }
0x206c   :  { %8750 = vmatprep.subr.bf16.mxu0 %v10522_v39  ;;  %9452 = vmatpush1.bf16.msra.mxu1 %v13663_v40  ;;  %v7954_v40 = vld [vmem:[#allocation17 + $0x398] sm:$0xff]  ;;  %v8787_v39 = vld [vmem:[#allocation19 + $0x70] sm:$0xff] }
0x206d   :  { %9453 = vmatprep.subr.bf16.mxu1 %v13666_v57  ;;  %v10545_v57 = vcombine.low %v7946_v41, %v7950_v49  ;;  %v10554_v4 = vcombine.high %v7954_v40, %v7958_v58 }
0x206f   :  { %8751 = vmatpush1.bf16.msra.mxu0 %v10521_v53  ;;  %v8803_v53 = vld [vmem:[#allocation19 + $0xf0] sm:$0xff] }
0x2070   :  { %8752 = vmatprep.subr.bf16.mxu0 %v10530_v52  ;;  %9454 = vmatpush1.bf16.msra.mxu1 %v13670_v6  ;;  %v7962_v6 = vld [vmem:[#allocation17 + $0x3d8] sm:$0xff]  ;;  %v8811_v52 = vld [vmem:[#allocation19 + $0x130] sm:$0xff]  ;;  %v13797_v8 = vcombine.low %v8799_v45, %v8803_v53 }
0x2071   :  { %9455 = vmatprep.subr.bf16.mxu1 %v13673_v56  ;;  %v10553_v56 = vcombine.low %v7954_v40, %v7958_v58  ;;  %v10562_v22 = vcombine.high %v7962_v6, %v7966_v60 }
0x2073   :  { %8753 = vmatpush1.bf16.msra.mxu0 %v10529_v21  ;;  %v8815_v21 = vld [vmem:[#allocation19 + $0x150] sm:$0xff] }
0x2074   :  { %8754 = vmatprep.subr.bf16.mxu0 %v10538_v37  ;;  %9456 = vmatpush1.bf16.msra.mxu1 %v13676_v25  ;;  %v8775_v25 = vld [vmem:[#allocation19 + $0x10] sm:$0xff] }
0x2075   :  { %9457 = vmatprep.subr.bf16.mxu1 %v13679_v36  ;;  %v10561_v36 = vcombine.low %v7962_v6, %v7966_v60  ;;  %v13771_v14 = vcombine.high %v8775_v25, %v8779_v24  ;;  %v8819_v37 = vld [vmem:[#allocation19 + $0x170] sm:$0xff] }
0x2076   :  { %v13806_v49 = vcombine.high %v8815_v21, %v8819_v37  ;;  %v13809_v40 = vcombine.low %v8815_v21, %v8819_v37  ;;  %v8771_v21 = vld [vmem:[%s14064_s12] sm:$0xf] }
0x2077   :  { %8755 = vmatpush1.bf16.msra.mxu0 %v10537_v0  ;;  %v8823_v0 = vld [vmem:[#allocation19 + $0x190] sm:$0xff]  ;;  %v13863_v37 = vrot.slane %v8771_v21, %v12652_v32 }
0x2078   :  { %8756 = vmatprep.subr.bf16.mxu0 %v10546_v61  ;;  %9458 = vmatpush1.bf16.msra.mxu1 %v13682_v7  ;;  %v8783_v7 = vld [vmem:[#allocation19 + $0x50] sm:$0xff] }
0x2079   :  { %9459 = vmatprep.subr.bf16.mxu1 %v13685_v63  ;;  %v13775_v63 = vcombine.low %v8775_v25, %v8779_v24  ;;  %v8827_v61 = vld [vmem:[#allocation19 + $0x1b0] sm:$0xff] }
0x207a   :  { %v13812_v58 = vcombine.high %v8823_v0, %v8827_v61  ;;  %v13815_v6 = vcombine.low %v8823_v0, %v8827_v61  ;;  %v13869_v61 = vrot.slane %v8771_v21, %v12657_v35 }
0x207b   :  { %8757 = vmatpush1.bf16.msra.mxu0 %v10545_v57  ;;  %v8831_v57 = vld [vmem:[#allocation19 + $0x1d0] sm:$0xff] }
0x207c   :  { %8758 = vmatprep.subr.bf16.mxu0 %v10554_v4  ;;  %9460 = vmatpush1.bf16.msra.mxu1 %v13688_v34  ;;  %v13778_v34 = vcombine.high %v8783_v7, %v8787_v39  ;;  %v8835_v4 = vld [vmem:[#allocation19 + $0x1f0] sm:$0xff] }
0x207d   :  { %9461 = vmatprep.subr.bf16.mxu1 %v13691_v31  ;;  %v8791_v31 = vld [vmem:[#allocation19 + $0x90] sm:$0xff]  ;;  %v13818_v60 = vcombine.high %v8831_v57, %v8835_v4 }
0x207f   :  { %8759 = vmatpush1.bf16.msra.mxu0 %v10553_v56  ;;  %v13821_v56 = vcombine.low %v8831_v57, %v8835_v4 }
0x2080   :  { %8760 = vmatprep.subr.bf16.mxu0 %v10562_v22  ;;  %9462 = vmatpush1.bf16.msra.mxu1 %v13694_v51  ;;  %v13784_v51 = vcombine.low %v8783_v7, %v8787_v39 }
0x2081   :  { %9463 = vmatprep.subr.bf16.mxu1 %v13697_v55  ;;  %v13788_v55 = vcombine.high %v8791_v31, %v8795_v2 }
0x2083   :  { %8761 = vmatpush1.bf16.msra.mxu0 %v10561_v36 }
0x2084   :  { %9239 = vmatprep.subr.bf16.mxu0 %v13771_v14  ;;  %9464 = vmatpush1.bf16.msra.mxu1 %v13700_v11  ;;  %v13791_v11 = vcombine.low %v8791_v31, %v8795_v2 }
0x2085   :  { %9531 = vmatprep.subr.bf16.mxu1 %v13703_v3  ;;  %v13794_v3 = vcombine.high %v8799_v45, %v8803_v53 }
0x2086   :  { %8763 = vmatmul.mubr.bf16.vlgmr.msra.gmra.mrb[76].mxu0 %v13603_v17  ;;  %v8807_v17 = vld [vmem:[#allocation19 + $0x110] sm:$0xff] }
0x2087   :  { %9240 = vmatpush1.bf16.msra.mxu0 %v13775_v63  ;;  %9271 = vmatprep.mubr.bf16.mxu0 %v14057_v1  ;;  %v13800_v5 = vcombine.high %v8807_v17, %v8811_v52  ;;  %v13803_v41 = vcombine.low %v8807_v17, %v8811_v52  ;;  %v8772_v52 = vld [vmem:[%s12508_s4] sm:$0xf] }
0x2088   :  { %9241 = vmatprep.subr.bf16.mxu0 %v13778_v34  ;;  %v13866_v0 = vrot.slane %v8772_v52, %v12652_v32  ;;  %v13874_v4 = vrot.slane %v8772_v52, %v12657_v35 }
0x208b   :  { %9242 = vmatpush1.bf16.msra.mxu0 %v13784_v51 }
0x208c   :  { %9243 = vmatprep.subr.bf16.mxu0 %v13788_v55 }
0x208f   :  { %9244 = vmatpush1.bf16.msra.mxu0 %v13791_v11 }
0x2090   :  { %9245 = vmatprep.subr.bf16.mxu0 %v13794_v3 }
0x2093   :  { %9246 = vmatpush1.bf16.msra.mxu0 %v13797_v8 }
0x2094   :  { %9247 = vmatprep.subr.bf16.mxu0 %v13800_v5 }
0x2097   :  { %9248 = vmatpush1.bf16.msra.mxu0 %v13803_v41 }
0x2098   :  { %9249 = vmatprep.subr.bf16.mxu0 %v13806_v49 }
0x209b   :  { %9250 = vmatpush1.bf16.msra.mxu0 %v13809_v40 }
0x209c   :  { %9251 = vmatprep.subr.bf16.mxu0 %v13812_v58 }
0x209f   :  { %9252 = vmatpush1.bf16.msra.mxu0 %v13815_v6 }
0x20a0   :  { %9253 = vmatprep.subr.bf16.mxu0 %v13818_v60 }
0x20a3   :  { %9254 = vmatpush1.bf16.msra.mxu0 %v13821_v56 }
0x20a4   :  { %9408 = vmatprep.subr.bf16.mxu0 %v13586_v23 }
0x20a6   :  { %9272 = vmatmul.mubr.bf16.vlgmr.msra.gmra.mrb[80].mxu0 %v14057_v1 }
0x20a7   :  { %9409 = vmatpush1.bf16.msra.mxu0 %v13584_v42  ;;  %9440 = vmatprep.mubr.bf16.mxu0 %v14057_v1 }
0x20a8   :  { %9410 = vmatprep.subr.bf16.mxu0 %v13607_v28 }
0x20ab   :  { %9411 = vmatpush1.bf16.msra.mxu0 %v13612_v15 }
0x20ac   :  { %9412 = vmatprep.subr.bf16.mxu0 %v13615_v59 }
0x20af   :  { %9413 = vmatpush1.bf16.msra.mxu0 %v13620_v46 }
0x20b0   :  { %9414 = vmatprep.subr.bf16.mxu0 %v13623_v62 }
0x20b3   :  { %9415 = vmatpush1.bf16.msra.mxu0 %v13626_v38 }
0x20b4   :  { %9416 = vmatprep.subr.bf16.mxu0 %v13629_v30 }
0x20b7   :  { %9417 = vmatpush1.bf16.msra.mxu0 %v13632_v12 }
0x20b8   :  { %9418 = vmatprep.subr.bf16.mxu0 %v13635_v9 }
0x20bb   :  { %9419 = vmatpush1.bf16.msra.mxu0 %v13638_v18 }
0x20bc   :  { %9420 = vmatprep.subr.bf16.mxu0 %v13641_v13 }
0x20bf   :  { %9421 = vmatpush1.bf16.msra.mxu0 %v13644_v10 }
0x20c0   :  { %9422 = vmatprep.subr.bf16.mxu0 %v13647_v29 }
0x20c3   :  { %9423 = vmatpush1.bf16.msra.mxu0 %v13650_v54 }
0x20c4   :  { %9490 = vmatprep.subr.bf16.mxu0 %v13771_v14 }
0x20d9   :  { %v13844_v42 = vpop.f32.mrb[68].mxu0  ;;  %v13846_v23 = vpop.f32.mrb[60].mxu1 }
0x20da   :  { %v13848_v28 = vpop.f32.mrb[69].mxu0  ;;  %v13850_v15 = vpop.f32.mrb[61].mxu1 }
0x20db   :  { %v8645_v59 = vpop.f32.mrb[70].mxu0  ;;  %v8727_v46 = vpop.f32.mrb[62].mxu1 }
0x20dc   :  { %v8646_v62 = vpop.f32.mrb[71].mxu0  ;;  %v8728_v38 = vpop.f32.mrb[63].mxu1 }
0x20f9   :  { %v9191_v30 = vpop.f32.mrb[64].mxu1 }
0x20fa   :  { %v9321_v12 = vadd.f32 %v9191_v30, %v13844_v42  ;;  %v9193_v9 = vpop.f32.mrb[65].mxu1 }
0x20fb   :  { %v9322_v18 = vadd.f32 %v9193_v9, %v13848_v28  ;;  %v9195_v13 = vpop.f32.mrb[66].mxu1 }
0x20fc   :  { %v9196_v10 = vpop.f32.mrb[67].mxu1 }
0x2119   :  { %v13854_v29 = vpop.f32.mrb[72].mxu0  ;;  %v9232_v54 = vpop.f32.mrb[68].mxu1 }
0x211a   :  { %v9323_v22 = vadd.f32 %v9232_v54, %v13854_v29  ;;  %v13857_v25 = vpop.f32.mrb[73].mxu0  ;;  %v9234_v24 = vpop.f32.mrb[69].mxu1 }
0x211b   :  { %v9324_v36 = vadd.f32 %v9234_v24, %v13857_v25  ;;  %v8686_v14 = vpop.f32.mrb[74].mxu0  ;;  %v9236_v7 = vpop.f32.mrb[70].mxu1  ;;  %v13887_v24 = vrot.slane %v8771_v21, %v12624_v50 }
0x211c   :  { %v8687_v39 = vpop.f32.mrb[75].mxu0  ;;  %v9237_v31 = vpop.f32.mrb[71].mxu1  ;;  %v9348_v30 = vadd.f32 %v13863_v37, %v9323_v22  ;;  %v13890_v14 = vrot.slane %v8772_v52, %v12624_v50  ;;  %v13893_v7 = vrot.slane %v8771_v21, %v12620_v48 }
0x211d   :  { %v9349_v13 = vadd.f32 %v13869_v61, %v9324_v36  ;;  %v13896_v39 = vrot.slane %v8772_v52, %v12620_v48 }
0x211e   :  { %v9347_v50 = vadd.f32 %v13893_v7, %v9322_v18 }
0x213a   :  { %v9314_v2 = vpop.f32.mrb[72].mxu1 }
0x213b   :  { %v9316_v45 = vpop.f32.mrb[73].mxu1 }
0x213c   :  { %v9318_v53 = vpop.f32.mrb[74].mxu1 }
0x213d   :  { %v9319_v17 = vpop.f32.mrb[75].mxu1  ;;  %v9346_v53 = vadd.f32 %v13887_v24, %v9321_v12 }
0x2159   :  { %v13871_v57 = vpop.f32.mrb[76].mxu0 }
0x215a   :  { %v9352_v59 = vadd.f32 %v9314_v2, %v13871_v57  ;;  %v13877_v46 = vpop.f32.mrb[77].mxu0 }
0x215b   :  { %v9353_v62 = vadd.f32 %v9316_v45, %v13877_v46  ;;  %v8768_v38 = vpop.f32.mrb[78].mxu0 }
0x215c   :  { %v9377_v32 = vadd.f32 %v13866_v0, %v9352_v59  ;;  %v8769_v9 = vpop.f32.mrb[79].mxu0 }
0x215d   :  { %v9378_v10 = vadd.f32 %v13874_v4, %v9353_v62 }
0x215e   :  { %v9381_v54 = vsel %vm7834_vm3, %v9348_v30, %v9377_v32 }
0x215f   :  { %v9382_v35 = vsel %vm7834_vm3, %v9349_v13, %v9378_v10 }
0x2160   :  { %v10629_v30 = vmul.f32 -1.442695, %v9382_v35 }
0x2179   :  { %v9273_v22 = vpop.f32.mrb[80].mxu0 }
0x217a   :  { %v9350_v36 = vadd.f32 %v9273_v22, %v13846_v23  ;;  %v9275_v31 = vpop.f32.mrb[81].mxu0 }
0x217b   :  { %v9351_v2 = vadd.f32 %v9275_v31, %v13850_v15  ;;  %v9277_v45 = vpop.f32.mrb[82].mxu0 }
0x217c   :  { %v9375_v17 = vadd.f32 %v13890_v14, %v9350_v36  ;;  %v9278_v59 = vpop.f32.mrb[83].mxu0 }
0x217d   :  { %v9376_v21 = vadd.f32 %v13896_v39, %v9351_v2 }
0x217e   :  { %v9379_v62 = vsel %vm7834_vm3, %v9346_v53, %v9375_v17 }
0x217f   :  { %v10627_v38 = vmul.f32 -1.442695, %v9379_v62  ;;  %v9380_v48 = vsel %vm7834_vm3, %v9347_v50, %v9376_v21  ;;  %v14065_v50 = vld [vmem:[#allocation47_spill] sm:$0xff]  ;;  %v9677_v21 = vld [vmem:[%s12513_s9 + $0x30] sm:$0xff] }
0x2180   :  { %v10628_v52 = vmul.f32 -1.442695, %v9380_v48  ;;  %v9695_v48 = vld [vmem:[%s12513_s9 + $0xc0] sm:$0xff] }
0x2181   :  { %11961 = vpow2.f32 %v10627_v38  ;;  %v9678_v38 = vld [vmem:[%s12513_s9 + $0x38] sm:$0xff] }
0x2182   :  { %11963 = vpow2.f32 %v10628_v52  ;;  %v9696_v52 = vld [vmem:[%s12513_s9 + $0xc8] sm:$0xff] }
0x2183   :  { %11965 = vpow2.f32 %v10629_v30  ;;  %v10907_v30 = vpack.c.bf16 %v9678_v38, %v9677_v21 }
0x2184   :  { %11967 = vtanh.f32 %v9381_v54 }
0x218b   :  { %v11962_v32 = vpop.eup %11961 }
0x218c   :  { %v11964_v9 = vpop.eup %11963  ;;  %v9386_v12 = vadd.f32 1.0, %v11962_v32  ;;  %v10909_v32 = vpack.c.bf16 %v9696_v52, %v9695_v48 }
0x218d   :  { %v9392_v13 = vadd.f32 1.0, %v11964_v9  ;;  %v11966_v18 = vpop.eup %11965  ;;  %v9679_v9 = vld [vmem:[%s12513_s9 + $0x40] sm:$0xff] }
0x218e   :  { %11969 = vrcp.f32 %v9386_v12  ;;  %v11968_v10 = vpop.eup %11967  ;;  %v9399_v31 = vadd.f32 1.0, %v11966_v18  ;;  %v9680_v12 = vld [vmem:[%s12513_s9 + $0x48] sm:$0xff]  ;;  %v9698_v18 = vld [vmem:[%s12513_s9 + $0xd8] sm:$0xff] }
0x218f   :  { %11971 = vrcp.f32 %v9392_v13  ;;  %v9697_v13 = vld [vmem:[%s12513_s9 + $0xd0] sm:$0xff] }
0x2190   :  { %11973 = vrcp.f32 %v9399_v31  ;;  %v9682_v31 = vld [vmem:[%s12513_s9 + $0x58] sm:$0xff] }
0x2198   :  { %v11970_v22 = vpop.eup %11969 }
0x2199   :  { %v11972_v36 = vpop.eup %11971  ;;  %v9403_v2 = vmul.f32 %v11970_v22, %v11968_v10  ;;  %v10911_v10 = vpack.c.bf16 %v9680_v12, %v9679_v9  ;;  %v10913_v22 = vpack.c.bf16 %v9698_v18, %v9697_v13 }
0x219a   :  { %v9402_v45 = vmul.f32 0.0, %v11972_v36  ;;  %v11974_v35 = vpop.eup %11973  ;;  %v9681_v36 = vld [vmem:[%s12513_s9 + $0x50] sm:$0xff] }
0x219c   :  { %v13906_v53 = vadd.f32 %v9403_v2, %v9402_v45  ;;  %v9699_v2 = vld [vmem:[%s12513_s9 + $0xe0] sm:$0xff]  ;;  %v9700_v45 = vld [vmem:[%s12513_s9 + $0xe8] sm:$0xff] }
0x219e   :  { %11975 = vtanh.f32 %v13906_v53 }
0x21a8   :  { %v11976_v17 = vpop.eup %11975 }
0x21a9   :  { %v13909_v59 = vmul.f32 %v11976_v17, %v11974_v35  ;;  %v10915_v35 = vpack.c.bf16 %v9682_v31, %v9681_v36  ;;  %v10917_v17 = vpack.c.bf16 %v9700_v45, %v9699_v2 }
0x21ab   :  { %v9407_v54 = vpack.c.bf16 %v13909_v59, %v13909_v59 }
0x21ad   :  { %9441 = vmatmul.mubr.bf16.vlgmr.msra.gmra.mrb[84].mxu0 %v9407_v54  ;;  %9482 = vmatmul.mubr.bf16.vlgmr.msra.gmra.mrb[76].mxu1 %v9407_v54 }
0x21ae   :  { %9491 = vmatpush1.bf16.msra.mxu0 %v13775_v63  ;;  %9532 = vmatpush1.bf16.msra.mxu1 %v13706_v16  ;;  %v14066_v63 = vld [vmem:[#allocation48_spill] sm:$0xff]  ;;  %v14067_v16 = vld [vmem:[#allocation49_spill] sm:$0xff] }
0x21af   :  { %9492 = vmatprep.subr.bf16.mxu0 %v13778_v34  ;;  %9533 = vmatprep.subr.bf16.mxu1 %v13709_v26  ;;  %v14068_v26 = vld [vmem:[#allocation50_spill] sm:$0xff] }
0x21b0   :  { %9522 = vmatprep.mubr.bf16.mxu0 %v14057_v1  ;;  %9563 = vmatprep.mubr.bf16.mxu1 %v14057_v1  ;;  %v14069_v1 = vld [vmem:[#allocation51_spill] sm:$0xff] }
0x21b1   :  { %v9671_v34 = vld [vmem:[%s12513_s9] sm:$0xff] }
0x21b2   :  { %9493 = vmatpush1.bf16.msra.mxu0 %v13784_v51  ;;  %9534 = vmatpush1.bf16.msra.mxu1 %v13715_v19  ;;  %v14070_v19 = vld [vmem:[#allocation52_spill] sm:$0xff] }
0x21b3   :  { %9494 = vmatprep.subr.bf16.mxu0 %v13788_v55  ;;  %9535 = vmatprep.subr.bf16.mxu1 %v14065_v50  ;;  %v9690_v55 = vld [vmem:[%s12513_s9 + $0x98] sm:$0xff]  ;;  %v9684_v50 = vld [vmem:[%s12513_s9 + $0x68] sm:$0xff] }
0x21b6   :  { %9495 = vmatpush1.bf16.msra.mxu0 %v13791_v11  ;;  %9536 = vmatpush1.bf16.msra.mxu1 %v14066_v63  ;;  %v9673_v11 = vld [vmem:[%s12513_s9 + $0x10] sm:$0xff] }
0x21b7   :  { %9496 = vmatprep.subr.bf16.mxu0 %v13794_v3  ;;  %9537 = vmatprep.subr.bf16.mxu1 %v14067_v16  ;;  %v9674_v3 = vld [vmem:[%s12513_s9 + $0x18] sm:$0xff]  ;;  %v9701_v63 = vld [vmem:[%s12513_s9 + $0xf0] sm:$0xff] }
0x21b8   :  { %v9702_v16 = vld [vmem:[%s12513_s9 + $0xf8] sm:$0xff] }
0x21ba   :  { %9497 = vmatpush1.bf16.msra.mxu0 %v13797_v8  ;;  %9538 = vmatpush1.bf16.msra.mxu1 %v14068_v26  ;;  %v10899_v8 = vpack.c.bf16 %v9674_v3, %v9673_v11 }
0x21bb   :  { %9498 = vmatprep.subr.bf16.mxu0 %v13800_v5  ;;  %9539 = vmatprep.subr.bf16.mxu1 %v14069_v1  ;;  %v9691_v5 = vld [vmem:[%s12513_s9 + $0xa0] sm:$0xff]  ;;  %v10921_v1 = vpack.c.bf16 %v9702_v16, %v9701_v63 }
0x21be   :  { %9499 = vmatpush1.bf16.msra.mxu0 %v13803_v41  ;;  %9540 = vmatpush1.bf16.msra.mxu1 %v13734_v33  ;;  %v9687_v33 = vld [vmem:[%s12513_s9 + $0x80] sm:$0xff]  ;;  %v9692_v41 = vld [vmem:[%s12513_s9 + $0xa8] sm:$0xff] }
0x21bf   :  { %9500 = vmatprep.subr.bf16.mxu0 %v13806_v49  ;;  %9541 = vmatprep.subr.bf16.mxu1 %v13737_v27  ;;  %v9688_v27 = vld [vmem:[%s12513_s9 + $0x88] sm:$0xff]  ;;  %v10901_v49 = vpack.c.bf16 %v9692_v41, %v9691_v5 }
0x21c2   :  { %9501 = vmatpush1.bf16.msra.mxu0 %v13809_v40  ;;  %9542 = vmatpush1.bf16.msra.mxu1 %v13740_v47  ;;  %v10893_v47 = vpack.c.bf16 %v9688_v27, %v9687_v33  ;;  %v9675_v40 = vld [vmem:[%s12513_s9 + $0x20] sm:$0xff]  ;;  %v9686_v33 = vld [vmem:[%s12513_s9 + $0x78] sm:$0xff] }
0x21c3   :  { %9502 = vmatprep.subr.bf16.mxu0 %v13812_v58  ;;  %9543 = vmatprep.subr.bf16.mxu1 %v14070_v19  ;;  %v9676_v58 = vld [vmem:[%s12513_s9 + $0x28] sm:$0xff]  ;;  %v9685_v19 = vld [vmem:[%s12513_s9 + $0x70] sm:$0xff] }
0x21c4   :  { %v10923_v27 = vpack.c.bf16 %v9686_v33, %v9685_v19 }
0x21c6   :  { %9503 = vmatpush1.bf16.msra.mxu0 %v13815_v6  ;;  %9544 = vmatpush1.bf16.msra.mxu1 %v13746_v44  ;;  %v9672_v44 = vld [vmem:[%s12513_s9 + $0x8] sm:$0xff]  ;;  %v10903_v6 = vpack.c.bf16 %v9676_v58, %v9675_v40 }
0x21c7   :  { %9504 = vmatprep.subr.bf16.mxu0 %v13818_v60  ;;  %9545 = vmatprep.subr.bf16.mxu1 %v13749_v20  ;;  %v10895_v51 = vpack.c.bf16 %v9672_v44, %v9671_v34  ;;  %v9689_v20 = vld [vmem:[%s12513_s9 + $0x90] sm:$0xff] }
0x21c8   :  { %v9693_v60 = vld [vmem:[%s12513_s9 + $0xb0] sm:$0xff] }
0x21ca   :  { %9505 = vmatpush1.bf16.msra.mxu0 %v13821_v56  ;;  %9546 = vmatpush1.bf16.msra.mxu1 %v13752_v43  ;;  %v10897_v43 = vpack.c.bf16 %v9690_v55, %v9689_v20  ;;  %v9694_v56 = vld [vmem:[%s12513_s9 + $0xb8] sm:$0xff] }
0x21cb   :  { %10894 = vmatprep.subr.bf16.mxu0 %v10893_v47  ;;  %v10905_v62 = vpack.c.bf16 %v9694_v56, %v9693_v60 }
0x21cd   :  { %9523 = vmatmul.mubr.bf16.vlgmr.msra.gmra.mrb[88].mxu0 %v9407_v54  ;;  %9564 = vmatmul.mubr.bf16.vlgmr.msra.gmra.mrb[80].mxu1 %v9407_v54  ;;  %v9683_v54 = vld [vmem:[%s12513_s9 + $0x60] sm:$0xff]  ;;  %s12334_s9 = smov [#allocation20]  }
0x21ce   :  { %10896 = vmatpush3.bf16.msra.mxu0 %v10895_v51  ;;  %v10919_v26 = vpack.c.bf16 %v9684_v50, %v9683_v54 }
0x21cf   :  { %10898 = vmatprep.subr.bf16.mxu0 %v10897_v43 }
0x21d2   :  { %10900 = vmatpush3.bf16.msra.mxu0 %v10899_v8 }
0x21d3   :  { %10902 = vmatprep.subr.bf16.mxu0 %v10901_v49 }
0x21d6   :  { %10904 = vmatpush3.bf16.msra.mxu0 %v10903_v6 }
0x21d7   :  { %10906 = vmatprep.subr.bf16.mxu0 %v10905_v62 }
0x21da   :  { %10908 = vmatpush3.bf16.msra.mxu0 %v10907_v30 }
0x21db   :  { %10910 = vmatprep.subr.bf16.mxu0 %v10909_v32 }
0x21de   :  { %10912 = vmatpush3.bf16.msra.mxu0 %v10911_v10 }
0x21df   :  { %10914 = vmatprep.subr.bf16.mxu0 %v10913_v22 }
0x21e2   :  { %10916 = vmatpush3.bf16.msra.mxu0 %v10915_v35 }
0x21e3   :  { %10918 = vmatprep.subr.bf16.mxu0 %v10917_v17 }
0x21e6   :  { %10920 = vmatpush3.bf16.msra.mxu0 %v10919_v26 }
0x21e7   :  { %10922 = vmatprep.subr.bf16.mxu0 %v10921_v1 }
0x21ea   :  { %10924 = vmatpush3.bf16.msra.mxu0 %v10923_v27 }
0x2280   :  { %v9442_v47 = vpop.f32.mrb[84].mxu0  ;;  %v9483_v34 = vpop.f32.mrb[76].mxu1 }
0x2281   :  { %v9576_v44 = vrot.slane %v9442_v47, 7  ;;  %v9578_v51 = vrot.slane %v9483_v34, 7  ;;  %v9444_v20 = vpop.f32.mrb[85].mxu0  ;;  %v9485_v55 = vpop.f32.mrb[77].mxu1 }
0x2282   :  { %v9577_v43 = vrot.slane %v9444_v20, 7  ;;  %v9579_v11 = vrot.slane %v9485_v55, 7  ;;  %v9446_v3 = vpop.f32.mrb[86].mxu0  ;;  %v9487_v8 = vpop.f32.mrb[78].mxu1 }
0x2283   :  { %v9584_v5 = vadd.f32 %v9576_v44, %v13844_v42  ;;  %v9586_v41 = vadd.f32 %v9578_v51, %v13854_v29  ;;  %v9447_v49 = vpop.f32.mrb[87].mxu0  ;;  %v9488_v40 = vpop.f32.mrb[79].mxu1 }
0x2284   :  { %v9585_v58 = vadd.f32 %v9577_v43, %v13848_v28  ;;  %v9587_v6 = vadd.f32 %v9579_v11, %v13857_v25  ;;  %v10633_v40 = vld [vmem:[%s12518_s3] ss:$0 sm:$0xff]  ;;  %s9807_s3 = sshll.u32 %s12334_s9, 4  ;;  %s9808_s3 = int_to_ptr.vmem [resolvable:$true] %s9807_s3 }
0x2285   :  { %v9588_v42 = vadd.f32 %v9584_v5, %v13887_v24  ;;  %v9590_v29 = vadd.f32 %v9586_v41, %v13863_v37  ;;  %s12239_s4 = scalar_lea.vmem %s9808_s3, 32  ;;  %p12244_p5 = scmp.lt.s32.totalorder %s9808_s3, %s9808_s3 }
0x2286   :  { %v9589_v18 = vadd.f32 %v9585_v58, %v13893_v7  ;;  %v9591_v10 = vadd.f32 %v9587_v6, %v13869_v61  ;;  %p12240_p4 = scmp.ne.s32.totalorder %s9808_s3, %s12239_s4  ;;  %p12245_p6 = scmp.lt.s32.totalorder %s12239_s4, %s12239_s4 }
0x2287   :  { %v9616_v2 = vrot.slane %v9588_v42, 1 }
0x2288   :  { %v9617_v17 = vrot.slane %v9589_v18, 1  ;;  %v9619_v7 = vrot.slane %v9591_v10, 1  ;;  %p12246_p7 = por %p12245_p6, %p12244_p5 }
0x228a   :  { %p12247_p8 = pnand %p12246_p7, %p12240_p4 }
0x22a0   :  { %v9524_v60 = vpop.f32.mrb[88].mxu0  ;;  %v9565_v56 = vpop.f32.mrb[80].mxu1 }
0x22a1   :  { %v9596_v21 = vrot.slane %v9524_v60, 1  ;;  %v9598_v62 = vrot.slane %v9565_v56, 1  ;;  %v9526_v38 = vpop.f32.mrb[89].mxu0  ;;  %v9567_v48 = vpop.f32.mrb[81].mxu1 }
0x22a2   :  { %v9597_v52 = vrot.slane %v9526_v38, 1  ;;  %v9599_v30 = vrot.slane %v9567_v48, 1  ;;  %v9528_v32 = vpop.f32.mrb[90].mxu0  ;;  %v9569_v9 = vpop.f32.mrb[82].mxu1 }
0x22a3   :  { %v9604_v12 = vadd.f32 %v9596_v21, %v13846_v23  ;;  %v9606_v28 = vadd.f32 %v9598_v62, %v13871_v57  ;;  %v9529_v13 = vpop.f32.mrb[91].mxu0  ;;  %v9570_v25 = vpop.f32.mrb[83].mxu1  ;;  %v9618_v57 = vrot.slane %v9590_v29, 1 }
0x22a4   :  { %v9605_v22 = vadd.f32 %v9597_v52, %v13850_v15  ;;  %v9607_v36 = vadd.f32 %v9599_v30, %v13877_v46 }
0x22a5   :  { %v9608_v31 = vadd.f32 %v9604_v12, %v13890_v14  ;;  %v9610_v24 = vadd.f32 %v9606_v28, %v13866_v0 }
0x22a6   :  { %v9609_v37 = vadd.f32 %v9605_v22, %v13896_v39  ;;  %v9611_v23 = vadd.f32 %v9607_v36, %v13874_v4 }
0x22a7   :  { %v9628_v45 = vrot.slane %v9608_v31, 7  ;;  %v9630_v35 = vrot.slane %v9610_v24, 7 }
0x22a8   :  { %v9629_v54 = vrot.slane %v9609_v37, 7  ;;  %v9631_v61 = vrot.slane %v9611_v23, 7 }
0x22a9   :  { %v9636_v15 = vsel %vm7834_vm3, %v9616_v2, %v9628_v45  ;;  %v9638_v46 = vsel %vm7834_vm3, %v9618_v57, %v9630_v35 }
0x22aa   :  { %v10630_v50 = vmul.f32 -1.442695, %v9636_v15  ;;  %v9637_v14 = vsel %vm7834_vm3, %v9617_v17, %v9629_v54  ;;  %v9639_v0 = vsel %vm7834_vm3, %v9619_v7, %v9631_v61 }
0x22ab   :  { %v10631_v39 = vmul.f32 -1.442695, %v9637_v14  ;;  %v10632_v4 = vmul.f32 -1.442695, %v9639_v0 }
0x22ac   :  { %11977 = vpow2.f32 %v10630_v50 }
0x22ad   :  { %11979 = vpow2.f32 %v10631_v39 }
0x22ae   :  { %11981 = vpow2.f32 %v10632_v4 }
0x22af   :  { %11983 = vtanh.f32 %v9638_v46 }
0x22b6   :  { %v11978_v63 = vpop.eup %11977 }
0x22b7   :  { %v11980_v16 = vpop.eup %11979  ;;  %v9643_v26 = vadd.f32 1.0, %v11978_v63 }
0x22b8   :  { %v9649_v1 = vadd.f32 1.0, %v11980_v16  ;;  %v11982_v19 = vpop.eup %11981 }
0x22b9   :  { %11985 = vrcp.f32 %v9643_v26  ;;  %v11984_v33 = vpop.eup %11983  ;;  %v9656_v44 = vadd.f32 1.0, %v11982_v19 }
0x22ba   :  { %11987 = vrcp.f32 %v9649_v1 }
0x22bb   :  { %11989 = vrcp.f32 %v9656_v44 }
0x22c3   :  { %v11986_v27 = vpop.eup %11985 }
0x22c4   :  { %v11988_v47 = vpop.eup %11987  ;;  %v9660_v34 = vmul.f32 %v11986_v27, %v11984_v33 }
0x22c5   :  { %v9659_v51 = vmul.f32 %v11988_v47, %v13906_v53  ;;  %v11990_v55 = vpop.eup %11989 }
0x22c7   :  { %v9661_v20 = vadd.f32 %v9660_v34, %v9659_v51 }
0x22c9   :  { %11991 = vtanh.f32 %v9661_v20 }
0x22d3   :  { %v11992_v43 = vpop.eup %11991 }
0x22d4   :  { %v9663_v11 = vmul.f32 %v11992_v43, %v11990_v55 }
0x22d6   :  { %v9668_v3 = vrot.slane %v9663_v11, 1  ;;  %v9665_v8 = vrot.slane %v9663_v11, 7 }
0x22d8   :  { %v9670_v5 = vsel %vm7834_vm3, %v9668_v3, %v13909_v59  ;;  %v9667_v41 = vsel %vm7834_vm3, %v13909_v59, %v9665_v8 }
0x22d9   :  { %9774 = vmatprep.mubr.f32.mxu0 %v9670_v5 }
0x22da   :  { %9775 = vmatmul.mubr.f32.vlgmr.msra.gmra.mrb[58].mxu0 %v9667_v41 }
0x23ad   :  { %v10730_v49 = vpop.f32.mrb[58].mxu0 }
0x23ae   :  { %v10731_v58 = vpop.f32.mrb[59].mxu0 }
0x23af   :  { %v10732_v53 = vadd.f32 %v10731_v58, %v10730_v49 }
0x23b1   :  { %v9777_v6 = vadd.f32 %v10732_v53, %v10633_v40 }
0x23b3   :  { %v9781_v60 = vsel %vm9780_vm4, %v9777_v6, -inf }
0x23b4   :  { %v9782_v56 = vrot.slane %v9781_v60, 4 }
0x23b6   :  { %v9783_v21 = vmax.f32 %v9781_v60, %v9782_v56 }
0x23b8   :  { %v9784_v62 = vrot.slane %v9783_v21, 2 }
0x23ba   :  { %v9785_v38 = vmax.f32 %v9783_v21, %v9784_v62 }
0x23bc   :  { %v9786_v48 = vrot.slane %v9785_v38, 1 }
0x23be   :  { %v9787_v52 = vmax.f32 %v9785_v38, %v9786_v48 }
0x23c0   :  { %v9788_v30 = vsub.f32 %v9777_v6, %v9787_v52 }
0x23c2   :  { %v9789_v32 = vmul.f32 1.442695, %v9788_v30 }
0x23c4   :  { %11993 = vpow2.f32 %v9789_v32 }
0x23ce   :  { %v11994_v59 = vpop.eup %11993 }
0x23cf   :  { %v9791_v9 = vsel %vm9780_vm4, %v11994_v59, 0.0 }
0x23d0   :  { %v9792_v42 = vrot.slane %v9791_v9, 4 }
0x23d2   :  { %v9793_v29 = vadd.f32 %v9792_v42, %v9791_v9 }
0x23d4   :  { %v9794_v12 = vrot.slane %v9793_v29, 2 }
0x23d6   :  { %v9795_v28 = vadd.f32 %v9794_v12, %v9793_v29 }
0x23d8   :  { %v9796_v13 = vrot.slane %v9795_v28, 1 }
0x23da   :  { %v9797_v25 = vadd.f32 %v9796_v13, %v9795_v28 }
0x23dc   :  { %11995 = vrcp.f32 %v9797_v25 }
0x23e6   :  { %v11996_v18 = vpop.eup %11995 }
0x23e7   :  { %v9799_v10 = vmul.f32 %v11996_v18, %v11994_v59 }
0x23e9   :  { %9800 = vst.msk [vmem:[#allocation20] sm:$0x3] %vm9780_vm4, %v9799_v10 }
0x23ea   :  { %12250 = shalt.err (!%p12247_p8)
}
0x23eb   :  { %s12251_s2 = scalar_lea.hbm %s12523_s30, 32 }
0x23ec   :  { %p12252_p9 = scmp.ne.s32.totalorder %s12523_s30, %s12251_s2  ;;  %p12255_p10 = scmp.lt.u32.totalorder %s12251_s2, %s12523_s30 }
0x23ee   :  { %p12257_p11 = pnand %p12255_p10, %p12252_p9 }
0x23f0   :  { %12260 = shalt.err (!%p12257_p11)
}
0x23f1   :  { %9810 = dma.vmem_to_hbm [thread:$0]  %s9808_s3, 32, %s12523_s30, [#allocation4]  }
0x23f2   :  { %12273 = dma.done.wait [#allocation4], 32  }
0x23f3   :  { %12274 = vsyncadd [#allocation4], 4294967264 }
0x23f4   :  { %9814 = vsyncpa [#allocation3], 1 }
0x23f5   :  { %9815 = vsyncpa [#allocation6], 1 }
0x23f6   :  { %9816 = vsyncpa [#allocation9], 1 }
0x23f7   :  { %9817 = vsyncpa [#allocation12], 1 }
0x23f8   :  { %9818 = vsyncpa [#allocation15], 1 }
0x23f9   :  { %9819 = vsyncpa [#allocation18], 1 }
0x23fa   :  { %9820 = vsyncpa [#allocation4], 1 }

</bundles_post_ra>
